<compile_context>
chip_gen: v7x
topology: tpu7x:2x2x1
jax: 0.10.0
libtpu: 0.0.40
codegen_flags: <defaults>
</compile_context>

<pallas_src>
import functools

import jax
import jax.numpy as jnp
import numpy as np
from jax import lax
from jax.experimental import pallas as pl
from jax.experimental.pallas import tpu as pltpu


def _mask2weights_kernel(x_ref, w1_ref, b1_ref, w2_ref, b2_ref,
                         w3_ref, b3_ref, w4_ref, b4_ref,
                         out_ref, *, Kw, H, W):
    Bc, N = x_ref.shape                     # N = H * W on the lane axis
    x0 = x_ref[...].astype(jnp.float32)

    # ---- 4 base SAME-padding edge masks (only these stay live) -------------
    p = lax.broadcasted_iota(jnp.int32, (Bc, N), 1)        # flattened index
    if W & (W - 1) == 0:                                   # power-of-two fast path
        col = jnp.bitwise_and(p, W - 1)
    else:
        col = p % W
    row_first = p < W
    row_last = p >= (H - 1) * W
    col_first = col == 0
    col_last = col == (W - 1)

    def mask_halo(win, oy, ox):
        # Zero positions whose 3x3 tap fell off the image.  Diagonal taps use
        # two selects built from the base masks on the fly instead of a
        # precomputed OR'd mask (keeps vreg liveness low at Bc=16).
        if oy == -1:
            win = jnp.where(row_first, 0.0, win)
        elif oy == 1:
            win = jnp.where(row_last, 0.0, win)
        if ox == -1:
            win = jnp.where(col_first, 0.0, win)
        elif ox == 1:
            win = jnp.where(col_last, 0.0, win)
        return win

    def conv3x3(x_chs, w_ref, b_ref, cin, cout, relu):
        # flat HWIO weight index: ((ky*3 + kx)*cin + ci)*cout + co
        accs = [jnp.full((Bc, N), b_ref[co], dtype=jnp.float32)
                for co in range(cout)]
        for ci in range(cin):
            for ky in range(3):
                for kx in range(3):
                    oy, ox = ky - 1, kx - 1
                    off = oy * W + ox
                    if off == 0:
                        win = x_chs[ci]
                    else:
                        # win[p] = x[p + off]  (static lane rotation, XLU slot)
                        win = pltpu.roll(x_chs[ci], shift=(-off) % N, axis=1)
                        win = mask_halo(win, oy, ox)
                    k = ky * 3 + kx
                    for co in range(cout):
                        wv = w_ref[(k * cin + ci) * cout + co]   # SMEM scalar
                        accs[co] = accs[co] + win * wv
        if relu:
            accs = [jnp.maximum(a, 0.0) for a in accs]
        return accs

    h = conv3x3([x0], w1_ref, b1_ref, 1, Kw, relu=True)
    h = conv3x3(h, w2_ref, b2_ref, Kw, 2 * Kw, relu=True)
    h = conv3x3(h, w3_ref, b3_ref, 2 * Kw, 2 * Kw, relu=True)
    h = conv3x3(h, w4_ref, b4_ref, 2 * Kw, Kw, relu=False)

    # ---- softmax over the channel dim (dim=-3 in NCHW) ----------------------
    if Kw == 2:
        # sigmoid identity: softmax([h0,h1])[0] = 1/(1+exp(h1-h0))
        e = jnp.exp(h[1] - h[0])                        # single EUP exp
        p0 = 1.0 / (1.0 + e)                            # exact reciprocal
        out_ref[:, 0:N] = p0.astype(out_ref.dtype)
        out_ref[:, N:2 * N] = (1.0 - p0).astype(out_ref.dtype)
    else:
        m = h[0]
        for c in range(1, Kw):
            m = jnp.maximum(m, h[c])
        es = [jnp.exp(h[c] - m) for c in range(Kw)]
        denom = es[0]
        for c in range(1, Kw):
            denom = denom + es[c]
        inv = 1.0 / denom                               # exact division
        for c in range(Kw):
            out_ref[:, c * N:(c + 1) * N] = (es[c] * inv).astype(out_ref.dtype)


def _choose_chunking(B):
    """Pick (Bc, B_pad): largest non-spilling chunk with >= 2 grid steps."""
    # Bc=16 only when the batch amortizes it (>=2 full 16-row steps);
    # otherwise Bc=8.  Always pad to >= 2 steps so the 'parallel' axis can
    # shard across both TensorCores on v7x (harmless extra step on v5e/v6e).
    Bc = 16 if B >= 32 else 8
    B_pad = max(2 * Bc, pl.cdiv(B, Bc) * Bc)
    return Bc, B_pad


def mask2weights_en_pallas(x, flat_params, Kw=2):
    """x: (B, 1, H, W) float32, NCHW. Returns (B, Kw, H, W) float32."""
    B, C, H, W = x.shape
    assert C == 1
    N = H * W
    assert N % 128 == 0, "H*W must be a multiple of 128 for the lane-dense layout"
    # TODO(synk): lane-pad N and re-derive border masks for H*W % 128 != 0.
    w1, b1, w2, b2, w3, b3, w4, b4 = flat_params

    # Lane-dense layout: flatten spatial dims onto lanes; pad batch so every
    # load/store is (8,128)-aligned and the grid has >= 2 parallel steps.
    Bc, B_pad = _choose_chunking(B)
    x_flat = x.reshape(B, N)
    if B_pad != B:
        x_flat = jnp.pad(x_flat, ((0, B_pad - B), (0, 0)))

    kern = functools.partial(_mask2weights_kernel, Kw=Kw, H=H, W=W)
    smem_spec = pl.BlockSpec(memory_space=pltpu.MemorySpace.SMEM)

    out_flat = pl.pallas_call(
        kern,
        out_shape=jax.ShapeDtypeStruct((B_pad, Kw * N), jnp.float32),
        grid=(B_pad // Bc,),
        in_specs=[
            pl.BlockSpec((Bc, N), lambda g: (g, 0)),
            smem_spec, smem_spec,   # conv1 w, b
            smem_spec, smem_spec,   # conv2 w, b
            smem_spec, smem_spec,   # conv3 w, b
            smem_spec, smem_spec,   # conv4 w, b
        ],
        out_specs=pl.BlockSpec((Bc, Kw * N), lambda g: (g, 0)),
        compiler_params=pltpu.CompilerParams(
            # >= 2 steps guaranteed by _choose_chunking, so this shards across
            # the two TensorCores on v7x; no-op on single-TC v5e/v6e.
            dimension_semantics=("parallel",)),
    )(x_flat, w1, b1, w2, b2, w3, b3, w4, b4)

    return out_flat[:B].reshape(B, Kw, H, W)


# ---------------- pure-JAX reference (for correctness check) ----------------

def _conv_same_ref(x, w_hwio, b):
    y = lax.conv_general_dilated(
        x, w_hwio, window_strides=(1, 1), padding="SAME",
        dimension_numbers=("NCHW", "HWIO", "NCHW"))
    return y + b[None, :, None, None]


def mask2weights_en_ref(x, structured_params):
    (w1, b1), (w2, b2), (w3, b3), (w4, b4) = structured_params
    h = jnp.maximum(_conv_same_ref(x, w1, b1), 0.0)
    h = jnp.maximum(_conv_same_ref(h, w2, b2), 0.0)
    h = jnp.maximum(_conv_same_ref(h, w3, b3), 0.0)
    h = _conv_same_ref(h, w4, b4)
    return jax.nn.softmax(h, axis=1)   # dim=-3 of NCHW


# ---------------------------------- main ------------------------------------

if __name__ == "__main__":
    Kw = 2
    B, H, W = 2, 16, 16

    key = jax.random.PRNGKey(0)
    keys = jax.random.split(key, 9)

    # deterministic synthetic parameters, HWIO weight layout (3, 3, Cin, Cout)
    def mk_w(k, cin, cout):
        return (0.3 * jax.random.normal(k, (3, 3, cin, cout))).astype(jnp.float32)

    def mk_b(k, cout):
        return (0.1 * jax.random.normal(k, (cout,))).astype(jnp.float32)

    w1, b1 = mk_w(keys[0], 1, Kw),          mk_b(keys[1], Kw)
    w2, b2 = mk_w(keys[2], Kw, 2 * Kw),     mk_b(keys[3], 2 * Kw)
    w3, b3 = mk_w(keys[4], 2 * Kw, 2 * Kw), mk_b(keys[5], 2 * Kw)
    w4, b4 = mk_w(keys[6], 2 * Kw, Kw),     mk_b(keys[7], Kw)

    x = jax.random.normal(keys[8], (B, 1, H, W), dtype=jnp.float32)

    flat_params = (w1.reshape(-1), b1, w2.reshape(-1), b2,
                   w3.reshape(-1), b3, w4.reshape(-1), b4)
    structured_params = ((w1, b1), (w2, b2), (w3, b3), (w4, b4))

    out = mask2weights_en_pallas(x, flat_params, Kw=Kw)
    out = jax.block_until_ready(out)

    ref = jax.block_until_ready(mask2weights_en_ref(x, structured_params))
    np.testing.assert_allclose(np.asarray(out), np.asarray(ref),
                               rtol=1e-4, atol=1e-5)

    print("KERNEL_OK")
</pallas_src>

<mosaic_0001>
module attributes {stable_mosaic.version = 11 : i64} {
  func.func @_mask2weights_kernel(%arg0: i32, %arg1: memref<8x256xf32, #tpu.memory_space<vmem>>, %arg2: memref<18xf32, #tpu.memory_space<smem>>, %arg3: memref<2xf32, #tpu.memory_space<smem>>, %arg4: memref<72xf32, #tpu.memory_space<smem>>, %arg5: memref<4xf32, #tpu.memory_space<smem>>, %arg6: memref<144xf32, #tpu.memory_space<smem>>, %arg7: memref<4xf32, #tpu.memory_space<smem>>, %arg8: memref<72xf32, #tpu.memory_space<smem>>, %arg9: memref<2xf32, #tpu.memory_space<smem>>, %arg10: memref<8x512xf32, #tpu.memory_space<vmem>>) attributes {dimension_semantics = [#tpu.dimension_semantics<parallel>], iteration_bounds = array<i64: 2>, scalar_prefetch = 0 : i64, scratch_operands = 0 : i64, tpu.core_type = #tpu.core_type<tc>, window_params = [{transform_indices = @transform_0, window_bounds = array<i64: 8, 256>}, {transform_indices = @transform_1, window_bounds = array<i64: 18>}, {transform_indices = @transform_2, window_bounds = array<i64: 2>}, {transform_indices = @transform_3, window_bounds = array<i64: 72>}, {transform_indices = @transform_4, window_bounds = array<i64: 4>}, {transform_indices = @transform_5, window_bounds = array<i64: 144>}, {transform_indices = @transform_6, window_bounds = array<i64: 4>}, {transform_indices = @transform_7, window_bounds = array<i64: 72>}, {transform_indices = @transform_8, window_bounds = array<i64: 2>}, {transform_indices = @transform_9, window_bounds = array<i64: 8, 512>}]} {
    %c0 = arith.constant 0 : index
    %c0_0 = arith.constant 0 : index
    %0 = vector.load %arg1[%c0, %c0_0] : memref<8x256xf32, #tpu.memory_space<vmem>>, vector<8x256xf32>
    %1 = tpu.iota {dimensions = array<i32: 1>} : vector<8x256xi32>
    %c15_i32 = arith.constant 15 : i32
    %2 = vector.broadcast %c15_i32 : i32 to vector<8x256xi32>
    %3 = arith.andi %1, %2 : vector<8x256xi32>
    %c16_i32 = arith.constant 16 : i32
    %4 = vector.broadcast %c16_i32 : i32 to vector<8x256xi32>
    %5 = arith.cmpi slt, %1, %4 : vector<8x256xi32>
    %c240_i32 = arith.constant 240 : i32
    %6 = vector.broadcast %c240_i32 : i32 to vector<8x256xi32>
    %7 = arith.cmpi sge, %1, %6 : vector<8x256xi32>
    %c0_i32 = arith.constant 0 : i32
    %8 = vector.broadcast %c0_i32 : i32 to vector<8x256xi32>
    %9 = arith.cmpi eq, %3, %8 : vector<8x256xi32>
    %c15_i32_1 = arith.constant 15 : i32
    %10 = vector.broadcast %c15_i32_1 : i32 to vector<8x256xi32>
    %11 = arith.cmpi eq, %3, %10 : vector<8x256xi32>
    %c0_2 = arith.constant 0 : index
    %12 = memref.load %arg3[%c0_2] : memref<2xf32, #tpu.memory_space<smem>>
    %13 = vector.broadcast %12 : f32 to vector<8x256xf32>
    %c1 = arith.constant 1 : index
    %14 = memref.load %arg3[%c1] : memref<2xf32, #tpu.memory_space<smem>>
    %15 = vector.broadcast %14 : f32 to vector<8x256xf32>
    %c17_i32 = arith.constant 17 : i32
    %16 = tpu.dynamic_rotate %0 by %c17_i32 dim 1 : vector<8x256xf32>, i32 -> vector<8x256xf32>
    %cst = arith.constant 0.000000e+00 : f32
    %17 = vector.broadcast %cst : f32 to vector<8x256xf32>
    %18 = arith.select %5, %17, %16 : vector<8x256xi1>, vector<8x256xf32>
    %cst_3 = arith.constant 0.000000e+00 : f32
    %19 = vector.broadcast %cst_3 : f32 to vector<8x256xf32>
    %20 = arith.select %9, %19, %18 : vector<8x256xi1>, vector<8x256xf32>
    %c0_4 = arith.constant 0 : index
    %21 = memref.load %arg2[%c0_4] : memref<18xf32, #tpu.memory_space<smem>>
    %22 = vector.broadcast %21 : f32 to vector<8x256xf32>
    %23 = arith.mulf %20, %22 : vector<8x256xf32>
    %24 = arith.addf %13, %23 : vector<8x256xf32>
    %c1_5 = arith.constant 1 : index
    %25 = memref.load %arg2[%c1_5] : memref<18xf32, #tpu.memory_space<smem>>
    %26 = vector.broadcast %25 : f32 to vector<8x256xf32>
    %27 = arith.mulf %20, %26 : vector<8x256xf32>
    %28 = arith.addf %15, %27 : vector<8x256xf32>
    %c16_i32_6 = arith.constant 16 : i32
    %29 = tpu.dynamic_rotate %0 by %c16_i32_6 dim 1 : vector<8x256xf32>, i32 -> vector<8x256xf32>
    %cst_7 = arith.constant 0.000000e+00 : f32
    %30 = vector.broadcast %cst_7 : f32 to vector<8x256xf32>
    %31 = arith.select %5, %30, %29 : vector<8x256xi1>, vector<8x256xf32>
    %c2 = arith.constant 2 : index
    %32 = memref.load %arg2[%c2] : memref<18xf32, #tpu.memory_space<smem>>
    %33 = vector.broadcast %32 : f32 to vector<8x256xf32>
    %34 = arith.mulf %31, %33 : vector<8x256xf32>
    %35 = arith.addf %24, %34 : vector<8x256xf32>
    %c3 = arith.constant 3 : index
    %36 = memref.load %arg2[%c3] : memref<18xf32, #tpu.memory_space<smem>>
    %37 = vector.broadcast %36 : f32 to vector<8x256xf32>
    %38 = arith.mulf %31, %37 : vector<8x256xf32>
    %39 = arith.addf %28, %38 : vector<8x256xf32>
    %c15_i32_8 = arith.constant 15 : i32
    %40 = tpu.dynamic_rotate %0 by %c15_i32_8 dim 1 : vector<8x256xf32>, i32 -> vector<8x256xf32>
    %cst_9 = arith.constant 0.000000e+00 : f32
    %41 = vector.broadcast %cst_9 : f32 to vector<8x256xf32>
    %42 = arith.select %5, %41, %40 : vector<8x256xi1>, vector<8x256xf32>
    %cst_10 = arith.constant 0.000000e+00 : f32
    %43 = vector.broadcast %cst_10 : f32 to vector<8x256xf32>
    %44 = arith.select %11, %43, %42 : vector<8x256xi1>, vector<8x256xf32>
    %c4 = arith.constant 4 : index
    %45 = memref.load %arg2[%c4] : memref<18xf32, #tpu.memory_space<smem>>
    %46 = vector.broadcast %45 : f32 to vector<8x256xf32>
    %47 = arith.mulf %44, %46 : vector<8x256xf32>
    %48 = arith.addf %35, %47 : vector<8x256xf32>
    %c5 = arith.constant 5 : index
    %49 = memref.load %arg2[%c5] : memref<18xf32, #tpu.memory_space<smem>>
    %50 = vector.broadcast %49 : f32 to vector<8x256xf32>
    %51 = arith.mulf %44, %50 : vector<8x256xf32>
    %52 = arith.addf %39, %51 : vector<8x256xf32>
    %c1_i32 = arith.constant 1 : i32
    %53 = tpu.dynamic_rotate %0 by %c1_i32 dim 1 : vector<8x256xf32>, i32 -> vector<8x256xf32>
    %cst_11 = arith.constant 0.000000e+00 : f32
    %54 = vector.broadcast %cst_11 : f32 to vector<8x256xf32>
    %55 = arith.select %9, %54, %53 : vector<8x256xi1>, vector<8x256xf32>
    %c6 = arith.constant 6 : index
    %56 = memref.load %arg2[%c6] : memref<18xf32, #tpu.memory_space<smem>>
    %57 = vector.broadcast %56 : f32 to vector<8x256xf32>
    %58 = arith.mulf %55, %57 : vector<8x256xf32>
    %59 = arith.addf %48, %58 : vector<8x256xf32>
    %c7 = arith.constant 7 : index
    %60 = memref.load %arg2[%c7] : memref<18xf32, #tpu.memory_space<smem>>
    %61 = vector.broadcast %60 : f32 to vector<8x256xf32>
    %62 = arith.mulf %55, %61 : vector<8x256xf32>
    %63 = arith.addf %52, %62 : vector<8x256xf32>
    %c8 = arith.constant 8 : index
    %64 = memref.load %arg2[%c8] : memref<18xf32, #tpu.memory_space<smem>>
    %65 = vector.broadcast %64 : f32 to vector<8x256xf32>
    %66 = arith.mulf %0, %65 : vector<8x256xf32>
    %67 = arith.addf %59, %66 : vector<8x256xf32>
    %c9 = arith.constant 9 : index
    %68 = memref.load %arg2[%c9] : memref<18xf32, #tpu.memory_space<smem>>
    %69 = vector.broadcast %68 : f32 to vector<8x256xf32>
    %70 = arith.mulf %0, %69 : vector<8x256xf32>
    %71 = arith.addf %63, %70 : vector<8x256xf32>
    %c255_i32 = arith.constant 255 : i32
    %72 = tpu.dynamic_rotate %0 by %c255_i32 dim 1 : vector<8x256xf32>, i32 -> vector<8x256xf32>
    %cst_12 = arith.constant 0.000000e+00 : f32
    %73 = vector.broadcast %cst_12 : f32 to vector<8x256xf32>
    %74 = arith.select %11, %73, %72 : vector<8x256xi1>, vector<8x256xf32>
    %c10 = arith.constant 10 : index
    %75 = memref.load %arg2[%c10] : memref<18xf32, #tpu.memory_space<smem>>
    %76 = vector.broadcast %75 : f32 to vector<8x256xf32>
    %77 = arith.mulf %74, %76 : vector<8x256xf32>
    %78 = arith.addf %67, %77 : vector<8x256xf32>
    %c11 = arith.constant 11 : index
    %79 = memref.load %arg2[%c11] : memref<18xf32, #tpu.memory_space<smem>>
    %80 = vector.broadcast %79 : f32 to vector<8x256xf32>
    %81 = arith.mulf %74, %80 : vector<8x256xf32>
    %82 = arith.addf %71, %81 : vector<8x256xf32>
    %c241_i32 = arith.constant 241 : i32
    %83 = tpu.dynamic_rotate %0 by %c241_i32 dim 1 : vector<8x256xf32>, i32 -> vector<8x256xf32>
    %cst_13 = arith.constant 0.000000e+00 : f32
    %84 = vector.broadcast %cst_13 : f32 to vector<8x256xf32>
    %85 = arith.select %7, %84, %83 : vector<8x256xi1>, vector<8x256xf32>
    %cst_14 = arith.constant 0.000000e+00 : f32
    %86 = vector.broadcast %cst_14 : f32 to vector<8x256xf32>
    %87 = arith.select %9, %86, %85 : vector<8x256xi1>, vector<8x256xf32>
    %c12 = arith.constant 12 : index
    %88 = memref.load %arg2[%c12] : memref<18xf32, #tpu.memory_space<smem>>
    %89 = vector.broadcast %88 : f32 to vector<8x256xf32>
    %90 = arith.mulf %87, %89 : vector<8x256xf32>
    %91 = arith.addf %78, %90 : vector<8x256xf32>
    %c13 = arith.constant 13 : index
    %92 = memref.load %arg2[%c13] : memref<18xf32, #tpu.memory_space<smem>>
    %93 = vector.broadcast %92 : f32 to vector<8x256xf32>
    %94 = arith.mulf %87, %93 : vector<8x256xf32>
    %95 = arith.addf %82, %94 : vector<8x256xf32>
    %c240_i32_15 = arith.constant 240 : i32
    %96 = tpu.dynamic_rotate %0 by %c240_i32_15 dim 1 : vector<8x256xf32>, i32 -> vector<8x256xf32>
    %cst_16 = arith.constant 0.000000e+00 : f32
    %97 = vector.broadcast %cst_16 : f32 to vector<8x256xf32>
    %98 = arith.select %7, %97, %96 : vector<8x256xi1>, vector<8x256xf32>
    %c14 = arith.constant 14 : index
    %99 = memref.load %arg2[%c14] : memref<18xf32, #tpu.memory_space<smem>>
    %100 = vector.broadcast %99 : f32 to vector<8x256xf32>
    %101 = arith.mulf %98, %100 : vector<8x256xf32>
    %102 = arith.addf %91, %101 : vector<8x256xf32>
    %c15 = arith.constant 15 : index
    %103 = memref.load %arg2[%c15] : memref<18xf32, #tpu.memory_space<smem>>
    %104 = vector.broadcast %103 : f32 to vector<8x256xf32>
    %105 = arith.mulf %98, %104 : vector<8x256xf32>
    %106 = arith.addf %95, %105 : vector<8x256xf32>
    %c239_i32 = arith.constant 239 : i32
    %107 = tpu.dynamic_rotate %0 by %c239_i32 dim 1 : vector<8x256xf32>, i32 -> vector<8x256xf32>
    %cst_17 = arith.constant 0.000000e+00 : f32
    %108 = vector.broadcast %cst_17 : f32 to vector<8x256xf32>
    %109 = arith.select %7, %108, %107 : vector<8x256xi1>, vector<8x256xf32>
    %cst_18 = arith.constant 0.000000e+00 : f32
    %110 = vector.broadcast %cst_18 : f32 to vector<8x256xf32>
    %111 = arith.select %11, %110, %109 : vector<8x256xi1>, vector<8x256xf32>
    %c16 = arith.constant 16 : index
    %112 = memref.load %arg2[%c16] : memref<18xf32, #tpu.memory_space<smem>>
    %113 = vector.broadcast %112 : f32 to vector<8x256xf32>
    %114 = arith.mulf %111, %113 : vector<8x256xf32>
    %115 = arith.addf %102, %114 : vector<8x256xf32>
    %c17 = arith.constant 17 : index
    %116 = memref.load %arg2[%c17] : memref<18xf32, #tpu.memory_space<smem>>
    %117 = vector.broadcast %116 : f32 to vector<8x256xf32>
    %118 = arith.mulf %111, %117 : vector<8x256xf32>
    %119 = arith.addf %106, %118 : vector<8x256xf32>
    %cst_19 = arith.constant 0.000000e+00 : f32
    %120 = vector.broadcast %cst_19 : f32 to vector<8x256xf32>
    %121 = arith.maximumf %115, %120 : vector<8x256xf32>
    %cst_20 = arith.constant 0.000000e+00 : f32
    %122 = vector.broadcast %cst_20 : f32 to vector<8x256xf32>
    %123 = arith.maximumf %119, %122 : vector<8x256xf32>
    %c0_21 = arith.constant 0 : index
    %124 = memref.load %arg5[%c0_21] : memref<4xf32, #tpu.memory_space<smem>>
    %125 = vector.broadcast %124 : f32 to vector<8x256xf32>
    %c1_22 = arith.constant 1 : index
    %126 = memref.load %arg5[%c1_22] : memref<4xf32, #tpu.memory_space<smem>>
    %127 = vector.broadcast %126 : f32 to vector<8x256xf32>
    %c2_23 = arith.constant 2 : index
    %128 = memref.load %arg5[%c2_23] : memref<4xf32, #tpu.memory_space<smem>>
    %129 = vector.broadcast %128 : f32 to vector<8x256xf32>
    %c3_24 = arith.constant 3 : index
    %130 = memref.load %arg5[%c3_24] : memref<4xf32, #tpu.memory_space<smem>>
    %131 = vector.broadcast %130 : f32 to vector<8x256xf32>
    %c17_i32_25 = arith.constant 17 : i32
    %132 = tpu.dynamic_rotate %121 by %c17_i32_25 dim 1 : vector<8x256xf32>, i32 -> vector<8x256xf32>
    %cst_26 = arith.constant 0.000000e+00 : f32
    %133 = vector.broadcast %cst_26 : f32 to vector<8x256xf32>
    %134 = arith.select %5, %133, %132 : vector<8x256xi1>, vector<8x256xf32>
    %cst_27 = arith.constant 0.000000e+00 : f32
    %135 = vector.broadcast %cst_27 : f32 to vector<8x256xf32>
    %136 = arith.select %9, %135, %134 : vector<8x256xi1>, vector<8x256xf32>
    %c0_28 = arith.constant 0 : index
    %137 = memref.load %arg4[%c0_28] : memref<72xf32, #tpu.memory_space<smem>>
    %138 = vector.broadcast %137 : f32 to vector<8x256xf32>
    %139 = arith.mulf %136, %138 : vector<8x256xf32>
    %140 = arith.addf %125, %139 : vector<8x256xf32>
    %c1_29 = arith.constant 1 : index
    %141 = memref.load %arg4[%c1_29] : memref<72xf32, #tpu.memory_space<smem>>
    %142 = vector.broadcast %141 : f32 to vector<8x256xf32>
    %143 = arith.mulf %136, %142 : vector<8x256xf32>
    %144 = arith.addf %127, %143 : vector<8x256xf32>
    %c2_30 = arith.constant 2 : index
    %145 = memref.load %arg4[%c2_30] : memref<72xf32, #tpu.memory_space<smem>>
    %146 = vector.broadcast %145 : f32 to vector<8x256xf32>
    %147 = arith.mulf %136, %146 : vector<8x256xf32>
    %148 = arith.addf %129, %147 : vector<8x256xf32>
    %c3_31 = arith.constant 3 : index
    %149 = memref.load %arg4[%c3_31] : memref<72xf32, #tpu.memory_space<smem>>
    %150 = vector.broadcast %149 : f32 to vector<8x256xf32>
    %151 = arith.mulf %136, %150 : vector<8x256xf32>
    %152 = arith.addf %131, %151 : vector<8x256xf32>
    %c16_i32_32 = arith.constant 16 : i32
    %153 = tpu.dynamic_rotate %121 by %c16_i32_32 dim 1 : vector<8x256xf32>, i32 -> vector<8x256xf32>
    %cst_33 = arith.constant 0.000000e+00 : f32
    %154 = vector.broadcast %cst_33 : f32 to vector<8x256xf32>
    %155 = arith.select %5, %154, %153 : vector<8x256xi1>, vector<8x256xf32>
    %c8_34 = arith.constant 8 : index
    %156 = memref.load %arg4[%c8_34] : memref<72xf32, #tpu.memory_space<smem>>
    %157 = vector.broadcast %156 : f32 to vector<8x256xf32>
    %158 = arith.mulf %155, %157 : vector<8x256xf32>
    %159 = arith.addf %140, %158 : vector<8x256xf32>
    %c9_35 = arith.constant 9 : index
    %160 = memref.load %arg4[%c9_35] : memref<72xf32, #tpu.memory_space<smem>>
    %161 = vector.broadcast %160 : f32 to vector<8x256xf32>
    %162 = arith.mulf %155, %161 : vector<8x256xf32>
    %163 = arith.addf %144, %162 : vector<8x256xf32>
    %c10_36 = arith.constant 10 : index
    %164 = memref.load %arg4[%c10_36] : memref<72xf32, #tpu.memory_space<smem>>
    %165 = vector.broadcast %164 : f32 to vector<8x256xf32>
    %166 = arith.mulf %155, %165 : vector<8x256xf32>
    %167 = arith.addf %148, %166 : vector<8x256xf32>
    %c11_37 = arith.constant 11 : index
    %168 = memref.load %arg4[%c11_37] : memref<72xf32, #tpu.memory_space<smem>>
    %169 = vector.broadcast %168 : f32 to vector<8x256xf32>
    %170 = arith.mulf %155, %169 : vector<8x256xf32>
    %171 = arith.addf %152, %170 : vector<8x256xf32>
    %c15_i32_38 = arith.constant 15 : i32
    %172 = tpu.dynamic_rotate %121 by %c15_i32_38 dim 1 : vector<8x256xf32>, i32 -> vector<8x256xf32>
    %cst_39 = arith.constant 0.000000e+00 : f32
    %173 = vector.broadcast %cst_39 : f32 to vector<8x256xf32>
    %174 = arith.select %5, %173, %172 : vector<8x256xi1>, vector<8x256xf32>
    %cst_40 = arith.constant 0.000000e+00 : f32
    %175 = vector.broadcast %cst_40 : f32 to vector<8x256xf32>
    %176 = arith.select %11, %175, %174 : vector<8x256xi1>, vector<8x256xf32>
    %c16_41 = arith.constant 16 : index
    %177 = memref.load %arg4[%c16_41] : memref<72xf32, #tpu.memory_space<smem>>
    %178 = vector.broadcast %177 : f32 to vector<8x256xf32>
    %179 = arith.mulf %176, %178 : vector<8x256xf32>
    %180 = arith.addf %159, %179 : vector<8x256xf32>
    %c17_42 = arith.constant 17 : index
    %181 = memref.load %arg4[%c17_42] : memref<72xf32, #tpu.memory_space<smem>>
    %182 = vector.broadcast %181 : f32 to vector<8x256xf32>
    %183 = arith.mulf %176, %182 : vector<8x256xf32>
    %184 = arith.addf %163, %183 : vector<8x256xf32>
    %c18 = arith.constant 18 : index
    %185 = memref.load %arg4[%c18] : memref<72xf32, #tpu.memory_space<smem>>
    %186 = vector.broadcast %185 : f32 to vector<8x256xf32>
    %187 = arith.mulf %176, %186 : vector<8x256xf32>
    %188 = arith.addf %167, %187 : vector<8x256xf32>
    %c19 = arith.constant 19 : index
    %189 = memref.load %arg4[%c19] : memref<72xf32, #tpu.memory_space<smem>>
    %190 = vector.broadcast %189 : f32 to vector<8x256xf32>
    %191 = arith.mulf %176, %190 : vector<8x256xf32>
    %192 = arith.addf %171, %191 : vector<8x256xf32>
    %c1_i32_43 = arith.constant 1 : i32
    %193 = tpu.dynamic_rotate %121 by %c1_i32_43 dim 1 : vector<8x256xf32>, i32 -> vector<8x256xf32>
    %cst_44 = arith.constant 0.000000e+00 : f32
    %194 = vector.broadcast %cst_44 : f32 to vector<8x256xf32>
    %195 = arith.select %9, %194, %193 : vector<8x256xi1>, vector<8x256xf32>
    %c24 = arith.constant 24 : index
    %196 = memref.load %arg4[%c24] : memref<72xf32, #tpu.memory_space<smem>>
    %197 = vector.broadcast %196 : f32 to vector<8x256xf32>
    %198 = arith.mulf %195, %197 : vector<8x256xf32>
    %199 = arith.addf %180, %198 : vector<8x256xf32>
    %c25 = arith.constant 25 : index
    %200 = memref.load %arg4[%c25] : memref<72xf32, #tpu.memory_space<smem>>
    %201 = vector.broadcast %200 : f32 to vector<8x256xf32>
    %202 = arith.mulf %195, %201 : vector<8x256xf32>
    %203 = arith.addf %184, %202 : vector<8x256xf32>
    %c26 = arith.constant 26 : index
    %204 = memref.load %arg4[%c26] : memref<72xf32, #tpu.memory_space<smem>>
    %205 = vector.broadcast %204 : f32 to vector<8x256xf32>
    %206 = arith.mulf %195, %205 : vector<8x256xf32>
    %207 = arith.addf %188, %206 : vector<8x256xf32>
    %c27 = arith.constant 27 : index
    %208 = memref.load %arg4[%c27] : memref<72xf32, #tpu.memory_space<smem>>
    %209 = vector.broadcast %208 : f32 to vector<8x256xf32>
    %210 = arith.mulf %195, %209 : vector<8x256xf32>
    %211 = arith.addf %192, %210 : vector<8x256xf32>
    %c32 = arith.constant 32 : index
    %212 = memref.load %arg4[%c32] : memref<72xf32, #tpu.memory_space<smem>>
    %213 = vector.broadcast %212 : f32 to vector<8x256xf32>
    %214 = arith.mulf %121, %213 : vector<8x256xf32>
    %215 = arith.addf %199, %214 : vector<8x256xf32>
    %c33 = arith.constant 33 : index
    %216 = memref.load %arg4[%c33] : memref<72xf32, #tpu.memory_space<smem>>
    %217 = vector.broadcast %216 : f32 to vector<8x256xf32>
    %218 = arith.mulf %121, %217 : vector<8x256xf32>
    %219 = arith.addf %203, %218 : vector<8x256xf32>
    %c34 = arith.constant 34 : index
    %220 = memref.load %arg4[%c34] : memref<72xf32, #tpu.memory_space<smem>>
    %221 = vector.broadcast %220 : f32 to vector<8x256xf32>
    %222 = arith.mulf %121, %221 : vector<8x256xf32>
    %223 = arith.addf %207, %222 : vector<8x256xf32>
    %c35 = arith.constant 35 : index
    %224 = memref.load %arg4[%c35] : memref<72xf32, #tpu.memory_space<smem>>
    %225 = vector.broadcast %224 : f32 to vector<8x256xf32>
    %226 = arith.mulf %121, %225 : vector<8x256xf32>
    %227 = arith.addf %211, %226 : vector<8x256xf32>
    %c255_i32_45 = arith.constant 255 : i32
    %228 = tpu.dynamic_rotate %121 by %c255_i32_45 dim 1 : vector<8x256xf32>, i32 -> vector<8x256xf32>
    %cst_46 = arith.constant 0.000000e+00 : f32
    %229 = vector.broadcast %cst_46 : f32 to vector<8x256xf32>
    %230 = arith.select %11, %229, %228 : vector<8x256xi1>, vector<8x256xf32>
    %c40 = arith.constant 40 : index
    %231 = memref.load %arg4[%c40] : memref<72xf32, #tpu.memory_space<smem>>
    %232 = vector.broadcast %231 : f32 to vector<8x256xf32>
    %233 = arith.mulf %230, %232 : vector<8x256xf32>
    %234 = arith.addf %215, %233 : vector<8x256xf32>
    %c41 = arith.constant 41 : index
    %235 = memref.load %arg4[%c41] : memref<72xf32, #tpu.memory_space<smem>>
    %236 = vector.broadcast %235 : f32 to vector<8x256xf32>
    %237 = arith.mulf %230, %236 : vector<8x256xf32>
    %238 = arith.addf %219, %237 : vector<8x256xf32>
    %c42 = arith.constant 42 : index
    %239 = memref.load %arg4[%c42] : memref<72xf32, #tpu.memory_space<smem>>
    %240 = vector.broadcast %239 : f32 to vector<8x256xf32>
    %241 = arith.mulf %230, %240 : vector<8x256xf32>
    %242 = arith.addf %223, %241 : vector<8x256xf32>
    %c43 = arith.constant 43 : index
    %243 = memref.load %arg4[%c43] : memref<72xf32, #tpu.memory_space<smem>>
    %244 = vector.broadcast %243 : f32 to vector<8x256xf32>
    %245 = arith.mulf %230, %244 : vector<8x256xf32>
    %246 = arith.addf %227, %245 : vector<8x256xf32>
    %c241_i32_47 = arith.constant 241 : i32
    %247 = tpu.dynamic_rotate %121 by %c241_i32_47 dim 1 : vector<8x256xf32>, i32 -> vector<8x256xf32>
    %cst_48 = arith.constant 0.000000e+00 : f32
    %248 = vector.broadcast %cst_48 : f32 to vector<8x256xf32>
    %249 = arith.select %7, %248, %247 : vector<8x256xi1>, vector<8x256xf32>
    %cst_49 = arith.constant 0.000000e+00 : f32
    %250 = vector.broadcast %cst_49 : f32 to vector<8x256xf32>
    %251 = arith.select %9, %250, %249 : vector<8x256xi1>, vector<8x256xf32>
    %c48 = arith.constant 48 : index
    %252 = memref.load %arg4[%c48] : memref<72xf32, #tpu.memory_space<smem>>
    %253 = vector.broadcast %252 : f32 to vector<8x256xf32>
    %254 = arith.mulf %251, %253 : vector<8x256xf32>
    %255 = arith.addf %234, %254 : vector<8x256xf32>
    %c49 = arith.constant 49 : index
    %256 = memref.load %arg4[%c49] : memref<72xf32, #tpu.memory_space<smem>>
    %257 = vector.broadcast %256 : f32 to vector<8x256xf32>
    %258 = arith.mulf %251, %257 : vector<8x256xf32>
    %259 = arith.addf %238, %258 : vector<8x256xf32>
    %c50 = arith.constant 50 : index
    %260 = memref.load %arg4[%c50] : memref<72xf32, #tpu.memory_space<smem>>
    %261 = vector.broadcast %260 : f32 to vector<8x256xf32>
    %262 = arith.mulf %251, %261 : vector<8x256xf32>
    %263 = arith.addf %242, %262 : vector<8x256xf32>
    %c51 = arith.constant 51 : index
    %264 = memref.load %arg4[%c51] : memref<72xf32, #tpu.memory_space<smem>>
    %265 = vector.broadcast %264 : f32 to vector<8x256xf32>
    %266 = arith.mulf %251, %265 : vector<8x256xf32>
    %267 = arith.addf %246, %266 : vector<8x256xf32>
    %c240_i32_50 = arith.constant 240 : i32
    %268 = tpu.dynamic_rotate %121 by %c240_i32_50 dim 1 : vector<8x256xf32>, i32 -> vector<8x256xf32>
    %cst_51 = arith.constant 0.000000e+00 : f32
    %269 = vector.broadcast %cst_51 : f32 to vector<8x256xf32>
    %270 = arith.select %7, %269, %268 : vector<8x256xi1>, vector<8x256xf32>
    %c56 = arith.constant 56 : index
    %271 = memref.load %arg4[%c56] : memref<72xf32, #tpu.memory_space<smem>>
    %272 = vector.broadcast %271 : f32 to vector<8x256xf32>
    %273 = arith.mulf %270, %272 : vector<8x256xf32>
    %274 = arith.addf %255, %273 : vector<8x256xf32>
    %c57 = arith.constant 57 : index
    %275 = memref.load %arg4[%c57] : memref<72xf32, #tpu.memory_space<smem>>
    %276 = vector.broadcast %275 : f32 to vector<8x256xf32>
    %277 = arith.mulf %270, %276 : vector<8x256xf32>
    %278 = arith.addf %259, %277 : vector<8x256xf32>
    %c58 = arith.constant 58 : index
    %279 = memref.load %arg4[%c58] : memref<72xf32, #tpu.memory_space<smem>>
    %280 = vector.broadcast %279 : f32 to vector<8x256xf32>
    %281 = arith.mulf %270, %280 : vector<8x256xf32>
    %282 = arith.addf %263, %281 : vector<8x256xf32>
    %c59 = arith.constant 59 : index
    %283 = memref.load %arg4[%c59] : memref<72xf32, #tpu.memory_space<smem>>
    %284 = vector.broadcast %283 : f32 to vector<8x256xf32>
    %285 = arith.mulf %270, %284 : vector<8x256xf32>
    %286 = arith.addf %267, %285 : vector<8x256xf32>
    %c239_i32_52 = arith.constant 239 : i32
    %287 = tpu.dynamic_rotate %121 by %c239_i32_52 dim 1 : vector<8x256xf32>, i32 -> vector<8x256xf32>
    %cst_53 = arith.constant 0.000000e+00 : f32
    %288 = vector.broadcast %cst_53 : f32 to vector<8x256xf32>
    %289 = arith.select %7, %288, %287 : vector<8x256xi1>, vector<8x256xf32>
    %cst_54 = arith.constant 0.000000e+00 : f32
    %290 = vector.broadcast %cst_54 : f32 to vector<8x256xf32>
    %291 = arith.select %11, %290, %289 : vector<8x256xi1>, vector<8x256xf32>
    %c64 = arith.constant 64 : index
    %292 = memref.load %arg4[%c64] : memref<72xf32, #tpu.memory_space<smem>>
    %293 = vector.broadcast %292 : f32 to vector<8x256xf32>
    %294 = arith.mulf %291, %293 : vector<8x256xf32>
    %295 = arith.addf %274, %294 : vector<8x256xf32>
    %c65 = arith.constant 65 : index
    %296 = memref.load %arg4[%c65] : memref<72xf32, #tpu.memory_space<smem>>
    %297 = vector.broadcast %296 : f32 to vector<8x256xf32>
    %298 = arith.mulf %291, %297 : vector<8x256xf32>
    %299 = arith.addf %278, %298 : vector<8x256xf32>
    %c66 = arith.constant 66 : index
    %300 = memref.load %arg4[%c66] : memref<72xf32, #tpu.memory_space<smem>>
    %301 = vector.broadcast %300 : f32 to vector<8x256xf32>
    %302 = arith.mulf %291, %301 : vector<8x256xf32>
    %303 = arith.addf %282, %302 : vector<8x256xf32>
    %c67 = arith.constant 67 : index
    %304 = memref.load %arg4[%c67] : memref<72xf32, #tpu.memory_space<smem>>
    %305 = vector.broadcast %304 : f32 to vector<8x256xf32>
    %306 = arith.mulf %291, %305 : vector<8x256xf32>
    %307 = arith.addf %286, %306 : vector<8x256xf32>
    %c17_i32_55 = arith.constant 17 : i32
    %308 = tpu.dynamic_rotate %123 by %c17_i32_55 dim 1 : vector<8x256xf32>, i32 -> vector<8x256xf32>
    %cst_56 = arith.constant 0.000000e+00 : f32
    %309 = vector.broadcast %cst_56 : f32 to vector<8x256xf32>
    %310 = arith.select %5, %309, %308 : vector<8x256xi1>, vector<8x256xf32>
    %cst_57 = arith.constant 0.000000e+00 : f32
    %311 = vector.broadcast %cst_57 : f32 to vector<8x256xf32>
    %312 = arith.select %9, %311, %310 : vector<8x256xi1>, vector<8x256xf32>
    %c4_58 = arith.constant 4 : index
    %313 = memref.load %arg4[%c4_58] : memref<72xf32, #tpu.memory_space<smem>>
    %314 = vector.broadcast %313 : f32 to vector<8x256xf32>
    %315 = arith.mulf %312, %314 : vector<8x256xf32>
    %316 = arith.addf %295, %315 : vector<8x256xf32>
    %c5_59 = arith.constant 5 : index
    %317 = memref.load %arg4[%c5_59] : memref<72xf32, #tpu.memory_space<smem>>
    %318 = vector.broadcast %317 : f32 to vector<8x256xf32>
    %319 = arith.mulf %312, %318 : vector<8x256xf32>
    %320 = arith.addf %299, %319 : vector<8x256xf32>
    %c6_60 = arith.constant 6 : index
    %321 = memref.load %arg4[%c6_60] : memref<72xf32, #tpu.memory_space<smem>>
    %322 = vector.broadcast %321 : f32 to vector<8x256xf32>
    %323 = arith.mulf %312, %322 : vector<8x256xf32>
    %324 = arith.addf %303, %323 : vector<8x256xf32>
    %c7_61 = arith.constant 7 : index
    %325 = memref.load %arg4[%c7_61] : memref<72xf32, #tpu.memory_space<smem>>
    %326 = vector.broadcast %325 : f32 to vector<8x256xf32>
    %327 = arith.mulf %312, %326 : vector<8x256xf32>
    %328 = arith.addf %307, %327 : vector<8x256xf32>
    %c16_i32_62 = arith.constant 16 : i32
    %329 = tpu.dynamic_rotate %123 by %c16_i32_62 dim 1 : vector<8x256xf32>, i32 -> vector<8x256xf32>
    %cst_63 = arith.constant 0.000000e+00 : f32
    %330 = vector.broadcast %cst_63 : f32 to vector<8x256xf32>
    %331 = arith.select %5, %330, %329 : vector<8x256xi1>, vector<8x256xf32>
    %c12_64 = arith.constant 12 : index
    %332 = memref.load %arg4[%c12_64] : memref<72xf32, #tpu.memory_space<smem>>
    %333 = vector.broadcast %332 : f32 to vector<8x256xf32>
    %334 = arith.mulf %331, %333 : vector<8x256xf32>
    %335 = arith.addf %316, %334 : vector<8x256xf32>
    %c13_65 = arith.constant 13 : index
    %336 = memref.load %arg4[%c13_65] : memref<72xf32, #tpu.memory_space<smem>>
    %337 = vector.broadcast %336 : f32 to vector<8x256xf32>
    %338 = arith.mulf %331, %337 : vector<8x256xf32>
    %339 = arith.addf %320, %338 : vector<8x256xf32>
    %c14_66 = arith.constant 14 : index
    %340 = memref.load %arg4[%c14_66] : memref<72xf32, #tpu.memory_space<smem>>
    %341 = vector.broadcast %340 : f32 to vector<8x256xf32>
    %342 = arith.mulf %331, %341 : vector<8x256xf32>
    %343 = arith.addf %324, %342 : vector<8x256xf32>
    %c15_67 = arith.constant 15 : index
    %344 = memref.load %arg4[%c15_67] : memref<72xf32, #tpu.memory_space<smem>>
    %345 = vector.broadcast %344 : f32 to vector<8x256xf32>
    %346 = arith.mulf %331, %345 : vector<8x256xf32>
    %347 = arith.addf %328, %346 : vector<8x256xf32>
    %c15_i32_68 = arith.constant 15 : i32
    %348 = tpu.dynamic_rotate %123 by %c15_i32_68 dim 1 : vector<8x256xf32>, i32 -> vector<8x256xf32>
    %cst_69 = arith.constant 0.000000e+00 : f32
    %349 = vector.broadcast %cst_69 : f32 to vector<8x256xf32>
    %350 = arith.select %5, %349, %348 : vector<8x256xi1>, vector<8x256xf32>
    %cst_70 = arith.constant 0.000000e+00 : f32
    %351 = vector.broadcast %cst_70 : f32 to vector<8x256xf32>
    %352 = arith.select %11, %351, %350 : vector<8x256xi1>, vector<8x256xf32>
    %c20 = arith.constant 20 : index
    %353 = memref.load %arg4[%c20] : memref<72xf32, #tpu.memory_space<smem>>
    %354 = vector.broadcast %353 : f32 to vector<8x256xf32>
    %355 = arith.mulf %352, %354 : vector<8x256xf32>
    %356 = arith.addf %335, %355 : vector<8x256xf32>
    %c21 = arith.constant 21 : index
    %357 = memref.load %arg4[%c21] : memref<72xf32, #tpu.memory_space<smem>>
    %358 = vector.broadcast %357 : f32 to vector<8x256xf32>
    %359 = arith.mulf %352, %358 : vector<8x256xf32>
    %360 = arith.addf %339, %359 : vector<8x256xf32>
    %c22 = arith.constant 22 : index
    %361 = memref.load %arg4[%c22] : memref<72xf32, #tpu.memory_space<smem>>
    %362 = vector.broadcast %361 : f32 to vector<8x256xf32>
    %363 = arith.mulf %352, %362 : vector<8x256xf32>
    %364 = arith.addf %343, %363 : vector<8x256xf32>
    %c23 = arith.constant 23 : index
    %365 = memref.load %arg4[%c23] : memref<72xf32, #tpu.memory_space<smem>>
    %366 = vector.broadcast %365 : f32 to vector<8x256xf32>
    %367 = arith.mulf %352, %366 : vector<8x256xf32>
    %368 = arith.addf %347, %367 : vector<8x256xf32>
    %c1_i32_71 = arith.constant 1 : i32
    %369 = tpu.dynamic_rotate %123 by %c1_i32_71 dim 1 : vector<8x256xf32>, i32 -> vector<8x256xf32>
    %cst_72 = arith.constant 0.000000e+00 : f32
    %370 = vector.broadcast %cst_72 : f32 to vector<8x256xf32>
    %371 = arith.select %9, %370, %369 : vector<8x256xi1>, vector<8x256xf32>
    %c28 = arith.constant 28 : index
    %372 = memref.load %arg4[%c28] : memref<72xf32, #tpu.memory_space<smem>>
    %373 = vector.broadcast %372 : f32 to vector<8x256xf32>
    %374 = arith.mulf %371, %373 : vector<8x256xf32>
    %375 = arith.addf %356, %374 : vector<8x256xf32>
    %c29 = arith.constant 29 : index
    %376 = memref.load %arg4[%c29] : memref<72xf32, #tpu.memory_space<smem>>
    %377 = vector.broadcast %376 : f32 to vector<8x256xf32>
    %378 = arith.mulf %371, %377 : vector<8x256xf32>
    %379 = arith.addf %360, %378 : vector<8x256xf32>
    %c30 = arith.constant 30 : index
    %380 = memref.load %arg4[%c30] : memref<72xf32, #tpu.memory_space<smem>>
    %381 = vector.broadcast %380 : f32 to vector<8x256xf32>
    %382 = arith.mulf %371, %381 : vector<8x256xf32>
    %383 = arith.addf %364, %382 : vector<8x256xf32>
    %c31 = arith.constant 31 : index
    %384 = memref.load %arg4[%c31] : memref<72xf32, #tpu.memory_space<smem>>
    %385 = vector.broadcast %384 : f32 to vector<8x256xf32>
    %386 = arith.mulf %371, %385 : vector<8x256xf32>
    %387 = arith.addf %368, %386 : vector<8x256xf32>
    %c36 = arith.constant 36 : index
    %388 = memref.load %arg4[%c36] : memref<72xf32, #tpu.memory_space<smem>>
    %389 = vector.broadcast %388 : f32 to vector<8x256xf32>
    %390 = arith.mulf %123, %389 : vector<8x256xf32>
    %391 = arith.addf %375, %390 : vector<8x256xf32>
    %c37 = arith.constant 37 : index
    %392 = memref.load %arg4[%c37] : memref<72xf32, #tpu.memory_space<smem>>
    %393 = vector.broadcast %392 : f32 to vector<8x256xf32>
    %394 = arith.mulf %123, %393 : vector<8x256xf32>
    %395 = arith.addf %379, %394 : vector<8x256xf32>
    %c38 = arith.constant 38 : index
    %396 = memref.load %arg4[%c38] : memref<72xf32, #tpu.memory_space<smem>>
    %397 = vector.broadcast %396 : f32 to vector<8x256xf32>
    %398 = arith.mulf %123, %397 : vector<8x256xf32>
    %399 = arith.addf %383, %398 : vector<8x256xf32>
    %c39 = arith.constant 39 : index
    %400 = memref.load %arg4[%c39] : memref<72xf32, #tpu.memory_space<smem>>
    %401 = vector.broadcast %400 : f32 to vector<8x256xf32>
    %402 = arith.mulf %123, %401 : vector<8x256xf32>
    %403 = arith.addf %387, %402 : vector<8x256xf32>
    %c255_i32_73 = arith.constant 255 : i32
    %404 = tpu.dynamic_rotate %123 by %c255_i32_73 dim 1 : vector<8x256xf32>, i32 -> vector<8x256xf32>
    %cst_74 = arith.constant 0.000000e+00 : f32
    %405 = vector.broadcast %cst_74 : f32 to vector<8x256xf32>
    %406 = arith.select %11, %405, %404 : vector<8x256xi1>, vector<8x256xf32>
    %c44 = arith.constant 44 : index
    %407 = memref.load %arg4[%c44] : memref<72xf32, #tpu.memory_space<smem>>
    %408 = vector.broadcast %407 : f32 to vector<8x256xf32>
    %409 = arith.mulf %406, %408 : vector<8x256xf32>
    %410 = arith.addf %391, %409 : vector<8x256xf32>
    %c45 = arith.constant 45 : index
    %411 = memref.load %arg4[%c45] : memref<72xf32, #tpu.memory_space<smem>>
    %412 = vector.broadcast %411 : f32 to vector<8x256xf32>
    %413 = arith.mulf %406, %412 : vector<8x256xf32>
    %414 = arith.addf %395, %413 : vector<8x256xf32>
    %c46 = arith.constant 46 : index
    %415 = memref.load %arg4[%c46] : memref<72xf32, #tpu.memory_space<smem>>
    %416 = vector.broadcast %415 : f32 to vector<8x256xf32>
    %417 = arith.mulf %406, %416 : vector<8x256xf32>
    %418 = arith.addf %399, %417 : vector<8x256xf32>
    %c47 = arith.constant 47 : index
    %419 = memref.load %arg4[%c47] : memref<72xf32, #tpu.memory_space<smem>>
    %420 = vector.broadcast %419 : f32 to vector<8x256xf32>
    %421 = arith.mulf %406, %420 : vector<8x256xf32>
    %422 = arith.addf %403, %421 : vector<8x256xf32>
    %c241_i32_75 = arith.constant 241 : i32
    %423 = tpu.dynamic_rotate %123 by %c241_i32_75 dim 1 : vector<8x256xf32>, i32 -> vector<8x256xf32>
    %cst_76 = arith.constant 0.000000e+00 : f32
    %424 = vector.broadcast %cst_76 : f32 to vector<8x256xf32>
    %425 = arith.select %7, %424, %423 : vector<8x256xi1>, vector<8x256xf32>
    %cst_77 = arith.constant 0.000000e+00 : f32
    %426 = vector.broadcast %cst_77 : f32 to vector<8x256xf32>
    %427 = arith.select %9, %426, %425 : vector<8x256xi1>, vector<8x256xf32>
    %c52 = arith.constant 52 : index
    %428 = memref.load %arg4[%c52] : memref<72xf32, #tpu.memory_space<smem>>
    %429 = vector.broadcast %428 : f32 to vector<8x256xf32>
    %430 = arith.mulf %427, %429 : vector<8x256xf32>
    %431 = arith.addf %410, %430 : vector<8x256xf32>
    %c53 = arith.constant 53 : index
    %432 = memref.load %arg4[%c53] : memref<72xf32, #tpu.memory_space<smem>>
    %433 = vector.broadcast %432 : f32 to vector<8x256xf32>
    %434 = arith.mulf %427, %433 : vector<8x256xf32>
    %435 = arith.addf %414, %434 : vector<8x256xf32>
    %c54 = arith.constant 54 : index
    %436 = memref.load %arg4[%c54] : memref<72xf32, #tpu.memory_space<smem>>
    %437 = vector.broadcast %436 : f32 to vector<8x256xf32>
    %438 = arith.mulf %427, %437 : vector<8x256xf32>
    %439 = arith.addf %418, %438 : vector<8x256xf32>
    %c55 = arith.constant 55 : index
    %440 = memref.load %arg4[%c55] : memref<72xf32, #tpu.memory_space<smem>>
    %441 = vector.broadcast %440 : f32 to vector<8x256xf32>
    %442 = arith.mulf %427, %441 : vector<8x256xf32>
    %443 = arith.addf %422, %442 : vector<8x256xf32>
    %c240_i32_78 = arith.constant 240 : i32
    %444 = tpu.dynamic_rotate %123 by %c240_i32_78 dim 1 : vector<8x256xf32>, i32 -> vector<8x256xf32>
    %cst_79 = arith.constant 0.000000e+00 : f32
    %445 = vector.broadcast %cst_79 : f32 to vector<8x256xf32>
    %446 = arith.select %7, %445, %444 : vector<8x256xi1>, vector<8x256xf32>
    %c60 = arith.constant 60 : index
    %447 = memref.load %arg4[%c60] : memref<72xf32, #tpu.memory_space<smem>>
    %448 = vector.broadcast %447 : f32 to vector<8x256xf32>
    %449 = arith.mulf %446, %448 : vector<8x256xf32>
    %450 = arith.addf %431, %449 : vector<8x256xf32>
    %c61 = arith.constant 61 : index
    %451 = memref.load %arg4[%c61] : memref<72xf32, #tpu.memory_space<smem>>
    %452 = vector.broadcast %451 : f32 to vector<8x256xf32>
    %453 = arith.mulf %446, %452 : vector<8x256xf32>
    %454 = arith.addf %435, %453 : vector<8x256xf32>
    %c62 = arith.constant 62 : index
    %455 = memref.load %arg4[%c62] : memref<72xf32, #tpu.memory_space<smem>>
    %456 = vector.broadcast %455 : f32 to vector<8x256xf32>
    %457 = arith.mulf %446, %456 : vector<8x256xf32>
    %458 = arith.addf %439, %457 : vector<8x256xf32>
    %c63 = arith.constant 63 : index
    %459 = memref.load %arg4[%c63] : memref<72xf32, #tpu.memory_space<smem>>
    %460 = vector.broadcast %459 : f32 to vector<8x256xf32>
    %461 = arith.mulf %446, %460 : vector<8x256xf32>
    %462 = arith.addf %443, %461 : vector<8x256xf32>
    %c239_i32_80 = arith.constant 239 : i32
    %463 = tpu.dynamic_rotate %123 by %c239_i32_80 dim 1 : vector<8x256xf32>, i32 -> vector<8x256xf32>
    %cst_81 = arith.constant 0.000000e+00 : f32
    %464 = vector.broadcast %cst_81 : f32 to vector<8x256xf32>
    %465 = arith.select %7, %464, %463 : vector<8x256xi1>, vector<8x256xf32>
    %cst_82 = arith.constant 0.000000e+00 : f32
    %466 = vector.broadcast %cst_82 : f32 to vector<8x256xf32>
    %467 = arith.select %11, %466, %465 : vector<8x256xi1>, vector<8x256xf32>
    %c68 = arith.constant 68 : index
    %468 = memref.load %arg4[%c68] : memref<72xf32, #tpu.memory_space<smem>>
    %469 = vector.broadcast %468 : f32 to vector<8x256xf32>
    %470 = arith.mulf %467, %469 : vector<8x256xf32>
    %471 = arith.addf %450, %470 : vector<8x256xf32>
    %c69 = arith.constant 69 : index
    %472 = memref.load %arg4[%c69] : memref<72xf32, #tpu.memory_space<smem>>
    %473 = vector.broadcast %472 : f32 to vector<8x256xf32>
    %474 = arith.mulf %467, %473 : vector<8x256xf32>
    %475 = arith.addf %454, %474 : vector<8x256xf32>
    %c70 = arith.constant 70 : index
    %476 = memref.load %arg4[%c70] : memref<72xf32, #tpu.memory_space<smem>>
    %477 = vector.broadcast %476 : f32 to vector<8x256xf32>
    %478 = arith.mulf %467, %477 : vector<8x256xf32>
    %479 = arith.addf %458, %478 : vector<8x256xf32>
    %c71 = arith.constant 71 : index
    %480 = memref.load %arg4[%c71] : memref<72xf32, #tpu.memory_space<smem>>
    %481 = vector.broadcast %480 : f32 to vector<8x256xf32>
    %482 = arith.mulf %467, %481 : vector<8x256xf32>
    %483 = arith.addf %462, %482 : vector<8x256xf32>
    %cst_83 = arith.constant 0.000000e+00 : f32
    %484 = vector.broadcast %cst_83 : f32 to vector<8x256xf32>
    %485 = arith.maximumf %471, %484 : vector<8x256xf32>
    %cst_84 = arith.constant 0.000000e+00 : f32
    %486 = vector.broadcast %cst_84 : f32 to vector<8x256xf32>
    %487 = arith.maximumf %475, %486 : vector<8x256xf32>
    %cst_85 = arith.constant 0.000000e+00 : f32
    %488 = vector.broadcast %cst_85 : f32 to vector<8x256xf32>
    %489 = arith.maximumf %479, %488 : vector<8x256xf32>
    %cst_86 = arith.constant 0.000000e+00 : f32
    %490 = vector.broadcast %cst_86 : f32 to vector<8x256xf32>
    %491 = arith.maximumf %483, %490 : vector<8x256xf32>
    %c0_87 = arith.constant 0 : index
    %492 = memref.load %arg7[%c0_87] : memref<4xf32, #tpu.memory_space<smem>>
    %493 = vector.broadcast %492 : f32 to vector<8x256xf32>
    %c1_88 = arith.constant 1 : index
    %494 = memref.load %arg7[%c1_88] : memref<4xf32, #tpu.memory_space<smem>>
    %495 = vector.broadcast %494 : f32 to vector<8x256xf32>
    %c2_89 = arith.constant 2 : index
    %496 = memref.load %arg7[%c2_89] : memref<4xf32, #tpu.memory_space<smem>>
    %497 = vector.broadcast %496 : f32 to vector<8x256xf32>
    %c3_90 = arith.constant 3 : index
    %498 = memref.load %arg7[%c3_90] : memref<4xf32, #tpu.memory_space<smem>>
    %499 = vector.broadcast %498 : f32 to vector<8x256xf32>
    %c17_i32_91 = arith.constant 17 : i32
    %500 = tpu.dynamic_rotate %485 by %c17_i32_91 dim 1 : vector<8x256xf32>, i32 -> vector<8x256xf32>
    %cst_92 = arith.constant 0.000000e+00 : f32
    %501 = vector.broadcast %cst_92 : f32 to vector<8x256xf32>
    %502 = arith.select %5, %501, %500 : vector<8x256xi1>, vector<8x256xf32>
    %cst_93 = arith.constant 0.000000e+00 : f32
    %503 = vector.broadcast %cst_93 : f32 to vector<8x256xf32>
    %504 = arith.select %9, %503, %502 : vector<8x256xi1>, vector<8x256xf32>
    %c0_94 = arith.constant 0 : index
    %505 = memref.load %arg6[%c0_94] : memref<144xf32, #tpu.memory_space<smem>>
    %506 = vector.broadcast %505 : f32 to vector<8x256xf32>
    %507 = arith.mulf %504, %506 : vector<8x256xf32>
    %508 = arith.addf %493, %507 : vector<8x256xf32>
    %c1_95 = arith.constant 1 : index
    %509 = memref.load %arg6[%c1_95] : memref<144xf32, #tpu.memory_space<smem>>
    %510 = vector.broadcast %509 : f32 to vector<8x256xf32>
    %511 = arith.mulf %504, %510 : vector<8x256xf32>
    %512 = arith.addf %495, %511 : vector<8x256xf32>
    %c2_96 = arith.constant 2 : index
    %513 = memref.load %arg6[%c2_96] : memref<144xf32, #tpu.memory_space<smem>>
    %514 = vector.broadcast %513 : f32 to vector<8x256xf32>
    %515 = arith.mulf %504, %514 : vector<8x256xf32>
    %516 = arith.addf %497, %515 : vector<8x256xf32>
    %c3_97 = arith.constant 3 : index
    %517 = memref.load %arg6[%c3_97] : memref<144xf32, #tpu.memory_space<smem>>
    %518 = vector.broadcast %517 : f32 to vector<8x256xf32>
    %519 = arith.mulf %504, %518 : vector<8x256xf32>
    %520 = arith.addf %499, %519 : vector<8x256xf32>
    %c16_i32_98 = arith.constant 16 : i32
    %521 = tpu.dynamic_rotate %485 by %c16_i32_98 dim 1 : vector<8x256xf32>, i32 -> vector<8x256xf32>
    %cst_99 = arith.constant 0.000000e+00 : f32
    %522 = vector.broadcast %cst_99 : f32 to vector<8x256xf32>
    %523 = arith.select %5, %522, %521 : vector<8x256xi1>, vector<8x256xf32>
    %c16_100 = arith.constant 16 : index
    %524 = memref.load %arg6[%c16_100] : memref<144xf32, #tpu.memory_space<smem>>
    %525 = vector.broadcast %524 : f32 to vector<8x256xf32>
    %526 = arith.mulf %523, %525 : vector<8x256xf32>
    %527 = arith.addf %508, %526 : vector<8x256xf32>
    %c17_101 = arith.constant 17 : index
    %528 = memref.load %arg6[%c17_101] : memref<144xf32, #tpu.memory_space<smem>>
    %529 = vector.broadcast %528 : f32 to vector<8x256xf32>
    %530 = arith.mulf %523, %529 : vector<8x256xf32>
    %531 = arith.addf %512, %530 : vector<8x256xf32>
    %c18_102 = arith.constant 18 : index
    %532 = memref.load %arg6[%c18_102] : memref<144xf32, #tpu.memory_space<smem>>
    %533 = vector.broadcast %532 : f32 to vector<8x256xf32>
    %534 = arith.mulf %523, %533 : vector<8x256xf32>
    %535 = arith.addf %516, %534 : vector<8x256xf32>
    %c19_103 = arith.constant 19 : index
    %536 = memref.load %arg6[%c19_103] : memref<144xf32, #tpu.memory_space<smem>>
    %537 = vector.broadcast %536 : f32 to vector<8x256xf32>
    %538 = arith.mulf %523, %537 : vector<8x256xf32>
    %539 = arith.addf %520, %538 : vector<8x256xf32>
    %c15_i32_104 = arith.constant 15 : i32
    %540 = tpu.dynamic_rotate %485 by %c15_i32_104 dim 1 : vector<8x256xf32>, i32 -> vector<8x256xf32>
    %cst_105 = arith.constant 0.000000e+00 : f32
    %541 = vector.broadcast %cst_105 : f32 to vector<8x256xf32>
    %542 = arith.select %5, %541, %540 : vector<8x256xi1>, vector<8x256xf32>
    %cst_106 = arith.constant 0.000000e+00 : f32
    %543 = vector.broadcast %cst_106 : f32 to vector<8x256xf32>
    %544 = arith.select %11, %543, %542 : vector<8x256xi1>, vector<8x256xf32>
    %c32_107 = arith.constant 32 : index
    %545 = memref.load %arg6[%c32_107] : memref<144xf32, #tpu.memory_space<smem>>
    %546 = vector.broadcast %545 : f32 to vector<8x256xf32>
    %547 = arith.mulf %544, %546 : vector<8x256xf32>
    %548 = arith.addf %527, %547 : vector<8x256xf32>
    %c33_108 = arith.constant 33 : index
    %549 = memref.load %arg6[%c33_108] : memref<144xf32, #tpu.memory_space<smem>>
    %550 = vector.broadcast %549 : f32 to vector<8x256xf32>
    %551 = arith.mulf %544, %550 : vector<8x256xf32>
    %552 = arith.addf %531, %551 : vector<8x256xf32>
    %c34_109 = arith.constant 34 : index
    %553 = memref.load %arg6[%c34_109] : memref<144xf32, #tpu.memory_space<smem>>
    %554 = vector.broadcast %553 : f32 to vector<8x256xf32>
    %555 = arith.mulf %544, %554 : vector<8x256xf32>
    %556 = arith.addf %535, %555 : vector<8x256xf32>
    %c35_110 = arith.constant 35 : index
    %557 = memref.load %arg6[%c35_110] : memref<144xf32, #tpu.memory_space<smem>>
    %558 = vector.broadcast %557 : f32 to vector<8x256xf32>
    %559 = arith.mulf %544, %558 : vector<8x256xf32>
    %560 = arith.addf %539, %559 : vector<8x256xf32>
    %c1_i32_111 = arith.constant 1 : i32
    %561 = tpu.dynamic_rotate %485 by %c1_i32_111 dim 1 : vector<8x256xf32>, i32 -> vector<8x256xf32>
    %cst_112 = arith.constant 0.000000e+00 : f32
    %562 = vector.broadcast %cst_112 : f32 to vector<8x256xf32>
    %563 = arith.select %9, %562, %561 : vector<8x256xi1>, vector<8x256xf32>
    %c48_113 = arith.constant 48 : index
    %564 = memref.load %arg6[%c48_113] : memref<144xf32, #tpu.memory_space<smem>>
    %565 = vector.broadcast %564 : f32 to vector<8x256xf32>
    %566 = arith.mulf %563, %565 : vector<8x256xf32>
    %567 = arith.addf %548, %566 : vector<8x256xf32>
    %c49_114 = arith.constant 49 : index
    %568 = memref.load %arg6[%c49_114] : memref<144xf32, #tpu.memory_space<smem>>
    %569 = vector.broadcast %568 : f32 to vector<8x256xf32>
    %570 = arith.mulf %563, %569 : vector<8x256xf32>
    %571 = arith.addf %552, %570 : vector<8x256xf32>
    %c50_115 = arith.constant 50 : index
    %572 = memref.load %arg6[%c50_115] : memref<144xf32, #tpu.memory_space<smem>>
    %573 = vector.broadcast %572 : f32 to vector<8x256xf32>
    %574 = arith.mulf %563, %573 : vector<8x256xf32>
    %575 = arith.addf %556, %574 : vector<8x256xf32>
    %c51_116 = arith.constant 51 : index
    %576 = memref.load %arg6[%c51_116] : memref<144xf32, #tpu.memory_space<smem>>
    %577 = vector.broadcast %576 : f32 to vector<8x256xf32>
    %578 = arith.mulf %563, %577 : vector<8x256xf32>
    %579 = arith.addf %560, %578 : vector<8x256xf32>
    %c64_117 = arith.constant 64 : index
    %580 = memref.load %arg6[%c64_117] : memref<144xf32, #tpu.memory_space<smem>>
    %581 = vector.broadcast %580 : f32 to vector<8x256xf32>
    %582 = arith.mulf %485, %581 : vector<8x256xf32>
    %583 = arith.addf %567, %582 : vector<8x256xf32>
    %c65_118 = arith.constant 65 : index
    %584 = memref.load %arg6[%c65_118] : memref<144xf32, #tpu.memory_space<smem>>
    %585 = vector.broadcast %584 : f32 to vector<8x256xf32>
    %586 = arith.mulf %485, %585 : vector<8x256xf32>
    %587 = arith.addf %571, %586 : vector<8x256xf32>
    %c66_119 = arith.constant 66 : index
    %588 = memref.load %arg6[%c66_119] : memref<144xf32, #tpu.memory_space<smem>>
    %589 = vector.broadcast %588 : f32 to vector<8x256xf32>
    %590 = arith.mulf %485, %589 : vector<8x256xf32>
    %591 = arith.addf %575, %590 : vector<8x256xf32>
    %c67_120 = arith.constant 67 : index
    %592 = memref.load %arg6[%c67_120] : memref<144xf32, #tpu.memory_space<smem>>
    %593 = vector.broadcast %592 : f32 to vector<8x256xf32>
    %594 = arith.mulf %485, %593 : vector<8x256xf32>
    %595 = arith.addf %579, %594 : vector<8x256xf32>
    %c255_i32_121 = arith.constant 255 : i32
    %596 = tpu.dynamic_rotate %485 by %c255_i32_121 dim 1 : vector<8x256xf32>, i32 -> vector<8x256xf32>
    %cst_122 = arith.constant 0.000000e+00 : f32
    %597 = vector.broadcast %cst_122 : f32 to vector<8x256xf32>
    %598 = arith.select %11, %597, %596 : vector<8x256xi1>, vector<8x256xf32>
    %c80 = arith.constant 80 : index
    %599 = memref.load %arg6[%c80] : memref<144xf32, #tpu.memory_space<smem>>
    %600 = vector.broadcast %599 : f32 to vector<8x256xf32>
    %601 = arith.mulf %598, %600 : vector<8x256xf32>
    %602 = arith.addf %583, %601 : vector<8x256xf32>
    %c81 = arith.constant 81 : index
    %603 = memref.load %arg6[%c81] : memref<144xf32, #tpu.memory_space<smem>>
    %604 = vector.broadcast %603 : f32 to vector<8x256xf32>
    %605 = arith.mulf %598, %604 : vector<8x256xf32>
    %606 = arith.addf %587, %605 : vector<8x256xf32>
    %c82 = arith.constant 82 : index
    %607 = memref.load %arg6[%c82] : memref<144xf32, #tpu.memory_space<smem>>
    %608 = vector.broadcast %607 : f32 to vector<8x256xf32>
    %609 = arith.mulf %598, %608 : vector<8x256xf32>
    %610 = arith.addf %591, %609 : vector<8x256xf32>
    %c83 = arith.constant 83 : index
    %611 = memref.load %arg6[%c83] : memref<144xf32, #tpu.memory_space<smem>>
    %612 = vector.broadcast %611 : f32 to vector<8x256xf32>
    %613 = arith.mulf %598, %612 : vector<8x256xf32>
    %614 = arith.addf %595, %613 : vector<8x256xf32>
    %c241_i32_123 = arith.constant 241 : i32
    %615 = tpu.dynamic_rotate %485 by %c241_i32_123 dim 1 : vector<8x256xf32>, i32 -> vector<8x256xf32>
    %cst_124 = arith.constant 0.000000e+00 : f32
    %616 = vector.broadcast %cst_124 : f32 to vector<8x256xf32>
    %617 = arith.select %7, %616, %615 : vector<8x256xi1>, vector<8x256xf32>
    %cst_125 = arith.constant 0.000000e+00 : f32
    %618 = vector.broadcast %cst_125 : f32 to vector<8x256xf32>
    %619 = arith.select %9, %618, %617 : vector<8x256xi1>, vector<8x256xf32>
    %c96 = arith.constant 96 : index
    %620 = memref.load %arg6[%c96] : memref<144xf32, #tpu.memory_space<smem>>
    %621 = vector.broadcast %620 : f32 to vector<8x256xf32>
    %622 = arith.mulf %619, %621 : vector<8x256xf32>
    %623 = arith.addf %602, %622 : vector<8x256xf32>
    %c97 = arith.constant 97 : index
    %624 = memref.load %arg6[%c97] : memref<144xf32, #tpu.memory_space<smem>>
    %625 = vector.broadcast %624 : f32 to vector<8x256xf32>
    %626 = arith.mulf %619, %625 : vector<8x256xf32>
    %627 = arith.addf %606, %626 : vector<8x256xf32>
    %c98 = arith.constant 98 : index
    %628 = memref.load %arg6[%c98] : memref<144xf32, #tpu.memory_space<smem>>
    %629 = vector.broadcast %628 : f32 to vector<8x256xf32>
    %630 = arith.mulf %619, %629 : vector<8x256xf32>
    %631 = arith.addf %610, %630 : vector<8x256xf32>
    %c99 = arith.constant 99 : index
    %632 = memref.load %arg6[%c99] : memref<144xf32, #tpu.memory_space<smem>>
    %633 = vector.broadcast %632 : f32 to vector<8x256xf32>
    %634 = arith.mulf %619, %633 : vector<8x256xf32>
    %635 = arith.addf %614, %634 : vector<8x256xf32>
    %c240_i32_126 = arith.constant 240 : i32
    %636 = tpu.dynamic_rotate %485 by %c240_i32_126 dim 1 : vector<8x256xf32>, i32 -> vector<8x256xf32>
    %cst_127 = arith.constant 0.000000e+00 : f32
    %637 = vector.broadcast %cst_127 : f32 to vector<8x256xf32>
    %638 = arith.select %7, %637, %636 : vector<8x256xi1>, vector<8x256xf32>
    %c112 = arith.constant 112 : index
    %639 = memref.load %arg6[%c112] : memref<144xf32, #tpu.memory_space<smem>>
    %640 = vector.broadcast %639 : f32 to vector<8x256xf32>
    %641 = arith.mulf %638, %640 : vector<8x256xf32>
    %642 = arith.addf %623, %641 : vector<8x256xf32>
    %c113 = arith.constant 113 : index
    %643 = memref.load %arg6[%c113] : memref<144xf32, #tpu.memory_space<smem>>
    %644 = vector.broadcast %643 : f32 to vector<8x256xf32>
    %645 = arith.mulf %638, %644 : vector<8x256xf32>
    %646 = arith.addf %627, %645 : vector<8x256xf32>
    %c114 = arith.constant 114 : index
    %647 = memref.load %arg6[%c114] : memref<144xf32, #tpu.memory_space<smem>>
    %648 = vector.broadcast %647 : f32 to vector<8x256xf32>
    %649 = arith.mulf %638, %648 : vector<8x256xf32>
    %650 = arith.addf %631, %649 : vector<8x256xf32>
    %c115 = arith.constant 115 : index
    %651 = memref.load %arg6[%c115] : memref<144xf32, #tpu.memory_space<smem>>
    %652 = vector.broadcast %651 : f32 to vector<8x256xf32>
    %653 = arith.mulf %638, %652 : vector<8x256xf32>
    %654 = arith.addf %635, %653 : vector<8x256xf32>
    %c239_i32_128 = arith.constant 239 : i32
    %655 = tpu.dynamic_rotate %485 by %c239_i32_128 dim 1 : vector<8x256xf32>, i32 -> vector<8x256xf32>
    %cst_129 = arith.constant 0.000000e+00 : f32
    %656 = vector.broadcast %cst_129 : f32 to vector<8x256xf32>
    %657 = arith.select %7, %656, %655 : vector<8x256xi1>, vector<8x256xf32>
    %cst_130 = arith.constant 0.000000e+00 : f32
    %658 = vector.broadcast %cst_130 : f32 to vector<8x256xf32>
    %659 = arith.select %11, %658, %657 : vector<8x256xi1>, vector<8x256xf32>
    %c128 = arith.constant 128 : index
    %660 = memref.load %arg6[%c128] : memref<144xf32, #tpu.memory_space<smem>>
    %661 = vector.broadcast %660 : f32 to vector<8x256xf32>
    %662 = arith.mulf %659, %661 : vector<8x256xf32>
    %663 = arith.addf %642, %662 : vector<8x256xf32>
    %c129 = arith.constant 129 : index
    %664 = memref.load %arg6[%c129] : memref<144xf32, #tpu.memory_space<smem>>
    %665 = vector.broadcast %664 : f32 to vector<8x256xf32>
    %666 = arith.mulf %659, %665 : vector<8x256xf32>
    %667 = arith.addf %646, %666 : vector<8x256xf32>
    %c130 = arith.constant 130 : index
    %668 = memref.load %arg6[%c130] : memref<144xf32, #tpu.memory_space<smem>>
    %669 = vector.broadcast %668 : f32 to vector<8x256xf32>
    %670 = arith.mulf %659, %669 : vector<8x256xf32>
    %671 = arith.addf %650, %670 : vector<8x256xf32>
    %c131 = arith.constant 131 : index
    %672 = memref.load %arg6[%c131] : memref<144xf32, #tpu.memory_space<smem>>
    %673 = vector.broadcast %672 : f32 to vector<8x256xf32>
    %674 = arith.mulf %659, %673 : vector<8x256xf32>
    %675 = arith.addf %654, %674 : vector<8x256xf32>
    %c17_i32_131 = arith.constant 17 : i32
    %676 = tpu.dynamic_rotate %487 by %c17_i32_131 dim 1 : vector<8x256xf32>, i32 -> vector<8x256xf32>
    %cst_132 = arith.constant 0.000000e+00 : f32
    %677 = vector.broadcast %cst_132 : f32 to vector<8x256xf32>
    %678 = arith.select %5, %677, %676 : vector<8x256xi1>, vector<8x256xf32>
    %cst_133 = arith.constant 0.000000e+00 : f32
    %679 = vector.broadcast %cst_133 : f32 to vector<8x256xf32>
    %680 = arith.select %9, %679, %678 : vector<8x256xi1>, vector<8x256xf32>
    %c4_134 = arith.constant 4 : index
    %681 = memref.load %arg6[%c4_134] : memref<144xf32, #tpu.memory_space<smem>>
    %682 = vector.broadcast %681 : f32 to vector<8x256xf32>
    %683 = arith.mulf %680, %682 : vector<8x256xf32>
    %684 = arith.addf %663, %683 : vector<8x256xf32>
    %c5_135 = arith.constant 5 : index
    %685 = memref.load %arg6[%c5_135] : memref<144xf32, #tpu.memory_space<smem>>
    %686 = vector.broadcast %685 : f32 to vector<8x256xf32>
    %687 = arith.mulf %680, %686 : vector<8x256xf32>
    %688 = arith.addf %667, %687 : vector<8x256xf32>
    %c6_136 = arith.constant 6 : index
    %689 = memref.load %arg6[%c6_136] : memref<144xf32, #tpu.memory_space<smem>>
    %690 = vector.broadcast %689 : f32 to vector<8x256xf32>
    %691 = arith.mulf %680, %690 : vector<8x256xf32>
    %692 = arith.addf %671, %691 : vector<8x256xf32>
    %c7_137 = arith.constant 7 : index
    %693 = memref.load %arg6[%c7_137] : memref<144xf32, #tpu.memory_space<smem>>
    %694 = vector.broadcast %693 : f32 to vector<8x256xf32>
    %695 = arith.mulf %680, %694 : vector<8x256xf32>
    %696 = arith.addf %675, %695 : vector<8x256xf32>
    %c16_i32_138 = arith.constant 16 : i32
    %697 = tpu.dynamic_rotate %487 by %c16_i32_138 dim 1 : vector<8x256xf32>, i32 -> vector<8x256xf32>
    %cst_139 = arith.constant 0.000000e+00 : f32
    %698 = vector.broadcast %cst_139 : f32 to vector<8x256xf32>
    %699 = arith.select %5, %698, %697 : vector<8x256xi1>, vector<8x256xf32>
    %c20_140 = arith.constant 20 : index
    %700 = memref.load %arg6[%c20_140] : memref<144xf32, #tpu.memory_space<smem>>
    %701 = vector.broadcast %700 : f32 to vector<8x256xf32>
    %702 = arith.mulf %699, %701 : vector<8x256xf32>
    %703 = arith.addf %684, %702 : vector<8x256xf32>
    %c21_141 = arith.constant 21 : index
    %704 = memref.load %arg6[%c21_141] : memref<144xf32, #tpu.memory_space<smem>>
    %705 = vector.broadcast %704 : f32 to vector<8x256xf32>
    %706 = arith.mulf %699, %705 : vector<8x256xf32>
    %707 = arith.addf %688, %706 : vector<8x256xf32>
    %c22_142 = arith.constant 22 : index
    %708 = memref.load %arg6[%c22_142] : memref<144xf32, #tpu.memory_space<smem>>
    %709 = vector.broadcast %708 : f32 to vector<8x256xf32>
    %710 = arith.mulf %699, %709 : vector<8x256xf32>
    %711 = arith.addf %692, %710 : vector<8x256xf32>
    %c23_143 = arith.constant 23 : index
    %712 = memref.load %arg6[%c23_143] : memref<144xf32, #tpu.memory_space<smem>>
    %713 = vector.broadcast %712 : f32 to vector<8x256xf32>
    %714 = arith.mulf %699, %713 : vector<8x256xf32>
    %715 = arith.addf %696, %714 : vector<8x256xf32>
    %c15_i32_144 = arith.constant 15 : i32
    %716 = tpu.dynamic_rotate %487 by %c15_i32_144 dim 1 : vector<8x256xf32>, i32 -> vector<8x256xf32>
    %cst_145 = arith.constant 0.000000e+00 : f32
    %717 = vector.broadcast %cst_145 : f32 to vector<8x256xf32>
    %718 = arith.select %5, %717, %716 : vector<8x256xi1>, vector<8x256xf32>
    %cst_146 = arith.constant 0.000000e+00 : f32
    %719 = vector.broadcast %cst_146 : f32 to vector<8x256xf32>
    %720 = arith.select %11, %719, %718 : vector<8x256xi1>, vector<8x256xf32>
    %c36_147 = arith.constant 36 : index
    %721 = memref.load %arg6[%c36_147] : memref<144xf32, #tpu.memory_space<smem>>
    %722 = vector.broadcast %721 : f32 to vector<8x256xf32>
    %723 = arith.mulf %720, %722 : vector<8x256xf32>
    %724 = arith.addf %703, %723 : vector<8x256xf32>
    %c37_148 = arith.constant 37 : index
    %725 = memref.load %arg6[%c37_148] : memref<144xf32, #tpu.memory_space<smem>>
    %726 = vector.broadcast %725 : f32 to vector<8x256xf32>
    %727 = arith.mulf %720, %726 : vector<8x256xf32>
    %728 = arith.addf %707, %727 : vector<8x256xf32>
    %c38_149 = arith.constant 38 : index
    %729 = memref.load %arg6[%c38_149] : memref<144xf32, #tpu.memory_space<smem>>
    %730 = vector.broadcast %729 : f32 to vector<8x256xf32>
    %731 = arith.mulf %720, %730 : vector<8x256xf32>
    %732 = arith.addf %711, %731 : vector<8x256xf32>
    %c39_150 = arith.constant 39 : index
    %733 = memref.load %arg6[%c39_150] : memref<144xf32, #tpu.memory_space<smem>>
    %734 = vector.broadcast %733 : f32 to vector<8x256xf32>
    %735 = arith.mulf %720, %734 : vector<8x256xf32>
    %736 = arith.addf %715, %735 : vector<8x256xf32>
    %c1_i32_151 = arith.constant 1 : i32
    %737 = tpu.dynamic_rotate %487 by %c1_i32_151 dim 1 : vector<8x256xf32>, i32 -> vector<8x256xf32>
    %cst_152 = arith.constant 0.000000e+00 : f32
    %738 = vector.broadcast %cst_152 : f32 to vector<8x256xf32>
    %739 = arith.select %9, %738, %737 : vector<8x256xi1>, vector<8x256xf32>
    %c52_153 = arith.constant 52 : index
    %740 = memref.load %arg6[%c52_153] : memref<144xf32, #tpu.memory_space<smem>>
    %741 = vector.broadcast %740 : f32 to vector<8x256xf32>
    %742 = arith.mulf %739, %741 : vector<8x256xf32>
    %743 = arith.addf %724, %742 : vector<8x256xf32>
    %c53_154 = arith.constant 53 : index
    %744 = memref.load %arg6[%c53_154] : memref<144xf32, #tpu.memory_space<smem>>
    %745 = vector.broadcast %744 : f32 to vector<8x256xf32>
    %746 = arith.mulf %739, %745 : vector<8x256xf32>
    %747 = arith.addf %728, %746 : vector<8x256xf32>
    %c54_155 = arith.constant 54 : index
    %748 = memref.load %arg6[%c54_155] : memref<144xf32, #tpu.memory_space<smem>>
    %749 = vector.broadcast %748 : f32 to vector<8x256xf32>
    %750 = arith.mulf %739, %749 : vector<8x256xf32>
    %751 = arith.addf %732, %750 : vector<8x256xf32>
    %c55_156 = arith.constant 55 : index
    %752 = memref.load %arg6[%c55_156] : memref<144xf32, #tpu.memory_space<smem>>
    %753 = vector.broadcast %752 : f32 to vector<8x256xf32>
    %754 = arith.mulf %739, %753 : vector<8x256xf32>
    %755 = arith.addf %736, %754 : vector<8x256xf32>
    %c68_157 = arith.constant 68 : index
    %756 = memref.load %arg6[%c68_157] : memref<144xf32, #tpu.memory_space<smem>>
    %757 = vector.broadcast %756 : f32 to vector<8x256xf32>
    %758 = arith.mulf %487, %757 : vector<8x256xf32>
    %759 = arith.addf %743, %758 : vector<8x256xf32>
    %c69_158 = arith.constant 69 : index
    %760 = memref.load %arg6[%c69_158] : memref<144xf32, #tpu.memory_space<smem>>
    %761 = vector.broadcast %760 : f32 to vector<8x256xf32>
    %762 = arith.mulf %487, %761 : vector<8x256xf32>
    %763 = arith.addf %747, %762 : vector<8x256xf32>
    %c70_159 = arith.constant 70 : index
    %764 = memref.load %arg6[%c70_159] : memref<144xf32, #tpu.memory_space<smem>>
    %765 = vector.broadcast %764 : f32 to vector<8x256xf32>
    %766 = arith.mulf %487, %765 : vector<8x256xf32>
    %767 = arith.addf %751, %766 : vector<8x256xf32>
    %c71_160 = arith.constant 71 : index
    %768 = memref.load %arg6[%c71_160] : memref<144xf32, #tpu.memory_space<smem>>
    %769 = vector.broadcast %768 : f32 to vector<8x256xf32>
    %770 = arith.mulf %487, %769 : vector<8x256xf32>
    %771 = arith.addf %755, %770 : vector<8x256xf32>
    %c255_i32_161 = arith.constant 255 : i32
    %772 = tpu.dynamic_rotate %487 by %c255_i32_161 dim 1 : vector<8x256xf32>, i32 -> vector<8x256xf32>
    %cst_162 = arith.constant 0.000000e+00 : f32
    %773 = vector.broadcast %cst_162 : f32 to vector<8x256xf32>
    %774 = arith.select %11, %773, %772 : vector<8x256xi1>, vector<8x256xf32>
    %c84 = arith.constant 84 : index
    %775 = memref.load %arg6[%c84] : memref<144xf32, #tpu.memory_space<smem>>
    %776 = vector.broadcast %775 : f32 to vector<8x256xf32>
    %777 = arith.mulf %774, %776 : vector<8x256xf32>
    %778 = arith.addf %759, %777 : vector<8x256xf32>
    %c85 = arith.constant 85 : index
    %779 = memref.load %arg6[%c85] : memref<144xf32, #tpu.memory_space<smem>>
    %780 = vector.broadcast %779 : f32 to vector<8x256xf32>
    %781 = arith.mulf %774, %780 : vector<8x256xf32>
    %782 = arith.addf %763, %781 : vector<8x256xf32>
    %c86 = arith.constant 86 : index
    %783 = memref.load %arg6[%c86] : memref<144xf32, #tpu.memory_space<smem>>
    %784 = vector.broadcast %783 : f32 to vector<8x256xf32>
    %785 = arith.mulf %774, %784 : vector<8x256xf32>
    %786 = arith.addf %767, %785 : vector<8x256xf32>
    %c87 = arith.constant 87 : index
    %787 = memref.load %arg6[%c87] : memref<144xf32, #tpu.memory_space<smem>>
    %788 = vector.broadcast %787 : f32 to vector<8x256xf32>
    %789 = arith.mulf %774, %788 : vector<8x256xf32>
    %790 = arith.addf %771, %789 : vector<8x256xf32>
    %c241_i32_163 = arith.constant 241 : i32
    %791 = tpu.dynamic_rotate %487 by %c241_i32_163 dim 1 : vector<8x256xf32>, i32 -> vector<8x256xf32>
    %cst_164 = arith.constant 0.000000e+00 : f32
    %792 = vector.broadcast %cst_164 : f32 to vector<8x256xf32>
    %793 = arith.select %7, %792, %791 : vector<8x256xi1>, vector<8x256xf32>
    %cst_165 = arith.constant 0.000000e+00 : f32
    %794 = vector.broadcast %cst_165 : f32 to vector<8x256xf32>
    %795 = arith.select %9, %794, %793 : vector<8x256xi1>, vector<8x256xf32>
    %c100 = arith.constant 100 : index
    %796 = memref.load %arg6[%c100] : memref<144xf32, #tpu.memory_space<smem>>
    %797 = vector.broadcast %796 : f32 to vector<8x256xf32>
    %798 = arith.mulf %795, %797 : vector<8x256xf32>
    %799 = arith.addf %778, %798 : vector<8x256xf32>
    %c101 = arith.constant 101 : index
    %800 = memref.load %arg6[%c101] : memref<144xf32, #tpu.memory_space<smem>>
    %801 = vector.broadcast %800 : f32 to vector<8x256xf32>
    %802 = arith.mulf %795, %801 : vector<8x256xf32>
    %803 = arith.addf %782, %802 : vector<8x256xf32>
    %c102 = arith.constant 102 : index
    %804 = memref.load %arg6[%c102] : memref<144xf32, #tpu.memory_space<smem>>
    %805 = vector.broadcast %804 : f32 to vector<8x256xf32>
    %806 = arith.mulf %795, %805 : vector<8x256xf32>
    %807 = arith.addf %786, %806 : vector<8x256xf32>
    %c103 = arith.constant 103 : index
    %808 = memref.load %arg6[%c103] : memref<144xf32, #tpu.memory_space<smem>>
    %809 = vector.broadcast %808 : f32 to vector<8x256xf32>
    %810 = arith.mulf %795, %809 : vector<8x256xf32>
    %811 = arith.addf %790, %810 : vector<8x256xf32>
    %c240_i32_166 = arith.constant 240 : i32
    %812 = tpu.dynamic_rotate %487 by %c240_i32_166 dim 1 : vector<8x256xf32>, i32 -> vector<8x256xf32>
    %cst_167 = arith.constant 0.000000e+00 : f32
    %813 = vector.broadcast %cst_167 : f32 to vector<8x256xf32>
    %814 = arith.select %7, %813, %812 : vector<8x256xi1>, vector<8x256xf32>
    %c116 = arith.constant 116 : index
    %815 = memref.load %arg6[%c116] : memref<144xf32, #tpu.memory_space<smem>>
    %816 = vector.broadcast %815 : f32 to vector<8x256xf32>
    %817 = arith.mulf %814, %816 : vector<8x256xf32>
    %818 = arith.addf %799, %817 : vector<8x256xf32>
    %c117 = arith.constant 117 : index
    %819 = memref.load %arg6[%c117] : memref<144xf32, #tpu.memory_space<smem>>
    %820 = vector.broadcast %819 : f32 to vector<8x256xf32>
    %821 = arith.mulf %814, %820 : vector<8x256xf32>
    %822 = arith.addf %803, %821 : vector<8x256xf32>
    %c118 = arith.constant 118 : index
    %823 = memref.load %arg6[%c118] : memref<144xf32, #tpu.memory_space<smem>>
    %824 = vector.broadcast %823 : f32 to vector<8x256xf32>
    %825 = arith.mulf %814, %824 : vector<8x256xf32>
    %826 = arith.addf %807, %825 : vector<8x256xf32>
    %c119 = arith.constant 119 : index
    %827 = memref.load %arg6[%c119] : memref<144xf32, #tpu.memory_space<smem>>
    %828 = vector.broadcast %827 : f32 to vector<8x256xf32>
    %829 = arith.mulf %814, %828 : vector<8x256xf32>
    %830 = arith.addf %811, %829 : vector<8x256xf32>
    %c239_i32_168 = arith.constant 239 : i32
    %831 = tpu.dynamic_rotate %487 by %c239_i32_168 dim 1 : vector<8x256xf32>, i32 -> vector<8x256xf32>
    %cst_169 = arith.constant 0.000000e+00 : f32
    %832 = vector.broadcast %cst_169 : f32 to vector<8x256xf32>
    %833 = arith.select %7, %832, %831 : vector<8x256xi1>, vector<8x256xf32>
    %cst_170 = arith.constant 0.000000e+00 : f32
    %834 = vector.broadcast %cst_170 : f32 to vector<8x256xf32>
    %835 = arith.select %11, %834, %833 : vector<8x256xi1>, vector<8x256xf32>
    %c132 = arith.constant 132 : index
    %836 = memref.load %arg6[%c132] : memref<144xf32, #tpu.memory_space<smem>>
    %837 = vector.broadcast %836 : f32 to vector<8x256xf32>
    %838 = arith.mulf %835, %837 : vector<8x256xf32>
    %839 = arith.addf %818, %838 : vector<8x256xf32>
    %c133 = arith.constant 133 : index
    %840 = memref.load %arg6[%c133] : memref<144xf32, #tpu.memory_space<smem>>
    %841 = vector.broadcast %840 : f32 to vector<8x256xf32>
    %842 = arith.mulf %835, %841 : vector<8x256xf32>
    %843 = arith.addf %822, %842 : vector<8x256xf32>
    %c134 = arith.constant 134 : index
    %844 = memref.load %arg6[%c134] : memref<144xf32, #tpu.memory_space<smem>>
    %845 = vector.broadcast %844 : f32 to vector<8x256xf32>
    %846 = arith.mulf %835, %845 : vector<8x256xf32>
    %847 = arith.addf %826, %846 : vector<8x256xf32>
    %c135 = arith.constant 135 : index
    %848 = memref.load %arg6[%c135] : memref<144xf32, #tpu.memory_space<smem>>
    %849 = vector.broadcast %848 : f32 to vector<8x256xf32>
    %850 = arith.mulf %835, %849 : vector<8x256xf32>
    %851 = arith.addf %830, %850 : vector<8x256xf32>
    %c17_i32_171 = arith.constant 17 : i32
    %852 = tpu.dynamic_rotate %489 by %c17_i32_171 dim 1 : vector<8x256xf32>, i32 -> vector<8x256xf32>
    %cst_172 = arith.constant 0.000000e+00 : f32
    %853 = vector.broadcast %cst_172 : f32 to vector<8x256xf32>
    %854 = arith.select %5, %853, %852 : vector<8x256xi1>, vector<8x256xf32>
    %cst_173 = arith.constant 0.000000e+00 : f32
    %855 = vector.broadcast %cst_173 : f32 to vector<8x256xf32>
    %856 = arith.select %9, %855, %854 : vector<8x256xi1>, vector<8x256xf32>
    %c8_174 = arith.constant 8 : index
    %857 = memref.load %arg6[%c8_174] : memref<144xf32, #tpu.memory_space<smem>>
    %858 = vector.broadcast %857 : f32 to vector<8x256xf32>
    %859 = arith.mulf %856, %858 : vector<8x256xf32>
    %860 = arith.addf %839, %859 : vector<8x256xf32>
    %c9_175 = arith.constant 9 : index
    %861 = memref.load %arg6[%c9_175] : memref<144xf32, #tpu.memory_space<smem>>
    %862 = vector.broadcast %861 : f32 to vector<8x256xf32>
    %863 = arith.mulf %856, %862 : vector<8x256xf32>
    %864 = arith.addf %843, %863 : vector<8x256xf32>
    %c10_176 = arith.constant 10 : index
    %865 = memref.load %arg6[%c10_176] : memref<144xf32, #tpu.memory_space<smem>>
    %866 = vector.broadcast %865 : f32 to vector<8x256xf32>
    %867 = arith.mulf %856, %866 : vector<8x256xf32>
    %868 = arith.addf %847, %867 : vector<8x256xf32>
    %c11_177 = arith.constant 11 : index
    %869 = memref.load %arg6[%c11_177] : memref<144xf32, #tpu.memory_space<smem>>
    %870 = vector.broadcast %869 : f32 to vector<8x256xf32>
    %871 = arith.mulf %856, %870 : vector<8x256xf32>
    %872 = arith.addf %851, %871 : vector<8x256xf32>
    %c16_i32_178 = arith.constant 16 : i32
    %873 = tpu.dynamic_rotate %489 by %c16_i32_178 dim 1 : vector<8x256xf32>, i32 -> vector<8x256xf32>
    %cst_179 = arith.constant 0.000000e+00 : f32
    %874 = vector.broadcast %cst_179 : f32 to vector<8x256xf32>
    %875 = arith.select %5, %874, %873 : vector<8x256xi1>, vector<8x256xf32>
    %c24_180 = arith.constant 24 : index
    %876 = memref.load %arg6[%c24_180] : memref<144xf32, #tpu.memory_space<smem>>
    %877 = vector.broadcast %876 : f32 to vector<8x256xf32>
    %878 = arith.mulf %875, %877 : vector<8x256xf32>
    %879 = arith.addf %860, %878 : vector<8x256xf32>
    %c25_181 = arith.constant 25 : index
    %880 = memref.load %arg6[%c25_181] : memref<144xf32, #tpu.memory_space<smem>>
    %881 = vector.broadcast %880 : f32 to vector<8x256xf32>
    %882 = arith.mulf %875, %881 : vector<8x256xf32>
    %883 = arith.addf %864, %882 : vector<8x256xf32>
    %c26_182 = arith.constant 26 : index
    %884 = memref.load %arg6[%c26_182] : memref<144xf32, #tpu.memory_space<smem>>
    %885 = vector.broadcast %884 : f32 to vector<8x256xf32>
    %886 = arith.mulf %875, %885 : vector<8x256xf32>
    %887 = arith.addf %868, %886 : vector<8x256xf32>
    %c27_183 = arith.constant 27 : index
    %888 = memref.load %arg6[%c27_183] : memref<144xf32, #tpu.memory_space<smem>>
    %889 = vector.broadcast %888 : f32 to vector<8x256xf32>
    %890 = arith.mulf %875, %889 : vector<8x256xf32>
    %891 = arith.addf %872, %890 : vector<8x256xf32>
    %c15_i32_184 = arith.constant 15 : i32
    %892 = tpu.dynamic_rotate %489 by %c15_i32_184 dim 1 : vector<8x256xf32>, i32 -> vector<8x256xf32>
    %cst_185 = arith.constant 0.000000e+00 : f32
    %893 = vector.broadcast %cst_185 : f32 to vector<8x256xf32>
    %894 = arith.select %5, %893, %892 : vector<8x256xi1>, vector<8x256xf32>
    %cst_186 = arith.constant 0.000000e+00 : f32
    %895 = vector.broadcast %cst_186 : f32 to vector<8x256xf32>
    %896 = arith.select %11, %895, %894 : vector<8x256xi1>, vector<8x256xf32>
    %c40_187 = arith.constant 40 : index
    %897 = memref.load %arg6[%c40_187] : memref<144xf32, #tpu.memory_space<smem>>
    %898 = vector.broadcast %897 : f32 to vector<8x256xf32>
    %899 = arith.mulf %896, %898 : vector<8x256xf32>
    %900 = arith.addf %879, %899 : vector<8x256xf32>
    %c41_188 = arith.constant 41 : index
    %901 = memref.load %arg6[%c41_188] : memref<144xf32, #tpu.memory_space<smem>>
    %902 = vector.broadcast %901 : f32 to vector<8x256xf32>
    %903 = arith.mulf %896, %902 : vector<8x256xf32>
    %904 = arith.addf %883, %903 : vector<8x256xf32>
    %c42_189 = arith.constant 42 : index
    %905 = memref.load %arg6[%c42_189] : memref<144xf32, #tpu.memory_space<smem>>
    %906 = vector.broadcast %905 : f32 to vector<8x256xf32>
    %907 = arith.mulf %896, %906 : vector<8x256xf32>
    %908 = arith.addf %887, %907 : vector<8x256xf32>
    %c43_190 = arith.constant 43 : index
    %909 = memref.load %arg6[%c43_190] : memref<144xf32, #tpu.memory_space<smem>>
    %910 = vector.broadcast %909 : f32 to vector<8x256xf32>
    %911 = arith.mulf %896, %910 : vector<8x256xf32>
    %912 = arith.addf %891, %911 : vector<8x256xf32>
    %c1_i32_191 = arith.constant 1 : i32
    %913 = tpu.dynamic_rotate %489 by %c1_i32_191 dim 1 : vector<8x256xf32>, i32 -> vector<8x256xf32>
    %cst_192 = arith.constant 0.000000e+00 : f32
    %914 = vector.broadcast %cst_192 : f32 to vector<8x256xf32>
    %915 = arith.select %9, %914, %913 : vector<8x256xi1>, vector<8x256xf32>
    %c56_193 = arith.constant 56 : index
    %916 = memref.load %arg6[%c56_193] : memref<144xf32, #tpu.memory_space<smem>>
    %917 = vector.broadcast %916 : f32 to vector<8x256xf32>
    %918 = arith.mulf %915, %917 : vector<8x256xf32>
    %919 = arith.addf %900, %918 : vector<8x256xf32>
    %c57_194 = arith.constant 57 : index
    %920 = memref.load %arg6[%c57_194] : memref<144xf32, #tpu.memory_space<smem>>
    %921 = vector.broadcast %920 : f32 to vector<8x256xf32>
    %922 = arith.mulf %915, %921 : vector<8x256xf32>
    %923 = arith.addf %904, %922 : vector<8x256xf32>
    %c58_195 = arith.constant 58 : index
    %924 = memref.load %arg6[%c58_195] : memref<144xf32, #tpu.memory_space<smem>>
    %925 = vector.broadcast %924 : f32 to vector<8x256xf32>
    %926 = arith.mulf %915, %925 : vector<8x256xf32>
    %927 = arith.addf %908, %926 : vector<8x256xf32>
    %c59_196 = arith.constant 59 : index
    %928 = memref.load %arg6[%c59_196] : memref<144xf32, #tpu.memory_space<smem>>
    %929 = vector.broadcast %928 : f32 to vector<8x256xf32>
    %930 = arith.mulf %915, %929 : vector<8x256xf32>
    %931 = arith.addf %912, %930 : vector<8x256xf32>
    %c72 = arith.constant 72 : index
    %932 = memref.load %arg6[%c72] : memref<144xf32, #tpu.memory_space<smem>>
    %933 = vector.broadcast %932 : f32 to vector<8x256xf32>
    %934 = arith.mulf %489, %933 : vector<8x256xf32>
    %935 = arith.addf %919, %934 : vector<8x256xf32>
    %c73 = arith.constant 73 : index
    %936 = memref.load %arg6[%c73] : memref<144xf32, #tpu.memory_space<smem>>
    %937 = vector.broadcast %936 : f32 to vector<8x256xf32>
    %938 = arith.mulf %489, %937 : vector<8x256xf32>
    %939 = arith.addf %923, %938 : vector<8x256xf32>
    %c74 = arith.constant 74 : index
    %940 = memref.load %arg6[%c74] : memref<144xf32, #tpu.memory_space<smem>>
    %941 = vector.broadcast %940 : f32 to vector<8x256xf32>
    %942 = arith.mulf %489, %941 : vector<8x256xf32>
    %943 = arith.addf %927, %942 : vector<8x256xf32>
    %c75 = arith.constant 75 : index
    %944 = memref.load %arg6[%c75] : memref<144xf32, #tpu.memory_space<smem>>
    %945 = vector.broadcast %944 : f32 to vector<8x256xf32>
    %946 = arith.mulf %489, %945 : vector<8x256xf32>
    %947 = arith.addf %931, %946 : vector<8x256xf32>
    %c255_i32_197 = arith.constant 255 : i32
    %948 = tpu.dynamic_rotate %489 by %c255_i32_197 dim 1 : vector<8x256xf32>, i32 -> vector<8x256xf32>
    %cst_198 = arith.constant 0.000000e+00 : f32
    %949 = vector.broadcast %cst_198 : f32 to vector<8x256xf32>
    %950 = arith.select %11, %949, %948 : vector<8x256xi1>, vector<8x256xf32>
    %c88 = arith.constant 88 : index
    %951 = memref.load %arg6[%c88] : memref<144xf32, #tpu.memory_space<smem>>
    %952 = vector.broadcast %951 : f32 to vector<8x256xf32>
    %953 = arith.mulf %950, %952 : vector<8x256xf32>
    %954 = arith.addf %935, %953 : vector<8x256xf32>
    %c89 = arith.constant 89 : index
    %955 = memref.load %arg6[%c89] : memref<144xf32, #tpu.memory_space<smem>>
    %956 = vector.broadcast %955 : f32 to vector<8x256xf32>
    %957 = arith.mulf %950, %956 : vector<8x256xf32>
    %958 = arith.addf %939, %957 : vector<8x256xf32>
    %c90 = arith.constant 90 : index
    %959 = memref.load %arg6[%c90] : memref<144xf32, #tpu.memory_space<smem>>
    %960 = vector.broadcast %959 : f32 to vector<8x256xf32>
    %961 = arith.mulf %950, %960 : vector<8x256xf32>
    %962 = arith.addf %943, %961 : vector<8x256xf32>
    %c91 = arith.constant 91 : index
    %963 = memref.load %arg6[%c91] : memref<144xf32, #tpu.memory_space<smem>>
    %964 = vector.broadcast %963 : f32 to vector<8x256xf32>
    %965 = arith.mulf %950, %964 : vector<8x256xf32>
    %966 = arith.addf %947, %965 : vector<8x256xf32>
    %c241_i32_199 = arith.constant 241 : i32
    %967 = tpu.dynamic_rotate %489 by %c241_i32_199 dim 1 : vector<8x256xf32>, i32 -> vector<8x256xf32>
    %cst_200 = arith.constant 0.000000e+00 : f32
    %968 = vector.broadcast %cst_200 : f32 to vector<8x256xf32>
    %969 = arith.select %7, %968, %967 : vector<8x256xi1>, vector<8x256xf32>
    %cst_201 = arith.constant 0.000000e+00 : f32
    %970 = vector.broadcast %cst_201 : f32 to vector<8x256xf32>
    %971 = arith.select %9, %970, %969 : vector<8x256xi1>, vector<8x256xf32>
    %c104 = arith.constant 104 : index
    %972 = memref.load %arg6[%c104] : memref<144xf32, #tpu.memory_space<smem>>
    %973 = vector.broadcast %972 : f32 to vector<8x256xf32>
    %974 = arith.mulf %971, %973 : vector<8x256xf32>
    %975 = arith.addf %954, %974 : vector<8x256xf32>
    %c105 = arith.constant 105 : index
    %976 = memref.load %arg6[%c105] : memref<144xf32, #tpu.memory_space<smem>>
    %977 = vector.broadcast %976 : f32 to vector<8x256xf32>
    %978 = arith.mulf %971, %977 : vector<8x256xf32>
    %979 = arith.addf %958, %978 : vector<8x256xf32>
    %c106 = arith.constant 106 : index
    %980 = memref.load %arg6[%c106] : memref<144xf32, #tpu.memory_space<smem>>
    %981 = vector.broadcast %980 : f32 to vector<8x256xf32>
    %982 = arith.mulf %971, %981 : vector<8x256xf32>
    %983 = arith.addf %962, %982 : vector<8x256xf32>
    %c107 = arith.constant 107 : index
    %984 = memref.load %arg6[%c107] : memref<144xf32, #tpu.memory_space<smem>>
    %985 = vector.broadcast %984 : f32 to vector<8x256xf32>
    %986 = arith.mulf %971, %985 : vector<8x256xf32>
    %987 = arith.addf %966, %986 : vector<8x256xf32>
    %c240_i32_202 = arith.constant 240 : i32
    %988 = tpu.dynamic_rotate %489 by %c240_i32_202 dim 1 : vector<8x256xf32>, i32 -> vector<8x256xf32>
    %cst_203 = arith.constant 0.000000e+00 : f32
    %989 = vector.broadcast %cst_203 : f32 to vector<8x256xf32>
    %990 = arith.select %7, %989, %988 : vector<8x256xi1>, vector<8x256xf32>
    %c120 = arith.constant 120 : index
    %991 = memref.load %arg6[%c120] : memref<144xf32, #tpu.memory_space<smem>>
    %992 = vector.broadcast %991 : f32 to vector<8x256xf32>
    %993 = arith.mulf %990, %992 : vector<8x256xf32>
    %994 = arith.addf %975, %993 : vector<8x256xf32>
    %c121 = arith.constant 121 : index
    %995 = memref.load %arg6[%c121] : memref<144xf32, #tpu.memory_space<smem>>
    %996 = vector.broadcast %995 : f32 to vector<8x256xf32>
    %997 = arith.mulf %990, %996 : vector<8x256xf32>
    %998 = arith.addf %979, %997 : vector<8x256xf32>
    %c122 = arith.constant 122 : index
    %999 = memref.load %arg6[%c122] : memref<144xf32, #tpu.memory_space<smem>>
    %1000 = vector.broadcast %999 : f32 to vector<8x256xf32>
    %1001 = arith.mulf %990, %1000 : vector<8x256xf32>
    %1002 = arith.addf %983, %1001 : vector<8x256xf32>
    %c123 = arith.constant 123 : index
    %1003 = memref.load %arg6[%c123] : memref<144xf32, #tpu.memory_space<smem>>
    %1004 = vector.broadcast %1003 : f32 to vector<8x256xf32>
    %1005 = arith.mulf %990, %1004 : vector<8x256xf32>
    %1006 = arith.addf %987, %1005 : vector<8x256xf32>
    %c239_i32_204 = arith.constant 239 : i32
    %1007 = tpu.dynamic_rotate %489 by %c239_i32_204 dim 1 : vector<8x256xf32>, i32 -> vector<8x256xf32>
    %cst_205 = arith.constant 0.000000e+00 : f32
    %1008 = vector.broadcast %cst_205 : f32 to vector<8x256xf32>
    %1009 = arith.select %7, %1008, %1007 : vector<8x256xi1>, vector<8x256xf32>
    %cst_206 = arith.constant 0.000000e+00 : f32
    %1010 = vector.broadcast %cst_206 : f32 to vector<8x256xf32>
    %1011 = arith.select %11, %1010, %1009 : vector<8x256xi1>, vector<8x256xf32>
    %c136 = arith.constant 136 : index
    %1012 = memref.load %arg6[%c136] : memref<144xf32, #tpu.memory_space<smem>>
    %1013 = vector.broadcast %1012 : f32 to vector<8x256xf32>
    %1014 = arith.mulf %1011, %1013 : vector<8x256xf32>
    %1015 = arith.addf %994, %1014 : vector<8x256xf32>
    %c137 = arith.constant 137 : index
    %1016 = memref.load %arg6[%c137] : memref<144xf32, #tpu.memory_space<smem>>
    %1017 = vector.broadcast %1016 : f32 to vector<8x256xf32>
    %1018 = arith.mulf %1011, %1017 : vector<8x256xf32>
    %1019 = arith.addf %998, %1018 : vector<8x256xf32>
    %c138 = arith.constant 138 : index
    %1020 = memref.load %arg6[%c138] : memref<144xf32, #tpu.memory_space<smem>>
    %1021 = vector.broadcast %1020 : f32 to vector<8x256xf32>
    %1022 = arith.mulf %1011, %1021 : vector<8x256xf32>
    %1023 = arith.addf %1002, %1022 : vector<8x256xf32>
    %c139 = arith.constant 139 : index
    %1024 = memref.load %arg6[%c139] : memref<144xf32, #tpu.memory_space<smem>>
    %1025 = vector.broadcast %1024 : f32 to vector<8x256xf32>
    %1026 = arith.mulf %1011, %1025 : vector<8x256xf32>
    %1027 = arith.addf %1006, %1026 : vector<8x256xf32>
    %c17_i32_207 = arith.constant 17 : i32
    %1028 = tpu.dynamic_rotate %491 by %c17_i32_207 dim 1 : vector<8x256xf32>, i32 -> vector<8x256xf32>
    %cst_208 = arith.constant 0.000000e+00 : f32
    %1029 = vector.broadcast %cst_208 : f32 to vector<8x256xf32>
    %1030 = arith.select %5, %1029, %1028 : vector<8x256xi1>, vector<8x256xf32>
    %cst_209 = arith.constant 0.000000e+00 : f32
    %1031 = vector.broadcast %cst_209 : f32 to vector<8x256xf32>
    %1032 = arith.select %9, %1031, %1030 : vector<8x256xi1>, vector<8x256xf32>
    %c12_210 = arith.constant 12 : index
    %1033 = memref.load %arg6[%c12_210] : memref<144xf32, #tpu.memory_space<smem>>
    %1034 = vector.broadcast %1033 : f32 to vector<8x256xf32>
    %1035 = arith.mulf %1032, %1034 : vector<8x256xf32>
    %1036 = arith.addf %1015, %1035 : vector<8x256xf32>
    %c13_211 = arith.constant 13 : index
    %1037 = memref.load %arg6[%c13_211] : memref<144xf32, #tpu.memory_space<smem>>
    %1038 = vector.broadcast %1037 : f32 to vector<8x256xf32>
    %1039 = arith.mulf %1032, %1038 : vector<8x256xf32>
    %1040 = arith.addf %1019, %1039 : vector<8x256xf32>
    %c14_212 = arith.constant 14 : index
    %1041 = memref.load %arg6[%c14_212] : memref<144xf32, #tpu.memory_space<smem>>
    %1042 = vector.broadcast %1041 : f32 to vector<8x256xf32>
    %1043 = arith.mulf %1032, %1042 : vector<8x256xf32>
    %1044 = arith.addf %1023, %1043 : vector<8x256xf32>
    %c15_213 = arith.constant 15 : index
    %1045 = memref.load %arg6[%c15_213] : memref<144xf32, #tpu.memory_space<smem>>
    %1046 = vector.broadcast %1045 : f32 to vector<8x256xf32>
    %1047 = arith.mulf %1032, %1046 : vector<8x256xf32>
    %1048 = arith.addf %1027, %1047 : vector<8x256xf32>
    %c16_i32_214 = arith.constant 16 : i32
    %1049 = tpu.dynamic_rotate %491 by %c16_i32_214 dim 1 : vector<8x256xf32>, i32 -> vector<8x256xf32>
    %cst_215 = arith.constant 0.000000e+00 : f32
    %1050 = vector.broadcast %cst_215 : f32 to vector<8x256xf32>
    %1051 = arith.select %5, %1050, %1049 : vector<8x256xi1>, vector<8x256xf32>
    %c28_216 = arith.constant 28 : index
    %1052 = memref.load %arg6[%c28_216] : memref<144xf32, #tpu.memory_space<smem>>
    %1053 = vector.broadcast %1052 : f32 to vector<8x256xf32>
    %1054 = arith.mulf %1051, %1053 : vector<8x256xf32>
    %1055 = arith.addf %1036, %1054 : vector<8x256xf32>
    %c29_217 = arith.constant 29 : index
    %1056 = memref.load %arg6[%c29_217] : memref<144xf32, #tpu.memory_space<smem>>
    %1057 = vector.broadcast %1056 : f32 to vector<8x256xf32>
    %1058 = arith.mulf %1051, %1057 : vector<8x256xf32>
    %1059 = arith.addf %1040, %1058 : vector<8x256xf32>
    %c30_218 = arith.constant 30 : index
    %1060 = memref.load %arg6[%c30_218] : memref<144xf32, #tpu.memory_space<smem>>
    %1061 = vector.broadcast %1060 : f32 to vector<8x256xf32>
    %1062 = arith.mulf %1051, %1061 : vector<8x256xf32>
    %1063 = arith.addf %1044, %1062 : vector<8x256xf32>
    %c31_219 = arith.constant 31 : index
    %1064 = memref.load %arg6[%c31_219] : memref<144xf32, #tpu.memory_space<smem>>
    %1065 = vector.broadcast %1064 : f32 to vector<8x256xf32>
    %1066 = arith.mulf %1051, %1065 : vector<8x256xf32>
    %1067 = arith.addf %1048, %1066 : vector<8x256xf32>
    %c15_i32_220 = arith.constant 15 : i32
    %1068 = tpu.dynamic_rotate %491 by %c15_i32_220 dim 1 : vector<8x256xf32>, i32 -> vector<8x256xf32>
    %cst_221 = arith.constant 0.000000e+00 : f32
    %1069 = vector.broadcast %cst_221 : f32 to vector<8x256xf32>
    %1070 = arith.select %5, %1069, %1068 : vector<8x256xi1>, vector<8x256xf32>
    %cst_222 = arith.constant 0.000000e+00 : f32
    %1071 = vector.broadcast %cst_222 : f32 to vector<8x256xf32>
    %1072 = arith.select %11, %1071, %1070 : vector<8x256xi1>, vector<8x256xf32>
    %c44_223 = arith.constant 44 : index
    %1073 = memref.load %arg6[%c44_223] : memref<144xf32, #tpu.memory_space<smem>>
    %1074 = vector.broadcast %1073 : f32 to vector<8x256xf32>
    %1075 = arith.mulf %1072, %1074 : vector<8x256xf32>
    %1076 = arith.addf %1055, %1075 : vector<8x256xf32>
    %c45_224 = arith.constant 45 : index
    %1077 = memref.load %arg6[%c45_224] : memref<144xf32, #tpu.memory_space<smem>>
    %1078 = vector.broadcast %1077 : f32 to vector<8x256xf32>
    %1079 = arith.mulf %1072, %1078 : vector<8x256xf32>
    %1080 = arith.addf %1059, %1079 : vector<8x256xf32>
    %c46_225 = arith.constant 46 : index
    %1081 = memref.load %arg6[%c46_225] : memref<144xf32, #tpu.memory_space<smem>>
    %1082 = vector.broadcast %1081 : f32 to vector<8x256xf32>
    %1083 = arith.mulf %1072, %1082 : vector<8x256xf32>
    %1084 = arith.addf %1063, %1083 : vector<8x256xf32>
    %c47_226 = arith.constant 47 : index
    %1085 = memref.load %arg6[%c47_226] : memref<144xf32, #tpu.memory_space<smem>>
    %1086 = vector.broadcast %1085 : f32 to vector<8x256xf32>
    %1087 = arith.mulf %1072, %1086 : vector<8x256xf32>
    %1088 = arith.addf %1067, %1087 : vector<8x256xf32>
    %c1_i32_227 = arith.constant 1 : i32
    %1089 = tpu.dynamic_rotate %491 by %c1_i32_227 dim 1 : vector<8x256xf32>, i32 -> vector<8x256xf32>
    %cst_228 = arith.constant 0.000000e+00 : f32
    %1090 = vector.broadcast %cst_228 : f32 to vector<8x256xf32>
    %1091 = arith.select %9, %1090, %1089 : vector<8x256xi1>, vector<8x256xf32>
    %c60_229 = arith.constant 60 : index
    %1092 = memref.load %arg6[%c60_229] : memref<144xf32, #tpu.memory_space<smem>>
    %1093 = vector.broadcast %1092 : f32 to vector<8x256xf32>
    %1094 = arith.mulf %1091, %1093 : vector<8x256xf32>
    %1095 = arith.addf %1076, %1094 : vector<8x256xf32>
    %c61_230 = arith.constant 61 : index
    %1096 = memref.load %arg6[%c61_230] : memref<144xf32, #tpu.memory_space<smem>>
    %1097 = vector.broadcast %1096 : f32 to vector<8x256xf32>
    %1098 = arith.mulf %1091, %1097 : vector<8x256xf32>
    %1099 = arith.addf %1080, %1098 : vector<8x256xf32>
    %c62_231 = arith.constant 62 : index
    %1100 = memref.load %arg6[%c62_231] : memref<144xf32, #tpu.memory_space<smem>>
    %1101 = vector.broadcast %1100 : f32 to vector<8x256xf32>
    %1102 = arith.mulf %1091, %1101 : vector<8x256xf32>
    %1103 = arith.addf %1084, %1102 : vector<8x256xf32>
    %c63_232 = arith.constant 63 : index
    %1104 = memref.load %arg6[%c63_232] : memref<144xf32, #tpu.memory_space<smem>>
    %1105 = vector.broadcast %1104 : f32 to vector<8x256xf32>
    %1106 = arith.mulf %1091, %1105 : vector<8x256xf32>
    %1107 = arith.addf %1088, %1106 : vector<8x256xf32>
    %c76 = arith.constant 76 : index
    %1108 = memref.load %arg6[%c76] : memref<144xf32, #tpu.memory_space<smem>>
    %1109 = vector.broadcast %1108 : f32 to vector<8x256xf32>
    %1110 = arith.mulf %491, %1109 : vector<8x256xf32>
    %1111 = arith.addf %1095, %1110 : vector<8x256xf32>
    %c77 = arith.constant 77 : index
    %1112 = memref.load %arg6[%c77] : memref<144xf32, #tpu.memory_space<smem>>
    %1113 = vector.broadcast %1112 : f32 to vector<8x256xf32>
    %1114 = arith.mulf %491, %1113 : vector<8x256xf32>
    %1115 = arith.addf %1099, %1114 : vector<8x256xf32>
    %c78 = arith.constant 78 : index
    %1116 = memref.load %arg6[%c78] : memref<144xf32, #tpu.memory_space<smem>>
    %1117 = vector.broadcast %1116 : f32 to vector<8x256xf32>
    %1118 = arith.mulf %491, %1117 : vector<8x256xf32>
    %1119 = arith.addf %1103, %1118 : vector<8x256xf32>
    %c79 = arith.constant 79 : index
    %1120 = memref.load %arg6[%c79] : memref<144xf32, #tpu.memory_space<smem>>
    %1121 = vector.broadcast %1120 : f32 to vector<8x256xf32>
    %1122 = arith.mulf %491, %1121 : vector<8x256xf32>
    %1123 = arith.addf %1107, %1122 : vector<8x256xf32>
    %c255_i32_233 = arith.constant 255 : i32
    %1124 = tpu.dynamic_rotate %491 by %c255_i32_233 dim 1 : vector<8x256xf32>, i32 -> vector<8x256xf32>
    %cst_234 = arith.constant 0.000000e+00 : f32
    %1125 = vector.broadcast %cst_234 : f32 to vector<8x256xf32>
    %1126 = arith.select %11, %1125, %1124 : vector<8x256xi1>, vector<8x256xf32>
    %c92 = arith.constant 92 : index
    %1127 = memref.load %arg6[%c92] : memref<144xf32, #tpu.memory_space<smem>>
    %1128 = vector.broadcast %1127 : f32 to vector<8x256xf32>
    %1129 = arith.mulf %1126, %1128 : vector<8x256xf32>
    %1130 = arith.addf %1111, %1129 : vector<8x256xf32>
    %c93 = arith.constant 93 : index
    %1131 = memref.load %arg6[%c93] : memref<144xf32, #tpu.memory_space<smem>>
    %1132 = vector.broadcast %1131 : f32 to vector<8x256xf32>
    %1133 = arith.mulf %1126, %1132 : vector<8x256xf32>
    %1134 = arith.addf %1115, %1133 : vector<8x256xf32>
    %c94 = arith.constant 94 : index
    %1135 = memref.load %arg6[%c94] : memref<144xf32, #tpu.memory_space<smem>>
    %1136 = vector.broadcast %1135 : f32 to vector<8x256xf32>
    %1137 = arith.mulf %1126, %1136 : vector<8x256xf32>
    %1138 = arith.addf %1119, %1137 : vector<8x256xf32>
    %c95 = arith.constant 95 : index
    %1139 = memref.load %arg6[%c95] : memref<144xf32, #tpu.memory_space<smem>>
    %1140 = vector.broadcast %1139 : f32 to vector<8x256xf32>
    %1141 = arith.mulf %1126, %1140 : vector<8x256xf32>
    %1142 = arith.addf %1123, %1141 : vector<8x256xf32>
    %c241_i32_235 = arith.constant 241 : i32
    %1143 = tpu.dynamic_rotate %491 by %c241_i32_235 dim 1 : vector<8x256xf32>, i32 -> vector<8x256xf32>
    %cst_236 = arith.constant 0.000000e+00 : f32
    %1144 = vector.broadcast %cst_236 : f32 to vector<8x256xf32>
    %1145 = arith.select %7, %1144, %1143 : vector<8x256xi1>, vector<8x256xf32>
    %cst_237 = arith.constant 0.000000e+00 : f32
    %1146 = vector.broadcast %cst_237 : f32 to vector<8x256xf32>
    %1147 = arith.select %9, %1146, %1145 : vector<8x256xi1>, vector<8x256xf32>
    %c108 = arith.constant 108 : index
    %1148 = memref.load %arg6[%c108] : memref<144xf32, #tpu.memory_space<smem>>
    %1149 = vector.broadcast %1148 : f32 to vector<8x256xf32>
    %1150 = arith.mulf %1147, %1149 : vector<8x256xf32>
    %1151 = arith.addf %1130, %1150 : vector<8x256xf32>
    %c109 = arith.constant 109 : index
    %1152 = memref.load %arg6[%c109] : memref<144xf32, #tpu.memory_space<smem>>
    %1153 = vector.broadcast %1152 : f32 to vector<8x256xf32>
    %1154 = arith.mulf %1147, %1153 : vector<8x256xf32>
    %1155 = arith.addf %1134, %1154 : vector<8x256xf32>
    %c110 = arith.constant 110 : index
    %1156 = memref.load %arg6[%c110] : memref<144xf32, #tpu.memory_space<smem>>
    %1157 = vector.broadcast %1156 : f32 to vector<8x256xf32>
    %1158 = arith.mulf %1147, %1157 : vector<8x256xf32>
    %1159 = arith.addf %1138, %1158 : vector<8x256xf32>
    %c111 = arith.constant 111 : index
    %1160 = memref.load %arg6[%c111] : memref<144xf32, #tpu.memory_space<smem>>
    %1161 = vector.broadcast %1160 : f32 to vector<8x256xf32>
    %1162 = arith.mulf %1147, %1161 : vector<8x256xf32>
    %1163 = arith.addf %1142, %1162 : vector<8x256xf32>
    %c240_i32_238 = arith.constant 240 : i32
    %1164 = tpu.dynamic_rotate %491 by %c240_i32_238 dim 1 : vector<8x256xf32>, i32 -> vector<8x256xf32>
    %cst_239 = arith.constant 0.000000e+00 : f32
    %1165 = vector.broadcast %cst_239 : f32 to vector<8x256xf32>
    %1166 = arith.select %7, %1165, %1164 : vector<8x256xi1>, vector<8x256xf32>
    %c124 = arith.constant 124 : index
    %1167 = memref.load %arg6[%c124] : memref<144xf32, #tpu.memory_space<smem>>
    %1168 = vector.broadcast %1167 : f32 to vector<8x256xf32>
    %1169 = arith.mulf %1166, %1168 : vector<8x256xf32>
    %1170 = arith.addf %1151, %1169 : vector<8x256xf32>
    %c125 = arith.constant 125 : index
    %1171 = memref.load %arg6[%c125] : memref<144xf32, #tpu.memory_space<smem>>
    %1172 = vector.broadcast %1171 : f32 to vector<8x256xf32>
    %1173 = arith.mulf %1166, %1172 : vector<8x256xf32>
    %1174 = arith.addf %1155, %1173 : vector<8x256xf32>
    %c126 = arith.constant 126 : index
    %1175 = memref.load %arg6[%c126] : memref<144xf32, #tpu.memory_space<smem>>
    %1176 = vector.broadcast %1175 : f32 to vector<8x256xf32>
    %1177 = arith.mulf %1166, %1176 : vector<8x256xf32>
    %1178 = arith.addf %1159, %1177 : vector<8x256xf32>
    %c127 = arith.constant 127 : index
    %1179 = memref.load %arg6[%c127] : memref<144xf32, #tpu.memory_space<smem>>
    %1180 = vector.broadcast %1179 : f32 to vector<8x256xf32>
    %1181 = arith.mulf %1166, %1180 : vector<8x256xf32>
    %1182 = arith.addf %1163, %1181 : vector<8x256xf32>
    %c239_i32_240 = arith.constant 239 : i32
    %1183 = tpu.dynamic_rotate %491 by %c239_i32_240 dim 1 : vector<8x256xf32>, i32 -> vector<8x256xf32>
    %cst_241 = arith.constant 0.000000e+00 : f32
    %1184 = vector.broadcast %cst_241 : f32 to vector<8x256xf32>
    %1185 = arith.select %7, %1184, %1183 : vector<8x256xi1>, vector<8x256xf32>
    %cst_242 = arith.constant 0.000000e+00 : f32
    %1186 = vector.broadcast %cst_242 : f32 to vector<8x256xf32>
    %1187 = arith.select %11, %1186, %1185 : vector<8x256xi1>, vector<8x256xf32>
    %c140 = arith.constant 140 : index
    %1188 = memref.load %arg6[%c140] : memref<144xf32, #tpu.memory_space<smem>>
    %1189 = vector.broadcast %1188 : f32 to vector<8x256xf32>
    %1190 = arith.mulf %1187, %1189 : vector<8x256xf32>
    %1191 = arith.addf %1170, %1190 : vector<8x256xf32>
    %c141 = arith.constant 141 : index
    %1192 = memref.load %arg6[%c141] : memref<144xf32, #tpu.memory_space<smem>>
    %1193 = vector.broadcast %1192 : f32 to vector<8x256xf32>
    %1194 = arith.mulf %1187, %1193 : vector<8x256xf32>
    %1195 = arith.addf %1174, %1194 : vector<8x256xf32>
    %c142 = arith.constant 142 : index
    %1196 = memref.load %arg6[%c142] : memref<144xf32, #tpu.memory_space<smem>>
    %1197 = vector.broadcast %1196 : f32 to vector<8x256xf32>
    %1198 = arith.mulf %1187, %1197 : vector<8x256xf32>
    %1199 = arith.addf %1178, %1198 : vector<8x256xf32>
    %c143 = arith.constant 143 : index
    %1200 = memref.load %arg6[%c143] : memref<144xf32, #tpu.memory_space<smem>>
    %1201 = vector.broadcast %1200 : f32 to vector<8x256xf32>
    %1202 = arith.mulf %1187, %1201 : vector<8x256xf32>
    %1203 = arith.addf %1182, %1202 : vector<8x256xf32>
    %cst_243 = arith.constant 0.000000e+00 : f32
    %1204 = vector.broadcast %cst_243 : f32 to vector<8x256xf32>
    %1205 = arith.maximumf %1191, %1204 : vector<8x256xf32>
    %cst_244 = arith.constant 0.000000e+00 : f32
    %1206 = vector.broadcast %cst_244 : f32 to vector<8x256xf32>
    %1207 = arith.maximumf %1195, %1206 : vector<8x256xf32>
    %cst_245 = arith.constant 0.000000e+00 : f32
    %1208 = vector.broadcast %cst_245 : f32 to vector<8x256xf32>
    %1209 = arith.maximumf %1199, %1208 : vector<8x256xf32>
    %cst_246 = arith.constant 0.000000e+00 : f32
    %1210 = vector.broadcast %cst_246 : f32 to vector<8x256xf32>
    %1211 = arith.maximumf %1203, %1210 : vector<8x256xf32>
    %c0_247 = arith.constant 0 : index
    %1212 = memref.load %arg9[%c0_247] : memref<2xf32, #tpu.memory_space<smem>>
    %1213 = vector.broadcast %1212 : f32 to vector<8x256xf32>
    %c1_248 = arith.constant 1 : index
    %1214 = memref.load %arg9[%c1_248] : memref<2xf32, #tpu.memory_space<smem>>
    %1215 = vector.broadcast %1214 : f32 to vector<8x256xf32>
    %c17_i32_249 = arith.constant 17 : i32
    %1216 = tpu.dynamic_rotate %1205 by %c17_i32_249 dim 1 : vector<8x256xf32>, i32 -> vector<8x256xf32>
    %cst_250 = arith.constant 0.000000e+00 : f32
    %1217 = vector.broadcast %cst_250 : f32 to vector<8x256xf32>
    %1218 = arith.select %5, %1217, %1216 : vector<8x256xi1>, vector<8x256xf32>
    %cst_251 = arith.constant 0.000000e+00 : f32
    %1219 = vector.broadcast %cst_251 : f32 to vector<8x256xf32>
    %1220 = arith.select %9, %1219, %1218 : vector<8x256xi1>, vector<8x256xf32>
    %c0_252 = arith.constant 0 : index
    %1221 = memref.load %arg8[%c0_252] : memref<72xf32, #tpu.memory_space<smem>>
    %1222 = vector.broadcast %1221 : f32 to vector<8x256xf32>
    %1223 = arith.mulf %1220, %1222 : vector<8x256xf32>
    %1224 = arith.addf %1213, %1223 : vector<8x256xf32>
    %c1_253 = arith.constant 1 : index
    %1225 = memref.load %arg8[%c1_253] : memref<72xf32, #tpu.memory_space<smem>>
    %1226 = vector.broadcast %1225 : f32 to vector<8x256xf32>
    %1227 = arith.mulf %1220, %1226 : vector<8x256xf32>
    %1228 = arith.addf %1215, %1227 : vector<8x256xf32>
    %c16_i32_254 = arith.constant 16 : i32
    %1229 = tpu.dynamic_rotate %1205 by %c16_i32_254 dim 1 : vector<8x256xf32>, i32 -> vector<8x256xf32>
    %cst_255 = arith.constant 0.000000e+00 : f32
    %1230 = vector.broadcast %cst_255 : f32 to vector<8x256xf32>
    %1231 = arith.select %5, %1230, %1229 : vector<8x256xi1>, vector<8x256xf32>
    %c8_256 = arith.constant 8 : index
    %1232 = memref.load %arg8[%c8_256] : memref<72xf32, #tpu.memory_space<smem>>
    %1233 = vector.broadcast %1232 : f32 to vector<8x256xf32>
    %1234 = arith.mulf %1231, %1233 : vector<8x256xf32>
    %1235 = arith.addf %1224, %1234 : vector<8x256xf32>
    %c9_257 = arith.constant 9 : index
    %1236 = memref.load %arg8[%c9_257] : memref<72xf32, #tpu.memory_space<smem>>
    %1237 = vector.broadcast %1236 : f32 to vector<8x256xf32>
    %1238 = arith.mulf %1231, %1237 : vector<8x256xf32>
    %1239 = arith.addf %1228, %1238 : vector<8x256xf32>
    %c15_i32_258 = arith.constant 15 : i32
    %1240 = tpu.dynamic_rotate %1205 by %c15_i32_258 dim 1 : vector<8x256xf32>, i32 -> vector<8x256xf32>
    %cst_259 = arith.constant 0.000000e+00 : f32
    %1241 = vector.broadcast %cst_259 : f32 to vector<8x256xf32>
    %1242 = arith.select %5, %1241, %1240 : vector<8x256xi1>, vector<8x256xf32>
    %cst_260 = arith.constant 0.000000e+00 : f32
    %1243 = vector.broadcast %cst_260 : f32 to vector<8x256xf32>
    %1244 = arith.select %11, %1243, %1242 : vector<8x256xi1>, vector<8x256xf32>
    %c16_261 = arith.constant 16 : index
    %1245 = memref.load %arg8[%c16_261] : memref<72xf32, #tpu.memory_space<smem>>
    %1246 = vector.broadcast %1245 : f32 to vector<8x256xf32>
    %1247 = arith.mulf %1244, %1246 : vector<8x256xf32>
    %1248 = arith.addf %1235, %1247 : vector<8x256xf32>
    %c17_262 = arith.constant 17 : index
    %1249 = memref.load %arg8[%c17_262] : memref<72xf32, #tpu.memory_space<smem>>
    %1250 = vector.broadcast %1249 : f32 to vector<8x256xf32>
    %1251 = arith.mulf %1244, %1250 : vector<8x256xf32>
    %1252 = arith.addf %1239, %1251 : vector<8x256xf32>
    %c1_i32_263 = arith.constant 1 : i32
    %1253 = tpu.dynamic_rotate %1205 by %c1_i32_263 dim 1 : vector<8x256xf32>, i32 -> vector<8x256xf32>
    %cst_264 = arith.constant 0.000000e+00 : f32
    %1254 = vector.broadcast %cst_264 : f32 to vector<8x256xf32>
    %1255 = arith.select %9, %1254, %1253 : vector<8x256xi1>, vector<8x256xf32>
    %c24_265 = arith.constant 24 : index
    %1256 = memref.load %arg8[%c24_265] : memref<72xf32, #tpu.memory_space<smem>>
    %1257 = vector.broadcast %1256 : f32 to vector<8x256xf32>
    %1258 = arith.mulf %1255, %1257 : vector<8x256xf32>
    %1259 = arith.addf %1248, %1258 : vector<8x256xf32>
    %c25_266 = arith.constant 25 : index
    %1260 = memref.load %arg8[%c25_266] : memref<72xf32, #tpu.memory_space<smem>>
    %1261 = vector.broadcast %1260 : f32 to vector<8x256xf32>
    %1262 = arith.mulf %1255, %1261 : vector<8x256xf32>
    %1263 = arith.addf %1252, %1262 : vector<8x256xf32>
    %c32_267 = arith.constant 32 : index
    %1264 = memref.load %arg8[%c32_267] : memref<72xf32, #tpu.memory_space<smem>>
    %1265 = vector.broadcast %1264 : f32 to vector<8x256xf32>
    %1266 = arith.mulf %1205, %1265 : vector<8x256xf32>
    %1267 = arith.addf %1259, %1266 : vector<8x256xf32>
    %c33_268 = arith.constant 33 : index
    %1268 = memref.load %arg8[%c33_268] : memref<72xf32, #tpu.memory_space<smem>>
    %1269 = vector.broadcast %1268 : f32 to vector<8x256xf32>
    %1270 = arith.mulf %1205, %1269 : vector<8x256xf32>
    %1271 = arith.addf %1263, %1270 : vector<8x256xf32>
    %c255_i32_269 = arith.constant 255 : i32
    %1272 = tpu.dynamic_rotate %1205 by %c255_i32_269 dim 1 : vector<8x256xf32>, i32 -> vector<8x256xf32>
    %cst_270 = arith.constant 0.000000e+00 : f32
    %1273 = vector.broadcast %cst_270 : f32 to vector<8x256xf32>
    %1274 = arith.select %11, %1273, %1272 : vector<8x256xi1>, vector<8x256xf32>
    %c40_271 = arith.constant 40 : index
    %1275 = memref.load %arg8[%c40_271] : memref<72xf32, #tpu.memory_space<smem>>
    %1276 = vector.broadcast %1275 : f32 to vector<8x256xf32>
    %1277 = arith.mulf %1274, %1276 : vector<8x256xf32>
    %1278 = arith.addf %1267, %1277 : vector<8x256xf32>
    %c41_272 = arith.constant 41 : index
    %1279 = memref.load %arg8[%c41_272] : memref<72xf32, #tpu.memory_space<smem>>
    %1280 = vector.broadcast %1279 : f32 to vector<8x256xf32>
    %1281 = arith.mulf %1274, %1280 : vector<8x256xf32>
    %1282 = arith.addf %1271, %1281 : vector<8x256xf32>
    %c241_i32_273 = arith.constant 241 : i32
    %1283 = tpu.dynamic_rotate %1205 by %c241_i32_273 dim 1 : vector<8x256xf32>, i32 -> vector<8x256xf32>
    %cst_274 = arith.constant 0.000000e+00 : f32
    %1284 = vector.broadcast %cst_274 : f32 to vector<8x256xf32>
    %1285 = arith.select %7, %1284, %1283 : vector<8x256xi1>, vector<8x256xf32>
    %cst_275 = arith.constant 0.000000e+00 : f32
    %1286 = vector.broadcast %cst_275 : f32 to vector<8x256xf32>
    %1287 = arith.select %9, %1286, %1285 : vector<8x256xi1>, vector<8x256xf32>
    %c48_276 = arith.constant 48 : index
    %1288 = memref.load %arg8[%c48_276] : memref<72xf32, #tpu.memory_space<smem>>
    %1289 = vector.broadcast %1288 : f32 to vector<8x256xf32>
    %1290 = arith.mulf %1287, %1289 : vector<8x256xf32>
    %1291 = arith.addf %1278, %1290 : vector<8x256xf32>
    %c49_277 = arith.constant 49 : index
    %1292 = memref.load %arg8[%c49_277] : memref<72xf32, #tpu.memory_space<smem>>
    %1293 = vector.broadcast %1292 : f32 to vector<8x256xf32>
    %1294 = arith.mulf %1287, %1293 : vector<8x256xf32>
    %1295 = arith.addf %1282, %1294 : vector<8x256xf32>
    %c240_i32_278 = arith.constant 240 : i32
    %1296 = tpu.dynamic_rotate %1205 by %c240_i32_278 dim 1 : vector<8x256xf32>, i32 -> vector<8x256xf32>
    %cst_279 = arith.constant 0.000000e+00 : f32
    %1297 = vector.broadcast %cst_279 : f32 to vector<8x256xf32>
    %1298 = arith.select %7, %1297, %1296 : vector<8x256xi1>, vector<8x256xf32>
    %c56_280 = arith.constant 56 : index
    %1299 = memref.load %arg8[%c56_280] : memref<72xf32, #tpu.memory_space<smem>>
    %1300 = vector.broadcast %1299 : f32 to vector<8x256xf32>
    %1301 = arith.mulf %1298, %1300 : vector<8x256xf32>
    %1302 = arith.addf %1291, %1301 : vector<8x256xf32>
    %c57_281 = arith.constant 57 : index
    %1303 = memref.load %arg8[%c57_281] : memref<72xf32, #tpu.memory_space<smem>>
    %1304 = vector.broadcast %1303 : f32 to vector<8x256xf32>
    %1305 = arith.mulf %1298, %1304 : vector<8x256xf32>
    %1306 = arith.addf %1295, %1305 : vector<8x256xf32>
    %c239_i32_282 = arith.constant 239 : i32
    %1307 = tpu.dynamic_rotate %1205 by %c239_i32_282 dim 1 : vector<8x256xf32>, i32 -> vector<8x256xf32>
    %cst_283 = arith.constant 0.000000e+00 : f32
    %1308 = vector.broadcast %cst_283 : f32 to vector<8x256xf32>
    %1309 = arith.select %7, %1308, %1307 : vector<8x256xi1>, vector<8x256xf32>
    %cst_284 = arith.constant 0.000000e+00 : f32
    %1310 = vector.broadcast %cst_284 : f32 to vector<8x256xf32>
    %1311 = arith.select %11, %1310, %1309 : vector<8x256xi1>, vector<8x256xf32>
    %c64_285 = arith.constant 64 : index
    %1312 = memref.load %arg8[%c64_285] : memref<72xf32, #tpu.memory_space<smem>>
    %1313 = vector.broadcast %1312 : f32 to vector<8x256xf32>
    %1314 = arith.mulf %1311, %1313 : vector<8x256xf32>
    %1315 = arith.addf %1302, %1314 : vector<8x256xf32>
    %c65_286 = arith.constant 65 : index
    %1316 = memref.load %arg8[%c65_286] : memref<72xf32, #tpu.memory_space<smem>>
    %1317 = vector.broadcast %1316 : f32 to vector<8x256xf32>
    %1318 = arith.mulf %1311, %1317 : vector<8x256xf32>
    %1319 = arith.addf %1306, %1318 : vector<8x256xf32>
    %c17_i32_287 = arith.constant 17 : i32
    %1320 = tpu.dynamic_rotate %1207 by %c17_i32_287 dim 1 : vector<8x256xf32>, i32 -> vector<8x256xf32>
    %cst_288 = arith.constant 0.000000e+00 : f32
    %1321 = vector.broadcast %cst_288 : f32 to vector<8x256xf32>
    %1322 = arith.select %5, %1321, %1320 : vector<8x256xi1>, vector<8x256xf32>
    %cst_289 = arith.constant 0.000000e+00 : f32
    %1323 = vector.broadcast %cst_289 : f32 to vector<8x256xf32>
    %1324 = arith.select %9, %1323, %1322 : vector<8x256xi1>, vector<8x256xf32>
    %c2_290 = arith.constant 2 : index
    %1325 = memref.load %arg8[%c2_290] : memref<72xf32, #tpu.memory_space<smem>>
    %1326 = vector.broadcast %1325 : f32 to vector<8x256xf32>
    %1327 = arith.mulf %1324, %1326 : vector<8x256xf32>
    %1328 = arith.addf %1315, %1327 : vector<8x256xf32>
    %c3_291 = arith.constant 3 : index
    %1329 = memref.load %arg8[%c3_291] : memref<72xf32, #tpu.memory_space<smem>>
    %1330 = vector.broadcast %1329 : f32 to vector<8x256xf32>
    %1331 = arith.mulf %1324, %1330 : vector<8x256xf32>
    %1332 = arith.addf %1319, %1331 : vector<8x256xf32>
    %c16_i32_292 = arith.constant 16 : i32
    %1333 = tpu.dynamic_rotate %1207 by %c16_i32_292 dim 1 : vector<8x256xf32>, i32 -> vector<8x256xf32>
    %cst_293 = arith.constant 0.000000e+00 : f32
    %1334 = vector.broadcast %cst_293 : f32 to vector<8x256xf32>
    %1335 = arith.select %5, %1334, %1333 : vector<8x256xi1>, vector<8x256xf32>
    %c10_294 = arith.constant 10 : index
    %1336 = memref.load %arg8[%c10_294] : memref<72xf32, #tpu.memory_space<smem>>
    %1337 = vector.broadcast %1336 : f32 to vector<8x256xf32>
    %1338 = arith.mulf %1335, %1337 : vector<8x256xf32>
    %1339 = arith.addf %1328, %1338 : vector<8x256xf32>
    %c11_295 = arith.constant 11 : index
    %1340 = memref.load %arg8[%c11_295] : memref<72xf32, #tpu.memory_space<smem>>
    %1341 = vector.broadcast %1340 : f32 to vector<8x256xf32>
    %1342 = arith.mulf %1335, %1341 : vector<8x256xf32>
    %1343 = arith.addf %1332, %1342 : vector<8x256xf32>
    %c15_i32_296 = arith.constant 15 : i32
    %1344 = tpu.dynamic_rotate %1207 by %c15_i32_296 dim 1 : vector<8x256xf32>, i32 -> vector<8x256xf32>
    %cst_297 = arith.constant 0.000000e+00 : f32
    %1345 = vector.broadcast %cst_297 : f32 to vector<8x256xf32>
    %1346 = arith.select %5, %1345, %1344 : vector<8x256xi1>, vector<8x256xf32>
    %cst_298 = arith.constant 0.000000e+00 : f32
    %1347 = vector.broadcast %cst_298 : f32 to vector<8x256xf32>
    %1348 = arith.select %11, %1347, %1346 : vector<8x256xi1>, vector<8x256xf32>
    %c18_299 = arith.constant 18 : index
    %1349 = memref.load %arg8[%c18_299] : memref<72xf32, #tpu.memory_space<smem>>
    %1350 = vector.broadcast %1349 : f32 to vector<8x256xf32>
    %1351 = arith.mulf %1348, %1350 : vector<8x256xf32>
    %1352 = arith.addf %1339, %1351 : vector<8x256xf32>
    %c19_300 = arith.constant 19 : index
    %1353 = memref.load %arg8[%c19_300] : memref<72xf32, #tpu.memory_space<smem>>
    %1354 = vector.broadcast %1353 : f32 to vector<8x256xf32>
    %1355 = arith.mulf %1348, %1354 : vector<8x256xf32>
    %1356 = arith.addf %1343, %1355 : vector<8x256xf32>
    %c1_i32_301 = arith.constant 1 : i32
    %1357 = tpu.dynamic_rotate %1207 by %c1_i32_301 dim 1 : vector<8x256xf32>, i32 -> vector<8x256xf32>
    %cst_302 = arith.constant 0.000000e+00 : f32
    %1358 = vector.broadcast %cst_302 : f32 to vector<8x256xf32>
    %1359 = arith.select %9, %1358, %1357 : vector<8x256xi1>, vector<8x256xf32>
    %c26_303 = arith.constant 26 : index
    %1360 = memref.load %arg8[%c26_303] : memref<72xf32, #tpu.memory_space<smem>>
    %1361 = vector.broadcast %1360 : f32 to vector<8x256xf32>
    %1362 = arith.mulf %1359, %1361 : vector<8x256xf32>
    %1363 = arith.addf %1352, %1362 : vector<8x256xf32>
    %c27_304 = arith.constant 27 : index
    %1364 = memref.load %arg8[%c27_304] : memref<72xf32, #tpu.memory_space<smem>>
    %1365 = vector.broadcast %1364 : f32 to vector<8x256xf32>
    %1366 = arith.mulf %1359, %1365 : vector<8x256xf32>
    %1367 = arith.addf %1356, %1366 : vector<8x256xf32>
    %c34_305 = arith.constant 34 : index
    %1368 = memref.load %arg8[%c34_305] : memref<72xf32, #tpu.memory_space<smem>>
    %1369 = vector.broadcast %1368 : f32 to vector<8x256xf32>
    %1370 = arith.mulf %1207, %1369 : vector<8x256xf32>
    %1371 = arith.addf %1363, %1370 : vector<8x256xf32>
    %c35_306 = arith.constant 35 : index
    %1372 = memref.load %arg8[%c35_306] : memref<72xf32, #tpu.memory_space<smem>>
    %1373 = vector.broadcast %1372 : f32 to vector<8x256xf32>
    %1374 = arith.mulf %1207, %1373 : vector<8x256xf32>
    %1375 = arith.addf %1367, %1374 : vector<8x256xf32>
    %c255_i32_307 = arith.constant 255 : i32
    %1376 = tpu.dynamic_rotate %1207 by %c255_i32_307 dim 1 : vector<8x256xf32>, i32 -> vector<8x256xf32>
    %cst_308 = arith.constant 0.000000e+00 : f32
    %1377 = vector.broadcast %cst_308 : f32 to vector<8x256xf32>
    %1378 = arith.select %11, %1377, %1376 : vector<8x256xi1>, vector<8x256xf32>
    %c42_309 = arith.constant 42 : index
    %1379 = memref.load %arg8[%c42_309] : memref<72xf32, #tpu.memory_space<smem>>
    %1380 = vector.broadcast %1379 : f32 to vector<8x256xf32>
    %1381 = arith.mulf %1378, %1380 : vector<8x256xf32>
    %1382 = arith.addf %1371, %1381 : vector<8x256xf32>
    %c43_310 = arith.constant 43 : index
    %1383 = memref.load %arg8[%c43_310] : memref<72xf32, #tpu.memory_space<smem>>
    %1384 = vector.broadcast %1383 : f32 to vector<8x256xf32>
    %1385 = arith.mulf %1378, %1384 : vector<8x256xf32>
    %1386 = arith.addf %1375, %1385 : vector<8x256xf32>
    %c241_i32_311 = arith.constant 241 : i32
    %1387 = tpu.dynamic_rotate %1207 by %c241_i32_311 dim 1 : vector<8x256xf32>, i32 -> vector<8x256xf32>
    %cst_312 = arith.constant 0.000000e+00 : f32
    %1388 = vector.broadcast %cst_312 : f32 to vector<8x256xf32>
    %1389 = arith.select %7, %1388, %1387 : vector<8x256xi1>, vector<8x256xf32>
    %cst_313 = arith.constant 0.000000e+00 : f32
    %1390 = vector.broadcast %cst_313 : f32 to vector<8x256xf32>
    %1391 = arith.select %9, %1390, %1389 : vector<8x256xi1>, vector<8x256xf32>
    %c50_314 = arith.constant 50 : index
    %1392 = memref.load %arg8[%c50_314] : memref<72xf32, #tpu.memory_space<smem>>
    %1393 = vector.broadcast %1392 : f32 to vector<8x256xf32>
    %1394 = arith.mulf %1391, %1393 : vector<8x256xf32>
    %1395 = arith.addf %1382, %1394 : vector<8x256xf32>
    %c51_315 = arith.constant 51 : index
    %1396 = memref.load %arg8[%c51_315] : memref<72xf32, #tpu.memory_space<smem>>
    %1397 = vector.broadcast %1396 : f32 to vector<8x256xf32>
    %1398 = arith.mulf %1391, %1397 : vector<8x256xf32>
    %1399 = arith.addf %1386, %1398 : vector<8x256xf32>
    %c240_i32_316 = arith.constant 240 : i32
    %1400 = tpu.dynamic_rotate %1207 by %c240_i32_316 dim 1 : vector<8x256xf32>, i32 -> vector<8x256xf32>
    %cst_317 = arith.constant 0.000000e+00 : f32
    %1401 = vector.broadcast %cst_317 : f32 to vector<8x256xf32>
    %1402 = arith.select %7, %1401, %1400 : vector<8x256xi1>, vector<8x256xf32>
    %c58_318 = arith.constant 58 : index
    %1403 = memref.load %arg8[%c58_318] : memref<72xf32, #tpu.memory_space<smem>>
    %1404 = vector.broadcast %1403 : f32 to vector<8x256xf32>
    %1405 = arith.mulf %1402, %1404 : vector<8x256xf32>
    %1406 = arith.addf %1395, %1405 : vector<8x256xf32>
    %c59_319 = arith.constant 59 : index
    %1407 = memref.load %arg8[%c59_319] : memref<72xf32, #tpu.memory_space<smem>>
    %1408 = vector.broadcast %1407 : f32 to vector<8x256xf32>
    %1409 = arith.mulf %1402, %1408 : vector<8x256xf32>
    %1410 = arith.addf %1399, %1409 : vector<8x256xf32>
    %c239_i32_320 = arith.constant 239 : i32
    %1411 = tpu.dynamic_rotate %1207 by %c239_i32_320 dim 1 : vector<8x256xf32>, i32 -> vector<8x256xf32>
    %cst_321 = arith.constant 0.000000e+00 : f32
    %1412 = vector.broadcast %cst_321 : f32 to vector<8x256xf32>
    %1413 = arith.select %7, %1412, %1411 : vector<8x256xi1>, vector<8x256xf32>
    %cst_322 = arith.constant 0.000000e+00 : f32
    %1414 = vector.broadcast %cst_322 : f32 to vector<8x256xf32>
    %1415 = arith.select %11, %1414, %1413 : vector<8x256xi1>, vector<8x256xf32>
    %c66_323 = arith.constant 66 : index
    %1416 = memref.load %arg8[%c66_323] : memref<72xf32, #tpu.memory_space<smem>>
    %1417 = vector.broadcast %1416 : f32 to vector<8x256xf32>
    %1418 = arith.mulf %1415, %1417 : vector<8x256xf32>
    %1419 = arith.addf %1406, %1418 : vector<8x256xf32>
    %c67_324 = arith.constant 67 : index
    %1420 = memref.load %arg8[%c67_324] : memref<72xf32, #tpu.memory_space<smem>>
    %1421 = vector.broadcast %1420 : f32 to vector<8x256xf32>
    %1422 = arith.mulf %1415, %1421 : vector<8x256xf32>
    %1423 = arith.addf %1410, %1422 : vector<8x256xf32>
    %c17_i32_325 = arith.constant 17 : i32
    %1424 = tpu.dynamic_rotate %1209 by %c17_i32_325 dim 1 : vector<8x256xf32>, i32 -> vector<8x256xf32>
    %cst_326 = arith.constant 0.000000e+00 : f32
    %1425 = vector.broadcast %cst_326 : f32 to vector<8x256xf32>
    %1426 = arith.select %5, %1425, %1424 : vector<8x256xi1>, vector<8x256xf32>
    %cst_327 = arith.constant 0.000000e+00 : f32
    %1427 = vector.broadcast %cst_327 : f32 to vector<8x256xf32>
    %1428 = arith.select %9, %1427, %1426 : vector<8x256xi1>, vector<8x256xf32>
    %c4_328 = arith.constant 4 : index
    %1429 = memref.load %arg8[%c4_328] : memref<72xf32, #tpu.memory_space<smem>>
    %1430 = vector.broadcast %1429 : f32 to vector<8x256xf32>
    %1431 = arith.mulf %1428, %1430 : vector<8x256xf32>
    %1432 = arith.addf %1419, %1431 : vector<8x256xf32>
    %c5_329 = arith.constant 5 : index
    %1433 = memref.load %arg8[%c5_329] : memref<72xf32, #tpu.memory_space<smem>>
    %1434 = vector.broadcast %1433 : f32 to vector<8x256xf32>
    %1435 = arith.mulf %1428, %1434 : vector<8x256xf32>
    %1436 = arith.addf %1423, %1435 : vector<8x256xf32>
    %c16_i32_330 = arith.constant 16 : i32
    %1437 = tpu.dynamic_rotate %1209 by %c16_i32_330 dim 1 : vector<8x256xf32>, i32 -> vector<8x256xf32>
    %cst_331 = arith.constant 0.000000e+00 : f32
    %1438 = vector.broadcast %cst_331 : f32 to vector<8x256xf32>
    %1439 = arith.select %5, %1438, %1437 : vector<8x256xi1>, vector<8x256xf32>
    %c12_332 = arith.constant 12 : index
    %1440 = memref.load %arg8[%c12_332] : memref<72xf32, #tpu.memory_space<smem>>
    %1441 = vector.broadcast %1440 : f32 to vector<8x256xf32>
    %1442 = arith.mulf %1439, %1441 : vector<8x256xf32>
    %1443 = arith.addf %1432, %1442 : vector<8x256xf32>
    %c13_333 = arith.constant 13 : index
    %1444 = memref.load %arg8[%c13_333] : memref<72xf32, #tpu.memory_space<smem>>
    %1445 = vector.broadcast %1444 : f32 to vector<8x256xf32>
    %1446 = arith.mulf %1439, %1445 : vector<8x256xf32>
    %1447 = arith.addf %1436, %1446 : vector<8x256xf32>
    %c15_i32_334 = arith.constant 15 : i32
    %1448 = tpu.dynamic_rotate %1209 by %c15_i32_334 dim 1 : vector<8x256xf32>, i32 -> vector<8x256xf32>
    %cst_335 = arith.constant 0.000000e+00 : f32
    %1449 = vector.broadcast %cst_335 : f32 to vector<8x256xf32>
    %1450 = arith.select %5, %1449, %1448 : vector<8x256xi1>, vector<8x256xf32>
    %cst_336 = arith.constant 0.000000e+00 : f32
    %1451 = vector.broadcast %cst_336 : f32 to vector<8x256xf32>
    %1452 = arith.select %11, %1451, %1450 : vector<8x256xi1>, vector<8x256xf32>
    %c20_337 = arith.constant 20 : index
    %1453 = memref.load %arg8[%c20_337] : memref<72xf32, #tpu.memory_space<smem>>
    %1454 = vector.broadcast %1453 : f32 to vector<8x256xf32>
    %1455 = arith.mulf %1452, %1454 : vector<8x256xf32>
    %1456 = arith.addf %1443, %1455 : vector<8x256xf32>
    %c21_338 = arith.constant 21 : index
    %1457 = memref.load %arg8[%c21_338] : memref<72xf32, #tpu.memory_space<smem>>
    %1458 = vector.broadcast %1457 : f32 to vector<8x256xf32>
    %1459 = arith.mulf %1452, %1458 : vector<8x256xf32>
    %1460 = arith.addf %1447, %1459 : vector<8x256xf32>
    %c1_i32_339 = arith.constant 1 : i32
    %1461 = tpu.dynamic_rotate %1209 by %c1_i32_339 dim 1 : vector<8x256xf32>, i32 -> vector<8x256xf32>
    %cst_340 = arith.constant 0.000000e+00 : f32
    %1462 = vector.broadcast %cst_340 : f32 to vector<8x256xf32>
    %1463 = arith.select %9, %1462, %1461 : vector<8x256xi1>, vector<8x256xf32>
    %c28_341 = arith.constant 28 : index
    %1464 = memref.load %arg8[%c28_341] : memref<72xf32, #tpu.memory_space<smem>>
    %1465 = vector.broadcast %1464 : f32 to vector<8x256xf32>
    %1466 = arith.mulf %1463, %1465 : vector<8x256xf32>
    %1467 = arith.addf %1456, %1466 : vector<8x256xf32>
    %c29_342 = arith.constant 29 : index
    %1468 = memref.load %arg8[%c29_342] : memref<72xf32, #tpu.memory_space<smem>>
    %1469 = vector.broadcast %1468 : f32 to vector<8x256xf32>
    %1470 = arith.mulf %1463, %1469 : vector<8x256xf32>
    %1471 = arith.addf %1460, %1470 : vector<8x256xf32>
    %c36_343 = arith.constant 36 : index
    %1472 = memref.load %arg8[%c36_343] : memref<72xf32, #tpu.memory_space<smem>>
    %1473 = vector.broadcast %1472 : f32 to vector<8x256xf32>
    %1474 = arith.mulf %1209, %1473 : vector<8x256xf32>
    %1475 = arith.addf %1467, %1474 : vector<8x256xf32>
    %c37_344 = arith.constant 37 : index
    %1476 = memref.load %arg8[%c37_344] : memref<72xf32, #tpu.memory_space<smem>>
    %1477 = vector.broadcast %1476 : f32 to vector<8x256xf32>
    %1478 = arith.mulf %1209, %1477 : vector<8x256xf32>
    %1479 = arith.addf %1471, %1478 : vector<8x256xf32>
    %c255_i32_345 = arith.constant 255 : i32
    %1480 = tpu.dynamic_rotate %1209 by %c255_i32_345 dim 1 : vector<8x256xf32>, i32 -> vector<8x256xf32>
    %cst_346 = arith.constant 0.000000e+00 : f32
    %1481 = vector.broadcast %cst_346 : f32 to vector<8x256xf32>
    %1482 = arith.select %11, %1481, %1480 : vector<8x256xi1>, vector<8x256xf32>
    %c44_347 = arith.constant 44 : index
    %1483 = memref.load %arg8[%c44_347] : memref<72xf32, #tpu.memory_space<smem>>
    %1484 = vector.broadcast %1483 : f32 to vector<8x256xf32>
    %1485 = arith.mulf %1482, %1484 : vector<8x256xf32>
    %1486 = arith.addf %1475, %1485 : vector<8x256xf32>
    %c45_348 = arith.constant 45 : index
    %1487 = memref.load %arg8[%c45_348] : memref<72xf32, #tpu.memory_space<smem>>
    %1488 = vector.broadcast %1487 : f32 to vector<8x256xf32>
    %1489 = arith.mulf %1482, %1488 : vector<8x256xf32>
    %1490 = arith.addf %1479, %1489 : vector<8x256xf32>
    %c241_i32_349 = arith.constant 241 : i32
    %1491 = tpu.dynamic_rotate %1209 by %c241_i32_349 dim 1 : vector<8x256xf32>, i32 -> vector<8x256xf32>
    %cst_350 = arith.constant 0.000000e+00 : f32
    %1492 = vector.broadcast %cst_350 : f32 to vector<8x256xf32>
    %1493 = arith.select %7, %1492, %1491 : vector<8x256xi1>, vector<8x256xf32>
    %cst_351 = arith.constant 0.000000e+00 : f32
    %1494 = vector.broadcast %cst_351 : f32 to vector<8x256xf32>
    %1495 = arith.select %9, %1494, %1493 : vector<8x256xi1>, vector<8x256xf32>
    %c52_352 = arith.constant 52 : index
    %1496 = memref.load %arg8[%c52_352] : memref<72xf32, #tpu.memory_space<smem>>
    %1497 = vector.broadcast %1496 : f32 to vector<8x256xf32>
    %1498 = arith.mulf %1495, %1497 : vector<8x256xf32>
    %1499 = arith.addf %1486, %1498 : vector<8x256xf32>
    %c53_353 = arith.constant 53 : index
    %1500 = memref.load %arg8[%c53_353] : memref<72xf32, #tpu.memory_space<smem>>
    %1501 = vector.broadcast %1500 : f32 to vector<8x256xf32>
    %1502 = arith.mulf %1495, %1501 : vector<8x256xf32>
    %1503 = arith.addf %1490, %1502 : vector<8x256xf32>
    %c240_i32_354 = arith.constant 240 : i32
    %1504 = tpu.dynamic_rotate %1209 by %c240_i32_354 dim 1 : vector<8x256xf32>, i32 -> vector<8x256xf32>
    %cst_355 = arith.constant 0.000000e+00 : f32
    %1505 = vector.broadcast %cst_355 : f32 to vector<8x256xf32>
    %1506 = arith.select %7, %1505, %1504 : vector<8x256xi1>, vector<8x256xf32>
    %c60_356 = arith.constant 60 : index
    %1507 = memref.load %arg8[%c60_356] : memref<72xf32, #tpu.memory_space<smem>>
    %1508 = vector.broadcast %1507 : f32 to vector<8x256xf32>
    %1509 = arith.mulf %1506, %1508 : vector<8x256xf32>
    %1510 = arith.addf %1499, %1509 : vector<8x256xf32>
    %c61_357 = arith.constant 61 : index
    %1511 = memref.load %arg8[%c61_357] : memref<72xf32, #tpu.memory_space<smem>>
    %1512 = vector.broadcast %1511 : f32 to vector<8x256xf32>
    %1513 = arith.mulf %1506, %1512 : vector<8x256xf32>
    %1514 = arith.addf %1503, %1513 : vector<8x256xf32>
    %c239_i32_358 = arith.constant 239 : i32
    %1515 = tpu.dynamic_rotate %1209 by %c239_i32_358 dim 1 : vector<8x256xf32>, i32 -> vector<8x256xf32>
    %cst_359 = arith.constant 0.000000e+00 : f32
    %1516 = vector.broadcast %cst_359 : f32 to vector<8x256xf32>
    %1517 = arith.select %7, %1516, %1515 : vector<8x256xi1>, vector<8x256xf32>
    %cst_360 = arith.constant 0.000000e+00 : f32
    %1518 = vector.broadcast %cst_360 : f32 to vector<8x256xf32>
    %1519 = arith.select %11, %1518, %1517 : vector<8x256xi1>, vector<8x256xf32>
    %c68_361 = arith.constant 68 : index
    %1520 = memref.load %arg8[%c68_361] : memref<72xf32, #tpu.memory_space<smem>>
    %1521 = vector.broadcast %1520 : f32 to vector<8x256xf32>
    %1522 = arith.mulf %1519, %1521 : vector<8x256xf32>
    %1523 = arith.addf %1510, %1522 : vector<8x256xf32>
    %c69_362 = arith.constant 69 : index
    %1524 = memref.load %arg8[%c69_362] : memref<72xf32, #tpu.memory_space<smem>>
    %1525 = vector.broadcast %1524 : f32 to vector<8x256xf32>
    %1526 = arith.mulf %1519, %1525 : vector<8x256xf32>
    %1527 = arith.addf %1514, %1526 : vector<8x256xf32>
    %c17_i32_363 = arith.constant 17 : i32
    %1528 = tpu.dynamic_rotate %1211 by %c17_i32_363 dim 1 : vector<8x256xf32>, i32 -> vector<8x256xf32>
    %cst_364 = arith.constant 0.000000e+00 : f32
    %1529 = vector.broadcast %cst_364 : f32 to vector<8x256xf32>
    %1530 = arith.select %5, %1529, %1528 : vector<8x256xi1>, vector<8x256xf32>
    %cst_365 = arith.constant 0.000000e+00 : f32
    %1531 = vector.broadcast %cst_365 : f32 to vector<8x256xf32>
    %1532 = arith.select %9, %1531, %1530 : vector<8x256xi1>, vector<8x256xf32>
    %c6_366 = arith.constant 6 : index
    %1533 = memref.load %arg8[%c6_366] : memref<72xf32, #tpu.memory_space<smem>>
    %1534 = vector.broadcast %1533 : f32 to vector<8x256xf32>
    %1535 = arith.mulf %1532, %1534 : vector<8x256xf32>
    %1536 = arith.addf %1523, %1535 : vector<8x256xf32>
    %c7_367 = arith.constant 7 : index
    %1537 = memref.load %arg8[%c7_367] : memref<72xf32, #tpu.memory_space<smem>>
    %1538 = vector.broadcast %1537 : f32 to vector<8x256xf32>
    %1539 = arith.mulf %1532, %1538 : vector<8x256xf32>
    %1540 = arith.addf %1527, %1539 : vector<8x256xf32>
    %c16_i32_368 = arith.constant 16 : i32
    %1541 = tpu.dynamic_rotate %1211 by %c16_i32_368 dim 1 : vector<8x256xf32>, i32 -> vector<8x256xf32>
    %cst_369 = arith.constant 0.000000e+00 : f32
    %1542 = vector.broadcast %cst_369 : f32 to vector<8x256xf32>
    %1543 = arith.select %5, %1542, %1541 : vector<8x256xi1>, vector<8x256xf32>
    %c14_370 = arith.constant 14 : index
    %1544 = memref.load %arg8[%c14_370] : memref<72xf32, #tpu.memory_space<smem>>
    %1545 = vector.broadcast %1544 : f32 to vector<8x256xf32>
    %1546 = arith.mulf %1543, %1545 : vector<8x256xf32>
    %1547 = arith.addf %1536, %1546 : vector<8x256xf32>
    %c15_371 = arith.constant 15 : index
    %1548 = memref.load %arg8[%c15_371] : memref<72xf32, #tpu.memory_space<smem>>
    %1549 = vector.broadcast %1548 : f32 to vector<8x256xf32>
    %1550 = arith.mulf %1543, %1549 : vector<8x256xf32>
    %1551 = arith.addf %1540, %1550 : vector<8x256xf32>
    %c15_i32_372 = arith.constant 15 : i32
    %1552 = tpu.dynamic_rotate %1211 by %c15_i32_372 dim 1 : vector<8x256xf32>, i32 -> vector<8x256xf32>
    %cst_373 = arith.constant 0.000000e+00 : f32
    %1553 = vector.broadcast %cst_373 : f32 to vector<8x256xf32>
    %1554 = arith.select %5, %1553, %1552 : vector<8x256xi1>, vector<8x256xf32>
    %cst_374 = arith.constant 0.000000e+00 : f32
    %1555 = vector.broadcast %cst_374 : f32 to vector<8x256xf32>
    %1556 = arith.select %11, %1555, %1554 : vector<8x256xi1>, vector<8x256xf32>
    %c22_375 = arith.constant 22 : index
    %1557 = memref.load %arg8[%c22_375] : memref<72xf32, #tpu.memory_space<smem>>
    %1558 = vector.broadcast %1557 : f32 to vector<8x256xf32>
    %1559 = arith.mulf %1556, %1558 : vector<8x256xf32>
    %1560 = arith.addf %1547, %1559 : vector<8x256xf32>
    %c23_376 = arith.constant 23 : index
    %1561 = memref.load %arg8[%c23_376] : memref<72xf32, #tpu.memory_space<smem>>
    %1562 = vector.broadcast %1561 : f32 to vector<8x256xf32>
    %1563 = arith.mulf %1556, %1562 : vector<8x256xf32>
    %1564 = arith.addf %1551, %1563 : vector<8x256xf32>
    %c1_i32_377 = arith.constant 1 : i32
    %1565 = tpu.dynamic_rotate %1211 by %c1_i32_377 dim 1 : vector<8x256xf32>, i32 -> vector<8x256xf32>
    %cst_378 = arith.constant 0.000000e+00 : f32
    %1566 = vector.broadcast %cst_378 : f32 to vector<8x256xf32>
    %1567 = arith.select %9, %1566, %1565 : vector<8x256xi1>, vector<8x256xf32>
    %c30_379 = arith.constant 30 : index
    %1568 = memref.load %arg8[%c30_379] : memref<72xf32, #tpu.memory_space<smem>>
    %1569 = vector.broadcast %1568 : f32 to vector<8x256xf32>
    %1570 = arith.mulf %1567, %1569 : vector<8x256xf32>
    %1571 = arith.addf %1560, %1570 : vector<8x256xf32>
    %c31_380 = arith.constant 31 : index
    %1572 = memref.load %arg8[%c31_380] : memref<72xf32, #tpu.memory_space<smem>>
    %1573 = vector.broadcast %1572 : f32 to vector<8x256xf32>
    %1574 = arith.mulf %1567, %1573 : vector<8x256xf32>
    %1575 = arith.addf %1564, %1574 : vector<8x256xf32>
    %c38_381 = arith.constant 38 : index
    %1576 = memref.load %arg8[%c38_381] : memref<72xf32, #tpu.memory_space<smem>>
    %1577 = vector.broadcast %1576 : f32 to vector<8x256xf32>
    %1578 = arith.mulf %1211, %1577 : vector<8x256xf32>
    %1579 = arith.addf %1571, %1578 : vector<8x256xf32>
    %c39_382 = arith.constant 39 : index
    %1580 = memref.load %arg8[%c39_382] : memref<72xf32, #tpu.memory_space<smem>>
    %1581 = vector.broadcast %1580 : f32 to vector<8x256xf32>
    %1582 = arith.mulf %1211, %1581 : vector<8x256xf32>
    %1583 = arith.addf %1575, %1582 : vector<8x256xf32>
    %c255_i32_383 = arith.constant 255 : i32
    %1584 = tpu.dynamic_rotate %1211 by %c255_i32_383 dim 1 : vector<8x256xf32>, i32 -> vector<8x256xf32>
    %cst_384 = arith.constant 0.000000e+00 : f32
    %1585 = vector.broadcast %cst_384 : f32 to vector<8x256xf32>
    %1586 = arith.select %11, %1585, %1584 : vector<8x256xi1>, vector<8x256xf32>
    %c46_385 = arith.constant 46 : index
    %1587 = memref.load %arg8[%c46_385] : memref<72xf32, #tpu.memory_space<smem>>
    %1588 = vector.broadcast %1587 : f32 to vector<8x256xf32>
    %1589 = arith.mulf %1586, %1588 : vector<8x256xf32>
    %1590 = arith.addf %1579, %1589 : vector<8x256xf32>
    %c47_386 = arith.constant 47 : index
    %1591 = memref.load %arg8[%c47_386] : memref<72xf32, #tpu.memory_space<smem>>
    %1592 = vector.broadcast %1591 : f32 to vector<8x256xf32>
    %1593 = arith.mulf %1586, %1592 : vector<8x256xf32>
    %1594 = arith.addf %1583, %1593 : vector<8x256xf32>
    %c241_i32_387 = arith.constant 241 : i32
    %1595 = tpu.dynamic_rotate %1211 by %c241_i32_387 dim 1 : vector<8x256xf32>, i32 -> vector<8x256xf32>
    %cst_388 = arith.constant 0.000000e+00 : f32
    %1596 = vector.broadcast %cst_388 : f32 to vector<8x256xf32>
    %1597 = arith.select %7, %1596, %1595 : vector<8x256xi1>, vector<8x256xf32>
    %cst_389 = arith.constant 0.000000e+00 : f32
    %1598 = vector.broadcast %cst_389 : f32 to vector<8x256xf32>
    %1599 = arith.select %9, %1598, %1597 : vector<8x256xi1>, vector<8x256xf32>
    %c54_390 = arith.constant 54 : index
    %1600 = memref.load %arg8[%c54_390] : memref<72xf32, #tpu.memory_space<smem>>
    %1601 = vector.broadcast %1600 : f32 to vector<8x256xf32>
    %1602 = arith.mulf %1599, %1601 : vector<8x256xf32>
    %1603 = arith.addf %1590, %1602 : vector<8x256xf32>
    %c55_391 = arith.constant 55 : index
    %1604 = memref.load %arg8[%c55_391] : memref<72xf32, #tpu.memory_space<smem>>
    %1605 = vector.broadcast %1604 : f32 to vector<8x256xf32>
    %1606 = arith.mulf %1599, %1605 : vector<8x256xf32>
    %1607 = arith.addf %1594, %1606 : vector<8x256xf32>
    %c240_i32_392 = arith.constant 240 : i32
    %1608 = tpu.dynamic_rotate %1211 by %c240_i32_392 dim 1 : vector<8x256xf32>, i32 -> vector<8x256xf32>
    %cst_393 = arith.constant 0.000000e+00 : f32
    %1609 = vector.broadcast %cst_393 : f32 to vector<8x256xf32>
    %1610 = arith.select %7, %1609, %1608 : vector<8x256xi1>, vector<8x256xf32>
    %c62_394 = arith.constant 62 : index
    %1611 = memref.load %arg8[%c62_394] : memref<72xf32, #tpu.memory_space<smem>>
    %1612 = vector.broadcast %1611 : f32 to vector<8x256xf32>
    %1613 = arith.mulf %1610, %1612 : vector<8x256xf32>
    %1614 = arith.addf %1603, %1613 : vector<8x256xf32>
    %c63_395 = arith.constant 63 : index
    %1615 = memref.load %arg8[%c63_395] : memref<72xf32, #tpu.memory_space<smem>>
    %1616 = vector.broadcast %1615 : f32 to vector<8x256xf32>
    %1617 = arith.mulf %1610, %1616 : vector<8x256xf32>
    %1618 = arith.addf %1607, %1617 : vector<8x256xf32>
    %c239_i32_396 = arith.constant 239 : i32
    %1619 = tpu.dynamic_rotate %1211 by %c239_i32_396 dim 1 : vector<8x256xf32>, i32 -> vector<8x256xf32>
    %cst_397 = arith.constant 0.000000e+00 : f32
    %1620 = vector.broadcast %cst_397 : f32 to vector<8x256xf32>
    %1621 = arith.select %7, %1620, %1619 : vector<8x256xi1>, vector<8x256xf32>
    %cst_398 = arith.constant 0.000000e+00 : f32
    %1622 = vector.broadcast %cst_398 : f32 to vector<8x256xf32>
    %1623 = arith.select %11, %1622, %1621 : vector<8x256xi1>, vector<8x256xf32>
    %c70_399 = arith.constant 70 : index
    %1624 = memref.load %arg8[%c70_399] : memref<72xf32, #tpu.memory_space<smem>>
    %1625 = vector.broadcast %1624 : f32 to vector<8x256xf32>
    %1626 = arith.mulf %1623, %1625 : vector<8x256xf32>
    %1627 = arith.addf %1614, %1626 : vector<8x256xf32>
    %c71_400 = arith.constant 71 : index
    %1628 = memref.load %arg8[%c71_400] : memref<72xf32, #tpu.memory_space<smem>>
    %1629 = vector.broadcast %1628 : f32 to vector<8x256xf32>
    %1630 = arith.mulf %1623, %1629 : vector<8x256xf32>
    %1631 = arith.addf %1618, %1630 : vector<8x256xf32>
    %1632 = arith.subf %1631, %1627 : vector<8x256xf32>
    %1633 = math.exp %1632 : vector<8x256xf32>
    %cst_401 = arith.constant 1.000000e+00 : f32
    %1634 = vector.broadcast %cst_401 : f32 to vector<8x256xf32>
    %1635 = arith.addf %1634, %1633 : vector<8x256xf32>
    %cst_402 = arith.constant 1.000000e+00 : f32
    %1636 = vector.broadcast %cst_402 : f32 to vector<8x256xf32>
    %1637 = arith.divf %1636, %1635 : vector<8x256xf32>
    %c0_403 = arith.constant 0 : index
    %c0_404 = arith.constant 0 : index
    %1638 = vector.load %arg10[%c0_403, %c0_404] : memref<8x512xf32, #tpu.memory_space<vmem>>, vector<8x256xf32>
    tpu.vector_store %arg10[%c0_403, %c0_404], %1637 {strides = array<i32>} : memref<8x512xf32, #tpu.memory_space<vmem>>, vector<8x256xf32>,
    %cst_405 = arith.constant 1.000000e+00 : f32
    %1639 = vector.broadcast %cst_405 : f32 to vector<8x256xf32>
    %1640 = arith.subf %1639, %1637 : vector<8x256xf32>
    %c0_406 = arith.constant 0 : index
    %c256 = arith.constant 256 : index
    %1641 = vector.load %arg10[%c0_406, %c256] : memref<8x512xf32, #tpu.memory_space<vmem>>, vector<8x256xf32>
    tpu.vector_store %arg10[%c0_406, %c256], %1640 {strides = array<i32>} : memref<8x512xf32, #tpu.memory_space<vmem>>, vector<8x256xf32>,
    return
  }
  func.func @transform_0(%arg0: i32) -> (i32, i32) {
    %c0_i32 = arith.constant 0 : i32
    %c0_i32_0 = arith.constant 0 : i32
    return %arg0, %c0_i32 : i32, i32
  }
  func.func @transform_1(%arg0: i32) -> i32 {
    %c0_i32 = arith.constant 0 : i32
    %c0_i32_0 = arith.constant 0 : i32
    return %c0_i32 : i32
  }
  func.func @transform_2(%arg0: i32) -> i32 {
    %c0_i32 = arith.constant 0 : i32
    %c0_i32_0 = arith.constant 0 : i32
    return %c0_i32 : i32
  }
  func.func @transform_3(%arg0: i32) -> i32 {
    %c0_i32 = arith.constant 0 : i32
    %c0_i32_0 = arith.constant 0 : i32
    return %c0_i32 : i32
  }
  func.func @transform_4(%arg0: i32) -> i32 {
    %c0_i32 = arith.constant 0 : i32
    %c0_i32_0 = arith.constant 0 : i32
    return %c0_i32 : i32
  }
  func.func @transform_5(%arg0: i32) -> i32 {
    %c0_i32 = arith.constant 0 : i32
    %c0_i32_0 = arith.constant 0 : i32
    return %c0_i32 : i32
  }
  func.func @transform_6(%arg0: i32) -> i32 {
    %c0_i32 = arith.constant 0 : i32
    %c0_i32_0 = arith.constant 0 : i32
    return %c0_i32 : i32
  }
  func.func @transform_7(%arg0: i32) -> i32 {
    %c0_i32 = arith.constant 0 : i32
    %c0_i32_0 = arith.constant 0 : i32
    return %c0_i32 : i32
  }
  func.func @transform_8(%arg0: i32) -> i32 {
    %c0_i32 = arith.constant 0 : i32
    %c0_i32_0 = arith.constant 0 : i32
    return %c0_i32 : i32
  }
  func.func @transform_9(%arg0: i32) -> (i32, i32) {
    %c0_i32 = arith.constant 0 : i32
    %c0_i32_0 = arith.constant 0 : i32
    return %arg0, %c0_i32 : i32, i32
  }
}

</mosaic_0001>

<bundles_post_ra>
// kernel: tpu_custom_call.1
= control target key start
LH: loop header
LB: loop body
LE: loop exit
PB: predicated region body
PF: predicated region fallthrough
CT: control target
= control target key end

     0   :  { %s7798_s0 = inlined_call_operand.hbm [shape: f32[16,256], index: 0, kind: input, shape index: {}]   ;;  %s7799_s1 = inlined_call_operand.vmem [shape: f32[18], index: 1, kind: input, shape index: {}]   ;;  %s7800_s2 = inlined_call_operand.vmem [shape: f32[2], index: 2, kind: input, shape index: {}]   ;;  %s7801_s3 = inlined_call_operand.vmem [shape: f32[72], index: 3, kind: input, shape index: {}]   ;;  %s7802_s4 = inlined_call_operand.vmem [shape: f32[4], index: 4, kind: input, shape index: {}]   ;;  %s7803_s5 = inlined_call_operand.vmem [shape: f32[144], index: 5, kind: input, shape index: {}]   ;;  %s7804_s6 = inlined_call_operand.vmem [shape: f32[4], index: 6, kind: input, shape index: {}]   ;;  %s7805_s7 = inlined_call_operand.vmem [shape: f32[72], index: 7, kind: input, shape index: {}]   ;;  %s7806_s8 = inlined_call_operand.vmem [shape: f32[2], index: 8, kind: input, shape index: {}]   ;;  %s7807_s9 = inlined_call_operand.hbm [shape: f32[16,512], index: 9, kind: output, shape index: {}]  }
   0x1   :  { %8005 = sst [smem:[#allocation90_spill]] %s7798_s0 }
   0x2   :  { %8006 = sst [smem:[#allocation91_spill]] %s7799_s1 }
   0x3   :  { %8007 = sst [smem:[#allocation92_spill]] %s7800_s2 }
   0x4   :  { %8008 = sst [smem:[#allocation93_spill]] %s7801_s3 }
   0x5   :  { %8009 = sst [smem:[#allocation94_spill]] %s7802_s4 }
   0x6   :  { %8010 = sst [smem:[#allocation95_spill]] %s7803_s5 }
   0x7   :  { %8011 = sst [smem:[#allocation96_spill]] %s7804_s6 }
   0x8   :  { %8012 = sst [smem:[#allocation97_spill]] %s7805_s7 }
   0x9   :  { %8013 = sst [smem:[#allocation98_spill]] %s7806_s8 }
   0xa   :  { %8014 = sst [smem:[#allocation99_spill]] %s7807_s9 }
   0xb   :  { %14 = vsyncpa [#allocation3], 0 }
   0xc   :  { %16 = vsyncpa [#allocation3 + $0x1], 0 }
   0xd   :  { %17 = vsyncpa [#allocation5], 0 }
   0xe   :  { %18 = vsyncpa [#allocation8], 0 }
   0xf   :  { %19 = vsyncpa [#allocation11], 0 }
  0x10   :  { %20 = vsyncpa [#allocation14], 0 }
  0x11   :  { %21 = vsyncpa [#allocation17], 0 }
  0x12   :  { %22 = vsyncpa [#allocation4], 0 }
  0x13   :  { %24 = vsyncpa [#allocation4 + $0x1], 0  ;;  %s4118_s30 = smov 0   ;;  %s4120_s10 = smov 0  }
  0x14   :  { %s4122_s11 = smov 0   ;;  %s4124_s12 = smov 0  }
  0x15 LB: > { %8015 = sst [smem:[#allocation26_spill]] %s4036_s30  ;;  %s8019_s2 = sld [smem:[#allocation92_spill]]  ;;  %s4048_s12 = sphi %s4124_s12, %s8520_s12   ;;  %s4044_s11 = sphi %s4122_s11, %s8523_s11   ;;  %s4040_s10 = sphi %s4120_s10, %s8522_s10   ;;  %s4036_s30 = sphi %s4118_s30, %s8521_s30  }
  0x16   : > { %8016 = sst [smem:[#allocation27_spill]] %s4040_s10  ;;  %s4142_s16 = sadd.s32 4294967295, %s4048_s12  }
  0x17   : > { %8017 = sst [smem:[#allocation28_spill]] %s4044_s11  ;;  %p3328_p0 = scmp.ge.s32.totalorder %s4048_s12, 1 }
  0x18   : > { %8018 = sst [smem:[#allocation29_spill]] %s4048_s12  ;;  %p7808_p1 = scmp.eq.s32.totalorder %s4142_s16, 0 }
  0x19   : > { %8020 = sst [smem:[#allocation30_spill]] %s4142_s16  ;;  %p255_p2 = scmp.lt.s32.totalorder %s4048_s12, 3 }
  0x1a   : > { %s8022_s4 = sld [smem:[#allocation94_spill]]  ;;  %s8023_s6 = sld [smem:[#allocation96_spill]] }
  0x1b   : > { %s279_s15 = sshll.u32 %s8019_s2, 4  ;;  %p4147_p3 = pnand %p3328_p0, %p255_p2  ;;  %s280_s15 = int_to_ptr.vmem [resolvable:$true] %s279_s15 }
  0x1c   : > { %s8025_s1 = sld [smem:[#allocation91_spill]]  ;;  %s3812_s28 = scalar_lea.vmem %s280_s15, 16 }
  0x1d   : > { %s8021_s17 = scalar_select %p4147_p3, 1, 0 }
  0x1e   : > { %p3705_p5 = pneg %p4147_p3  ;;  %p3813_p7 = scmp.ne.s32.totalorder %s280_s15, %s3812_s28 }
  0x1f   : > { %p3820_p11 = scmp.lt.s32.totalorder %s280_s15, %s280_s15  ;;  %p3821_p12 = scmp.lt.s32.totalorder %s3812_s28, %s3812_s28 }
  0x20   : > { %s301_s20 = sshll.u32 %s8022_s4, 4  ;;  %s323_s23 = sshll.u32 %s8023_s6, 4  ;;  %s302_s20 = int_to_ptr.vmem [resolvable:$true] %s301_s20  ;;  %s4166_s23 = int_to_ptr.vmem [resolvable:$true] %s323_s23 }
  0x21   : > { %p4162_p6 = pnand %p3705_p5, %p7808_p1  ;;  %p3822_p13 = por %p3821_p12, %p3820_p11 }
  0x22   : > { %s268_s27 = sshll.u32 %s8025_s1, 4  ;;  %s4171_s27 = int_to_ptr.vmem [resolvable:$true] %s268_s27 }
  0x23   : > { %p4175_p8 = pneg %p4162_p6 }
  0x25   : > { %p3815_p9 = pnand %p4175_p8, %p3813_p7 }
  0x27   : > { %p3816_p10 = pneg %p3815_p9 }
  0x29   : > { %p3823_p0 = pnand %p3822_p13, %p3816_p10 }
  0x2b   : > { %3826 = shalt.err (!%p3823_p0)
}
  0x2c   : > { %s4050_s13 = smov [#allocation7]   ;;  %s3827_s14 = scalar_lea.vmem %s302_s20, 16 }
  0x2d   : > { %3711 = dma.vmem_to_smem (!%p4162_p6), %s280_s15, 16, %s4050_s13, [#allocation8]  }
  0x2e   : > { %p3828_p2 = scmp.ne.s32.totalorder %s302_s20, %s3827_s14  ;;  %p3835_p1 = scmp.lt.s32.totalorder %s302_s20, %s302_s20 }
  0x2f   : > { %p3836_p3 = scmp.lt.s32.totalorder %s3827_s14, %s3827_s14 }
  0x30   : > { %p3830_p5 = pnand %p3828_p2, %p4175_p8 }
  0x31   : > { %p3837_p7 = por %p3836_p3, %p3835_p1 }
  0x32   : > { %p3831_p4 = pneg %p3830_p5 }
  0x34   : > { %p3838_p9 = pnand %p3837_p7, %p3831_p4 }
  0x36   : > { %3841 = shalt.err (!%p3838_p9)
}
  0x37   : > { %s4051_s18 = smov [#allocation10]   ;;  %s3842_s19 = scalar_lea.vmem %s4166_s23, 16 }
  0x38   : > { %3717 = dma.vmem_to_smem (!%p4162_p6), %s302_s20, 16, %s4051_s18, [#allocation11]  }
  0x39   : > { %p3843_p10 = scmp.ne.s32.totalorder %s4166_s23, %s3842_s19  ;;  %p3850_p13 = scmp.lt.s32.totalorder %s4166_s23, %s4166_s23 }
  0x3a   : > { %p3851_p0 = scmp.lt.s32.totalorder %s3842_s19, %s3842_s19 }
  0x3b   : > { %p3845_p11 = pnand %p3843_p10, %p4175_p8 }
  0x3c   : > { %p3852_p2 = por %p3851_p0, %p3850_p13 }
  0x3d   : > { %p3846_p12 = pneg %p3845_p11 }
  0x3f   : > { %p3853_p1 = pnand %p3852_p2, %p3846_p12 }
  0x41   : > { %3856 = shalt.err (!%p3853_p1)
}
  0x42   : > { %s4052_s15 = smov [#allocation13]   ;;  %s3857_s20 = scalar_lea.vmem %s4171_s27, 16 }
  0x43   : > { %3723 = dma.vmem_to_smem (!%p4162_p6), %s4166_s23, 16, %s4052_s15, [#allocation14]  }
  0x44   : > { %p3858_p3 = scmp.ne.s32.totalorder %s4171_s27, %s3857_s20  ;;  %p3865_p7 = scmp.lt.s32.totalorder %s4171_s27, %s4171_s27 }
  0x45   : > { %p3866_p9 = scmp.lt.s32.totalorder %s3857_s20, %s3857_s20 }
  0x46   : > { %p3860_p4 = pnand %p3858_p3, %p4175_p8 }
  0x47   : > { %p3867_p10 = por %p3866_p9, %p3865_p7 }
  0x48   : > { %p3861_p5 = pneg %p3860_p4 }
  0x4a   : > { %p3868_p11 = pnand %p3867_p10, %p3861_p5 }
  0x4c   : > { %3871 = shalt.err (!%p3868_p11)
}
  0x4d   : > { %s4053_s21 = smov [#allocation6]   ;;  %s8027_s3 = sld [smem:[#allocation93_spill]] }
  0x4e   : > { %3708 = dma.vmem_to_smem (!%p4162_p6), %s4171_s27, 16, %s4053_s21, [#allocation5]  }
  0x4f   : > { %s8028_s5 = sld [smem:[#allocation95_spill]] }
  0x53   : > { %s290_s23 = sshll.u32 %s8027_s3, 4  ;;  %s291_s23 = int_to_ptr.vmem [resolvable:$true] %s290_s23 }
  0x54   : > { %s3872_s14 = scalar_lea.vmem %s291_s23, 16  ;;  %p3880_p2 = scmp.lt.s32.totalorder %s291_s23, %s291_s23 }
  0x55   : > { %s312_s13 = sshll.u32 %s8028_s5, 4  ;;  %p3873_p12 = scmp.ne.s32.totalorder %s291_s23, %s3872_s14  ;;  %s313_s13 = int_to_ptr.vmem [resolvable:$true] %s312_s13 }
  0x56   : > { %p3881_p1 = scmp.lt.s32.totalorder %s3872_s14, %s3872_s14 }
  0x57   : > { %p3875_p13 = pnand %p3873_p12, %p4175_p8 }
  0x58   : > { %p3882_p3 = por %p3881_p1, %p3880_p2 }
  0x59   : > { %p3876_p0 = pneg %p3875_p13 }
  0x5b   : > { %p3883_p4 = pnand %p3882_p3, %p3876_p0 }
  0x5d   : > { %3886 = shalt.err (!%p3883_p4)
}
  0x5e   : > { %s4054_s27 = smov [#allocation9]   ;;  %s3887_s18 = scalar_lea.vmem %s313_s13, 32 }
  0x5f   : > { %3714 = dma.vmem_to_smem (!%p4162_p6), %s291_s23, 16, %s4054_s27, [#allocation8]  }
  0x60   : > { %p3888_p5 = scmp.ne.s32.totalorder %s313_s13, %s3887_s18  ;;  %p3895_p10 = scmp.lt.s32.totalorder %s313_s13, %s313_s13 }
  0x61   : > { %p3896_p11 = scmp.lt.s32.totalorder %s3887_s18, %s3887_s18 }
  0x62   : > { %p3890_p7 = pnand %p3888_p5, %p4175_p8 }
  0x63   : > { %p3897_p12 = por %p3896_p11, %p3895_p10 }
  0x64   : > { %p3891_p9 = pneg %p3890_p7 }
  0x66   : > { %p3898_p13 = pnand %p3897_p12, %p3891_p9 }
  0x68   : > { %3901 = shalt.err (!%p3898_p13)
}
  0x69   : > { %s4055_s19 = smov [#allocation12]   ;;  %s8029_s7 = sld [smem:[#allocation97_spill]] }
  0x6a   : > { %3720 = dma.vmem_to_smem (!%p4162_p6), %s313_s13, 32, %s4055_s19, [#allocation11]  }
  0x6b   : > { %s8030_s8 = sld [smem:[#allocation98_spill]] }
  0x6f   : > { %s334_s21 = sshll.u32 %s8029_s7, 4  ;;  %s335_s21 = int_to_ptr.vmem [resolvable:$true] %s334_s21 }
  0x70   : > { %s3902_s26 = scalar_lea.vmem %s335_s21, 16  ;;  %p3910_p3 = scmp.lt.s32.totalorder %s335_s21, %s335_s21 }
  0x71   : > { %s345_s23 = sshll.u32 %s8030_s8, 4  ;;  %p3903_p0 = scmp.ne.s32.totalorder %s335_s21, %s3902_s26  ;;  %s346_s23 = int_to_ptr.vmem [resolvable:$true] %s345_s23 }
  0x72   : > { %p3911_p4 = scmp.lt.s32.totalorder %s3902_s26, %s3902_s26 }
  0x73   : > { %p3905_p2 = pnand %p3903_p0, %p4175_p8 }
  0x74   : > { %p3912_p5 = por %p3911_p4, %p3910_p3 }
  0x75   : > { %p3906_p1 = pneg %p3905_p2 }
  0x77   : > { %p3913_p7 = pnand %p3912_p5, %p3906_p1 }
  0x79   : > { %3916 = shalt.err (!%p3913_p7)
}
  0x7a   : > { %s4056_s28 = smov [#allocation15]   ;;  %s3917_s13 = scalar_lea.vmem %s346_s23, 16 }
  0x7b   : > { %3726 = dma.vmem_to_smem (!%p4162_p6), %s335_s21, 16, %s4056_s28, [#allocation14]  }
  0x7c   : > { %p3918_p9 = scmp.ne.s32.totalorder %s346_s23, %s3917_s13  ;;  %p3925_p12 = scmp.lt.s32.totalorder %s346_s23, %s346_s23 }
  0x7d   : > { %p3926_p13 = scmp.lt.s32.totalorder %s3917_s13, %s3917_s13 }
  0x7e   : > { %p3920_p10 = pnand %p3918_p9, %p4175_p8 }
  0x7f   : > { %p3927_p0 = por %p3926_p13, %p3925_p12 }
  0x80   : > { %p3921_p11 = pneg %p3920_p10 }
  0x82   : > { %p3928_p2 = pnand %p3927_p0, %p3921_p11 }
  0x84   : > { %3931 = shalt.err (!%p3928_p2)
}
  0x85   : > { %s4057_s14 = smov [#allocation16]   ;;  %s3327_s29 = sadd.s32 4294967294, %s4048_s12  }
  0x86   : > { %3729 = dma.vmem_to_smem (!%p4162_p6), %s346_s23, 16, %s4057_s14, [#allocation17]  }
  0x87   : > { %s4235_s27 = sadd.s32 1, %s4048_s12   ;;  %s37_s18 = sadd.s32 1, %s4044_s11 }
  0x88   : > { %8031 = sst [smem:[#allocation31_spill]] %s4235_s27  ;;  %s34_s24 = ssub.s32 %s4048_s12, %s4235_s27 }
  0x89   : > { %p35_p8 = scmp.eq.s32.totalorder %s34_s24, 0  ;;  %p44_p1 = scmp.ne.s32.totalorder %s4044_s11, %s4040_s10 }
  0x8a   : > { %p45_p3 = scmp.eq.s32.totalorder %s4048_s12, 0  ;;  %p50_p4 = scmp.ne.s32.totalorder %s4040_s10, %s4036_s30 }
  0x8b   : > { %s4246_s19 = scalar_select %p35_p8, %s4044_s11, %s37_s18  }
  0x8c   : > { %p4248_p5 = por %p45_p3, %p44_p1  ;;  %p8034_p7 = scmp.eq.s32.totalorder %s4142_s16, 0 }
  0x8d   : > { %8032 = sst [smem:[#allocation32_spill]] %s4246_s19  ;;  %p242_p9 = scmp.eq.s32.totalorder %s4142_s16, 1 }
  0x8e   : > { %p4254_p6 = por %p8034_p7, %p50_p4  ;;  %p248_p10 = scmp.eq.s32.totalorder %s3327_s29, 1 }
  0x8f   : > { %p3746_p11 = scmp.lt.s32.totalorder %s4048_s12, 2  ;;  %s356_s21 = sand.u32 1, %s4044_s11  }
  0x90   : > { %p4261_p12 = por %p242_p9, %p44_p1  ;;  %p4265_p13 = por %p248_p10, %p50_p4 }
  0x91   : > { %s3338_s23 = sshll.u32 %s356_s21, 4  ;;  %s3667_s26 = sshll.u32 %s4048_s12, 8 }
  0x92   : > { %s8036_s22 = scalar_select %p4261_p12, 1, 0 }
  0x93   : > { %s8038_s25 = scalar_select %p4265_p13, 1, 0 }
  0x94   : > { %8037 = sst [smem:[#allocation33_spill]] %s8036_s22  ;;  %s8040_s0 = sld [smem:[#allocation90_spill]] }
  0x95   : > { %8039 = sst [smem:[#allocation34_spill]] %s8038_s25  ;;  %s360_s29 = scalar_lea.vmem [#allocation2], %s3338_s23 }
  0x96   : > { %s368_s24 = sshll.u32 %s360_s29, 4  ;;  %p4279_p0 = pnand %p3746_p11, %p4248_p5  ;;  %s4275_s24 = int_to_ptr.vmem [resolvable:$true] %s368_s24 }
  0x97   : > { %s357_s1 = scalar_lea.sflag [#allocation3], %s356_s21 }
  0x98   : > { %p3934_p8 = pneg %p4279_p0 }
  0x9a   : > { %s4273_s14 = scalar_lea.hbm %s8040_s0, %s3667_s26  ;;  %s3937_s28 = scalar_lea.hbm %s8040_s0, 512 }
  0x9b   : > { %s3932_s2 = scalar_lea.hbm %s4273_s14, 256  ;;  %p3938_p4 = scmp.lt.u32.totalorder %s4273_s14, %s8040_s0 }
  0x9c   : > { %p3933_p2 = scmp.ne.s32.totalorder %s4273_s14, %s3932_s2  ;;  %p3939_p5 = scmp.lt.u32.totalorder %s3937_s28, %s3932_s2 }
  0x9d   : > { %p3941_p9 = scmp.lt.u32.totalorder %s3932_s2, %s4273_s14 }
  0x9e   : > { %p3935_p1 = pnand %p3934_p8, %p3933_p2  ;;  %p3940_p7 = por %p3939_p5, %p3938_p4 }
  0xa0   : > { %p3936_p3 = pneg %p3935_p1  ;;  %p3942_p10 = por %p3941_p9, %p3940_p7 }
  0xa2   : > { %p3943_p11 = pnand %p3942_p10, %p3936_p3 }
  0xa4   : > { %3946 = shalt.err (!%p3943_p11)
}
  0xa5   : > { %s3947_s21 = scalar_lea.vmem %s4275_s24, 256  ;;  %s4058_s29 = smov [#allocation2]  }
  0xa6   : > { %p3948_p2 = scmp.ne.s32.totalorder %s4275_s24, %s3947_s21  ;;  %s3952_s23 = sshll.u32 %s4058_s29, 4  ;;  %s3953_s23 = int_to_ptr.vmem [resolvable:$false] %s3952_s23 }
  0xa7   : > { %s3954_s26 = scalar_lea.vmem %s3953_s23, 512  ;;  %p3955_p12 = scmp.lt.s32.totalorder %s4275_s24, %s3953_s23 }
  0xa8   : > { %p3950_p1 = pnand %p3948_p2, %p3934_p8  ;;  %p3956_p4 = scmp.lt.s32.totalorder %s3954_s26, %s3947_s21 }
  0xaa   : > { %p3951_p13 = pneg %p3950_p1  ;;  %p3957_p5 = por %p3956_p4, %p3955_p12 }
  0xac   : > { %p3958_p7 = pnand %p3957_p5, %p3951_p13 }
  0xae   : > { %3961 = shalt.err (!%p3958_p7)
}
  0xaf   : > { %3733 = dma.hbm_to_vmem [thread:$0]  (!%p4279_p0), %s4273_s14, 256, %s4275_s24, %s357_s1  }
  0xb0   : > { %p8042_p3 = scmp.ne.s32.totalorder %s8021_s17, 0 }
  0xb2   : > { %377 = sbr.rel (%p8042_p3) target bundleno = 1195 (0x4ab), region = 56 }
  0xb9   : > { %s4311_s2 = sand.u32 1, %s4040_s10  }
  0xba   : > { %8043 = sst [smem:[#allocation35_spill]] %s4311_s2  ;;  %s3342_s28 = sshll.u32 %s4311_s2, 4 }
  0xbb   : > { %s380_s15 = scalar_lea.sflag [#allocation3], %s4311_s2  ;;  %s383_s13 = scalar_lea.vmem [#allocation2], %s3342_s28 }
  0xbc   : > { %4007 = dma.done.wait (%p4254_p6), %s380_s15, 256  }
  0xbd   : > { %4009 = vsyncadd (%p4254_p6), %s380_s15, 4294967040  ;;  %p8044_p12 = scmp.eq.s32.totalorder %s4142_s16, 0 }
  0xbf   : > { %4011 = dma.done.wait (%p8044_p12), [#allocation5], 16   ;;  %p8045_p13 = pmov %p8044_p12 }
  0xc0   : > { %p8046_p0 = pmov %p8044_p12 }
  0xc1   : > { %4013 = vsyncadd (%p8045_p13), [#allocation5], 4294967280 }
  0xc2   : > { %4015 = dma.done.wait (%p8046_p0), [#allocation8], 32   ;;  %p8047_p8 = pmov %p8046_p0 }
  0xc3   : > { %p8048_p9 = pmov %p8046_p0 }
  0xc4   : > { %4017 = vsyncadd (%p8047_p8), [#allocation8], 4294967264 }
  0xc5   : > { %4019 = dma.done.wait (%p8048_p9), [#allocation11], 48   ;;  %p8049_p10 = pmov %p8046_p0 }
  0xc6   : > { %p8050_p6 = pmov %p8046_p0 }
  0xc7   : > { %4021 = vsyncadd (%p8049_p10), [#allocation11], 4294967248 }
  0xc8   : > { %4023 = dma.done.wait (%p8050_p6), [#allocation14], 32   ;;  %p8051_p11 = pmov %p8046_p0 }
  0xc9   : > { %p8052_p2 = pmov %p8046_p0 }
  0xca   : > { %4025 = vsyncadd (%p8051_p11), [#allocation14], 4294967264 }
  0xcb   : > { %4027 = dma.done.wait (%p8052_p2), [#allocation17], 16   ;;  %p8053_p1 = pmov %p8046_p0 }
  0xcd   : > { %4029 = vsyncadd (%p8053_p1), [#allocation17], 4294967280 }
  0xce   : > { %420 = sfence }
  0xcf   : > { %v4339_v0 = vld [vmem:[%s383_s13] sm:$0xff]  ;;  %s7823_s1 = smov 16   ;;  %s7825_s17 = smov 17   ;;  %v4345_v1 = vld [vmem:[%s383_s13 + $0x8] sm:$0xff]  ;;  %v453_v2 = vlaneseq }
  0xd0   : > { %493 = vrot.lane.b32.xlu1 %v4339_v0, %s7823_s1  ;;  %470 = vrot.lane.b32.xlu0 %v4339_v0, %s7825_s17  ;;  %s7821_s20 = smov 15   ;;  %s7819_s14 = smov 1  }
  0xd1   : > { %s7815_s24 = smov 127   ;;  %s7813_s18 = smov 113   ;;  %v4375_v3 = vand.u32 127, %v453_v2 }
  0xd2   : > { %s7817_s21 = smov 112   ;;  %s7811_s29 = smov 111  }
  0xd3   : > { %v4378_v4 = vadd.s32 128, %v4375_v3  ;;  %s481_s23 = sld [smem:[#allocation6]]  ;;  %s4380_s26 = sld [smem:[#allocation6 + $0x2]]  ;;  %v456_v7 = vand.u32 15, %v4375_v3  ;;  %vm458_vm0 = vcmp.lt.s32.totalorder %v4375_v3, 16  ;;  %vm474_vm1 = vcmp.lt.s32.totalorder %v4375_v3, 17 }
  0xd4   : > { %495 = vrot.lane.b32.xlu1 %v4345_v1, %s7823_s1  ;;  %472 = vrot.lane.b32.xlu0 %v4345_v1, %s7825_s17  ;;  %s4382_s28 = sld [smem:[#allocation7]]  ;;  %s4388_s15 = sld [smem:[#allocation6 + $0x4]]  ;;  %vm517_vm4 = vcmp.lt.s32.totalorder %v4375_v3, 15  ;;  %vm540_vm7 = vcmp.lt.s32.totalorder %v4375_v3, 1  ;;  %vm573_vm8 = vcmp.lt.s32.totalorder %v4375_v3, 127  ;;  %vm594_vm9 = vcmp.lt.s32.totalorder %v4375_v3, 113 }
  0xd5   : > { %v457_v8 = vand.u32 15, %v4378_v4  ;;  %vm4390_vm2 = vcmp.eq.s32.totalorder %v456_v7, 0  ;;  %s4398_s13 = sld [smem:[#allocation6 + $0x6]]  ;;  %vm4435_vm6 = vcmp.eq.s32.totalorder %v456_v7, 15  ;;  %vm461_vm10 = vcmp.ge.s32.totalorder %v4378_v4, 240  ;;  %s4681_s0 = sld [smem:[#allocation10 + $0x2]] }
  0xd6   : > { %vm617_vm11 = vcmp.lt.s32.totalorder %v4375_v3, 112  ;;  %vm638_vm12 = vcmp.lt.s32.totalorder %v4375_v3, 111  ;;  %s4683_s3 = sld [smem:[#allocation10 + $0x3]]  ;;  %s4685_s4 = sld [smem:[#allocation9 + $0x2]] }
  0xd7   : > { %vm4394_vm3 = vcmp.eq.s32.totalorder %v457_v8, 0  ;;  %vm4431_vm5 = vcmp.eq.s32.totalorder %v457_v8, 15  ;;  %s4687_s5 = sld [smem:[#allocation9 + $0x3]]  ;;  %s4689_s6 = sld [smem:[#allocation9 + $0x8]] }
  0xd8   : > { %515 = vrot.lane.b32.xlu1 %v4345_v1, %s7821_s20  ;;  %513 = vrot.lane.b32.xlu0 %v4339_v0, %s7821_s20  ;;  %s4691_s7 = sld [smem:[#allocation9 + $0x9]]  ;;  %s4693_s8 = sld [smem:[#allocation9 + $0xa]] }
  0xd9   : > { %v482_v14 = vstv %s481_s23  ;;  %v502_v17 = vstv %s4380_s26  ;;  %s4446_s23 = sld [smem:[#allocation6 + $0xa]]  ;;  %s4457_s26 = sld [smem:[#allocation6 + $0xc]] }
  0xda   : > { %v467_v20 = vstv %s4382_s28  ;;  %v525_v35 = vstv %s4388_s15  ;;  %s4480_s28 = sld [smem:[#allocation6 + $0xe]]  ;;  %s4502_s15 = sld [smem:[#allocation6 + $0x10]] }
  0xdb   : > { %v546_v41 = vstv %s4398_s13  ;;  %s4522_s13 = sld [smem:[#allocation7 + $0x1]]  ;;  %8067 = sst [smem:[#allocation40_spill]] %s4681_s0 }
  0xdc   : > { %538 = vrot.lane.b32.xlu1 %v4345_v1, %s7819_s14  ;;  %536 = vrot.lane.b32.xlu0 %v4339_v0, %s7819_s14  ;;  %8068 = sst [smem:[#allocation41_spill]] %s4683_s3  ;;  %s4695_s19 = sld [smem:[#allocation9 + $0xb]] }
  0xdd   : > { %8069 = sst [smem:[#allocation42_spill]] %s4685_s4  ;;  %s4699_s10 = sld [smem:[#allocation9 + $0x11]] }
  0xde   : > { %8070 = sst [smem:[#allocation43_spill]] %s4687_s5  ;;  %s4697_s11 = sld [smem:[#allocation9 + $0x10]] }
  0xdf   : > { %v579_v62 = vstv %s4446_s23  ;;  %v602_v8 = vstv %s4457_s26  ;;  %s4532_s23 = sld [smem:[#allocation6 + $0x3]]  ;;  %s4541_s26 = sld [smem:[#allocation6 + $0x5]] }
  0xe0   : > { %571 = vrot.lane.b32.xlu1 %v4345_v1, %s7815_s24  ;;  %569 = vrot.lane.b32.xlu0 %v4339_v0, %s7815_s24  ;;  %8071 = sst [smem:[#allocation44_spill]] %s4689_s6  ;;  %s4703_s12 = sld [smem:[#allocation9 + $0x13]] }
  0xe1   : > { %8072 = sst [smem:[#allocation45_spill]] %s4691_s7  ;;  %s4701_s27 = sld [smem:[#allocation9 + $0x12]] }
  0xe2   : > { %8073 = sst [smem:[#allocation46_spill]] %s4693_s8  ;;  %s4705_s25 = sld [smem:[#allocation9 + $0x18]] }
  0xe3   : > { %8074 = sst [smem:[#allocation47_spill]] %s4695_s19  ;;  %s4707_s30 = sld [smem:[#allocation9 + $0x19]] }
  0xe4   : > { %592 = vrot.lane.b32.xlu1 %v4345_v1, %s7813_s18  ;;  %590 = vrot.lane.b32.xlu0 %v4339_v0, %s7813_s18  ;;  %8075 = sst [smem:[#allocation48_spill]] %s4697_s11  ;;  %s4709_s9 = sld [smem:[#allocation9 + $0x1a]] }
  0xe5   : > { %8076 = sst [smem:[#allocation49_spill]] %s4699_s10  ;;  %s4711_s22 = sld [smem:[#allocation9 + $0x1b]] }
  0xe6   : > { %8078 = sst [smem:[#allocation51_spill]] %s4703_s12  ;;  %s4713_s16 = sld [smem:[#allocation9 + $0x28]] }
  0xe7   : > { %8077 = sst [smem:[#allocation50_spill]] %s4701_s27  ;;  %s4715_s2 = sld [smem:[#allocation9 + $0x29]] }
  0xe8   : > { %615 = vrot.lane.b32.xlu1 %v4345_v1, %s7817_s21  ;;  %613 = vrot.lane.b32.xlu0 %v4339_v0, %s7817_s21  ;;  %8079 = sst [smem:[#allocation52_spill]] %s4705_s25  ;;  %s4719_s27 = sld [smem:[#allocation9 + $0x2b]] }
  0xe9   : > { %8080 = sst [smem:[#allocation53_spill]] %s4707_s30  ;;  %s4721_s12 = sld [smem:[#allocation9 + $0x30]] }
  0xea   : > { %8081 = sst [smem:[#allocation54_spill]] %s4709_s9  ;;  %s4723_s30 = sld [smem:[#allocation9 + $0x31]] }
  0xeb   : > { %s4725_s9 = sld [smem:[#allocation9 + $0x32]] }
  0xec   : > { %636 = vrot.lane.b32.xlu1 %v4345_v1, %s7811_s29  ;;  %634 = vrot.lane.b32.xlu0 %v4339_v0, %s7811_s29  ;;  %s4410_s29 = sld [smem:[#allocation6 + $0x8]]  ;;  %8082 = sst [smem:[#allocation55_spill]] %s4713_s16 }
  0xed   : > { %s4727_s16 = sld [smem:[#allocation9 + $0x33]] }
  0xee   : > { %8084 = sst [smem:[#allocation57_spill]] %s4719_s27  ;;  %s4733_s27 = sld [smem:[#allocation9 + $0x38]] }
  0xef   : > { %8085 = sst [smem:[#allocation58_spill]] %s4721_s12  ;;  %s4735_s12 = sld [smem:[#allocation9 + $0x39]] }
  0xf0   : > { %8086 = sst [smem:[#allocation59_spill]] %s4723_s30  ;;  %s4737_s30 = sld [smem:[#allocation9 + $0x3a]] }
  0xf2   : > { %v558_v50 = vstv %s4410_s29  ;;  %s4495_s29 = sld [smem:[#allocation6 + $0x1]] }
  0xf3   : > { %v559_v58 = vmul.f32 %v558_v50, %v4339_v0 }
 0x142   : > { %v494_v5 = vpop.permute.xlu1 %493  ;;  %v471_v6 = vpop.permute.xlu0 %470 }
 0x146   : > { %v496_v9 = vpop.permute.xlu1 %495  ;;  %v473_v12 = vpop.permute.xlu0 %472 }
 0x147   : > { %v498_v13 = vsel %vm458_vm0, %v496_v9, %v494_v5  ;;  %v475_v15 = vsel %vm474_vm1, %v471_v6, %v473_v12  ;;  %v476_v16 = vsel %vm474_vm1, %v473_v12, %v471_v6  ;;  %v4427_v23 = vsel %vm458_vm0, %v494_v5, %v496_v9 }
 0x148   : > { %v477_v18 = vsel %vm458_vm0, 0.0, %v476_v16  ;;  %v4414_v19 = vsel %vm458_vm0, 0.0, %v498_v13  ;;  %v4423_v22 = vsel %vm4394_vm3, 0.0, %v475_v15  ;;  %v504_v36 = vmul.f32 %v502_v17, %v4427_v23 }
 0x149   : > { %v4419_v21 = vsel %vm4390_vm2, 0.0, %v477_v18  ;;  %v484_v25 = vmul.f32 %v482_v14, %v4423_v22  ;;  %v503_v32 = vmul.f32 %v502_v17, %v4414_v19  ;;  %v560_v5 = vmul.f32 %v558_v50, %v4345_v1 }
 0x14a   : > { %v483_v24 = vmul.f32 %v482_v14, %v4419_v21  ;;  %v516_v26 = vpop.permute.xlu1 %515  ;;  %v514_v28 = vpop.permute.xlu0 %513 }
 0x14b   : > { %v518_v30 = vsel %vm517_vm4, %v514_v28, %v516_v26  ;;  %v519_v31 = vsel %vm517_vm4, %v516_v26, %v514_v28  ;;  %v486_v34 = vadd.f32 %v484_v25, %v467_v20  ;;  %v623_v28 = vstv %s4480_s28  ;;  %s4558_s28 = sld [smem:[#allocation6 + $0x7]] }
 0x14c   : > { %v485_v33 = vadd.f32 %v483_v24, %v467_v20  ;;  %v520_v37 = vsel %vm458_vm0, 0.0, %v519_v31  ;;  %v4453_v38 = vsel %vm4431_vm5, 0.0, %v518_v30 }
 0x14d   : > { %v506_v43 = vadd.f32 %v504_v36, %v486_v34  ;;  %v4461_v44 = vsel %vm4435_vm6, 0.0, %v520_v37  ;;  %v527_v45 = vmul.f32 %v525_v35, %v4453_v38 }
 0x14e   : > { %v505_v39 = vadd.f32 %v503_v32, %v485_v33  ;;  %v539_v40 = vpop.permute.xlu1 %538  ;;  %v537_v42 = vpop.permute.xlu0 %536  ;;  %v526_v47 = vmul.f32 %v525_v35, %v4461_v44 }
 0x14f   : > { %v541_v46 = vsel %vm540_vm7, %v537_v42, %v539_v40  ;;  %v542_v48 = vsel %vm540_vm7, %v539_v40, %v537_v42  ;;  %v529_v57 = vadd.f32 %v527_v45, %v506_v43  ;;  %v488_v40 = vstv %s4495_s29  ;;  %s3361_s29 = sld [smem:[#allocation6 + $0x9]] }
 0x150   : > { %v4471_v49 = vsel %vm4394_vm3, 0.0, %v541_v46  ;;  %v4476_v51 = vsel %vm4390_vm2, 0.0, %v542_v48  ;;  %v528_v53 = vadd.f32 %v526_v47, %v505_v39  ;;  %v646_v42 = vstv %s4502_s15  ;;  %s3363_s15 = sld [smem:[#allocation6 + $0xb]] }
 0x151   : > { %v548_v52 = vmul.f32 %v546_v41, %v4471_v49  ;;  %v547_v54 = vmul.f32 %v546_v41, %v4476_v51 }
 0x152   : > { %v572_v55 = vpop.permute.xlu1 %571  ;;  %v570_v56 = vpop.permute.xlu0 %569 }
 0x153   : > { %v574_v59 = vsel %vm573_vm8, %v570_v56, %v572_v55  ;;  %v575_v60 = vsel %vm573_vm8, %v572_v55, %v570_v56  ;;  %v549_v61 = vadd.f32 %v547_v54, %v528_v53  ;;  %v550_v2 = vadd.f32 %v548_v52, %v529_v57 }
 0x154   : > { %v4490_v63 = vsel %vm4435_vm6, 0.0, %v574_v59  ;;  %v4499_v6 = vsel %vm4431_vm5, 0.0, %v575_v60  ;;  %v489_v52 = vmul.f32 %v488_v40, %v4419_v21  ;;  %v469_v56 = vstv %s4522_s13  ;;  %s3365_s13 = sld [smem:[#allocation6 + $0xd]] }
 0x155   : > { %v561_v12 = vadd.f32 %v559_v58, %v549_v61  ;;  %v580_v13 = vmul.f32 %v579_v62, %v4490_v63  ;;  %v562_v18 = vadd.f32 %v560_v5, %v550_v2  ;;  %v581_v20 = vmul.f32 %v579_v62, %v4499_v6 }
 0x156   : > { %v593_v7 = vpop.permute.xlu1 %592  ;;  %v591_v9 = vpop.permute.xlu0 %590  ;;  %v508_v61 = vstv %s4532_s23  ;;  %v490_v21 = vmul.f32 %v488_v40, %v4423_v22  ;;  %v491_v62 = vadd.f32 %v489_v52, %v469_v56  ;;  %v552_v22 = vstv %s4558_s28  ;;  %s3367_s23 = sld [smem:[#allocation6 + $0xf]]  ;;  %s8062_s28 = smov 111  }
 0x157   : > { %v595_v14 = vsel %vm594_vm9, %v591_v9, %v593_v7  ;;  %v596_v15 = vsel %vm594_vm9, %v593_v7, %v591_v9  ;;  %v582_v31 = vadd.f32 %v580_v13, %v561_v12  ;;  %v583_v36 = vadd.f32 %v581_v20, %v562_v18 }
 0x158   : > { %v598_v16 = vsel %vm461_vm10, 0.0, %v596_v15  ;;  %v4513_v17 = vsel %vm4390_vm2, 0.0, %v595_v14  ;;  %v531_v7 = vstv %s4541_s26  ;;  %v492_v12 = vadd.f32 %v490_v21, %v469_v56  ;;  %s3369_s26 = sld [smem:[#allocation6 + $0x11]] }
 0x159   : > { %v4519_v24 = vsel %vm4394_vm3, 0.0, %v598_v16  ;;  %v603_v25 = vmul.f32 %v602_v8, %v4513_v17  ;;  %v532_v14 = vmul.f32 %v531_v7, %v4461_v44  ;;  %v510_v15 = vmul.f32 %v508_v61, %v4427_v23 }
 0x15a   : > { %v616_v26 = vpop.permute.xlu1 %615  ;;  %v614_v30 = vpop.permute.xlu0 %613  ;;  %v604_v32 = vmul.f32 %v602_v8, %v4519_v24  ;;  %v509_v8 = vmul.f32 %v508_v61, %v4414_v19  ;;  %v533_v16 = vmul.f32 %v531_v7, %v4453_v38  ;;  %v553_v20 = vmul.f32 %v552_v22, %v4476_v51 }
 0x15b   : > { %v4528_v33 = vsel %vm617_vm11, %v614_v30, %v616_v26  ;;  %v619_v34 = vsel %vm617_vm11, %v616_v26, %v614_v30  ;;  %v605_v37 = vadd.f32 %v603_v25, %v582_v31  ;;  %v512_v19 = vadd.f32 %v510_v15, %v492_v12 }
 0x15c   : > { %v4536_v35 = vsel %vm461_vm10, 0.0, %v619_v34  ;;  %v624_v39 = vmul.f32 %v623_v28, %v4528_v33  ;;  %v606_v45 = vadd.f32 %v604_v32, %v583_v36  ;;  %v511_v13 = vadd.f32 %v509_v8, %v491_v62 }
 0x15d   : > { %v625_v46 = vmul.f32 %v623_v28, %v4536_v35  ;;  %v564_v44 = vstv %s3361_s29  ;;  %v554_v25 = vmul.f32 %v552_v22, %v4471_v49  ;;  %v535_v23 = vadd.f32 %v533_v16, %v512_v19  ;;  %s4657_s29 = sld [smem:[#allocation9 + $0x20]] }
 0x15e   : > { %v637_v41 = vpop.permute.xlu1 %636  ;;  %v635_v43 = vpop.permute.xlu0 %634  ;;  %v626_v53 = vadd.f32 %v624_v39, %v605_v37  ;;  %v534_v18 = vadd.f32 %v532_v14, %v511_v13  ;;  %v565_v28 = vmul.f32 %v564_v44, %v4339_v0  ;;  %v585_v38 = vstv %s3363_s15  ;;  %s4659_s15 = sld [smem:[#allocation9 + $0x21]] }
 0x15f   : > { %v639_v47 = vsel %vm638_vm12, %v635_v43, %v637_v41  ;;  %v640_v48 = vsel %vm638_vm12, %v637_v41, %v635_v43  ;;  %v627_v58 = vadd.f32 %v625_v46, %v606_v45  ;;  %v556_v51 = vadd.f32 %v554_v25, %v535_v23 }
 0x160   : > { %v4551_v50 = vsel %vm4435_vm6, 0.0, %v639_v47  ;;  %v642_v54 = vsel %vm461_vm10, 0.0, %v640_v48  ;;  %v555_v26 = vadd.f32 %v553_v20, %v534_v18  ;;  %v566_v30 = vmul.f32 %v564_v44, %v4345_v1 }
 0x161   : > { %v647_v55 = vmul.f32 %v646_v42, %v4551_v50  ;;  %v4562_v57 = vsel %vm4431_vm5, 0.0, %v642_v54  ;;  %v608_v49 = vstv %s3365_s13  ;;  %v586_v32 = vmul.f32 %v585_v38, %v4490_v63  ;;  %s4661_s13 = sld [smem:[#allocation9 + $0x22]] }
 0x162   : > { %v648_v59 = vmul.f32 %v646_v42, %v4562_v57  ;;  %v567_v31 = vadd.f32 %v565_v28, %v555_v26  ;;  %v568_v34 = vadd.f32 %v566_v30, %v556_v51  ;;  %v587_v0 = vmul.f32 %v585_v38, %v4499_v6 }
 0x163   : > { %v649_v60 = vadd.f32 %v647_v55, %v626_v53  ;;  %v609_v36 = vmul.f32 %v608_v49, %v4513_v17  ;;  %v629_v37 = vstv %s3367_s23  ;;  %v610_v39 = vmul.f32 %v608_v49, %v4519_v24  ;;  %s4663_s23 = sld [smem:[#allocation9 + $0x23]] }
 0x164   : > { %v650_v2 = vadd.f32 %v648_v59, %v627_v58  ;;  %v588_v1 = vadd.f32 %v586_v32, %v567_v31  ;;  %v652_v40 = vstv %s3369_s26  ;;  %v589_v63 = vadd.f32 %v587_v0, %v568_v34  ;;  %s4665_s26 = sld [smem:[#allocation9 + $0x24]] }
 0x165   : > { %v4567_v5 = vmax.f32 %v649_v60, 0.0  ;;  %v630_v42 = vmul.f32 %v629_v37, %v4528_v33  ;;  %v631_v17 = vmul.f32 %v629_v37, %v4536_v35  ;;  %v653_v43 = vmul.f32 %v652_v40, %v4551_v50 }
 0x166   : > { %v4571_v9 = vmax.f32 %v650_v2, 0.0  ;;  %v611_v41 = vadd.f32 %v609_v36, %v588_v1  ;;  %v612_v6 = vadd.f32 %v610_v39, %v589_v63  ;;  %v654_v45 = vmul.f32 %v652_v40, %v4562_v57 }
 0x167   : > { %669 = vrot.lane.b32.xlu0 %v4567_v5, %s7825_s17  ;;  %v802_v50 = vstv %s4657_s29  ;;  %v808_v52 = vstv %s4659_s15  ;;  %v814_v53 = vstv %s4661_s13  ;;  %s4749_s29 = sld [smem:[#allocation9 + $0x40]]  ;;  %s4751_s15 = sld [smem:[#allocation9 + $0x41]] }
 0x168   : > { %671 = vrot.lane.b32.xlu1 %v4571_v9, %s7825_s17  ;;  %v632_v24 = vadd.f32 %v630_v42, %v611_v41  ;;  %v633_v46 = vadd.f32 %v631_v17, %v612_v6  ;;  %v666_v62 = vstv %s4681_s0  ;;  %v668_v2 = vstv %s4683_s3  ;;  %s8091_s13 = sld [smem:[#allocation51_spill]]  ;;  %s8094_s3 = sld [smem:[#allocation54_spill]] }
 0x169   : > { %v820_v54 = vstv %s4663_s23  ;;  %v692_v7 = vstv %s4685_s4  ;;  %v698_v8 = vstv %s4687_s5  ;;  %v712_v12 = vstv %s4689_s6  ;;  %s4765_s23 = sld [smem:[#allocation9 + $0x4]]  ;;  %s4789_s6 = sld [smem:[#allocation9 + $0xd]] }
 0x16a   : > { %v655_v47 = vadd.f32 %v653_v43, %v632_v24  ;;  %v656_v33 = vadd.f32 %v654_v45, %v633_v46  ;;  %v1090_v55 = vstv %s4665_s26  ;;  %v718_v13 = vstv %s4691_s7  ;;  %s4767_s26 = sld [smem:[#allocation9 + $0x5]]  ;;  %s4787_s7 = sld [smem:[#allocation9 + $0xc]] }
 0x16b   : > { %703 = vrot.lane.b32.xlu0 %v4567_v5, %s7823_s1  ;;  %v724_v14 = vstv %s4693_s8  ;;  %v730_v22 = vstv %s4695_s19  ;;  %v4770_v15 = vmul.f32 %v802_v50, %v4567_v5  ;;  %v4773_v19 = vmul.f32 %v808_v52, %v4567_v5  ;;  %s4781_s8 = sld [smem:[#allocation9 + $0x6]]  ;;  %s4783_s19 = sld [smem:[#allocation9 + $0x7]] }
 0x16c   : > { %705 = vrot.lane.b32.xlu1 %v4571_v9, %s7823_s1  ;;  %v4619_v35 = vmax.f32 %v655_v47, 0.0  ;;  %v4623_v48 = vmax.f32 %v656_v33, 0.0  ;;  %v4776_v16 = vmul.f32 %v814_v53, %v4567_v5  ;;  %v4779_v18 = vmul.f32 %v820_v54, %v4567_v5  ;;  %s4807_s0 = sld [smem:[#allocation9 + $0xf]]  ;;  %s4825_s4 = sld [smem:[#allocation9 + $0x16]] }
 0x16d   : > { %8087 = sst [smem:[#allocation60_spill]] %s4751_s15  ;;  %v746_v20 = vstv %s4697_s11  ;;  %v752_v44 = vstv %s4699_s10  ;;  %v4803_v38 = vmul.f32 %v808_v52, %v4571_v9  ;;  %s8093_s10 = sld [smem:[#allocation53_spill]]  ;;  %v4810_v51 = vmul.f32 %v814_v53, %v4571_v9 }
 0x16e   : > { %v4792_v25 = vmul.f32 %v1090_v55, %v4619_v35  ;;  %v764_v28 = vstv %s8091_s13  ;;  %s4805_s11 = sld [smem:[#allocation9 + $0xe]]  ;;  %v4813_v30 = vmul.f32 %v820_v54, %v4571_v9  ;;  %s4815_s13 = sld [smem:[#allocation9 + $0x14]]  ;;  %v4820_v49 = vmul.f32 %v1090_v55, %v4623_v48 }
 0x16f   : > { %735 = vrot.lane.b32.xlu0 %v4567_v5, %s7821_s20  ;;  %8092 = sst [smem:[#allocation63_spill]] %s4789_s6  ;;  %v778_v36 = vstv %s4705_s25  ;;  %v790_v1 = vstv %s8094_s3  ;;  %v796_v39 = vstv %s4711_s22  ;;  %s4853_s25 = sld [smem:[#allocation9 + $0x1e]] }
 0x170   : > { %737 = vrot.lane.b32.xlu1 %v4571_v9, %s7821_s20  ;;  %v840_v63 = vstv %s4715_s2  ;;  %s8130_s22 = sld [smem:[#allocation57_spill]]  ;;  %s5263_s6 = sld [smem:[#allocation9 + $0x46]] }
 0x171   : > { %s5233_s15 = sld [smem:[#allocation9 + $0x3f]]  ;;  %s8206_s5 = smov 16  }
 0x172   : > { %8100 = sst [smem:[#allocation64_spill]] %s4825_s4  ;;  %s4847_s4 = sld [smem:[#allocation9 + $0x1d]] }
 0x173   : > { %769 = vrot.lane.b32.xlu0 %v4567_v5, %s7819_s14  ;;  %v784_v37 = vstv %s8093_s10  ;;  %s4855_s10 = sld [smem:[#allocation9 + $0x1f]]  ;;  %s3437_s3 = sld [smem:[#allocation9 + $0x3d]] }
 0x174   : > { %771 = vrot.lane.b32.xlu1 %v4571_v9, %s7819_s14  ;;  %8095 = sst [smem:[#allocation54_spill]] %s4815_s13  ;;  %s5215_s13 = sld [smem:[#allocation9 + $0x37]] }
 0x175   : > { %8106 = sst [smem:[#allocation68_spill]] %s4853_s25  ;;  %s8207_s25 = smov 15  }
 0x177   : > { %825 = vrot.lane.b32.xlu0 %v4567_v5, %s7815_s24 }
 0x178   : > { %827 = vrot.lane.b32.xlu1 %v4571_v9, %s7815_s24  ;;  %8105 = sst [smem:[#allocation67_spill]] %s4847_s4  ;;  %s5250_s4 = sld [smem:[#allocation9 + $0x44]] }
 0x179   : > { %8107 = sst [smem:[#allocation69_spill]] %s4855_s10  ;;  %s3433_s10 = sld [smem:[#allocation9 + $0x35]] }
 0x17b   : > { %857 = vrot.lane.b32.xlu0 %v4567_v5, %s7813_s18 }
 0x17c   : > { %859 = vrot.lane.b32.xlu1 %v4571_v9, %s7813_s18 }
 0x17f   : > { %891 = vrot.lane.b32.xlu0 %v4567_v5, %s7817_s21 }
 0x180   : > { %893 = vrot.lane.b32.xlu1 %v4571_v9, %s7817_s21 }
 0x183   : > { %923 = vrot.lane.b32.xlu0 %v4567_v5, %s8062_s28  ;;  %v4800_v5 = vmul.f32 %v802_v50, %v4571_v9 }
 0x184   : > { %925 = vrot.lane.b32.xlu1 %v4571_v9, %s8062_s28 }
 0x187   : > { %957 = vrot.lane.b32.xlu0 %v4619_v35, %s7825_s17 }
 0x188   : > { %959 = vrot.lane.b32.xlu1 %v4623_v48, %s7825_s17  ;;  %s4679_s17 = sld [smem:[#allocation10 + $0x1]] }
 0x18b   : > { %991 = vrot.lane.b32.xlu0 %v4619_v35, %s7823_s1 }
 0x18c   : > { %993 = vrot.lane.b32.xlu1 %v4623_v48, %s7823_s1  ;;  %s4677_s1 = sld [smem:[#allocation10]] }
 0x18e   : > { %8066 = sst [smem:[#allocation39_spill]] %s4679_s17  ;;  %v664_v60 = vstv %s4679_s17 }
 0x18f   : > { %1023 = vrot.lane.b32.xlu0 %v4619_v35, %s7821_s20  ;;  %s4817_s17 = sld [smem:[#allocation9 + $0x15]] }
 0x190   : > { %1025 = vrot.lane.b32.xlu1 %v4623_v48, %s7821_s20  ;;  %s4675_s20 = sld [smem:[#allocation9 + $0x1]] }
 0x192   : > { %8065 = sst [smem:[#allocation38_spill]] %s4677_s1  ;;  %v662_v59 = vstv %s4677_s1 }
 0x193   : > { %1057 = vrot.lane.b32.xlu0 %v4619_v35, %s7819_s14 }
 0x194   : > { %1059 = vrot.lane.b32.xlu1 %v4623_v48, %s7819_s14  ;;  %s4673_s14 = sld [smem:[#allocation9]] }
 0x196   : > { %8064 = sst [smem:[#allocation37_spill]] %s4675_s20  ;;  %v686_v21 = vstv %s4675_s20  ;;  %s4827_s20 = sld [smem:[#allocation9 + $0x17]] }
 0x197   : > { %1113 = vrot.lane.b32.xlu0 %v4619_v35, %s7815_s24 }
 0x198   : > { %1115 = vrot.lane.b32.xlu1 %v4623_v48, %s7815_s24  ;;  %s4669_s24 = sld [smem:[#allocation9 + $0x26]] }
 0x19a   : > { %8063 = sst [smem:[#allocation36_spill]] %s4673_s14  ;;  %v680_v61 = vstv %s4673_s14  ;;  %s4895_s14 = sld [smem:[#allocation9 + $0x2f]] }
 0x19b   : > { %1145 = vrot.lane.b32.xlu0 %v4619_v35, %s7813_s18 }
 0x19c   : > { %1147 = vrot.lane.b32.xlu1 %v4623_v48, %s7813_s18  ;;  %s4667_s18 = sld [smem:[#allocation9 + $0x25]]  ;;  %8101 = sst [smem:[#allocation65_spill]] %s4827_s20 }
 0x19d   : > { %s4845_s20 = sld [smem:[#allocation9 + $0x1c]] }
 0x19e   : > { %v1102_v57 = vstv %s4669_s24  ;;  %s4759_s24 = sld [smem:[#allocation9 + $0x43]] }
 0x19f   : > { %1179 = vrot.lane.b32.xlu0 %v4619_v35, %s7817_s21  ;;  %v4830_v9 = vmul.f32 %v1102_v57, %v4623_v48  ;;  %v4836_v34 = vmul.f32 %v1102_v57, %v4619_v35 }
 0x1a0   : > { %1181 = vrot.lane.b32.xlu1 %v4623_v48, %s7817_s21  ;;  %s4671_s21 = sld [smem:[#allocation9 + $0x27]]  ;;  %v1140_v24 = vstv %s4895_s14  ;;  %s8205_s14 = smov 17  }
 0x1a2   : > { %v1096_v56 = vstv %s4667_s18  ;;  %s4757_s18 = sld [smem:[#allocation9 + $0x42]] }
 0x1a3   : > { %1211 = vrot.lane.b32.xlu0 %v4619_v35, %s8062_s28  ;;  %v4795_v23 = vmul.f32 %v1096_v56, %v4619_v35  ;;  %v4823_v31 = vmul.f32 %v1096_v56, %v4623_v48  ;;  %8104 = sst [smem:[#allocation66_spill]] %s4845_s20 }
 0x1a4   : > { %1213 = vrot.lane.b32.xlu1 %v4623_v48, %s8062_s28  ;;  %s4717_s28 = sld [smem:[#allocation9 + $0x2a]]  ;;  %8089 = sst [smem:[#allocation62_spill]] %s4759_s24 }
 0x1a5   : > { %s8132_s20 = sld [smem:[#allocation58_spill]]  ;;  %s8153_s2 = sld [smem:[#allocation62_spill]] }
 0x1a6   : > { %v1108_v58 = vstv %s4671_s21  ;;  %s8090_s21 = sld [smem:[#allocation50_spill]]  ;;  %s5207_s24 = sld [smem:[#allocation9 + $0x34]] }
 0x1a7   : > { %v4833_v32 = vmul.f32 %v1108_v58, %v4623_v48  ;;  %v4839_v0 = vmul.f32 %v1108_v58, %v4619_v35 }
 0x1a8   : > { %8088 = sst [smem:[#allocation61_spill]] %s4757_s18  ;;  %s8133_s18 = sld [smem:[#allocation59_spill]] }
 0x1aa   : > { %8083 = sst [smem:[#allocation56_spill]] %s4717_s28  ;;  %s4739_s28 = sld [smem:[#allocation9 + $0x3b]] }
 0x1ab   : > { %s8098_s1 = sld [smem:[#allocation56_spill]] }
 0x1ac   : > { %v758_v26 = vstv %s8090_s21  ;;  %s8096_s21 = sld [smem:[#allocation55_spill]] }
 0x1ad   : > { %8097 = sst [smem:[#allocation55_spill]] %s4817_s17  ;;  %s4869_s17 = sld [smem:[#allocation9 + $0x2e]] }
 0x1b1   : > { %v846_v41 = vstv %s8098_s1  ;;  %s3429_s1 = sld [smem:[#allocation9 + $0x2d]] }
 0x1b2   : > { %v834_v40 = vstv %s8096_s21  ;;  %s5213_s21 = sld [smem:[#allocation9 + $0x36]] }
 0x1d9   : > { %v670_v53 = vpop.permute.xlu0 %669 }
 0x1da   : > { %v672_v48 = vpop.permute.xlu1 %671 }
 0x1db   : > { %v673_v56 = vsel %vm474_vm1, %v670_v53, %v672_v48  ;;  %v674_v33 = vsel %vm474_vm1, %v672_v48, %v670_v53 }
 0x1dc   : > { %v675_v50 = vsel %vm458_vm0, 0.0, %v674_v33  ;;  %v678_v46 = vsel %vm4394_vm3, 0.0, %v673_v56 }
 0x1dd   : > { %v704_v45 = vpop.permute.xlu0 %703  ;;  %v677_v48 = vsel %vm4390_vm2, 0.0, %v675_v50  ;;  %v682_v33 = vmul.f32 %v680_v61, %v678_v46  ;;  %v688_v53 = vmul.f32 %v686_v21, %v678_v46  ;;  %v694_v56 = vmul.f32 %v692_v7, %v678_v46 }
 0x1de   : > { %v681_v52 = vmul.f32 %v680_v61, %v677_v48  ;;  %v687_v58 = vmul.f32 %v686_v21, %v677_v48  ;;  %v693_v47 = vmul.f32 %v692_v7, %v677_v48  ;;  %v699_v35 = vmul.f32 %v698_v8, %v677_v48  ;;  %v706_v57 = vpop.permute.xlu1 %705 }
 0x1df   : > { %v684_v50 = vadd.f32 %v682_v33, %v662_v59  ;;  %v690_v55 = vadd.f32 %v688_v53, %v664_v60  ;;  %v700_v54 = vmul.f32 %v698_v8, %v678_v46  ;;  %v696_v48 = vadd.f32 %v694_v56, %v666_v62 }
 0x1e0   : > { %v683_v61 = vadd.f32 %v681_v52, %v662_v59  ;;  %v689_v21 = vadd.f32 %v687_v58, %v664_v60  ;;  %v695_v7 = vadd.f32 %v693_v47, %v666_v62  ;;  %v701_v33 = vadd.f32 %v699_v35, %v668_v2 }
 0x1e1   : > { %v736_v43 = vpop.permute.xlu0 %735  ;;  %v702_v53 = vadd.f32 %v700_v54, %v668_v2  ;;  %v707_v8 = vsel %vm458_vm0, %v704_v45, %v706_v57  ;;  %v708_v59 = vsel %vm458_vm0, %v706_v57, %v704_v45 }
 0x1e2   : > { %v709_v60 = vsel %vm458_vm0, 0.0, %v708_v59  ;;  %v714_v46 = vmul.f32 %v712_v12, %v707_v8  ;;  %v720_v62 = vmul.f32 %v718_v13, %v707_v8  ;;  %v726_v47 = vmul.f32 %v724_v14, %v707_v8  ;;  %v738_v52 = vpop.permute.xlu1 %737 }
 0x1e3   : > { %v713_v35 = vmul.f32 %v712_v12, %v709_v60  ;;  %v719_v2 = vmul.f32 %v718_v13, %v709_v60  ;;  %v725_v54 = vmul.f32 %v724_v14, %v709_v60  ;;  %v731_v58 = vmul.f32 %v730_v22, %v709_v60 }
 0x1e4   : > { %v716_v56 = vadd.f32 %v714_v46, %v684_v50  ;;  %v728_v45 = vadd.f32 %v726_v47, %v696_v48  ;;  %v732_v57 = vmul.f32 %v730_v22, %v707_v8  ;;  %v722_v6 = vadd.f32 %v720_v62, %v690_v55 }
 0x1e5   : > { %v770_v59 = vpop.permute.xlu0 %769  ;;  %v715_v17 = vadd.f32 %v713_v35, %v683_v61  ;;  %v727_v42 = vadd.f32 %v725_v54, %v695_v7  ;;  %v733_v12 = vadd.f32 %v731_v58, %v701_v33  ;;  %v721_v13 = vadd.f32 %v719_v2, %v689_v21 }
 0x1e6   : > { %v734_v14 = vadd.f32 %v732_v57, %v702_v53  ;;  %v739_v50 = vsel %vm517_vm4, %v736_v43, %v738_v52  ;;  %v740_v22 = vsel %vm517_vm4, %v738_v52, %v736_v43  ;;  %v772_v48 = vpop.permute.xlu1 %771 }
 0x1e7   : > { %v741_v61 = vsel %vm458_vm0, 0.0, %v740_v22  ;;  %v744_v55 = vsel %vm4431_vm5, 0.0, %v739_v50  ;;  %v773_v21 = vsel %vm540_vm7, %v770_v59, %v772_v48  ;;  %v774_v7 = vsel %vm540_vm7, %v772_v48, %v770_v59 }
 0x1e8   : > { %v743_v33 = vsel %vm4435_vm6, 0.0, %v741_v61  ;;  %v748_v53 = vmul.f32 %v746_v20, %v744_v55  ;;  %v754_v43 = vmul.f32 %v752_v44, %v744_v55  ;;  %v760_v8 = vmul.f32 %v758_v26, %v744_v55 }
 0x1e9   : > { %v826_v60 = vpop.permute.xlu0 %825  ;;  %v747_v46 = vmul.f32 %v746_v20, %v743_v33  ;;  %v753_v62 = vmul.f32 %v752_v44, %v743_v33  ;;  %v759_v47 = vmul.f32 %v758_v26, %v743_v33  ;;  %v765_v52 = vmul.f32 %v764_v28, %v743_v33 }
 0x1ea   : > { %v750_v35 = vadd.f32 %v748_v53, %v716_v56  ;;  %v756_v2 = vadd.f32 %v754_v43, %v722_v6  ;;  %v762_v54 = vadd.f32 %v760_v8, %v728_v45  ;;  %v766_v58 = vmul.f32 %v764_v28, %v744_v55  ;;  %v828_v57 = vpop.permute.xlu1 %827 }
 0x1eb   : > { %v749_v20 = vadd.f32 %v747_v46, %v715_v17  ;;  %v755_v44 = vadd.f32 %v753_v62, %v721_v13  ;;  %v761_v59 = vadd.f32 %v759_v47, %v727_v42  ;;  %v767_v26 = vadd.f32 %v765_v52, %v733_v12 }
 0x1ec   : > { %v768_v50 = vadd.f32 %v766_v58, %v734_v14  ;;  %v775_v22 = vsel %vm4390_vm2, 0.0, %v774_v7  ;;  %v776_v6 = vsel %vm4394_vm3, 0.0, %v773_v21  ;;  %v829_v56 = vsel %vm573_vm8, %v826_v60, %v828_v57 }
 0x1ed   : > { %v858_v45 = vpop.permute.xlu0 %857  ;;  %v779_v28 = vmul.f32 %v778_v36, %v775_v22  ;;  %v780_v48 = vmul.f32 %v778_v36, %v776_v6  ;;  %v785_v17 = vmul.f32 %v784_v37, %v775_v22  ;;  %v786_v42 = vmul.f32 %v784_v37, %v776_v6 }
 0x1ee   : > { %v791_v12 = vmul.f32 %v790_v1, %v775_v22  ;;  %v792_v13 = vmul.f32 %v790_v1, %v776_v6  ;;  %v797_v14 = vmul.f32 %v796_v39, %v775_v22  ;;  %v798_v61 = vmul.f32 %v796_v39, %v776_v6  ;;  %v860_v55 = vpop.permute.xlu1 %859 }
 0x1ef   : > { %v781_v21 = vadd.f32 %v779_v28, %v749_v20  ;;  %v782_v7 = vadd.f32 %v780_v48, %v750_v35  ;;  %v787_v33 = vadd.f32 %v785_v17, %v755_v44  ;;  %v788_v53 = vadd.f32 %v786_v42, %v756_v2 }
 0x1f0   : > { %v793_v43 = vadd.f32 %v791_v12, %v761_v59  ;;  %v794_v8 = vadd.f32 %v792_v13, %v762_v54  ;;  %v799_v36 = vadd.f32 %v797_v14, %v767_v26  ;;  %v800_v46 = vadd.f32 %v798_v61, %v768_v50 }
 0x1f1   : > { %v892_v62 = vpop.permute.xlu0 %891  ;;  %v805_v37 = vadd.f32 %v4770_v15, %v781_v21  ;;  %v806_v1 = vadd.f32 %v4800_v5, %v782_v7  ;;  %v811_v39 = vadd.f32 %v4773_v19, %v787_v33  ;;  %v812_v47 = vadd.f32 %v4803_v38, %v788_v53 }
 0x1f2   : > { %v817_v52 = vadd.f32 %v4776_v16, %v793_v43  ;;  %v818_v35 = vadd.f32 %v4810_v51, %v794_v8  ;;  %v823_v2 = vadd.f32 %v4779_v18, %v799_v36  ;;  %v824_v54 = vadd.f32 %v4813_v30, %v800_v46  ;;  %v894_v15 = vpop.permute.xlu1 %893 }
 0x1f3   : > { %v830_v5 = vsel %vm573_vm8, %v828_v57, %v826_v60  ;;  %v831_v19 = vsel %vm4435_vm6, 0.0, %v829_v56  ;;  %v861_v38 = vsel %vm594_vm9, %v858_v45, %v860_v55  ;;  %v862_v16 = vsel %vm594_vm9, %v860_v55, %v858_v45 }
 0x1f4   : > { %v832_v51 = vsel %vm4431_vm5, 0.0, %v830_v5  ;;  %v835_v18 = vmul.f32 %v834_v40, %v831_v19  ;;  %v841_v30 = vmul.f32 %v840_v63, %v831_v19  ;;  %v847_v58 = vmul.f32 %v846_v41, %v831_v19 }
 0x1f5   : > { %v836_v60 = vmul.f32 %v834_v40, %v832_v51  ;;  %v842_v57 = vmul.f32 %v840_v63, %v832_v51  ;;  %v848_v20 = vmul.f32 %v846_v41, %v832_v51  ;;  %v8131_v44 = vstv %s8130_s22  ;;  %v924_v45 = vpop.permute.xlu0 %923  ;;  %s3441_s22 = sld [smem:[#allocation9 + $0x45]] }
 0x1f6   : > { %v853_v59 = vmul.f32 %v8131_v44, %v831_v19  ;;  %v837_v26 = vadd.f32 %v835_v18, %v805_v37  ;;  %v843_v50 = vadd.f32 %v841_v30, %v811_v39  ;;  %v849_v22 = vadd.f32 %v847_v58, %v817_v52  ;;  %v926_v28 = vpop.permute.xlu1 %925 }
 0x1f7   : > { %v8134_v6 = vmov %v8131_v44  ;;  %v838_v40 = vadd.f32 %v836_v60, %v806_v1  ;;  %v844_v63 = vadd.f32 %v842_v57, %v812_v47  ;;  %v850_v48 = vadd.f32 %v848_v20, %v818_v35 }
 0x1f8   : > { %v854_v56 = vmul.f32 %v8134_v6, %v832_v51  ;;  %v855_v41 = vadd.f32 %v853_v59, %v823_v2  ;;  %v864_v42 = vsel %vm461_vm10, 0.0, %v862_v16  ;;  %v865_v12 = vsel %vm4390_vm2, 0.0, %v861_v38 }
 0x1f9   : > { %v895_v13 = vsel %vm617_vm11, %v892_v62, %v894_v15  ;;  %v866_v14 = vsel %vm4394_vm3, 0.0, %v864_v42  ;;  %v8135_v61 = vstv %s8132_s20  ;;  %v8136_v21 = vstv %s8133_s18  ;;  %v958_v18 = vpop.permute.xlu0 %957  ;;  %s8208_s20 = smov 1   ;;  %s8209_s18 = smov 127  }
 0x1fa   : > { %v856_v17 = vadd.f32 %v854_v56, %v824_v54  ;;  %v869_v55 = vmul.f32 %v8135_v61, %v865_v12  ;;  %v875_v7 = vmul.f32 %v8136_v21, %v865_v12  ;;  %v8137_v33 = vstv %s4725_s9  ;;  %v960_v30 = vpop.permute.xlu1 %959  ;;  %s8150_s9 = sld [smem:[#allocation60_spill]] }
 0x1fb   : > { %v881_v53 = vmul.f32 %v8137_v33, %v865_v12  ;;  %v8138_v43 = vmov %v8135_v61  ;;  %v8139_v36 = vmov %v8136_v21  ;;  %v8140_v37 = vmov %v8137_v33 }
 0x1fc   : > { %v870_v8 = vmul.f32 %v8138_v43, %v866_v14  ;;  %v876_v46 = vmul.f32 %v8139_v36, %v866_v14  ;;  %v882_v1 = vmul.f32 %v8140_v37, %v866_v14  ;;  %v8141_v39 = vstv %s4727_s16  ;;  %s8151_s16 = sld [smem:[#allocation61_spill]] }
 0x1fd   : > { %v887_v47 = vmul.f32 %v8141_v39, %v865_v12  ;;  %v871_v52 = vadd.f32 %v869_v55, %v837_v26  ;;  %v877_v35 = vadd.f32 %v875_v7, %v843_v50  ;;  %v883_v2 = vadd.f32 %v881_v53, %v849_v22 }
 0x1fe   : > { %v8142_v54 = vmov %v8141_v39  ;;  %v872_v19 = vadd.f32 %v870_v8, %v838_v40  ;;  %v878_v38 = vadd.f32 %v876_v46, %v844_v63  ;;  %v884_v16 = vadd.f32 %v882_v1, %v850_v48  ;;  %v992_v1 = vpop.permute.xlu0 %991  ;;  %v994_v39 = vpop.permute.xlu1 %993 }
 0x1ff   : > { %v888_v5 = vmul.f32 %v8142_v54, %v866_v14  ;;  %v889_v51 = vadd.f32 %v887_v47, %v855_v41  ;;  %v896_v60 = vsel %vm617_vm11, %v894_v15, %v892_v62  ;;  %v8143_v57 = vstv %s4733_s27  ;;  %s8180_s27 = sld [smem:[#allocation64_spill]] }
 0x200   : > { %v901_v20 = vmul.f32 %v8143_v57, %v895_v13  ;;  %v8144_v44 = vstv %s4735_s12  ;;  %v898_v26 = vsel %vm461_vm10, 0.0, %v896_v60  ;;  %v8145_v50 = vstv %s4737_s30  ;;  %s8168_s30 = sld [smem:[#allocation63_spill]] }
 0x201   : > { %v890_v58 = vadd.f32 %v888_v5, %v856_v17  ;;  %v907_v59 = vmul.f32 %v8144_v44, %v895_v13  ;;  %v913_v22 = vmul.f32 %v8145_v50, %v895_v13  ;;  %v8146_v6 = vstv %s4739_s28  ;;  %s8179_s12 = sld [smem:[#allocation55_spill]]  ;;  %s8194_s28 = sld [smem:[#allocation69_spill]] }
 0x202   : > { %v919_v56 = vmul.f32 %v8146_v6, %v895_v13  ;;  %v927_v40 = vsel %vm638_vm12, %v924_v45, %v926_v28  ;;  %v8147_v63 = vmov %v8143_v57  ;;  %v903_v41 = vadd.f32 %v901_v20, %v871_v52 }
 0x203   : > { %v902_v48 = vmul.f32 %v8147_v63, %v898_v26  ;;  %v8148_v17 = vmov %v8144_v44  ;;  %v909_v15 = vadd.f32 %v907_v59, %v877_v35  ;;  %v8149_v42 = vmov %v8145_v50 }
 0x204   : > { %v908_v62 = vmul.f32 %v8148_v17, %v898_v26  ;;  %v914_v12 = vmul.f32 %v8149_v42, %v898_v26  ;;  %v915_v14 = vadd.f32 %v913_v22, %v883_v2  ;;  %v8152_v61 = vmov %v8146_v6 }
 0x205   : > { %v920_v55 = vmul.f32 %v8152_v61, %v898_v26  ;;  %v921_v13 = vadd.f32 %v919_v56, %v889_v51  ;;  %v904_v21 = vadd.f32 %v902_v48, %v872_v19  ;;  %v928_v33 = vsel %vm638_vm12, %v926_v28, %v924_v45 }
 0x206   : > { %v910_v7 = vadd.f32 %v908_v62, %v878_v38  ;;  %v931_v53 = vsel %vm4435_vm6, 0.0, %v927_v40  ;;  %v916_v43 = vadd.f32 %v914_v12, %v884_v16  ;;  %v930_v36 = vsel %vm461_vm10, 0.0, %v928_v33 }
 0x207   : > { %v922_v8 = vadd.f32 %v920_v55, %v890_v58  ;;  %v8154_v46 = vstv %s4749_s29  ;;  %v932_v47 = vsel %vm4431_vm5, 0.0, %v930_v36  ;;  %v8155_v52 = vstv %s8150_s9  ;;  %v1024_v55 = vpop.permute.xlu0 %1023  ;;  %s5205_s29 = sld [smem:[#allocation9 + $0x2c]]  ;;  %s8210_s9 = smov 113  }
 0x208   : > { %v935_v37 = vmul.f32 %v8154_v46, %v931_v53  ;;  %v941_v35 = vmul.f32 %v8155_v52, %v931_v53  ;;  %v8156_v2 = vstv %s8151_s16  ;;  %v8157_v28 = vstv %s8153_s2  ;;  %s8211_s16 = smov 112   ;;  %s8212_s2 = smov 111  }
 0x209   : > { %v947_v45 = vmul.f32 %v8156_v2, %v931_v53  ;;  %v953_v54 = vmul.f32 %v8157_v28, %v931_v53  ;;  %v8158_v5 = vmov %v8154_v46  ;;  %v8159_v16 = vmov %v8155_v52 }
 0x20a   : > { %v936_v19 = vmul.f32 %v8158_v5, %v932_v47  ;;  %v937_v38 = vadd.f32 %v935_v37, %v903_v41  ;;  %v942_v51 = vmul.f32 %v8159_v16, %v932_v47  ;;  %v8160_v58 = vmov %v8156_v2 }
 0x20b   : > { %v948_v60 = vmul.f32 %v8160_v58, %v932_v47  ;;  %v943_v57 = vadd.f32 %v941_v35, %v909_v15  ;;  %v949_v20 = vadd.f32 %v947_v45, %v915_v14  ;;  %v8161_v44 = vmov %v8157_v28 }
 0x20c   : > { %v954_v59 = vmul.f32 %v8161_v44, %v932_v47  ;;  %v955_v26 = vadd.f32 %v953_v54, %v921_v13  ;;  %v938_v50 = vadd.f32 %v936_v19, %v904_v21  ;;  %v944_v22 = vadd.f32 %v942_v51, %v910_v7  ;;  %v1026_v13 = vpop.permute.xlu1 %1025 }
 0x20d   : > { %v950_v6 = vadd.f32 %v948_v60, %v916_v43  ;;  %v961_v56 = vsel %vm474_vm1, %v958_v18, %v960_v30  ;;  %v962_v63 = vsel %vm474_vm1, %v960_v30, %v958_v18  ;;  %v995_v41 = vsel %vm458_vm0, %v992_v1, %v994_v39 }
 0x20e   : > { %v956_v40 = vadd.f32 %v954_v59, %v922_v8  ;;  %v966_v48 = vsel %vm4394_vm3, 0.0, %v961_v56  ;;  %v963_v17 = vsel %vm458_vm0, 0.0, %v962_v63  ;;  %v8162_v62 = vstv %s4765_s23  ;;  %s5218_s23 = sld [smem:[#allocation9 + $0x3c]] }
 0x20f   : > { %v970_v15 = vmul.f32 %v8162_v62, %v966_v48  ;;  %v8163_v42 = vstv %s4767_s26  ;;  %v8164_v14 = vstv %s4781_s8  ;;  %v965_v18 = vsel %vm4390_vm2, 0.0, %v963_v17  ;;  %s8178_s8 = sld [smem:[#allocation54_spill]]  ;;  %s5224_s26 = sld [smem:[#allocation9 + $0x3e]] }
 0x210   : > { %v976_v12 = vmul.f32 %v8163_v42, %v966_v48  ;;  %v982_v61 = vmul.f32 %v8164_v14, %v966_v48  ;;  %v8165_v30 = vstv %s4783_s19  ;;  %v996_v7 = vsel %vm458_vm0, %v994_v39, %v992_v1  ;;  %v1060_v17 = vpop.permute.xlu1 %1059  ;;  %s8192_s19 = sld [smem:[#allocation68_spill]] }
 0x211   : > { %v988_v21 = vmul.f32 %v8165_v30, %v966_v48  ;;  %v8166_v33 = vstv %s4787_s7  ;;  %v8167_v43 = vmov %v8162_v62  ;;  %v972_v36 = vadd.f32 %v970_v15, %v938_v50  ;;  %s8182_s7 = sld [smem:[#allocation65_spill]] }
 0x212   : > { %v1002_v53 = vmul.f32 %v8166_v33, %v995_v41  ;;  %v969_v8 = vmul.f32 %v8167_v43, %v965_v18  ;;  %v8169_v46 = vmov %v8163_v42  ;;  %v978_v47 = vadd.f32 %v976_v12, %v944_v22 }
 0x213   : > { %v975_v37 = vmul.f32 %v8169_v46, %v965_v18  ;;  %v8170_v52 = vmov %v8164_v14  ;;  %v984_v2 = vadd.f32 %v982_v61, %v950_v6  ;;  %v8171_v45 = vmov %v8165_v30 }
 0x214   : > { %v981_v35 = vmul.f32 %v8170_v52, %v965_v18  ;;  %v987_v28 = vmul.f32 %v8171_v45, %v965_v18  ;;  %v990_v1 = vadd.f32 %v988_v21, %v956_v40  ;;  %v971_v39 = vadd.f32 %v969_v8, %v937_v38 }
 0x215   : > { %v977_v54 = vadd.f32 %v975_v37, %v943_v57  ;;  %v997_v5 = vsel %vm458_vm0, 0.0, %v996_v7  ;;  %v1004_v19 = vadd.f32 %v1002_v53, %v972_v36  ;;  %v8172_v58 = vmov %v8166_v33  ;;  %v1058_v57 = vpop.permute.xlu0 %1057 }
 0x216   : > { %v983_v16 = vadd.f32 %v981_v35, %v949_v20  ;;  %v989_v51 = vadd.f32 %v987_v28, %v955_v26  ;;  %v1001_v60 = vmul.f32 %v8172_v58, %v997_v5  ;;  %v8173_v44 = vstv %s8168_s30  ;;  %s5426_s30 = sld [smem:[#allocation12 + $0x40]] }
 0x217   : > { %v1007_v59 = vmul.f32 %v8173_v44, %v997_v5  ;;  %v8174_v50 = vmov %v8173_v44  ;;  %v8175_v56 = vstv %s4805_s11  ;;  %v8177_v40 = vstv %s4807_s0  ;;  %s8187_s0 = sld [smem:[#allocation66_spill]]  ;;  %s8190_s11 = sld [smem:[#allocation67_spill]] }
 0x218   : > { %v1008_v22 = vmul.f32 %v8174_v50, %v995_v41  ;;  %v1013_v6 = vmul.f32 %v8175_v56, %v997_v5  ;;  %v8176_v63 = vmov %v8175_v56  ;;  %v1019_v38 = vmul.f32 %v8177_v40, %v997_v5  ;;  %v1116_v50 = vpop.permute.xlu1 %1115 }
 0x219   : > { %v1014_v48 = vmul.f32 %v8176_v63, %v995_v41  ;;  %v1003_v62 = vadd.f32 %v1001_v60, %v971_v39  ;;  %v1009_v20 = vadd.f32 %v1007_v59, %v977_v54  ;;  %v8181_v26 = vmov %v8177_v40  ;;  %v1114_v59 = vpop.permute.xlu0 %1113 }
 0x21a   : > { %v1020_v15 = vmul.f32 %v8181_v26, %v995_v41  ;;  %v1027_v42 = vsel %vm517_vm4, %v1024_v55, %v1026_v13  ;;  %v1010_v12 = vadd.f32 %v1008_v22, %v978_v47  ;;  %v1015_v14 = vadd.f32 %v1013_v6, %v983_v16 }
 0x21b   : > { %v1016_v61 = vadd.f32 %v1014_v48, %v984_v2  ;;  %v1021_v18 = vadd.f32 %v1019_v38, %v989_v51  ;;  %v1028_v21 = vsel %vm517_vm4, %v1026_v13, %v1024_v55  ;;  %v1032_v7 = vsel %vm4431_vm5, 0.0, %v1027_v42 }
 0x21c   : > { %v1022_v30 = vadd.f32 %v1020_v15, %v990_v1  ;;  %v1061_v41 = vsel %vm540_vm7, %v1058_v57, %v1060_v17  ;;  %v1029_v33 = vsel %vm458_vm0, 0.0, %v1028_v21  ;;  %v8183_v53 = vstv %s8178_s8  ;;  %s5428_s8 = sld [smem:[#allocation12 + $0x41]] }
 0x21d   : > { %v1036_v43 = vmul.f32 %v8183_v53, %v1032_v7  ;;  %v8184_v8 = vstv %s8179_s12  ;;  %v8185_v46 = vstv %s8180_s27  ;;  %v1031_v47 = vsel %vm4435_vm6, 0.0, %v1029_v33  ;;  %s5430_s12 = sld [smem:[#allocation12 + $0x42]]  ;;  %s5434_s27 = sld [smem:[#allocation12 + $0x43]] }
 0x21e   : > { %v1042_v36 = vmul.f32 %v8184_v8, %v1032_v7  ;;  %v1048_v37 = vmul.f32 %v8185_v46, %v1032_v7  ;;  %v8186_v55 = vstv %s8182_s7  ;;  %v1062_v52 = vsel %vm540_vm7, %v1060_v17, %v1058_v57  ;;  %s5436_s7 = sld [smem:[#allocation12 + $0x44]] }
 0x21f   : > { %v1054_v13 = vmul.f32 %v8186_v55, %v1032_v7  ;;  %v1064_v35 = vsel %vm4394_vm3, 0.0, %v1061_v41  ;;  %v8188_v2 = vmov %v8183_v53  ;;  %v1038_v28 = vadd.f32 %v1036_v43, %v1004_v19 }
 0x220   : > { %v1035_v45 = vmul.f32 %v8188_v2, %v1031_v47  ;;  %v8189_v1 = vmov %v8184_v8  ;;  %v1044_v54 = vadd.f32 %v1042_v36, %v1010_v12  ;;  %v8191_v5 = vmov %v8185_v46 }
 0x221   : > { %v1041_v39 = vmul.f32 %v8189_v1, %v1031_v47  ;;  %v1047_v16 = vmul.f32 %v8191_v5, %v1031_v47  ;;  %v1050_v51 = vadd.f32 %v1048_v37, %v1016_v61  ;;  %v8193_v58 = vmov %v8186_v55 }
 0x222   : > { %v1053_v60 = vmul.f32 %v8193_v58, %v1031_v47  ;;  %v1056_v44 = vadd.f32 %v1054_v13, %v1022_v30  ;;  %v1037_v22 = vadd.f32 %v1035_v45, %v1003_v62  ;;  %v1063_v19 = vsel %vm4390_vm2, 0.0, %v1062_v52  ;;  %v1146_v13 = vpop.permute.xlu0 %1145  ;;  %v1148_v52 = vpop.permute.xlu1 %1147 }
 0x223   : > { %v1043_v56 = vadd.f32 %v1041_v39, %v1009_v20  ;;  %v8195_v6 = vstv %s8187_s0  ;;  %v1049_v48 = vadd.f32 %v1047_v16, %v1015_v14  ;;  %v8197_v17 = vstv %s8190_s11  ;;  %s5438_s0 = sld [smem:[#allocation12 + $0x45]]  ;;  %s5440_s11 = sld [smem:[#allocation12 + $0x46]] }
 0x224   : > { %v1068_v63 = vmul.f32 %v8195_v6, %v1064_v35  ;;  %v1055_v40 = vadd.f32 %v1053_v60, %v1021_v18  ;;  %v8196_v38 = vmov %v8195_v6  ;;  %v1073_v26 = vmul.f32 %v8197_v17, %v1063_v19 }
 0x225   : > { %v1067_v57 = vmul.f32 %v8196_v38, %v1063_v19  ;;  %v8198_v42 = vmov %v8197_v17  ;;  %v8199_v61 = vstv %s8192_s19  ;;  %v8201_v41 = vstv %s8194_s28  ;;  %s5444_s19 = sld [smem:[#allocation12 + $0x47]]  ;;  %s5446_s28 = sld [smem:[#allocation12 + $0x48]] }
 0x226   : > { %v1070_v15 = vadd.f32 %v1068_v63, %v1038_v28  ;;  %v1074_v12 = vmul.f32 %v8198_v42, %v1064_v35  ;;  %v1079_v30 = vmul.f32 %v8199_v61, %v1063_v19  ;;  %v8200_v62 = vmov %v8199_v61 }
 0x227   : > { %v1080_v21 = vmul.f32 %v8200_v62, %v1064_v35  ;;  %v1069_v20 = vadd.f32 %v1067_v57, %v1037_v22  ;;  %v1075_v7 = vadd.f32 %v1073_v26, %v1043_v56  ;;  %v1085_v14 = vmul.f32 %v8201_v41, %v1063_v19  ;;  %v1182_v22 = vpop.permute.xlu1 %1181 }
 0x228   : > { %v8202_v18 = vmov %v8201_v41  ;;  %v1076_v53 = vadd.f32 %v1074_v12, %v1044_v54  ;;  %v1081_v43 = vadd.f32 %v1079_v30, %v1049_v48  ;;  %v1094_v36 = vadd.f32 %v4820_v49, %v1070_v15 }
 0x229   : > { %v1086_v33 = vmul.f32 %v8202_v18, %v1064_v35  ;;  %v1082_v8 = vadd.f32 %v1080_v21, %v1050_v51  ;;  %v1087_v46 = vadd.f32 %v1085_v14, %v1055_v40  ;;  %v1093_v47 = vadd.f32 %v4792_v25, %v1069_v20 }
 0x22a   : > { %v5222_v55 = vadd.f32 %v4795_v23, %v1075_v7  ;;  %v5227_v35 = vadd.f32 %v4823_v31, %v1076_v53  ;;  %v1105_v49 = vadd.f32 %v4836_v34, %v1081_v43  ;;  %v1117_v25 = vsel %vm573_vm8, %v1114_v59, %v1116_v50 }
 0x22b   : > { %v1088_v37 = vadd.f32 %v1086_v33, %v1056_v44  ;;  %v1106_v2 = vadd.f32 %v4830_v9, %v1082_v8  ;;  %v1111_v23 = vadd.f32 %v4839_v0, %v1087_v46  ;;  %v1118_v31 = vsel %vm573_vm8, %v1116_v50, %v1114_v59  ;;  %v1180_v50 = vpop.permute.xlu0 %1179  ;;  %v1214_v43 = vpop.permute.xlu1 %1213 }
 0x22c   : > { %v5241_v34 = vsel %vm4435_vm6, 0.0, %v1117_v25  ;;  %v5245_v9 = vsel %vm4431_vm5, 0.0, %v1118_v31  ;;  %v8203_v28 = vstv %s4869_s17  ;;  %v1122_v54 = vstv %s5205_s29  ;;  %s5272_s17 = sld [smem:[#allocation9 + $0x47]]  ;;  %s5448_s29 = sld [smem:[#allocation12 + $0x49]] }
 0x22d   : > { %v1112_v45 = vadd.f32 %v4833_v32, %v1088_v37  ;;  %v1135_v1 = vmul.f32 %v8203_v28, %v5241_v34  ;;  %v8204_v0 = vmov %v8203_v28  ;;  %v1141_v39 = vmul.f32 %v1140_v24, %v5241_v34 }
 0x22e   : > { %v1136_v32 = vmul.f32 %v8204_v0, %v5245_v9  ;;  %v1142_v16 = vmul.f32 %v1140_v24, %v5245_v9  ;;  %v1156_v51 = vstv %s5207_s24  ;;  %v1168_v44 = vstv %s5213_s21  ;;  %s5450_s24 = sld [smem:[#allocation12 + $0x4a]]  ;;  %s5454_s21 = sld [smem:[#allocation12 + $0x4b]] }
 0x22f   : > { %v1137_v5 = vadd.f32 %v1135_v1, %v1105_v49  ;;  %v1143_v60 = vadd.f32 %v1141_v39, %v1111_v23  ;;  %v1174_v59 = vstv %s5215_s13  ;;  %v1149_v19 = vsel %vm594_vm9, %v1146_v13, %v1148_v52  ;;  %v1212_v53 = vpop.permute.xlu0 %1211  ;;  %s5456_s13 = sld [smem:[#allocation12 + $0x4c]] }
 0x230   : > { %v1138_v58 = vadd.f32 %v1136_v32, %v1106_v2  ;;  %v1144_v56 = vadd.f32 %v1142_v16, %v1112_v45  ;;  %v1150_v6 = vsel %vm594_vm9, %v1148_v52, %v1146_v13  ;;  %v1188_v63 = vstv %s5218_s23  ;;  %s5458_s23 = sld [smem:[#allocation12 + $0x4e]] }
 0x231   : > { %v1123_v24 = vmul.f32 %v1122_v54, %v5241_v34  ;;  %v1152_v48 = vsel %vm461_vm10, 0.0, %v1150_v6  ;;  %v5279_v40 = vsel %vm4390_vm2, 0.0, %v1149_v19  ;;  %v1200_v38 = vstv %s5224_s26  ;;  %s5460_s26 = sld [smem:[#allocation12 + $0x4f]] }
 0x232   : > { %v1124_v57 = vmul.f32 %v1122_v54, %v5245_v9  ;;  %v5285_v17 = vsel %vm4394_vm3, 0.0, %v1152_v48  ;;  %v1169_v26 = vmul.f32 %v1168_v44, %v5279_v40  ;;  %v1206_v15 = vstv %s5233_s15  ;;  %s5464_s15 = sld [smem:[#allocation12]] }
 0x233   : > { %v1157_v42 = vmul.f32 %v1156_v51, %v5279_v40  ;;  %v1170_v12 = vmul.f32 %v1168_v44, %v5285_v17  ;;  %v1175_v61 = vmul.f32 %v1174_v59, %v5279_v40  ;;  %v1184_v30 = vsel %vm617_vm11, %v1182_v22, %v1180_v50 }
 0x234   : > { %v1171_v62 = vadd.f32 %v1169_v26, %v1137_v5  ;;  %v1176_v21 = vmul.f32 %v1174_v59, %v5285_v17  ;;  %v5297_v20 = vsel %vm617_vm11, %v1180_v50, %v1182_v22  ;;  %v1222_v7 = vstv %s5250_s4  ;;  %s5466_s4 = sld [smem:[#allocation12 + $0x1]] }
 0x235   : > { %v1125_v41 = vadd.f32 %v1123_v24, %v1093_v47  ;;  %v1158_v14 = vmul.f32 %v1156_v51, %v5285_v17  ;;  %v1172_v18 = vadd.f32 %v1170_v12, %v1138_v58  ;;  %v1177_v33 = vadd.f32 %v1175_v61, %v1143_v60 }
 0x236   : > { %v1126_v8 = vadd.f32 %v1124_v57, %v1094_v36  ;;  %v1178_v46 = vadd.f32 %v1176_v21, %v1144_v56  ;;  %v5303_v37 = vsel %vm461_vm10, 0.0, %v1184_v30  ;;  %v1234_v13 = vstv %s5263_s6  ;;  %8213 = sst [smem:[#allocation36_spill]] %s5458_s23  ;;  %s5468_s6 = sld [smem:[#allocation13]] }
 0x237   : > { %v1159_v52 = vadd.f32 %v1157_v42, %v1125_v41  ;;  %v1189_v49 = vmul.f32 %v1188_v63, %v5297_v20  ;;  %v1201_v2 = vmul.f32 %v1200_v38, %v5297_v20  ;;  %v1202_v47 = vmul.f32 %v1200_v38, %v5303_v37  ;;  %8214 = sst [smem:[#allocation37_spill]] %s5460_s26 }
 0x238   : > { %v1207_v25 = vmul.f32 %v1206_v15, %v5297_v20  ;;  %v1208_v23 = vmul.f32 %v1206_v15, %v5303_v37  ;;  %v1240_v45 = vstv %s5272_s17  ;;  %v1215_v36 = vsel %vm638_vm12, %v1212_v53, %v1214_v43  ;;  %8215 = sst [smem:[#allocation42_spill]] %s5464_s15  ;;  %s5470_s17 = sld [smem:[#allocation13 + $0x1]] }
 0x239   : > { %v1160_v31 = vadd.f32 %v1158_v14, %v1126_v8  ;;  %v1190_v28 = vmul.f32 %v1188_v63, %v5303_v37  ;;  %v1203_v1 = vadd.f32 %v1201_v2, %v1171_v62  ;;  %v1204_v0 = vadd.f32 %v1202_v47, %v1172_v18 }
 0x23a   : > { %v1209_v32 = vadd.f32 %v1207_v25, %v1177_v33  ;;  %v1210_v39 = vadd.f32 %v1208_v23, %v1178_v46  ;;  %v1216_v54 = vsel %vm638_vm12, %v1214_v43, %v1212_v53  ;;  %v1219_v5 = vsel %vm4435_vm6, 0.0, %v1215_v36  ;;  %8216 = sst [smem:[#allocation43_spill]] %s5466_s4 }
 0x23b   : > { %v1191_v16 = vadd.f32 %v1189_v49, %v1159_v52  ;;  %v1218_v51 = vsel %vm461_vm10, 0.0, %v1216_v54  ;;  %v1223_v58 = vmul.f32 %v1222_v7, %v1219_v5  ;;  %v1235_v60 = vmul.f32 %v1234_v13, %v1219_v5 }
 0x23c   : > { %v1220_v44 = vsel %vm4431_vm5, 0.0, %v1218_v51  ;;  %v1241_v59 = vmul.f32 %v1240_v45, %v1219_v5  ;;  %v1192_v50 = vadd.f32 %v1190_v28, %v1160_v31  ;;  %v1128_v42 = vstv %s3429_s1  ;;  %8217 = sst [smem:[#allocation38_spill]] %s5468_s6  ;;  %s5474_s1 = sld [smem:[#allocation13 + $0x2]] }
 0x23d   : > { %v1224_v22 = vmul.f32 %v1222_v7, %v1220_v44  ;;  %v1225_v56 = vadd.f32 %v1223_v58, %v1191_v16  ;;  %v1236_v19 = vmul.f32 %v1234_v13, %v1220_v44  ;;  %v5323_v6 = vadd.f32 %v1235_v60, %v1203_v1 }
 0x23e   : > { %v1242_v63 = vmul.f32 %v1240_v45, %v1220_v44  ;;  %v5325_v24 = vadd.f32 %v1241_v59, %v1209_v32  ;;  %v1162_v12 = vstv %s3433_s10  ;;  %v1129_v61 = vmul.f32 %v1128_v42, %v5241_v34  ;;  %8218 = sst [smem:[#allocation39_spill]] %s5470_s17  ;;  %s5476_s10 = sld [smem:[#allocation13 + $0x3]] }
 0x23f   : > { %v1226_v48 = vadd.f32 %v1224_v22, %v1192_v50  ;;  %v5327_v38 = vmax.f32 %v1225_v56, 0.0  ;;  %v1238_v57 = vadd.f32 %v1236_v19, %v1204_v0  ;;  %v1130_v30 = vmul.f32 %v1128_v42, %v5245_v9 }
 0x240   : > { %v5329_v26 = vadd.f32 %v1242_v63, %v1210_v39  ;;  %v1163_v62 = vmul.f32 %v1162_v12, %v5279_v40  ;;  %v1194_v21 = vstv %s3437_s3  ;;  %v1131_v7 = vadd.f32 %v1129_v61, %v5222_v55  ;;  %s5478_s3 = sld [smem:[#allocation12 + $0x2]] }
 0x241   : > { %v5331_v15 = vmax.f32 %v1226_v48, 0.0  ;;  %1261 = vrot.lane.b32.xlu0 %v5327_v38, %s8205_s14  ;;  %v1164_v41 = vmul.f32 %v1162_v12, %v5285_v17  ;;  %v1228_v14 = vstv %s3441_s22  ;;  %v1132_v34 = vadd.f32 %v1130_v30, %v5227_v35  ;;  %s5480_s22 = sld [smem:[#allocation12 + $0x3]] }
 0x242   : > { %v1165_v18 = vadd.f32 %v1163_v62, %v1131_v7  ;;  %v1195_v33 = vmul.f32 %v1194_v21, %v5297_v20  ;;  %v1196_v40 = vmul.f32 %v1194_v21, %v5303_v37  ;;  %v1229_v53 = vmul.f32 %v1228_v14, %v1219_v5  ;;  %8219 = sst [smem:[#allocation40_spill]] %s5474_s1 }
 0x243   : > { %1263 = vrot.lane.b32.xlu1 %v5331_v15, %s8205_s14  ;;  %v1166_v9 = vadd.f32 %v1164_v41, %v1132_v34  ;;  %v1230_v17 = vmul.f32 %v1228_v14, %v1220_v44  ;;  %v5408_v37 = vmax.f32 %v5323_v6, 0.0  ;;  %v5412_v13 = vmax.f32 %v1238_v57, 0.0 }
 0x244   : > { %v1197_v55 = vadd.f32 %v1195_v33, %v1165_v18  ;;  %8220 = sst [smem:[#allocation41_spill]] %s5476_s10  ;;  %v1394_v52 = vstv %s5426_s30  ;;  %v1400_v49 = vstv %s5428_s8  ;;  %v1406_v2 = vstv %s5430_s12  ;;  %s5536_s30 = sld [smem:[#allocation12 + $0x60]] }
 0x245   : > { %1295 = vrot.lane.b32.xlu0 %v5327_v38, %s8206_s5  ;;  %v1198_v43 = vadd.f32 %v1196_v40, %v1166_v9  ;;  %v1412_v47 = vstv %s5434_s27  ;;  %v1682_v25 = vstv %s5436_s7  ;;  %v1688_v23 = vstv %s5438_s0  ;;  %s5538_s8 = sld [smem:[#allocation12 + $0x61]]  ;;  %s5685_s7 = sld [smem:[#allocation12 + $0x27]] }
 0x246   : > { %v1231_v35 = vadd.f32 %v1229_v53, %v1197_v55  ;;  %8221 = sst [smem:[#allocation44_spill]] %s5478_s3  ;;  %s5500_s3 = sld [smem:[#allocation12 + $0x23]]  ;;  %v1694_v45 = vstv %s5440_s11  ;;  %v1700_v36 = vstv %s5444_s19  ;;  %v1970_v31 = vstv %s5446_s28 }
 0x247   : > { %1297 = vrot.lane.b32.xlu1 %v5331_v15, %s8206_s5  ;;  %v1232_v20 = vadd.f32 %v1230_v17, %v1198_v43  ;;  %8222 = sst [smem:[#allocation45_spill]] %s5480_s22  ;;  %s5496_s22 = sld [smem:[#allocation12 + $0x21]]  ;;  %v5532_v28 = vmax.f32 %v5325_v24, 0.0  ;;  %v1976_v1 = vstv %s5448_s29  ;;  %v1982_v0 = vstv %s5450_s24 }
 0x248   : > { %v5371_v8 = vmax.f32 %v1231_v35, 0.0  ;;  %v1988_v32 = vstv %s5454_s21  ;;  %s8241_s12 = sld [smem:[#allocation44_spill]]  ;;  %v1254_v39 = vstv %s5468_s6  ;;  %s8242_s27 = sld [smem:[#allocation45_spill]]  ;;  %v2258_v54 = vstv %s5456_s13 }
 0x249   : > { %1327 = vrot.lane.b32.xlu0 %v5327_v38, %s8207_s25  ;;  %v5375_v46 = vmax.f32 %v1232_v20, 0.0  ;;  %8238 = vst [vmem:[#allocation70_spill] sm:$0xff] %v5532_v28  ;;  %v2270_v5 = vstv %s5458_s23  ;;  %v2276_v16 = vstv %s5460_s26  ;;  %v5552_v51 = vmax.f32 %v5329_v26, 0.0  ;;  %s5567_s26 = sld [smem:[#allocation12 + $0x72]]  ;;  %s5569_s23 = sld [smem:[#allocation12 + $0x73]] }
 0x24a   : > { %8239 = sst [smem:[#allocation63_spill]] %s5536_s30  ;;  %v1256_v58 = vstv %s5470_s17  ;;  %v1258_v60 = vstv %s5474_s1  ;;  %v1260_v44 = vstv %s5476_s10  ;;  %v1272_v59 = vstv %s5464_s15  ;;  %s5579_s10 = sld [smem:[#allocation12 + $0x80]] }
 0x24b   : > { %1329 = vrot.lane.b32.xlu1 %v5331_v15, %s8207_s25  ;;  %8240 = sst [smem:[#allocation54_spill]] %s5538_s8  ;;  %8246 = vst [vmem:[#allocation71_spill] sm:$0xff] %v5552_v51  ;;  %s8247_s8 = smov 17   ;;  %v1278_v50 = vstv %s5466_s4  ;;  %v5577_v24 = vmul.f32 %v1394_v52, %v5327_v38  ;;  %v5595_v61 = vmul.f32 %v1394_v52, %v5331_v15  ;;  %v5598_v30 = vmul.f32 %v1400_v49, %v5327_v38 }
 0x24c   : > { %8230 = sst [smem:[#allocation53_spill]] %s5500_s3  ;;  %s5581_s1 = sld [smem:[#allocation12 + $0x81]]  ;;  %v5601_v62 = vmul.f32 %v1400_v49, %v5331_v15  ;;  %v5608_v21 = vmul.f32 %v1406_v2, %v5327_v38  ;;  %v5611_v7 = vmul.f32 %v1406_v2, %v5331_v15  ;;  %v5614_v41 = vmul.f32 %v1412_v47, %v5327_v38 }
 0x24d   : > { %1361 = vrot.lane.b32.xlu0 %v5327_v38, %s8208_s20  ;;  %8228 = sst [smem:[#allocation51_spill]] %s5496_s22  ;;  %s5587_s17 = sld [smem:[#allocation12 + $0x82]]  ;;  %v5617_v14 = vmul.f32 %v1412_v47, %v5331_v15  ;;  %v5650_v40 = vmul.f32 %v1694_v45, %v5375_v46  ;;  %v5655_v53 = vmul.f32 %v1700_v36, %v5375_v46  ;;  %v5666_v55 = vmul.f32 %v1682_v25, %v5371_v8 }
 0x24e   : > { %v1284_v22 = vstv %s8241_s12  ;;  %v1290_v56 = vstv %s8242_s27  ;;  %s5589_s12 = sld [smem:[#allocation12 + $0x83]]  ;;  %s5619_s3 = sld [smem:[#allocation12 + $0x6]]  ;;  %v5671_v17 = vmul.f32 %v1688_v23, %v5371_v8  ;;  %v5676_v43 = vmul.f32 %v1694_v45, %v5371_v8 }
 0x24f   : > { %1363 = vrot.lane.b32.xlu1 %v5331_v15, %s8208_s20  ;;  %8253 = sst [smem:[#allocation67_spill]] %s5567_s26  ;;  %s5621_s6 = sld [smem:[#allocation12 + $0x7]]  ;;  %v5681_v35 = vmul.f32 %v1700_v36, %v5371_v8  ;;  %v5690_v20 = vmul.f32 %v1970_v31, %v5412_v13  ;;  %v5700_v52 = vmul.f32 %v1982_v0, %v5412_v13  ;;  %v5718_v47 = vmul.f32 %v1970_v31, %v5408_v37 }
 0x250   : > { %8254 = sst [smem:[#allocation68_spill]] %s5579_s10  ;;  %s8262_s27 = smov 15   ;;  %v5734_v45 = vmul.f32 %v1982_v0, %v5408_v37  ;;  %v5739_v36 = vmul.f32 %v1988_v32, %v5408_v37  ;;  %v5752_v0 = vmul.f32 %v2258_v54, %v5552_v51  ;;  %v5809_v33 = vmul.f32 %v2270_v5, %v5532_v28 }
 0x251   : > { %1417 = vrot.lane.b32.xlu0 %v5327_v38, %s8209_s18  ;;  %s5659_s22 = sld [smem:[#allocation12 + $0x24]]  ;;  %s5661_s4 = sld [smem:[#allocation12 + $0x25]]  ;;  %8275 = vst [vmem:[#allocation79_spill] sm:$0xff] %v5718_v47 }
 0x252   : > { %8269 = sst [smem:[#allocation77_spill]] %s5685_s7  ;;  %s5711_s19 = sld [smem:[#allocation12 + $0x34]]  ;;  %8283 = vst [vmem:[#allocation82_spill] sm:$0xff] %v5752_v0  ;;  %8298 = vst [vmem:[#allocation88_spill] sm:$0xff] %v5809_v33 }
 0x253   : > { %1419 = vrot.lane.b32.xlu1 %v5331_v15, %s8209_s18  ;;  %s8279_s28 = smov 1   ;;  %s5745_s29 = sld [smem:[#allocation12 + $0x54]] }
 0x254   : > { %s5747_s15 = sld [smem:[#allocation12 + $0x55]]  ;;  %s5763_s24 = sld [smem:[#allocation12 + $0x56]] }
 0x255   : > { %1449 = vrot.lane.b32.xlu0 %v5327_v38, %s8210_s9  ;;  %s5765_s21 = sld [smem:[#allocation12 + $0x57]]  ;;  %s8295_s26 = smov 127  }
 0x256   : > { %s8296_s10 = sld [smem:[#allocation77_spill]]  ;;  %s8299_s13 = smov 113  }
 0x257   : > { %1451 = vrot.lane.b32.xlu1 %v5331_v15, %s8210_s9  ;;  %8264 = sst [smem:[#allocation74_spill]] %s5659_s22 }
 0x258   : > { %8265 = sst [smem:[#allocation75_spill]] %s5661_s4  ;;  %s5683_s4 = sld [smem:[#allocation12 + $0x26]] }
 0x259   : > { %1483 = vrot.lane.b32.xlu0 %v5327_v38, %s8211_s16  ;;  %8280 = sst [smem:[#allocation81_spill]] %s5745_s29  ;;  %s8292_s11 = sld [smem:[#allocation74_spill]] }
 0x25a   : > { %8282 = sst [smem:[#allocation37_spill]] %s5747_s15  ;;  %s5839_s29 = sld [smem:[#allocation12 + $0x67]] }
 0x25b   : > { %1485 = vrot.lane.b32.xlu1 %v5331_v15, %s8211_s16  ;;  %8285 = sst [smem:[#allocation84_spill]] %s5763_s24 }
 0x25c   : > { %8286 = sst [smem:[#allocation85_spill]] %s5765_s21  ;;  %s8318_s21 = sld [smem:[#allocation51_spill]] }
 0x25d   : > { %1515 = vrot.lane.b32.xlu0 %v5327_v38, %s8212_s2  ;;  %v5634_v38 = vmul.f32 %v1682_v25, %v5375_v46  ;;  %s8320_s24 = sld [smem:[#allocation53_spill]] }
 0x25e   : > { %8268 = sst [smem:[#allocation76_spill]] %s5683_s4  ;;  %s5713_s4 = sld [smem:[#allocation12 + $0x35]] }
 0x25f   : > { %1517 = vrot.lane.b32.xlu1 %v5331_v15, %s8212_s2  ;;  %v5639_v15 = vmul.f32 %v1688_v23, %v5375_v46  ;;  %v5779_v23 = vmul.f32 %v2276_v16, %v5552_v51 }
 0x261   : > { %1549 = vrot.lane.b32.xlu0 %v5371_v8, %s8205_s14  ;;  %8291 = vst [vmem:[#allocation86_spill] sm:$0xff] %v5779_v23 }
 0x263   : > { %1551 = vrot.lane.b32.xlu1 %v5375_v46, %s8205_s14 }
 0x265   : > { %1583 = vrot.lane.b32.xlu0 %v5371_v8, %s8206_s5 }
 0x267   : > { %1585 = vrot.lane.b32.xlu1 %v5375_v46, %s8206_s5 }
 0x269   : > { %1615 = vrot.lane.b32.xlu0 %v5371_v8, %s8207_s25 }
 0x26b   : > { %1617 = vrot.lane.b32.xlu1 %v5375_v46, %s8207_s25 }
 0x26d   : > { %1649 = vrot.lane.b32.xlu0 %v5371_v8, %s8208_s20 }
 0x26f   : > { %1651 = vrot.lane.b32.xlu1 %v5375_v46, %s8208_s20 }
 0x271   : > { %1705 = vrot.lane.b32.xlu0 %v5371_v8, %s8209_s18 }
 0x273   : > { %1707 = vrot.lane.b32.xlu1 %v5375_v46, %s8209_s18 }
 0x275   : > { %1737 = vrot.lane.b32.xlu0 %v5371_v8, %s8210_s9 }
 0x277   : > { %1739 = vrot.lane.b32.xlu1 %v5375_v46, %s8210_s9 }
 0x279   : > { %1771 = vrot.lane.b32.xlu0 %v5371_v8, %s8211_s16 }
 0x27b   : > { %1773 = vrot.lane.b32.xlu1 %v5375_v46, %s8211_s16 }
 0x27d   : > { %1803 = vrot.lane.b32.xlu0 %v5371_v8, %s8212_s2  ;;  %v5705_v8 = vmul.f32 %v1988_v32, %v5412_v13 }
 0x27f   : > { %1805 = vrot.lane.b32.xlu1 %v5375_v46, %s8212_s2  ;;  %v5695_v46 = vmul.f32 %v1976_v1, %v5412_v13 }
 0x281   : > { %1837 = vrot.lane.b32.xlu0 %v5408_v37, %s8205_s14  ;;  %8270 = vst [vmem:[#allocation78_spill] sm:$0xff] %v5695_v46 }
 0x283   : > { %1839 = vrot.lane.b32.xlu1 %v5412_v13, %s8205_s14  ;;  %s5494_s14 = sld [smem:[#allocation12 + $0x20]] }
 0x285   : > { %1871 = vrot.lane.b32.xlu0 %v5408_v37, %s8206_s5 }
 0x287   : > { %1873 = vrot.lane.b32.xlu1 %v5412_v13, %s8206_s5  ;;  %s5490_s5 = sld [smem:[#allocation12 + $0x13]] }
 0x289   : > { %1903 = vrot.lane.b32.xlu0 %v5408_v37, %s8207_s25  ;;  %8227 = sst [smem:[#allocation50_spill]] %s5494_s14  ;;  %s5510_s14 = sld [smem:[#allocation12 + $0x33]] }
 0x28a   : > { %s8317_s15 = sld [smem:[#allocation50_spill]] }
 0x28b   : > { %1905 = vrot.lane.b32.xlu1 %v5412_v13, %s8207_s25  ;;  %s5488_s25 = sld [smem:[#allocation12 + $0x12]] }
 0x28d   : > { %1937 = vrot.lane.b32.xlu0 %v5408_v37, %s8208_s20  ;;  %8226 = sst [smem:[#allocation49_spill]] %s5490_s5  ;;  %s5506_s5 = sld [smem:[#allocation12 + $0x31]] }
 0x28e   : > { %s8313_s0 = sld [smem:[#allocation49_spill]] }
 0x28f   : > { %1939 = vrot.lane.b32.xlu1 %v5412_v13, %s8208_s20  ;;  %s5486_s20 = sld [smem:[#allocation12 + $0x11]] }
 0x290   : > { %8234 = sst [smem:[#allocation59_spill]] %s5510_s14  ;;  %s5525_s14 = sld [smem:[#allocation12 + $0x53]] }
 0x291   : > { %1993 = vrot.lane.b32.xlu0 %v5408_v37, %s8209_s18  ;;  %8225 = sst [smem:[#allocation48_spill]] %s5488_s25  ;;  %s5504_s25 = sld [smem:[#allocation12 + $0x30]] }
 0x292   : > { %s8248_s30 = sld [smem:[#allocation48_spill]] }
 0x293   : > { %1995 = vrot.lane.b32.xlu1 %v5412_v13, %s8209_s18  ;;  %s5484_s18 = sld [smem:[#allocation12 + $0x10]]  ;;  %8232 = sst [smem:[#allocation57_spill]] %s5506_s5 }
 0x294   : > { %s5523_s5 = sld [smem:[#allocation12 + $0x52]]  ;;  %s8329_s7 = sld [smem:[#allocation57_spill]] }
 0x295   : > { %2025 = vrot.lane.b32.xlu0 %v5408_v37, %s8210_s9  ;;  %8224 = sst [smem:[#allocation47_spill]] %s5486_s20  ;;  %s5508_s20 = sld [smem:[#allocation12 + $0x32]] }
 0x296   : > { %8237 = sst [smem:[#allocation62_spill]] %s5525_s14  ;;  %s5544_s14 = sld [smem:[#allocation12 + $0x62]] }
 0x297   : > { %2027 = vrot.lane.b32.xlu1 %v5412_v13, %s8210_s9  ;;  %s5498_s9 = sld [smem:[#allocation12 + $0x22]]  ;;  %8231 = sst [smem:[#allocation56_spill]] %s5504_s25 }
 0x298   : > { %s5520_s25 = sld [smem:[#allocation12 + $0x51]]  ;;  %v1316_v63 = vstv %s8248_s30  ;;  %s5627_s30 = sld [smem:[#allocation12 + $0x14]] }
 0x299   : > { %8223 = sst [smem:[#allocation46_spill]] %s5484_s18  ;;  %2059 = vrot.lane.b32.xlu0 %v5408_v37, %s8211_s16  ;;  %v1304_v19 = vstv %s5484_s18  ;;  %s5629_s18 = sld [smem:[#allocation12 + $0x15]] }
 0x29a   : > { %8236 = sst [smem:[#allocation61_spill]] %s5523_s5 }
 0x29b   : > { %2061 = vrot.lane.b32.xlu1 %v5412_v13, %s8211_s16  ;;  %8233 = sst [smem:[#allocation58_spill]] %s5508_s20  ;;  %s5546_s5 = sld [smem:[#allocation12 + $0x63]] }
 0x29c   : > { %s5518_s16 = sld [smem:[#allocation12 + $0x50]]  ;;  %8243 = sst [smem:[#allocation55_spill]] %s5544_s14 }
 0x29d   : > { %8229 = sst [smem:[#allocation52_spill]] %s5498_s9  ;;  %2091 = vrot.lane.b32.xlu0 %v5408_v37, %s8212_s2  ;;  %s5603_s9 = sld [smem:[#allocation12 + $0x4]] }
 0x29e   : > { %8235 = sst [smem:[#allocation60_spill]] %s5520_s25  ;;  %s5559_s25 = sld [smem:[#allocation12 + $0x70]] }
 0x29f   : > { %2093 = vrot.lane.b32.xlu1 %v5412_v13, %s8212_s2  ;;  %s8245_s2 = sld [smem:[#allocation47_spill]]  ;;  %v5723_v13 = vmul.f32 %v1976_v1, %v5408_v37  ;;  %s5729_s20 = sld [smem:[#allocation12 + $0x37]]  ;;  %v5757_v37 = vmul.f32 %v2270_v5, %v5552_v51  ;;  %v5793_v1 = vmul.f32 %v2258_v54, %v5532_v28  ;;  %v5823_v5 = vmul.f32 %v2276_v16, %v5532_v28 }
 0x2a0   : > { %s5605_s14 = sld [smem:[#allocation12 + $0x5]]  ;;  %s8331_s22 = sld [smem:[#allocation58_spill]] }
 0x2a1   : > { %8244 = sst [smem:[#allocation64_spill]] %s5546_s5  ;;  %2125 = vrot.lane.b32.xlu0 %v5532_v28, %s8247_s8  ;;  %s5561_s5 = sld [smem:[#allocation12 + $0x71]]  ;;  %8277 = vst [vmem:[#allocation80_spill] sm:$0xff] %v5723_v13  ;;  %8284 = vst [vmem:[#allocation83_spill] sm:$0xff] %v5757_v37 }
 0x2a2   : > { %8297 = vst [vmem:[#allocation87_spill] sm:$0xff] %v5793_v1  ;;  %8303 = vst [vmem:[#allocation89_spill] sm:$0xff] %v5823_v5 }
 0x2a3   : > { %2127 = vrot.lane.b32.xlu1 %v5552_v51, %s8247_s8  ;;  %s8256_s8 = smov 16   ;;  %8258 = sst [smem:[#allocation69_spill]] %s5603_s9 }
 0x2a4   : > { %8250 = sst [smem:[#allocation65_spill]] %s5559_s25  ;;  %s5772_s25 = sld [smem:[#allocation12 + $0x64]] }
 0x2a5   : > { %v1310_v6 = vstv %s8245_s2  ;;  %2159 = vrot.lane.b32.xlu0 %v5532_v28, %s8256_s8  ;;  %s5645_s2 = sld [smem:[#allocation12 + $0x17]]  ;;  %8278 = sst [smem:[#allocation36_spill]] %s5729_s20 }
 0x2a6   : > { %s5799_s9 = sld [smem:[#allocation12 + $0x66]]  ;;  %s8314_s20 = smov 111  }
 0x2a7   : > { %8252 = sst [smem:[#allocation66_spill]] %s5561_s5  ;;  %2161 = vrot.lane.b32.xlu1 %v5552_v51, %s8256_s8  ;;  %s5643_s8 = sld [smem:[#allocation12 + $0x16]] }
 0x2a8   : > { %s5774_s5 = sld [smem:[#allocation12 + $0x65]] }
 0x2a9   : > { %2191 = vrot.lane.b32.xlu0 %v5532_v28, %s8262_s27 }
 0x2ab   : > { %8261 = sst [smem:[#allocation73_spill]] %s5645_s2  ;;  %2193 = vrot.lane.b32.xlu1 %v5552_v51, %s8262_s27  ;;  %s5727_s27 = sld [smem:[#allocation12 + $0x36]] }
 0x2ad   : > { %8260 = sst [smem:[#allocation72_spill]] %s5643_s8  ;;  %2225 = vrot.lane.b32.xlu0 %v5532_v28, %s8279_s28  ;;  %s8288_s8 = sld [smem:[#allocation73_spill]] }
 0x2ae   : > { %s8287_s2 = sld [smem:[#allocation72_spill]]  ;;  %8290 = sst [smem:[#allocation73_spill]] %s5774_s5 }
 0x2af   : > { %2227 = vrot.lane.b32.xlu1 %v5552_v51, %s8279_s28  ;;  %8289 = sst [smem:[#allocation72_spill]] %s5772_s25  ;;  %s8294_s28 = sld [smem:[#allocation76_spill]] }
 0x2b0   : > { %s8309_s5 = smov 112   ;;  %s8319_s25 = sld [smem:[#allocation52_spill]] }
 0x2b1   : > { %2281 = vrot.lane.b32.xlu0 %v5532_v28, %s8295_s26 }
 0x2b3   : > { %2283 = vrot.lane.b32.xlu1 %v5552_v51, %s8295_s26  ;;  %v1262_v2 = vpop.permute.xlu0 %1261  ;;  %s8332_s26 = sld [smem:[#allocation59_spill]] }
 0x2b5   : > { %v1264_v34 = vpop.permute.xlu1 %1263  ;;  %2313 = vrot.lane.b32.xlu0 %v5532_v28, %s8299_s13 }
 0x2b6   : > { %v1265_v25 = vsel %vm474_vm1, %v1262_v2, %v1264_v34  ;;  %v1266_v18 = vsel %vm474_vm1, %v1264_v34, %v1262_v2 }
 0x2b7   : > { %v1267_v32 = vsel %vm458_vm0, 0.0, %v1266_v18  ;;  %v1270_v9 = vsel %vm4394_vm3, 0.0, %v1265_v25  ;;  %2315 = vrot.lane.b32.xlu1 %v5552_v51, %s8299_s13  ;;  %v1296_v16 = vpop.permute.xlu0 %1295  ;;  %s8328_s13 = sld [smem:[#allocation56_spill]] }
 0x2b8   : > { %v1269_v18 = vsel %vm4390_vm2, 0.0, %v1267_v32  ;;  %v1274_v2 = vmul.f32 %v1272_v59, %v1270_v9  ;;  %v1280_v25 = vmul.f32 %v1278_v50, %v1270_v9  ;;  %v1286_v12 = vmul.f32 %v1284_v22, %v1270_v9 }
 0x2b9   : > { %v1273_v31 = vmul.f32 %v1272_v59, %v1269_v18  ;;  %v1279_v34 = vmul.f32 %v1278_v50, %v1269_v18  ;;  %v1285_v49 = vmul.f32 %v1284_v22, %v1269_v18  ;;  %v1291_v54 = vmul.f32 %v1290_v56, %v1269_v18  ;;  %v1298_v42 = vpop.permute.xlu1 %1297  ;;  %2347 = vrot.lane.b32.xlu0 %v5532_v28, %s8309_s5 }
 0x2ba   : > { %v1276_v32 = vadd.f32 %v1274_v2, %v1254_v39  ;;  %v1282_v26 = vadd.f32 %v1280_v25, %v1256_v58  ;;  %v1292_v59 = vmul.f32 %v1290_v56, %v1270_v9  ;;  %v1288_v48 = vadd.f32 %v1286_v12, %v1258_v60 }
 0x2bb   : > { %v1275_v50 = vadd.f32 %v1273_v31, %v1254_v39  ;;  %v1281_v22 = vadd.f32 %v1279_v34, %v1256_v58  ;;  %v1287_v18 = vadd.f32 %v1285_v49, %v1258_v60  ;;  %2349 = vrot.lane.b32.xlu1 %v5552_v51, %s8309_s5  ;;  %v1328_v2 = vpop.permute.xlu0 %1327  ;;  %v1293_v25 = vadd.f32 %v1291_v54, %v1260_v44  ;;  %s6362_s5 = sld [smem:[#allocation12 + $0x6b]] }
 0x2bc   : > { %v1294_v56 = vadd.f32 %v1292_v59, %v1260_v44  ;;  %v1299_v39 = vsel %vm458_vm0, %v1296_v16, %v1298_v42  ;;  %v1300_v58 = vsel %vm458_vm0, %v1298_v42, %v1296_v16  ;;  %v8315_v16 = vstv %s8313_s0  ;;  %s8341_s0 = sld [smem:[#allocation60_spill]] }
 0x2bd   : > { %v1301_v60 = vsel %vm458_vm0, 0.0, %v1300_v58  ;;  %v1306_v12 = vmul.f32 %v1304_v19, %v1299_v39  ;;  %v1312_v9 = vmul.f32 %v1310_v6, %v1299_v39  ;;  %v1318_v49 = vmul.f32 %v1316_v63, %v1299_v39  ;;  %v1330_v31 = vpop.permute.xlu1 %1329  ;;  %2379 = vrot.lane.b32.xlu0 %v5532_v28, %s8314_s20 }
 0x2be   : > { %v1305_v44 = vmul.f32 %v1304_v19, %v1301_v60  ;;  %v1311_v54 = vmul.f32 %v1310_v6, %v1301_v60  ;;  %v1317_v42 = vmul.f32 %v1316_v63, %v1301_v60  ;;  %v1323_v34 = vmul.f32 %v8315_v16, %v1301_v60 }
 0x2bf   : > { %v1308_v59 = vadd.f32 %v1306_v12, %v1276_v32  ;;  %v1320_v58 = vadd.f32 %v1318_v49, %v1288_v48  ;;  %v8316_v57 = vmov %v8315_v16  ;;  %2381 = vrot.lane.b32.xlu1 %v5552_v51, %s8314_s20  ;;  %v1362_v1 = vpop.permute.xlu0 %1361  ;;  %v1314_v19 = vadd.f32 %v1312_v9, %v1282_v26  ;;  %s6360_s20 = sld [smem:[#allocation12 + $0x6a]] }
 0x2c0   : > { %v1324_v0 = vmul.f32 %v8316_v57, %v1299_v39  ;;  %v1307_v28 = vadd.f32 %v1305_v44, %v1275_v50  ;;  %v1319_v5 = vadd.f32 %v1317_v42, %v1287_v18  ;;  %v1325_v6 = vadd.f32 %v1323_v34, %v1293_v25 }
 0x2c1   : > { %v1313_v63 = vadd.f32 %v1311_v54, %v1281_v22  ;;  %v1331_v48 = vsel %vm517_vm4, %v1328_v2, %v1330_v31  ;;  %v1332_v57 = vsel %vm517_vm4, %v1330_v31, %v1328_v2  ;;  %v1364_v39 = vpop.permute.xlu1 %1363  ;;  %v8321_v25 = vstv %s8317_s15  ;;  %s8342_s15 = sld [smem:[#allocation61_spill]] }
 0x2c2   : > { %v1326_v32 = vadd.f32 %v1324_v0, %v1294_v56  ;;  %v1333_v50 = vsel %vm458_vm0, 0.0, %v1332_v57  ;;  %v1336_v26 = vsel %vm4431_vm5, 0.0, %v1331_v48  ;;  %v1365_v22 = vsel %vm540_vm7, %v1362_v1, %v1364_v39 }
 0x2c3   : > { %v1366_v0 = vsel %vm540_vm7, %v1364_v39, %v1362_v1  ;;  %v1335_v18 = vsel %vm4435_vm6, 0.0, %v1333_v50  ;;  %v1340_v56 = vmul.f32 %v8321_v25, %v1336_v26  ;;  %v8322_v2 = vstv %s8318_s21  ;;  %v1418_v49 = vpop.permute.xlu0 %1417  ;;  %s8343_s21 = sld [smem:[#allocation62_spill]] }
 0x2c4   : > { %v1346_v60 = vmul.f32 %v8322_v2, %v1336_v26  ;;  %v8323_v12 = vstv %s8319_s25  ;;  %v8324_v31 = vmov %v8321_v25  ;;  %v8325_v54 = vmov %v8322_v2  ;;  %s8351_s25 = sld [smem:[#allocation63_spill]] }
 0x2c5   : > { %v1352_v9 = vmul.f32 %v8323_v12, %v1336_v26  ;;  %v1339_v44 = vmul.f32 %v8324_v31, %v1335_v18  ;;  %v1345_v42 = vmul.f32 %v8325_v54, %v1335_v18  ;;  %v8326_v16 = vmov %v8323_v12  ;;  %v1420_v12 = vpop.permute.xlu1 %1419 }
 0x2c6   : > { %v1351_v34 = vmul.f32 %v8326_v16, %v1335_v18  ;;  %v8327_v48 = vstv %s8320_s24  ;;  %v1342_v1 = vadd.f32 %v1340_v56, %v1308_v59  ;;  %v1348_v39 = vadd.f32 %v1346_v60, %v1314_v19  ;;  %s8352_s24 = sld [smem:[#allocation54_spill]] }
 0x2c7   : > { %v1357_v57 = vmul.f32 %v8327_v48, %v1335_v18  ;;  %v1354_v50 = vadd.f32 %v1352_v9, %v1320_v58  ;;  %v8330_v25 = vmov %v8327_v48  ;;  %v1341_v31 = vadd.f32 %v1339_v44, %v1307_v28  ;;  %v1450_v19 = vpop.permute.xlu0 %1449 }
 0x2c8   : > { %v1358_v2 = vmul.f32 %v8330_v25, %v1336_v26  ;;  %v1347_v54 = vadd.f32 %v1345_v42, %v1313_v63  ;;  %v1353_v23 = vadd.f32 %v1351_v34, %v1319_v5  ;;  %v1367_v18 = vsel %vm4390_vm2, 0.0, %v1366_v0 }
 0x2c9   : > { %v1359_v16 = vadd.f32 %v1357_v57, %v1325_v6  ;;  %v1368_v59 = vsel %vm4394_vm3, 0.0, %v1365_v22  ;;  %v1421_v58 = vsel %vm573_vm8, %v1418_v49, %v1420_v12  ;;  %v8333_v26 = vstv %s8328_s13  ;;  %v1452_v25 = vpop.permute.xlu1 %1451  ;;  %s8353_s13 = sld [smem:[#allocation55_spill]] }
 0x2ca   : > { %v1360_v51 = vadd.f32 %v1358_v2, %v1326_v32  ;;  %v1371_v56 = vmul.f32 %v8333_v26, %v1367_v18  ;;  %v8334_v60 = vmov %v8333_v26  ;;  %v8335_v28 = vstv %s8329_s7  ;;  %s8361_s7 = sld [smem:[#allocation65_spill]] }
 0x2cb   : > { %v1372_v9 = vmul.f32 %v8334_v60, %v1368_v59  ;;  %v1377_v44 = vmul.f32 %v8335_v28, %v1367_v18  ;;  %v8336_v63 = vmov %v8335_v28  ;;  %v8337_v6 = vstv %s8331_s22  ;;  %v1484_v28 = vpop.permute.xlu0 %1483  ;;  %s8363_s22 = sld [smem:[#allocation66_spill]] }
 0x2cc   : > { %v1378_v5 = vmul.f32 %v8336_v63, %v1368_v59  ;;  %v1383_v32 = vmul.f32 %v8337_v6, %v1367_v18  ;;  %v8338_v42 = vmov %v8337_v6  ;;  %v8339_v0 = vstv %s8332_s26  ;;  %s8365_s26 = sld [smem:[#allocation67_spill]] }
 0x2cd   : > { %v1384_v34 = vmul.f32 %v8338_v42, %v1368_v59  ;;  %v1389_v48 = vmul.f32 %v8339_v0, %v1367_v18  ;;  %v8340_v57 = vmov %v8339_v0  ;;  %v1373_v2 = vadd.f32 %v1371_v56, %v1341_v31 }
 0x2ce   : > { %v1390_v22 = vmul.f32 %v8340_v57, %v1368_v59  ;;  %v1374_v37 = vadd.f32 %v1372_v9, %v1342_v1  ;;  %v1379_v33 = vadd.f32 %v1377_v44, %v1347_v54  ;;  %v1380_v13 = vadd.f32 %v1378_v5, %v1348_v39 }
 0x2cf   : > { %v1385_v26 = vadd.f32 %v1383_v32, %v1353_v23  ;;  %v1386_v46 = vadd.f32 %v1384_v34, %v1354_v50  ;;  %v1391_v60 = vadd.f32 %v1389_v48, %v1359_v16  ;;  %v1397_v63 = vadd.f32 %v5577_v24, %v1373_v2  ;;  %v1486_v24 = vpop.permute.xlu1 %1485 }
 0x2d0   : > { %v1392_v47 = vadd.f32 %v1390_v22, %v1360_v51  ;;  %v1398_v6 = vadd.f32 %v5595_v61, %v1374_v37  ;;  %v1403_v18 = vadd.f32 %v5598_v30, %v1379_v33  ;;  %v1404_v31 = vadd.f32 %v5601_v62, %v1380_v13  ;;  %v1516_v37 = vpop.permute.xlu0 %1515 }
 0x2d1   : > { %v1409_v1 = vadd.f32 %v5608_v21, %v1385_v26  ;;  %v1410_v23 = vadd.f32 %v5611_v7, %v1386_v46  ;;  %v1415_v51 = vadd.f32 %v5614_v41, %v1391_v60  ;;  %v1422_v61 = vsel %vm573_vm8, %v1420_v12, %v1418_v49 }
 0x2d2   : > { %v1416_v39 = vadd.f32 %v5617_v14, %v1392_v47  ;;  %v1423_v30 = vsel %vm4435_vm6, 0.0, %v1421_v58  ;;  %v1453_v62 = vsel %vm594_vm9, %v1450_v19, %v1452_v25  ;;  %v1454_v21 = vsel %vm594_vm9, %v1452_v25, %v1450_v19 }
 0x2d3   : > { %v1424_v7 = vsel %vm4431_vm5, 0.0, %v1422_v61  ;;  %v8344_v41 = vstv %s5518_s16  ;;  %v8345_v14 = vstv %s8341_s0  ;;  %v8346_v47 = vstv %s8342_s15  ;;  %v1518_v42 = vpop.permute.xlu1 %1517  ;;  %s8355_s16 = sld [smem:[#allocation64_spill]]  ;;  %s8372_s0 = sld [smem:[#allocation68_spill]] }
 0x2d4   : > { %v1427_v33 = vmul.f32 %v8344_v41, %v1423_v30  ;;  %v1433_v46 = vmul.f32 %v8345_v14, %v1423_v30  ;;  %v1439_v13 = vmul.f32 %v8346_v47, %v1423_v30  ;;  %v8347_v49 = vmov %v8344_v41  ;;  %v5999_v60 = vpop.permute.xlu0 %1549  ;;  %s6227_s15 = sld [smem:[#allocation12 + $0x18]] }
 0x2d5   : > { %v1428_v50 = vmul.f32 %v8347_v49, %v1424_v7  ;;  %v8348_v12 = vmov %v8345_v14  ;;  %v8349_v16 = vmov %v8346_v47  ;;  %v8350_v58 = vstv %s8343_s21  ;;  %s6239_s21 = sld [smem:[#allocation12 + $0x19]] }
 0x2d6   : > { %v1434_v54 = vmul.f32 %v8348_v12, %v1424_v7  ;;  %v1440_v59 = vmul.f32 %v8349_v16, %v1424_v7  ;;  %v1445_v56 = vmul.f32 %v8350_v58, %v1423_v30  ;;  %v1429_v19 = vadd.f32 %v1427_v33, %v1397_v63 }
 0x2d7   : > { %v1435_v9 = vadd.f32 %v1433_v46, %v1403_v18  ;;  %v1441_v44 = vadd.f32 %v1439_v13, %v1409_v1  ;;  %v8354_v5 = vmov %v8350_v58  ;;  %v1430_v34 = vadd.f32 %v1428_v50, %v1398_v6  ;;  %v1552_v14 = vpop.permute.xlu1 %1551 }
 0x2d8   : > { %v1446_v32 = vmul.f32 %v8354_v5, %v1424_v7  ;;  %v1436_v0 = vadd.f32 %v1434_v54, %v1404_v31  ;;  %v1442_v48 = vadd.f32 %v1440_v59, %v1410_v23  ;;  %v1447_v57 = vadd.f32 %v1445_v56, %v1415_v51  ;;  %v1584_v58 = vpop.permute.xlu0 %1583 }
 0x2d9   : > { %v1456_v25 = vsel %vm461_vm10, 0.0, %v1454_v21  ;;  %v1457_v2 = vsel %vm4390_vm2, 0.0, %v1453_v62  ;;  %v1487_v26 = vsel %vm617_vm11, %v1484_v28, %v1486_v24  ;;  %v8356_v6 = vstv %s8351_s25  ;;  %s6250_s25 = sld [smem:[#allocation12 + $0x1a]] }
 0x2da   : > { %v1448_v22 = vadd.f32 %v1446_v32, %v1416_v39  ;;  %v1458_v63 = vsel %vm4394_vm3, 0.0, %v1456_v25  ;;  %v1461_v18 = vmul.f32 %v8356_v6, %v1457_v2  ;;  %v8357_v31 = vstv %s8352_s24  ;;  %s6260_s24 = sld [smem:[#allocation12 + $0x1b]] }
 0x2db   : > { %v1467_v1 = vmul.f32 %v8357_v31, %v1457_v2  ;;  %v8358_v23 = vstv %s8353_s13  ;;  %v8359_v39 = vmov %v8356_v6  ;;  %v8360_v30 = vmov %v8357_v31  ;;  %8421 = sst [smem:[#allocation74_spill]] %s6239_s21  ;;  %s6262_s13 = sld [smem:[#allocation12 + $0x28]] }
 0x2dc   : > { %v1473_v51 = vmul.f32 %v8358_v23, %v1457_v2  ;;  %v1462_v61 = vmul.f32 %v8359_v39, %v1458_v63  ;;  %v1468_v21 = vmul.f32 %v8360_v30, %v1458_v63  ;;  %v8362_v62 = vmov %v8358_v23  ;;  %s6383_s21 = sld [smem:[#allocation12 + $0x7b]] }
 0x2dd   : > { %v1474_v7 = vmul.f32 %v8362_v62, %v1458_v63  ;;  %v8364_v41 = vstv %s8355_s16  ;;  %v1463_v46 = vadd.f32 %v1461_v18, %v1429_v19  ;;  %v1469_v47 = vadd.f32 %v1467_v1, %v1435_v9  ;;  %s6273_s16 = sld [smem:[#allocation12 + $0x29]] }
 0x2de   : > { %v1479_v33 = vmul.f32 %v8364_v41, %v1457_v2  ;;  %v1475_v13 = vadd.f32 %v1473_v51, %v1441_v44  ;;  %v8366_v49 = vmov %v8364_v41  ;;  %v1464_v12 = vadd.f32 %v1462_v61, %v1430_v34 }
 0x2df   : > { %v1480_v50 = vmul.f32 %v8366_v49, %v1458_v63  ;;  %v1470_v54 = vadd.f32 %v1468_v21, %v1436_v0  ;;  %v1476_v16 = vadd.f32 %v1474_v7, %v1442_v48  ;;  %v1488_v5 = vsel %vm617_vm11, %v1486_v24, %v1484_v28  ;;  %v6049_v49 = vpop.permute.xlu0 %1615 }
 0x2e0   : > { %v1481_v59 = vadd.f32 %v1479_v33, %v1447_v57  ;;  %v8367_v32 = vstv %s8361_s7  ;;  %v8368_v19 = vstv %s8363_s22  ;;  %v1490_v44 = vsel %vm461_vm10, 0.0, %v1488_v5  ;;  %v1586_v57 = vpop.permute.xlu1 %1585  ;;  %s6275_s7 = sld [smem:[#allocation12 + $0x2a]]  ;;  %s6279_s22 = sld [smem:[#allocation12 + $0x2b]] }
 0x2e1   : > { %v1482_v56 = vadd.f32 %v1480_v50, %v1448_v22  ;;  %v1493_v25 = vmul.f32 %v8367_v32, %v1487_v26  ;;  %v1499_v9 = vmul.f32 %v8368_v19, %v1487_v26  ;;  %v8369_v2 = vstv %s8365_s26  ;;  %8425 = sst [smem:[#allocation76_spill]] %s6262_s13  ;;  %s6402_s13 = sld [smem:[#allocation12 + $0x89]] }
 0x2e2   : > { %v1505_v34 = vmul.f32 %v8369_v2, %v1487_v26  ;;  %v8370_v63 = vstv %s5569_s23  ;;  %v1519_v48 = vsel %vm638_vm12, %v1516_v37, %v1518_v42  ;;  %v8371_v6 = vmov %v8367_v32  ;;  %s8382_s23 = sld [smem:[#allocation69_spill]]  ;;  %s6281_s26 = sld [smem:[#allocation12 + $0x38]] }
 0x2e3   : > { %v1511_v0 = vmul.f32 %v8370_v63, %v1487_v26  ;;  %v1494_v22 = vmul.f32 %v8371_v6, %v1490_v44  ;;  %v1495_v18 = vadd.f32 %v1493_v25, %v1463_v46  ;;  %v8373_v28 = vmov %v8368_v19  ;;  %8427 = sst [smem:[#allocation77_spill]] %s6273_s16  ;;  %s6375_s16 = sld [smem:[#allocation12 + $0x78]] }
 0x2e4   : > { %v1500_v24 = vmul.f32 %v8373_v28, %v1490_v44  ;;  %v1501_v31 = vadd.f32 %v1499_v9, %v1469_v47  ;;  %v8374_v1 = vmov %v8369_v2  ;;  %v1507_v51 = vadd.f32 %v1505_v34, %v1475_v13  ;;  %v6051_v50 = vpop.permute.xlu1 %1617 }
 0x2e5   : > { %v1506_v23 = vmul.f32 %v8374_v1, %v1490_v44  ;;  %v8375_v39 = vmov %v8370_v63  ;;  %v1513_v26 = vadd.f32 %v1511_v0, %v1481_v59  ;;  %v1496_v30 = vadd.f32 %v1494_v22, %v1464_v12 }
 0x2e6   : > { %v1512_v61 = vmul.f32 %v8375_v39, %v1490_v44  ;;  %v1502_v21 = vadd.f32 %v1500_v24, %v1470_v54  ;;  %v1520_v62 = vsel %vm638_vm12, %v1518_v42, %v1516_v37  ;;  %v1523_v7 = vsel %vm4435_vm6, 0.0, %v1519_v48 }
 0x2e7   : > { %v1508_v41 = vadd.f32 %v1506_v23, %v1476_v16  ;;  %v1522_v46 = vsel %vm461_vm10, 0.0, %v1520_v62  ;;  %v8376_v47 = vstv %s8372_s0  ;;  %v8377_v54 = vstv %s5581_s1  ;;  %s6177_s1 = sld [smem:[#allocation12 + $0x77]]  ;;  %s6292_s0 = sld [smem:[#allocation12 + $0x39]] }
 0x2e8   : > { %v1514_v33 = vadd.f32 %v1512_v61, %v1482_v56  ;;  %v1527_v13 = vmul.f32 %v8376_v47, %v1523_v7  ;;  %v1524_v12 = vsel %vm4431_vm5, 0.0, %v1522_v46  ;;  %v1533_v37 = vmul.f32 %v8377_v54, %v1523_v7  ;;  %8428 = sst [smem:[#allocation42_spill]] %s6281_s26  ;;  %s6377_s26 = sld [smem:[#allocation12 + $0x79]] }
 0x2e9   : > { %v8378_v42 = vstv %s5587_s17  ;;  %v8379_v5 = vstv %s5589_s12  ;;  %v8380_v32 = vmov %v8376_v47  ;;  %v8381_v19 = vmov %v8377_v54  ;;  %s6175_s17 = sld [smem:[#allocation12 + $0x76]]  ;;  %s8419_s12 = sld [smem:[#allocation84_spill]] }
 0x2ea   : > { %v1539_v59 = vmul.f32 %v8378_v42, %v1523_v7  ;;  %v1545_v16 = vmul.f32 %v8379_v5, %v1523_v7  ;;  %v1528_v56 = vmul.f32 %v8380_v32, %v1524_v12  ;;  %v1529_v25 = vadd.f32 %v1527_v13, %v1495_v18 }
 0x2eb   : > { %v1534_v9 = vmul.f32 %v8381_v19, %v1524_v12  ;;  %v8383_v44 = vmov %v8378_v42  ;;  %v1535_v34 = vadd.f32 %v1533_v37, %v1501_v31  ;;  %v8384_v0 = vmov %v8379_v5 }
 0x2ec   : > { %v1540_v2 = vmul.f32 %v8383_v44, %v1524_v12  ;;  %v1541_v63 = vadd.f32 %v1539_v59, %v1507_v51  ;;  %v1546_v48 = vmul.f32 %v8384_v0, %v1524_v12  ;;  %v1547_v6 = vadd.f32 %v1545_v16, %v1513_v26 }
 0x2ed   : > { %v1530_v22 = vadd.f32 %v1528_v56, %v1496_v30  ;;  %v1536_v28 = vadd.f32 %v1534_v9, %v1502_v21  ;;  %v1553_v18 = vsel %vm474_vm1, %v5999_v60, %v1552_v14  ;;  %v1554_v31 = vsel %vm474_vm1, %v1552_v14, %v5999_v60  ;;  %8429 = sst [smem:[#allocation43_spill]] %s6292_s0  ;;  %s6393_s0 = sld [smem:[#allocation12 + $0x88]] }
 0x2ee   : > { %v1542_v24 = vadd.f32 %v1540_v2, %v1508_v41  ;;  %v1548_v1 = vadd.f32 %v1546_v48, %v1514_v33  ;;  %v1558_v23 = vsel %vm4394_vm3, 0.0, %v1553_v18  ;;  %v1587_v51 = vsel %vm458_vm0, %v1584_v58, %v1586_v57  ;;  %v1650_v41 = vpop.permute.xlu0 %1649  ;;  %v1652_v33 = vpop.permute.xlu1 %1651 }
 0x2ef   : > { %v1555_v39 = vsel %vm458_vm0, 0.0, %v1554_v31  ;;  %v8385_v61 = vstv %s8382_s23  ;;  %v8386_v30 = vstv %s5605_s14  ;;  %v8387_v62 = vstv %s5619_s3  ;;  %s8400_s14 = sld [smem:[#allocation75_spill]]  ;;  %s6187_s3 = sld [smem:[#allocation12 + $0x85]] }
 0x2f0   : > { %v1562_v26 = vmul.f32 %v8385_v61, %v1558_v23  ;;  %v1568_v21 = vmul.f32 %v8386_v30, %v1558_v23  ;;  %v1574_v7 = vmul.f32 %v8387_v62, %v1558_v23  ;;  %v1557_v60 = vsel %vm4390_vm2, 0.0, %v1555_v39  ;;  %s6302_s23 = sld [smem:[#allocation12 + $0x3a]] }
 0x2f1   : > { %v8388_v14 = vstv %s5621_s6  ;;  %v1588_v47 = vsel %vm458_vm0, %v1586_v57, %v1584_v58  ;;  %v8389_v13 = vstv %s5627_s30  ;;  %v8390_v54 = vmov %v8385_v61  ;;  %s6169_s6 = sld [smem:[#allocation12 + $0x75]]  ;;  %s6193_s30 = sld [smem:[#allocation12 + $0x86]] }
 0x2f2   : > { %v1580_v46 = vmul.f32 %v8388_v14, %v1558_v23  ;;  %v1594_v12 = vmul.f32 %v8389_v13, %v1587_v51  ;;  %v1561_v37 = vmul.f32 %v8390_v54, %v1557_v60  ;;  %v1564_v42 = vadd.f32 %v1562_v26, %v1530_v22 }
 0x2f3   : > { %v8391_v59 = vmov %v8386_v30  ;;  %v1570_v16 = vadd.f32 %v1568_v21, %v1536_v28  ;;  %v8392_v32 = vmov %v8387_v62  ;;  %v1576_v19 = vadd.f32 %v1574_v7, %v1542_v24  ;;  %v6119_v7 = vpop.permute.xlu1 %1707 }
 0x2f4   : > { %v1567_v5 = vmul.f32 %v8391_v59, %v1557_v60  ;;  %v1573_v56 = vmul.f32 %v8392_v32, %v1557_v60  ;;  %v8393_v9 = vmov %v8388_v14  ;;  %v1582_v58 = vadd.f32 %v1580_v46, %v1548_v1 }
 0x2f5   : > { %v1579_v44 = vmul.f32 %v8393_v9, %v1557_v60  ;;  %v1563_v57 = vadd.f32 %v1561_v37, %v1529_v25  ;;  %v1589_v0 = vsel %vm458_vm0, 0.0, %v1588_v47  ;;  %v1596_v48 = vadd.f32 %v1594_v12, %v1564_v42 }
 0x2f6   : > { %v1569_v2 = vadd.f32 %v1567_v5, %v1535_v34  ;;  %v1575_v22 = vadd.f32 %v1573_v56, %v1541_v63  ;;  %v8394_v31 = vmov %v8389_v13  ;;  %v8395_v39 = vstv %s5629_s18  ;;  %v6117_v34 = vpop.permute.xlu0 %1705  ;;  %s6167_s18 = sld [smem:[#allocation12 + $0x74]] }
 0x2f7   : > { %v1581_v18 = vadd.f32 %v1579_v44, %v1547_v6  ;;  %v1593_v23 = vmul.f32 %v8394_v31, %v1589_v0  ;;  %v1599_v28 = vmul.f32 %v8395_v39, %v1589_v0  ;;  %v8396_v61 = vmov %v8395_v39 }
 0x2f8   : > { %v1600_v26 = vmul.f32 %v8396_v61, %v1587_v51  ;;  %v8397_v30 = vstv %s8287_s2  ;;  %v8399_v1 = vstv %s8288_s8  ;;  %v1619_v46 = vsel %vm517_vm4, %v6049_v49, %v6051_v50  ;;  %v6157_v61 = vpop.permute.xlu1 %1739  ;;  %s8411_s2 = sld [smem:[#allocation36_spill]]  ;;  %s6195_s8 = sld [smem:[#allocation12 + $0x87]] }
 0x2f9   : > { %v1605_v24 = vmul.f32 %v8397_v30, %v1589_v0  ;;  %v8398_v21 = vmov %v8397_v30  ;;  %v1611_v25 = vmul.f32 %v8399_v1, %v1589_v0  ;;  %v1595_v63 = vadd.f32 %v1593_v23, %v1563_v57 }
 0x2fa   : > { %v1606_v62 = vmul.f32 %v8398_v21, %v1587_v51  ;;  %v1601_v6 = vadd.f32 %v1599_v28, %v1569_v2  ;;  %v8401_v60 = vmov %v8399_v1  ;;  %v1602_v47 = vadd.f32 %v1600_v26, %v1570_v16  ;;  %v6155_v28 = vpop.permute.xlu0 %1737 }
 0x2fb   : > { %v1612_v14 = vmul.f32 %v8401_v60, %v1587_v51  ;;  %v1607_v13 = vadd.f32 %v1605_v24, %v1575_v22  ;;  %v1613_v54 = vadd.f32 %v1611_v25, %v1581_v18  ;;  %v1620_v42 = vsel %vm517_vm4, %v6051_v50, %v6049_v49 }
 0x2fc   : > { %v1608_v12 = vadd.f32 %v1606_v62, %v1576_v19  ;;  %v1624_v51 = vsel %vm4431_vm5, 0.0, %v1619_v46  ;;  %v1653_v59 = vsel %vm540_vm7, %v1650_v41, %v1652_v33  ;;  %v1621_v5 = vsel %vm458_vm0, 0.0, %v1620_v42 }
 0x2fd   : > { %v1614_v37 = vadd.f32 %v1612_v14, %v1582_v58  ;;  %v8402_v16 = vstv %s8292_s11  ;;  %v8403_v56 = vstv %s8400_s14  ;;  %v8404_v9 = vstv %s8294_s28  ;;  %s6214_s11 = sld [smem:[#allocation12 + $0xa]]  ;;  %s6225_s28 = sld [smem:[#allocation12 + $0xb]] }
 0x2fe   : > { %v1628_v32 = vmul.f32 %v8402_v16, %v1624_v51  ;;  %v1634_v19 = vmul.f32 %v8403_v56, %v1624_v51  ;;  %v1640_v44 = vmul.f32 %v8404_v9, %v1624_v51  ;;  %v1623_v49 = vsel %vm4435_vm6, 0.0, %v1621_v5  ;;  %s6304_s14 = sld [smem:[#allocation12 + $0x3b]] }
 0x2ff   : > { %v8405_v50 = vstv %s8296_s10  ;;  %v1654_v57 = vsel %vm540_vm7, %v1652_v33, %v1650_v41  ;;  %v1656_v2 = vsel %vm4394_vm3, 0.0, %v1653_v59  ;;  %v8406_v0 = vmov %v8402_v16  ;;  %s6185_s10 = sld [smem:[#allocation12 + $0x84]] }
 0x300   : > { %v1646_v58 = vmul.f32 %v8405_v50, %v1624_v51  ;;  %v1627_v22 = vmul.f32 %v8406_v0, %v1623_v49  ;;  %v1630_v18 = vadd.f32 %v1628_v32, %v1596_v48  ;;  %v8407_v31 = vmov %v8403_v56  ;;  %v6200_v0 = vpop.permute.xlu0 %1771 }
 0x301   : > { %v1633_v23 = vmul.f32 %v8407_v31, %v1623_v49  ;;  %v1636_v39 = vadd.f32 %v1634_v19, %v1602_v47  ;;  %v8408_v26 = vmov %v8404_v9  ;;  %v1642_v24 = vadd.f32 %v1640_v44, %v1608_v12 }
 0x302   : > { %v1639_v30 = vmul.f32 %v8408_v26, %v1623_v49  ;;  %v8409_v21 = vmov %v8405_v50  ;;  %v1648_v33 = vadd.f32 %v1646_v58, %v1614_v37  ;;  %v1629_v62 = vadd.f32 %v1627_v22, %v1595_v63  ;;  %v6202_v22 = vpop.permute.xlu1 %1773 }
 0x303   : > { %v1645_v41 = vmul.f32 %v8409_v21, %v1623_v49  ;;  %v1635_v48 = vadd.f32 %v1633_v23, %v1601_v6  ;;  %v1655_v1 = vsel %vm4390_vm2, 0.0, %v1654_v57  ;;  %v8410_v25 = vstv %s5711_s19  ;;  %s8420_s19 = sld [smem:[#allocation85_spill]] }
 0x304   : > { %v1660_v60 = vmul.f32 %v8410_v25, %v1656_v2  ;;  %v1641_v14 = vadd.f32 %v1639_v30, %v1607_v13  ;;  %v8412_v47 = vmov %v8410_v25  ;;  %v8413_v42 = vstv %s5713_s4  ;;  %s6204_s4 = sld [smem:[#allocation12 + $0x8]] }
 0x305   : > { %v1647_v46 = vadd.f32 %v1645_v41, %v1613_v54  ;;  %v1659_v12 = vmul.f32 %v8412_v47, %v1655_v1  ;;  %v1665_v37 = vmul.f32 %v8413_v42, %v1655_v1  ;;  %v8414_v6 = vmov %v8413_v42 }
 0x306   : > { %v1662_v63 = vadd.f32 %v1660_v60, %v1630_v18  ;;  %v1666_v51 = vmul.f32 %v8414_v6, %v1656_v2  ;;  %v8415_v59 = vstv %s5727_s27  ;;  %v8417_v56 = vstv %s8411_s2  ;;  %s6212_s27 = sld [smem:[#allocation12 + $0x9]]  ;;  %s6326_s2 = sld [smem:[#allocation12 + $0x58]] }
 0x307   : > { %v1671_v5 = vmul.f32 %v8415_v59, %v1655_v1  ;;  %v8416_v16 = vmov %v8415_v59  ;;  %v1661_v13 = vadd.f32 %v1659_v12, %v1629_v62  ;;  %v1667_v54 = vadd.f32 %v1665_v37, %v1635_v48  ;;  %v6271_v12 = vpop.permute.xlu1 %1805 }
 0x308   : > { %v1672_v32 = vmul.f32 %v8416_v16, %v1656_v2  ;;  %v1677_v19 = vmul.f32 %v8417_v56, %v1655_v1  ;;  %v8418_v9 = vmov %v8417_v56  ;;  %v1668_v49 = vadd.f32 %v1666_v51, %v1636_v39 }
 0x309   : > { %v1678_v44 = vmul.f32 %v8418_v9, %v1656_v2  ;;  %v1673_v50 = vadd.f32 %v1671_v5, %v1641_v14  ;;  %v6198_v57 = vadd.f32 %v5634_v38, %v1662_v63  ;;  %v6207_v2 = vadd.f32 %v5666_v55, %v1661_v13  ;;  %v6267_v14 = vpop.permute.xlu0 %1803 }
 0x30a   : > { %v1674_v58 = vadd.f32 %v1672_v32, %v1642_v24  ;;  %v1679_v18 = vadd.f32 %v1677_v19, %v1647_v46  ;;  %v6210_v23 = vadd.f32 %v5671_v17, %v1667_v54  ;;  %v6217_v38 = vadd.f32 %v5639_v15, %v1668_v49 }
 0x30b   : > { %v1680_v31 = vadd.f32 %v1678_v44, %v1648_v33  ;;  %v1697_v39 = vadd.f32 %v5676_v43, %v1673_v50  ;;  %v1709_v17 = vsel %vm573_vm8, %v6117_v34, %v6119_v7  ;;  %v1780_v24 = vstv %s6167_s18  ;;  %s8448_s18 = sld [smem:[#allocation76_spill]] }
 0x30c   : > { %v1698_v55 = vadd.f32 %v5650_v40, %v1674_v58  ;;  %v1703_v15 = vadd.f32 %v5681_v35, %v1679_v18  ;;  %v1710_v40 = vsel %vm573_vm8, %v6119_v7, %v6117_v34  ;;  %v6237_v43 = vsel %vm4435_vm6, 0.0, %v1709_v17 }
 0x30d   : > { %v1704_v26 = vadd.f32 %v5655_v53, %v1680_v31  ;;  %v6243_v30 = vsel %vm4431_vm5, 0.0, %v1710_v40  ;;  %v8422_v53 = vstv %s8419_s12  ;;  %v1786_v21 = vstv %s6169_s6  ;;  %v1838_v40 = vpop.permute.xlu0 %1837  ;;  %s6342_s12 = sld [smem:[#allocation12 + $0x5b]]  ;;  %s8452_s6 = sld [smem:[#allocation74_spill]] }
 0x30e   : > { %v1727_v35 = vmul.f32 %v8422_v53, %v6237_v43  ;;  %v8423_v34 = vmov %v8422_v53  ;;  %v8424_v41 = vstv %s8420_s19  ;;  %v1792_v62 = vstv %s6175_s17  ;;  %s6328_s17 = sld [smem:[#allocation12 + $0x59]]  ;;  %v1840_v53 = vpop.permute.xlu1 %1839 }
 0x30f   : > { %v1728_v7 = vmul.f32 %v8423_v34, %v6243_v30  ;;  %v1733_v33 = vmul.f32 %v8424_v41, %v6237_v43  ;;  %v1798_v48 = vstv %s6177_s1  ;;  %v8426_v25 = vmov %v8424_v41  ;;  %s6348_s19 = sld [smem:[#allocation12 + $0x69]]  ;;  %s6381_s1 = sld [smem:[#allocation12 + $0x7a]] }
 0x310   : > { %v1729_v1 = vadd.f32 %v1727_v35, %v1697_v39  ;;  %v1734_v60 = vmul.f32 %v8426_v25, %v6243_v30  ;;  %v1814_v46 = vstv %s6185_s10  ;;  %v1820_v47 = vstv %s6187_s3  ;;  %s8454_s10 = sld [smem:[#allocation42_spill]]  ;;  %s6667_s3 = sld [smem:[#allocation12 + $0xc]] }
 0x311   : > { %v1730_v42 = vadd.f32 %v1728_v7, %v1698_v55  ;;  %v1735_v37 = vadd.f32 %v1733_v33, %v1703_v15  ;;  %v1826_v63 = vstv %s6193_s30  ;;  %v1832_v6 = vstv %s6195_s8  ;;  %s8436_s30 = sld [smem:[#allocation81_spill]]  ;;  %s8437_s8 = sld [smem:[#allocation37_spill]] }
 0x312   : > { %v1736_v51 = vadd.f32 %v1734_v60, %v1704_v26  ;;  %v1741_v59 = vsel %vm594_vm9, %v6155_v28, %v6157_v61  ;;  %v1742_v5 = vsel %vm594_vm9, %v6157_v61, %v6155_v28  ;;  %v1848_v16 = vstv %s6204_s4  ;;  %s6675_s4 = sld [smem:[#allocation12 + $0xe]] }
 0x313   : > { %v1744_v32 = vsel %vm461_vm10, 0.0, %v1742_v5  ;;  %v6298_v13 = vsel %vm4390_vm2, 0.0, %v1741_v59  ;;  %v1854_v54 = vstv %s6212_s27  ;;  %v1860_v56 = vstv %s6214_s11  ;;  %s8441_s11 = sld [smem:[#allocation72_spill]]  ;;  %s6732_s27 = sld [smem:[#allocation12 + $0x1f]] }
 0x314   : > { %v6308_v28 = vsel %vm4394_vm3, 0.0, %v1744_v32  ;;  %v8430_v61 = vstv %s5799_s9  ;;  %v1866_v9 = vstv %s6225_s28  ;;  %v1880_v44 = vstv %s6227_s15  ;;  %8433 = sst [smem:[#allocation44_spill]] %s6328_s17  ;;  %s8442_s28 = sld [smem:[#allocation73_spill]] }
 0x315   : > { %v1761_v19 = vmul.f32 %v8430_v61, %v6298_v13  ;;  %v8431_v49 = vmov %v8430_v61  ;;  %v8432_v58 = vstv %s5839_s29  ;;  %v1776_v31 = vsel %vm617_vm11, %v6202_v22, %v6200_v0  ;;  %s6340_s9 = sld [smem:[#allocation12 + $0x5a]]  ;;  %s6346_s29 = sld [smem:[#allocation12 + $0x68]] }
 0x316   : > { %v1762_v50 = vmul.f32 %v8431_v49, %v6308_v28  ;;  %v1767_v18 = vmul.f32 %v8432_v58, %v6298_v13  ;;  %v8434_v17 = vmov %v8432_v58  ;;  %v6337_v26 = vsel %vm617_vm11, %v6200_v0, %v6202_v22  ;;  %8435 = sst [smem:[#allocation45_spill]] %s6348_s19  ;;  %s6419_s17 = sld [smem:[#allocation12 + $0x8a]] }
 0x317   : > { %v1763_v55 = vadd.f32 %v1761_v19, %v1729_v1  ;;  %v1768_v15 = vmul.f32 %v8434_v17, %v6308_v28  ;;  %v1892_v35 = vstv %s6250_s25  ;;  %v1898_v41 = vstv %s6260_s24  ;;  %v1874_v17 = vpop.permute.xlu1 %1873  ;;  %s6435_s19 = sld [smem:[#allocation12 + $0x8b]]  ;;  %s8466_s15 = sld [smem:[#allocation77_spill]] }
 0x318   : > { %v1764_v34 = vadd.f32 %v1762_v50, %v1730_v42  ;;  %v1769_v7 = vadd.f32 %v1767_v18, %v1735_v37  ;;  %v6352_v22 = vsel %vm461_vm10, 0.0, %v1776_v31  ;;  %v1926_v25 = vstv %s6275_s7  ;;  %s6776_s25 = sld [smem:[#allocation12 + $0x2e]]  ;;  %s6780_s24 = sld [smem:[#allocation12 + $0x2f]] }
 0x319   : > { %v1770_v0 = vadd.f32 %v1768_v15, %v1736_v51  ;;  %v1793_v60 = vmul.f32 %v1792_v62, %v6337_v26  ;;  %v1794_v42 = vmul.f32 %v1792_v62, %v6352_v22  ;;  %v1932_v37 = vstv %s6279_s22  ;;  %s6782_s7 = sld [smem:[#allocation12 + $0x1c]] }
 0x31a   : > { %v1799_v51 = vmul.f32 %v1798_v48, %v6337_v26  ;;  %v1800_v5 = vmul.f32 %v1798_v48, %v6352_v22  ;;  %v1807_v32 = vsel %vm638_vm12, %v6267_v14, %v6271_v12  ;;  %v1958_v49 = vstv %s6302_s23  ;;  %s6805_s22 = sld [smem:[#allocation12 + $0x2c]]  ;;  %s6807_s23 = sld [smem:[#allocation12 + $0x3e]] }
 0x31b   : > { %v1795_v62 = vadd.f32 %v1793_v60, %v1763_v55  ;;  %v1796_v19 = vadd.f32 %v1794_v42, %v1764_v34  ;;  %v1964_v50 = vstv %s6304_s14  ;;  %v1808_v18 = vsel %vm638_vm12, %v6271_v12, %v6267_v14  ;;  %v1872_v55 = vpop.permute.xlu0 %1871  ;;  %s6820_s14 = sld [smem:[#allocation12 + $0xd]] }
 0x31c   : > { %v1801_v48 = vadd.f32 %v1799_v51, %v1769_v7  ;;  %v1802_v58 = vadd.f32 %v1800_v5, %v1770_v0  ;;  %v6391_v31 = vsel %vm4435_vm6, 0.0, %v1807_v32  ;;  %v1810_v15 = vsel %vm461_vm10, 0.0, %v1808_v18 }
 0x31d   : > { %v1827_v34 = vmul.f32 %v1826_v63, %v6391_v31  ;;  %v6406_v12 = vsel %vm4431_vm5, 0.0, %v1810_v15  ;;  %v1833_v0 = vmul.f32 %v1832_v6, %v6391_v31  ;;  %v1841_v60 = vsel %vm474_vm1, %v1838_v40, %v1840_v53 }
 0x31e   : > { %v1842_v42 = vsel %vm474_vm1, %v1840_v53, %v1838_v40  ;;  %v2014_v51 = vstv %s6340_s9  ;;  %v2020_v5 = vstv %s6342_s12  ;;  %v1828_v15 = vmul.f32 %v1826_v63, %v6406_v12  ;;  %s8482_s9 = sld [smem:[#allocation44_spill]]  ;;  %s8485_s12 = sld [smem:[#allocation45_spill]] }
 0x31f   : > { %v1829_v14 = vadd.f32 %v1827_v34, %v1795_v62  ;;  %v1834_v61 = vmul.f32 %v1832_v6, %v6406_v12  ;;  %v1835_v1 = vadd.f32 %v1833_v0, %v1801_v48  ;;  %v1843_v40 = vsel %vm458_vm0, 0.0, %v1842_v42  ;;  %v1904_v34 = vpop.permute.xlu0 %1903  ;;  %v1906_v0 = vpop.permute.xlu1 %1905 }
 0x320   : > { %v6431_v53 = vsel %vm4394_vm3, 0.0, %v1841_v60  ;;  %v1830_v6 = vadd.f32 %v1828_v15, %v1796_v19  ;;  %v6439_v48 = vsel %vm4390_vm2, 0.0, %v1843_v40  ;;  %v8438_v40 = vstv %s8436_s30  ;;  %s6907_s30 = sld [smem:[#allocation12 + $0x6c]] }
 0x321   : > { %v1836_v62 = vadd.f32 %v1834_v61, %v1802_v58  ;;  %v1861_v60 = vmul.f32 %v1860_v56, %v6439_v48  ;;  %v1862_v61 = vmul.f32 %v1860_v56, %v6431_v53  ;;  %v1867_v19 = vmul.f32 %v1866_v9, %v6439_v48 }
 0x322   : > { %v1868_v58 = vmul.f32 %v1866_v9, %v6431_v53  ;;  %v1715_v42 = vmul.f32 %v8438_v40, %v6237_v43  ;;  %v8439_v32 = vstv %s8437_s8  ;;  %v6467_v18 = vsel %vm458_vm0, %v1872_v55, %v1874_v17 }
 0x323   : > { %v1721_v7 = vmul.f32 %v8439_v32, %v6237_v43  ;;  %v1863_v39 = vadd.f32 %v1861_v60, %v1829_v14  ;;  %v1864_v63 = vadd.f32 %v1862_v61, %v1830_v6  ;;  %v1869_v33 = vadd.f32 %v1867_v19, %v1835_v1 }
 0x324   : > { %v1870_v56 = vadd.f32 %v1868_v58, %v1836_v62  ;;  %v8440_v9 = vmov %v8438_v40  ;;  %v1876_v40 = vsel %vm458_vm0, %v1874_v17, %v1872_v55  ;;  %v1894_v43 = vmul.f32 %v1892_v35, %v6467_v18  ;;  %v1938_v55 = vpop.permute.xlu0 %1937  ;;  %v1940_v17 = vpop.permute.xlu1 %1939 }
 0x325   : > { %v1716_v15 = vmul.f32 %v8440_v9, %v6243_v30  ;;  %v2114_v14 = vstv %s6419_s17  ;;  %v6480_v1 = vsel %vm458_vm0, 0.0, %v1876_v40  ;;  %v1900_v32 = vmul.f32 %v1898_v41, %v6467_v18  ;;  %s6856_s17 = sld [smem:[#allocation12 + $0x5f]] }
 0x326   : > { %v1907_v6 = vsel %vm517_vm4, %v1904_v34, %v1906_v0  ;;  %v1908_v62 = vsel %vm517_vm4, %v1906_v0, %v1904_v34  ;;  %v1717_v60 = vadd.f32 %v1715_v42, %v6207_v2  ;;  %v8443_v61 = vstv %s8437_s8  ;;  %s6922_s8 = sld [smem:[#allocation12 + $0x7e]] }
 0x327   : > { %v1722_v19 = vmul.f32 %v8443_v61, %v6243_v30  ;;  %v1723_v58 = vadd.f32 %v1721_v7, %v6210_v23  ;;  %v1893_v40 = vmul.f32 %v1892_v35, %v6480_v1  ;;  %v1896_v59 = vadd.f32 %v1894_v43, %v1864_v63 }
 0x328   : > { %v1899_v34 = vmul.f32 %v1898_v41, %v6480_v1  ;;  %v1902_v2 = vadd.f32 %v1900_v32, %v1870_v56  ;;  %v8444_v0 = vstv %s8441_s11  ;;  %v8445_v23 = vstv %s8442_s28  ;;  %s6929_s11 = sld [smem:[#allocation12 + $0x7f]]  ;;  %s6931_s28 = sld [smem:[#allocation12 + $0x7c]] }
 0x329   : > { %v1749_v30 = vmul.f32 %v8444_v0, %v6298_v13  ;;  %v1755_v7 = vmul.f32 %v8445_v23, %v6298_v13  ;;  %v1909_v42 = vsel %vm458_vm0, 0.0, %v1908_v62  ;;  %v6511_v35 = vsel %vm4431_vm5, 0.0, %v1907_v6 }
 0x32a   : > { %v1718_v63 = vadd.f32 %v1716_v15, %v6198_v57  ;;  %v1895_v41 = vadd.f32 %v1893_v40, %v1863_v39  ;;  %v1901_v43 = vadd.f32 %v1899_v34, %v1869_v33  ;;  %v6516_v56 = vsel %vm4435_vm6, 0.0, %v1909_v42  ;;  %v1994_v15 = vpop.permute.xlu0 %1993 }
 0x32b   : > { %v1724_v32 = vadd.f32 %v1722_v19, %v6217_v38  ;;  %v8446_v13 = vmov %v8444_v0  ;;  %v8447_v62 = vmov %v8445_v23  ;;  %v1927_v6 = vmul.f32 %v1926_v25, %v6516_v56  ;;  %v1996_v19 = vpop.permute.xlu1 %1995 }
 0x32c   : > { %v1750_v61 = vmul.f32 %v8446_v13, %v6308_v28  ;;  %v1756_v0 = vmul.f32 %v8447_v62, %v6308_v28  ;;  %v1781_v57 = vmul.f32 %v1780_v24, %v6337_v26  ;;  %v1928_v39 = vmul.f32 %v1926_v25, %v6511_v35 }
 0x32d   : > { %v1933_v33 = vmul.f32 %v1932_v37, %v6516_v56  ;;  %v1934_v38 = vmul.f32 %v1932_v37, %v6511_v35  ;;  %v1751_v28 = vadd.f32 %v1749_v30, %v1717_v60  ;;  %v1757_v40 = vadd.f32 %v1755_v7, %v1723_v58 }
 0x32e   : > { %v1787_v34 = vmul.f32 %v1786_v21, %v6337_v26  ;;  %v1929_v23 = vadd.f32 %v1927_v6, %v1895_v41  ;;  %v1930_v25 = vadd.f32 %v1928_v39, %v1896_v59  ;;  %v1941_v37 = vsel %vm540_vm7, %v1938_v55, %v1940_v17 }
 0x32f   : > { %v1935_v42 = vadd.f32 %v1933_v33, %v1901_v43  ;;  %v1936_v13 = vadd.f32 %v1934_v38, %v1902_v2  ;;  %v1752_v62 = vadd.f32 %v1750_v61, %v1718_v63  ;;  %v1758_v9 = vadd.f32 %v1756_v0, %v1724_v32  ;;  %v2026_v43 = vpop.permute.xlu0 %2025  ;;  %v2028_v32 = vpop.permute.xlu1 %2027 }
 0x330   : > { %v1942_v60 = vsel %vm540_vm7, %v1940_v17, %v1938_v55  ;;  %v6549_v26 = vsel %vm4394_vm3, 0.0, %v1941_v37  ;;  %v1782_v59 = vmul.f32 %v1780_v24, %v6352_v22  ;;  %v1788_v58 = vmul.f32 %v1786_v21, %v6352_v22 }
 0x331   : > { %v6559_v2 = vsel %vm4390_vm2, 0.0, %v1942_v60  ;;  %v1960_v30 = vmul.f32 %v1958_v49, %v6549_v26  ;;  %v1783_v7 = vadd.f32 %v1781_v57, %v1751_v28  ;;  %v1789_v55 = vadd.f32 %v1787_v34, %v1757_v40 }
 0x332   : > { %v1959_v17 = vmul.f32 %v1958_v49, %v6559_v2  ;;  %v1965_v24 = vmul.f32 %v1964_v50, %v6559_v2  ;;  %v1815_v21 = vmul.f32 %v1814_v46, %v6391_v31  ;;  %v1816_v22 = vmul.f32 %v1814_v46, %v6406_v12 }
 0x333   : > { %v1962_v63 = vadd.f32 %v1960_v30, %v1930_v25  ;;  %v1966_v41 = vmul.f32 %v1964_v50, %v6549_v26  ;;  %v1997_v49 = vsel %vm573_vm8, %v1994_v15, %v1996_v19  ;;  %v1998_v6 = vsel %vm573_vm8, %v1996_v19, %v1994_v15  ;;  %v2060_v25 = vpop.permute.xlu0 %2059 }
 0x334   : > { %v1961_v61 = vadd.f32 %v1959_v17, %v1929_v23  ;;  %v1967_v0 = vadd.f32 %v1965_v24, %v1935_v42  ;;  %v1784_v57 = vadd.f32 %v1782_v59, %v1752_v62  ;;  %v1790_v39 = vadd.f32 %v1788_v58, %v1758_v9  ;;  %v2062_v42 = vpop.permute.xlu1 %2061 }
 0x335   : > { %v1821_v46 = vmul.f32 %v1820_v47, %v6391_v31  ;;  %v1968_v50 = vadd.f32 %v1966_v41, %v1936_v13  ;;  %v1822_v33 = vmul.f32 %v1820_v47, %v6406_v12  ;;  %v1849_v38 = vmul.f32 %v1848_v16, %v6439_v48 }
 0x336   : > { %v1985_v28 = vadd.f32 %v5734_v45, %v1961_v61  ;;  %v1986_v15 = vadd.f32 %v5700_v52, %v1962_v63  ;;  %v1991_v19 = vadd.f32 %v5739_v36, %v1967_v0  ;;  %v6598_v31 = vsel %vm4435_vm6, 0.0, %v1997_v49 }
 0x337   : > { %v1992_v9 = vadd.f32 %v5705_v8, %v1968_v50  ;;  %v6602_v47 = vsel %vm4431_vm5, 0.0, %v1998_v6  ;;  %v1817_v12 = vadd.f32 %v1815_v21, %v1783_v7  ;;  %v1818_v40 = vadd.f32 %v1816_v22, %v1784_v57  ;;  %v2092_v57 = vpop.permute.xlu0 %2091 }
 0x338   : > { %v1850_v45 = vmul.f32 %v1848_v16, %v6431_v53  ;;  %v2029_v52 = vsel %vm594_vm9, %v2026_v43, %v2028_v32  ;;  %v2015_v8 = vmul.f32 %v2014_v51, %v6598_v31  ;;  %v2016_v36 = vmul.f32 %v2014_v51, %v6602_v47 }
 0x339   : > { %v2021_v34 = vmul.f32 %v2020_v5, %v6598_v31  ;;  %v2022_v23 = vmul.f32 %v2020_v5, %v6602_v47  ;;  %v1824_v16 = vadd.f32 %v1822_v33, %v1790_v39  ;;  %v1851_v13 = vadd.f32 %v1849_v38, %v1817_v12  ;;  %v2094_v39 = vpop.permute.xlu1 %2093 }
 0x33a   : > { %v1855_v37 = vmul.f32 %v1854_v54, %v6439_v48  ;;  %v1881_v62 = vmul.f32 %v1880_v44, %v6480_v1  ;;  %v2017_v51 = vadd.f32 %v2015_v8, %v1985_v28  ;;  %v2018_v60 = vadd.f32 %v2016_v36, %v1986_v15 }
 0x33b   : > { %v2023_v59 = vadd.f32 %v2021_v34, %v1991_v19  ;;  %v2024_v58 = vadd.f32 %v2022_v23, %v1992_v9  ;;  %v1856_v5 = vmul.f32 %v1854_v54, %v6431_v53  ;;  %v2030_v30 = vsel %vm594_vm9, %v2028_v32, %v2026_v43 }
 0x33c   : > { %v6634_v7 = vsel %vm4390_vm2, 0.0, %v2029_v52  ;;  %v2064_v48 = vsel %vm617_vm11, %v2062_v42, %v2060_v25  ;;  %v1852_v17 = vadd.f32 %v1850_v45, %v1818_v40  ;;  %v1882_v24 = vmul.f32 %v1880_v44, %v6467_v18 }
 0x33d   : > { %v2032_v21 = vsel %vm461_vm10, 0.0, %v2030_v30  ;;  %v8449_v54 = vstv %s6360_s20  ;;  %v1823_v22 = vadd.f32 %v1821_v46, %v1789_v55  ;;  %v8450_v63 = vstv %s8448_s18  ;;  %s6680_s20 = sld [smem:[#allocation12 + $0xf]]  ;;  %s6959_s18 = sld [smem:[#allocation12 + $0x8c]] }
 0x33e   : > { %v2049_v53 = vmul.f32 %v8449_v54, %v6634_v7  ;;  %v1915_v41 = vmul.f32 %v8450_v63, %v6516_v56  ;;  %v6651_v43 = vsel %vm4394_vm3, 0.0, %v2032_v21  ;;  %v8451_v32 = vstv %s6362_s5  ;;  %s6713_s5 = sld [smem:[#allocation12 + $0x1e]] }
 0x33f   : > { %v2055_v61 = vmul.f32 %v8451_v32, %v6634_v7  ;;  %v1883_v44 = vadd.f32 %v1881_v62, %v1851_v13  ;;  %v8453_v0 = vmov %v8450_v63  ;;  %v6661_v6 = vsel %vm617_vm11, %v2060_v25, %v2062_v42 }
 0x340   : > { %v1916_v49 = vmul.f32 %v8453_v0, %v6511_v35  ;;  %v6665_v55 = vsel %vm461_vm10, 0.0, %v2064_v48  ;;  %v8455_v46 = vmov %v8449_v54  ;;  %v2051_v33 = vadd.f32 %v2049_v53, %v2017_v51  ;;  %v2126_v53 = vpop.permute.xlu0 %2125 }
 0x341   : > { %v2050_v50 = vmul.f32 %v8455_v46, %v6651_v43  ;;  %v8456_v38 = vmov %v8451_v32  ;;  %v2057_v15 = vadd.f32 %v2055_v61, %v2023_v59  ;;  %v1857_v19 = vadd.f32 %v1855_v37, %v1823_v22 }
 0x342   : > { %v2056_v28 = vmul.f32 %v8456_v38, %v6651_v43  ;;  %v1858_v9 = vadd.f32 %v1856_v5, %v1824_v16  ;;  %v1884_v12 = vadd.f32 %v1882_v24, %v1852_v17  ;;  %v8457_v40 = vstv %s8452_s6  ;;  %s6961_s6 = sld [smem:[#allocation12 + $0x8e]] }
 0x343   : > { %v1888_v45 = vmul.f32 %v8457_v40, %v6467_v18  ;;  %v1917_v52 = vadd.f32 %v1915_v41, %v1883_v44  ;;  %v8458_v8 = vstv %s8454_s10  ;;  %v2052_v34 = vadd.f32 %v2050_v50, %v2018_v60  ;;  %s6966_s10 = sld [smem:[#allocation12 + $0x8f]] }
 0x344   : > { %v1948_v36 = vmul.f32 %v8458_v8, %v6549_v26  ;;  %v2058_v23 = vadd.f32 %v2056_v28, %v2024_v58  ;;  %v8459_v25 = vmov %v8458_v8  ;;  %v8460_v13 = vstv %s6381_s1  ;;  %s6895_s1 = sld [smem:[#allocation12 + $0x6f]] }
 0x345   : > { %v1947_v42 = vmul.f32 %v8459_v25, %v6559_v2  ;;  %v2081_v62 = vmul.f32 %v8460_v13, %v6661_v6  ;;  %v8461_v16 = vmov %v8460_v13  ;;  %v8462_v51 = vstv %s6383_s21  ;;  %s8468_s21 = sld [smem:[#allocation43_spill]] }
 0x346   : > { %v2082_v37 = vmul.f32 %v8461_v16, %v6665_v55  ;;  %v2087_v18 = vmul.f32 %v8462_v51, %v6661_v6  ;;  %v8463_v59 = vmov %v8457_v40  ;;  %v1918_v30 = vadd.f32 %v1916_v49, %v1884_v12 }
 0x347   : > { %v1887_v5 = vmul.f32 %v8463_v59, %v6480_v1  ;;  %v8464_v48 = vmov %v8462_v51  ;;  %v2095_v58 = vsel %vm638_vm12, %v2092_v57, %v2094_v39  ;;  %v2083_v17 = vadd.f32 %v2081_v62, %v2051_v33  ;;  %v2128_v1 = vpop.permute.xlu1 %2127 }
 0x348   : > { %v2088_v60 = vmul.f32 %v8464_v48, %v6665_v55  ;;  %v2084_v24 = vadd.f32 %v2082_v37, %v2052_v34  ;;  %v2089_v21 = vadd.f32 %v2087_v18, %v2057_v15  ;;  %v2096_v54 = vsel %vm638_vm12, %v2094_v39, %v2092_v57  ;;  %v8469_v34 = vld [vmem:[#allocation79_spill] sm:$0xff]  ;;  %v2160_v48 = vpop.permute.xlu0 %2159 }
 0x349   : > { %v1950_v22 = vadd.f32 %v1948_v36, %v1918_v30  ;;  %v2098_v41 = vsel %vm461_vm10, 0.0, %v2096_v54  ;;  %v6711_v32 = vsel %vm4435_vm6, 0.0, %v2095_v58  ;;  %v1949_v61 = vadd.f32 %v1947_v42, %v1917_v52 }
 0x34a   : > { %v2090_v63 = vadd.f32 %v2088_v60, %v2058_v23  ;;  %v6717_v44 = vsel %vm4431_vm5, 0.0, %v2098_v41  ;;  %v2115_v0 = vmul.f32 %v2114_v14, %v6711_v32  ;;  %v2136_v49 = vstv %s6667_s3  ;;  %s6988_s3 = sld [smem:[#allocation12 + $0x1d]] }
 0x34b   : > { %v2116_v57 = vmul.f32 %v2114_v14, %v6717_v44  ;;  %v8465_v39 = vstv %s6435_s19  ;;  %v2148_v50 = vstv %s6675_s4  ;;  %v2129_v33 = vsel %vm474_vm1, %v2126_v53, %v2128_v1  ;;  %v2162_v60 = vpop.permute.xlu1 %2161  ;;  %s6893_s19 = sld [smem:[#allocation12 + $0x5c]]  ;;  %s7020_s4 = sld [smem:[#allocation12 + $0x3d]] }
 0x34c   : > { %v2121_v46 = vmul.f32 %v8465_v39, %v6711_v32  ;;  %v1890_v38 = vadd.f32 %v1888_v45, %v1858_v9  ;;  %v2117_v28 = vadd.f32 %v2115_v0, %v2083_v17  ;;  %v8467_v15 = vmov %v8465_v39 }
 0x34d   : > { %v2122_v12 = vmul.f32 %v8467_v15, %v6717_v44  ;;  %v2154_v40 = vstv %s6680_s20  ;;  %v1889_v14 = vadd.f32 %v1887_v5, %v1857_v19  ;;  %v1974_v52 = vadd.f32 %v5690_v20, %v1950_v22  ;;  %s3571_s20 = sld [smem:[#allocation12 + $0x4d]] }
 0x34e   : > { %v2118_v8 = vadd.f32 %v2116_v57, %v2084_v24  ;;  %v2123_v36 = vadd.f32 %v2121_v46, %v2089_v21  ;;  %v1973_v23 = vadd.f32 %v8469_v34, %v1949_v61  ;;  %v2130_v9 = vsel %vm474_vm1, %v2128_v1, %v2126_v53 }
 0x34f   : > { %v2124_v25 = vadd.f32 %v2122_v12, %v2090_v63  ;;  %v6744_v45 = vsel %vm4394_vm3, 0.0, %v2129_v33  ;;  %v8470_v19 = vstv %s6326_s2  ;;  %v2131_v62 = vsel %vm458_vm0, 0.0, %v2130_v9  ;;  %s6854_s2 = sld [smem:[#allocation12 + $0x5e]] }
 0x350   : > { %v2003_v42 = vmul.f32 %v8470_v19, %v6598_v31  ;;  %v8471_v20 = vmov %v8470_v19  ;;  %v2150_v16 = vmul.f32 %v2148_v50, %v6744_v45  ;;  %v8472_v37 = vstv %s8466_s15  ;;  %s3579_s15 = sld [smem:[#allocation12 + $0x6d]] }
 0x351   : > { %v2004_v13 = vmul.f32 %v8471_v20, %v6602_v47  ;;  %v1921_v51 = vmul.f32 %v8472_v37, %v6516_v56  ;;  %v8473_v18 = vmov %v8472_v37  ;;  %v6763_v5 = vsel %vm4390_vm2, 0.0, %v2131_v62  ;;  %v2192_v20 = vpop.permute.xlu0 %2191 }
 0x352   : > { %v1922_v59 = vmul.f32 %v8473_v18, %v6511_v35  ;;  %v2156_v30 = vmul.f32 %v2154_v40, %v6744_v45  ;;  %v8474_v58 = vstv %s8468_s21  ;;  %v8475_v24 = vstv %s6346_s29  ;;  %s6887_s29 = sld [smem:[#allocation12 + $0x6e]]  ;;  %s8502_s21 = smov 15  }
 0x353   : > { %v1954_v17 = vmul.f32 %v8474_v58, %v6549_v26  ;;  %v2037_v21 = vmul.f32 %v8475_v24, %v6634_v7  ;;  %v8476_v56 = vmov %v8475_v24  ;;  %v2180_v35 = vstv %s6713_s5  ;;  %s3575_s5 = sld [smem:[#allocation12 + $0x5d]] }
 0x354   : > { %v2038_v54 = vmul.f32 %v8476_v56, %v6651_v43  ;;  %v2149_v53 = vmul.f32 %v2148_v50, %v6763_v5  ;;  %v2152_v1 = vadd.f32 %v2150_v16, %v2118_v8  ;;  %v2155_v22 = vmul.f32 %v2154_v40, %v6763_v5 }
 0x355   : > { %v2158_v63 = vadd.f32 %v2156_v30, %v2124_v25  ;;  %v2005_v41 = vadd.f32 %v2003_v42, %v1973_v23  ;;  %v2006_v61 = vadd.f32 %v2004_v13, %v1974_v52  ;;  %v2186_v26 = vstv %s6732_s27  ;;  %v2194_v13 = vpop.permute.xlu1 %2193  ;;  %s8501_s27 = smov 16  }
 0x356   : > { %v6787_v0 = vsel %vm458_vm0, %v2160_v48, %v2162_v60  ;;  %v8477_v57 = vstv %s6375_s16  ;;  %v2151_v46 = vadd.f32 %v2149_v53, %v2117_v28  ;;  %v2157_v50 = vadd.f32 %v2155_v22, %v2123_v36  ;;  %s6815_s16 = sld [smem:[#allocation12 + $0x3f]] }
 0x357   : > { %v2069_v39 = vmul.f32 %v8477_v57, %v6661_v6  ;;  %v2164_v33 = vsel %vm458_vm0, %v2162_v60, %v2160_v48  ;;  %v2039_v15 = vadd.f32 %v2037_v21, %v2005_v41  ;;  %v2182_v40 = vmul.f32 %v2180_v35, %v6787_v0 }
 0x358   : > { %v6796_v12 = vsel %vm458_vm0, 0.0, %v2164_v33  ;;  %v2188_v52 = vmul.f32 %v2186_v26, %v6787_v0  ;;  %v1923_v8 = vadd.f32 %v1921_v51, %v1889_v14  ;;  %v1924_v34 = vadd.f32 %v1922_v59, %v1890_v38 }
 0x359   : > { %v2040_v23 = vadd.f32 %v2038_v54, %v2006_v61  ;;  %v2181_v28 = vmul.f32 %v2180_v35, %v6796_v12  ;;  %v8478_v36 = vmov %v8477_v57  ;;  %v2184_v9 = vadd.f32 %v2182_v40, %v2152_v1 }
 0x35a   : > { %v2070_v25 = vmul.f32 %v8478_v36, %v6665_v55  ;;  %v2187_v19 = vmul.f32 %v2186_v26, %v6796_v12  ;;  %v2190_v42 = vadd.f32 %v2188_v52, %v2158_v63  ;;  %v8479_v38 = vmov %v8474_v58 }
 0x35b   : > { %v1953_v14 = vmul.f32 %v8479_v38, %v6559_v2  ;;  %v1956_v62 = vadd.f32 %v1954_v17, %v1924_v34  ;;  %v8480_v16 = vstv %s6393_s0  ;;  %v2183_v51 = vadd.f32 %v2181_v28, %v2151_v46  ;;  %s6843_s0 = sld [smem:[#allocation12 + $0x3c]]  ;;  %v2228_v46 = vpop.permute.xlu1 %2227  ;;  %v8484_v38 = vld [vmem:[#allocation80_spill] sm:$0xff] }
 0x35c   : > { %v2103_v37 = vmul.f32 %v8480_v16, %v6711_v32  ;;  %v2071_v18 = vadd.f32 %v2069_v39, %v2039_v15  ;;  %v8481_v59 = vmov %v8480_v16  ;;  %v2189_v48 = vadd.f32 %v2187_v19, %v2157_v50  ;;  %v2226_v39 = vpop.permute.xlu0 %2225 }
 0x35d   : > { %v2104_v30 = vmul.f32 %v8481_v59, %v6717_v44  ;;  %v2214_v60 = vstv %s6776_s25  ;;  %v2137_v58 = vmul.f32 %v2136_v49, %v6763_v5  ;;  %v2220_v2 = vstv %s6780_s24  ;;  %s3583_s25 = sld [smem:[#allocation12 + $0x7d]] }
 0x35e   : > { %v2195_v17 = vsel %vm517_vm4, %v2192_v20, %v2194_v13  ;;  %v2196_v24 = vsel %vm517_vm4, %v2194_v13, %v2192_v20  ;;  %v2072_v21 = vadd.f32 %v2070_v25, %v2040_v23  ;;  %v2168_v56 = vstv %s6782_s7  ;;  %s3587_s24 = sld [smem:[#allocation12 + $0x8d]]  ;;  %s8504_s7 = smov 1  }
 0x35f   : > { %v2197_v54 = vsel %vm458_vm0, 0.0, %v2196_v24  ;;  %v6836_v35 = vsel %vm4431_vm5, 0.0, %v2195_v17  ;;  %v1955_v53 = vadd.f32 %v1953_v14, %v1923_v8  ;;  %v2105_v1 = vadd.f32 %v2103_v37, %v2071_v18 }
 0x360   : > { %v6840_v22 = vsel %vm4435_vm6, 0.0, %v2197_v54  ;;  %v2216_v63 = vmul.f32 %v2214_v60, %v6836_v35  ;;  %v2106_v41 = vadd.f32 %v2104_v30, %v2072_v21  ;;  %v2138_v61 = vmul.f32 %v2136_v49, %v6744_v45 }
 0x361   : > { %v2215_v26 = vmul.f32 %v2214_v60, %v6840_v22  ;;  %v2221_v57 = vmul.f32 %v2220_v2, %v6840_v22  ;;  %v2139_v50 = vadd.f32 %v2137_v58, %v2105_v1  ;;  %v2169_v33 = vmul.f32 %v2168_v56, %v6796_v12  ;;  %v2282_v1 = vpop.permute.xlu0 %2281 }
 0x362   : > { %v2218_v15 = vadd.f32 %v2216_v63, %v2184_v9  ;;  %v2222_v40 = vmul.f32 %v2220_v2, %v6836_v35  ;;  %v2202_v52 = vstv %s6805_s22  ;;  %v2246_v23 = vstv %s6807_s23  ;;  %v8483_v9 = vld [vmem:[#allocation78_spill] sm:$0xff]  ;;  %v2284_v63 = vpop.permute.xlu1 %2283  ;;  %s8506_s22 = smov 127   ;;  %s8507_s23 = smov 113  }
 0x363   : > { %v2217_v8 = vadd.f32 %v2215_v26, %v2183_v51  ;;  %v2223_v34 = vadd.f32 %v2221_v57, %v2189_v48  ;;  %v2252_v28 = vstv %s6815_s16  ;;  %v2229_v36 = vsel %vm540_vm7, %v2226_v39, %v2228_v46  ;;  %s8508_s16 = smov 112  }
 0x364   : > { %v2224_v49 = vadd.f32 %v2222_v40, %v2190_v42  ;;  %v2230_v25 = vsel %vm540_vm7, %v2228_v46, %v2226_v39  ;;  %v1980_v19 = vadd.f32 %v8483_v9, %v1956_v62  ;;  %v2142_v20 = vstv %s6820_s14  ;;  %v8490_v40 = vld [vmem:[#allocation83_spill] sm:$0xff]  ;;  %s8509_s14 = smov 111  }
 0x365   : > { %v6867_v13 = vsel %vm4390_vm2, 0.0, %v2230_v25  ;;  %v6871_v42 = vsel %vm4394_vm3, 0.0, %v2229_v36  ;;  %v1979_v14 = vadd.f32 %v8484_v38, %v1955_v53  ;;  %v2140_v16 = vadd.f32 %v2138_v61, %v2106_v41 }
 0x366   : > { %v2170_v37 = vmul.f32 %v2168_v56, %v6787_v0  ;;  %v2203_v51 = vmul.f32 %v2202_v52, %v6840_v22  ;;  %v2247_v18 = vmul.f32 %v2246_v23, %v6867_v13  ;;  %v2248_v62 = vmul.f32 %v2246_v23, %v6871_v42 }
 0x367   : > { %v2253_v59 = vmul.f32 %v2252_v28, %v6867_v13  ;;  %v2254_v30 = vmul.f32 %v2252_v28, %v6871_v42  ;;  %v8486_v48 = vstv %s8482_s9  ;;  %v2171_v17 = vadd.f32 %v2169_v33, %v2139_v50  ;;  %v8489_v33 = vld [vmem:[#allocation88_spill] sm:$0xff]  ;;  %s7199_s9 = sld [smem:[#allocation15 + $0x20]] }
 0x368   : > { %v2009_v60 = vmul.f32 %v8486_v48, %v6598_v31  ;;  %v8487_v58 = vmov %v8486_v48  ;;  %v2234_v24 = vstv %s6843_s0  ;;  %v2249_v21 = vadd.f32 %v2247_v18, %v2217_v8  ;;  %v2314_v48 = vpop.permute.xlu0 %2313  ;;  %s7189_s0 = sld [smem:[#allocation15]] }
 0x369   : > { %v2010_v2 = vmul.f32 %v8487_v58, %v6602_v47  ;;  %v2250_v56 = vadd.f32 %v2248_v62, %v2218_v15  ;;  %v2255_v54 = vadd.f32 %v2253_v59, %v2223_v34  ;;  %v2256_v53 = vadd.f32 %v2254_v30, %v2224_v49  ;;  %v8491_v34 = vld [vmem:[#allocation89_spill] sm:$0xff]  ;;  %v8492_v49 = vld [vmem:[#allocation86_spill] sm:$0xff]  ;;  %v2316_v58 = vpop.permute.xlu1 %2315 }
 0x36a   : > { %v8488_v41 = vstv %s8485_s12  ;;  %v2172_v26 = vadd.f32 %v2170_v37, %v2140_v16  ;;  %v2204_v31 = vmul.f32 %v2202_v52, %v6836_v35  ;;  %v2205_v57 = vadd.f32 %v2203_v51, %v2171_v17  ;;  %s7203_s12 = sld [smem:[#allocation16 + $0x1]] }
 0x36b   : > { %v2043_v61 = vmul.f32 %v8488_v41, %v6634_v7  ;;  %v2235_v47 = vmul.f32 %v2234_v24, %v6867_v13  ;;  %v2236_v39 = vmul.f32 %v2234_v24, %v6871_v42  ;;  %v2302_v46 = vstv %s6854_s2  ;;  %s7193_s2 = sld [smem:[#allocation15 + $0x1]] }
 0x36c   : > { %v2308_v50 = vstv %s6856_s17  ;;  %v2273_v15 = vadd.f32 %v8489_v33, %v2249_v21  ;;  %v2274_v8 = vadd.f32 %v8490_v40, %v2250_v56  ;;  %v2285_v7 = vsel %vm573_vm8, %v2282_v1, %v2284_v63  ;;  %v8496_v33 = vld [vmem:[#allocation82_spill] sm:$0xff]  ;;  %s7197_s17 = sld [smem:[#allocation16]] }
 0x36d   : > { %v2286_v52 = vsel %vm573_vm8, %v2284_v63, %v2282_v1  ;;  %v2279_v23 = vadd.f32 %v8491_v34, %v2255_v54  ;;  %v2280_v28 = vadd.f32 %v8492_v49, %v2256_v53  ;;  %v6913_v36 = vsel %vm4435_vm6, 0.0, %v2285_v7  ;;  %v2348_v7 = vpop.permute.xlu0 %2347 }
 0x36e   : > { %v6917_v25 = vsel %vm4431_vm5, 0.0, %v2286_v52  ;;  %v2011_v9 = vadd.f32 %v2009_v60, %v1979_v14  ;;  %v2012_v38 = vadd.f32 %v2010_v2, %v1980_v19  ;;  %v8493_v16 = vmov %v8488_v41  ;;  %v2350_v52 = vpop.permute.xlu1 %2349 }
 0x36f   : > { %v2044_v37 = vmul.f32 %v8493_v16, %v6651_v43  ;;  %v2206_v51 = vadd.f32 %v2204_v31, %v2172_v26  ;;  %v2303_v18 = vmul.f32 %v2302_v46, %v6913_v36  ;;  %v2304_v62 = vmul.f32 %v2302_v46, %v6917_v25 }
 0x370   : > { %v2309_v59 = vmul.f32 %v2308_v50, %v6913_v36  ;;  %v2310_v30 = vmul.f32 %v2308_v50, %v6917_v25  ;;  %v2045_v19 = vadd.f32 %v2043_v61, %v2011_v9  ;;  %v2237_v14 = vadd.f32 %v2235_v47, %v2205_v57  ;;  %v8495_v57 = vld [vmem:[#allocation87_spill] sm:$0xff] }
 0x371   : > { %v2238_v60 = vadd.f32 %v2236_v39, %v2206_v51  ;;  %v2336_v43 = vstv %s6887_s29  ;;  %v2305_v2 = vadd.f32 %v2303_v18, %v2273_v15  ;;  %v2306_v17 = vadd.f32 %v2304_v62, %v2274_v8  ;;  %s7205_s29 = sld [smem:[#allocation15 + $0x8]] }
 0x372   : > { %v2311_v24 = vadd.f32 %v2309_v59, %v2279_v23  ;;  %v2312_v21 = vadd.f32 %v2310_v30, %v2280_v28  ;;  %v2290_v56 = vstv %s6893_s19  ;;  %v2342_v54 = vstv %s6895_s1  ;;  %s7207_s19 = sld [smem:[#allocation15 + $0x9]]  ;;  %s7209_s1 = sld [smem:[#allocation15 + $0x10]] }
 0x373   : > { %v2317_v53 = vsel %vm594_vm9, %v2314_v48, %v2316_v58  ;;  %v2318_v1 = vsel %vm594_vm9, %v2316_v58, %v2314_v48  ;;  %v2046_v63 = vadd.f32 %v2044_v37, %v2012_v38  ;;  %v8494_v41 = vstv %s6377_s26  ;;  %s6992_s26 = sld [smem:[#allocation12 + $0x2d]] }
 0x374   : > { %v2075_v61 = vmul.f32 %v8494_v41, %v6661_v6  ;;  %v2320_v26 = vsel %vm461_vm10, 0.0, %v2318_v1  ;;  %v6946_v31 = vsel %vm4390_vm2, 0.0, %v2317_v53  ;;  %v2261_v47 = vadd.f32 %v8495_v57, %v2237_v14  ;;  %v2380_v1 = vpop.permute.xlu0 %2379 }
 0x375   : > { %v2324_v39 = vstv %s6907_s30  ;;  %v6952_v46 = vsel %vm4394_vm3, 0.0, %v2320_v26  ;;  %v2337_v50 = vmul.f32 %v2336_v43, %v6946_v31  ;;  %v2262_v15 = vadd.f32 %v8496_v33, %v2238_v60  ;;  %s7211_s30 = sld [smem:[#allocation15 + $0x11]] }
 0x376   : > { %v2291_v6 = vmul.f32 %v2290_v56, %v6913_v36  ;;  %v2338_v40 = vmul.f32 %v2336_v43, %v6952_v46  ;;  %v2343_v8 = vmul.f32 %v2342_v54, %v6946_v31  ;;  %v2292_v34 = vmul.f32 %v2290_v56, %v6917_v25 }
 0x377   : > { %v2339_v23 = vadd.f32 %v2337_v50, %v2305_v2  ;;  %v2344_v49 = vmul.f32 %v2342_v54, %v6952_v46  ;;  %v2368_v28 = vstv %s6922_s8  ;;  %v2325_v9 = vmul.f32 %v2324_v39, %v6946_v31  ;;  %s7213_s8 = sld [smem:[#allocation15 + $0x18]] }
 0x378   : > { %v2326_v38 = vmul.f32 %v2324_v39, %v6952_v46  ;;  %v2340_v16 = vadd.f32 %v2338_v40, %v2306_v17  ;;  %v2345_v37 = vadd.f32 %v2343_v8, %v2311_v24  ;;  %v2374_v18 = vstv %s6929_s11  ;;  %s7231_s11 = sld [smem:[#allocation15 + $0x19]] }
 0x379   : > { %v2346_v51 = vadd.f32 %v2344_v49, %v2312_v21  ;;  %v6973_v62 = vsel %vm617_vm11, %v2348_v7, %v2350_v52  ;;  %v2352_v59 = vsel %vm617_vm11, %v2350_v52, %v2348_v7  ;;  %v2293_v30 = vadd.f32 %v2291_v6, %v2261_v47 }
 0x37a   : > { %v2356_v48 = vstv %s6931_s28  ;;  %v6980_v58 = vsel %vm461_vm10, 0.0, %v2352_v59  ;;  %v2369_v14 = vmul.f32 %v2368_v28, %v6973_v62  ;;  %v8497_v60 = vmov %v8494_v41  ;;  %v2382_v41 = vpop.permute.xlu1 %2381  ;;  %s7233_s28 = sld [smem:[#allocation15 + $0x21]] }
 0x37b   : > { %v2076_v43 = vmul.f32 %v8497_v60, %v6665_v55  ;;  %v2294_v2 = vadd.f32 %v2292_v34, %v2262_v15  ;;  %v2370_v17 = vmul.f32 %v2368_v28, %v6980_v58  ;;  %v2375_v24 = vmul.f32 %v2374_v18, %v6973_v62 }
 0x37c   : > { %v2077_v21 = vadd.f32 %v2075_v61, %v2045_v19  ;;  %v2327_v56 = vadd.f32 %v2325_v9, %v2293_v30  ;;  %v2371_v54 = vadd.f32 %v2369_v14, %v2339_v23  ;;  %v2376_v53 = vmul.f32 %v2374_v18, %v6980_v58 }
 0x37d   : > { %v2328_v55 = vadd.f32 %v2326_v38, %v2294_v2  ;;  %v2357_v26 = vmul.f32 %v2356_v48, %v6973_v62  ;;  %v2372_v57 = vadd.f32 %v2370_v17, %v2340_v16  ;;  %v2377_v47 = vadd.f32 %v2375_v24, %v2345_v37 }
 0x37e   : > { %v2358_v19 = vmul.f32 %v2356_v48, %v6980_v58  ;;  %v2378_v61 = vadd.f32 %v2376_v53, %v2346_v51  ;;  %v2390_v39 = vstv %s6959_s18  ;;  %v2402_v50 = vstv %s6961_s6  ;;  %s7266_s18 = sld [smem:[#allocation15 + $0x28]]  ;;  %s7268_s6 = sld [smem:[#allocation15 + $0x29]] }
 0x37f   : > { %v2078_v33 = vadd.f32 %v2076_v43, %v2046_v63  ;;  %v2408_v15 = vstv %s6966_s10  ;;  %v2383_v6 = vsel %vm638_vm12, %v2380_v1, %v2382_v41  ;;  %v2384_v40 = vsel %vm638_vm12, %v2382_v41, %v2380_v1  ;;  %s7274_s10 = sld [smem:[#allocation15 + $0x30]] }
 0x380   : > { %v8498_v8 = vstv %s6402_s13  ;;  %v2386_v23 = vsel %vm461_vm10, 0.0, %v2384_v40  ;;  %v7012_v63 = vsel %vm4435_vm6, 0.0, %v2383_v6  ;;  %v2359_v49 = vadd.f32 %v2357_v26, %v2327_v56  ;;  %s8500_s13 = smov 17  }
 0x381   : > { %v2109_v7 = vmul.f32 %v8498_v8, %v6711_v32  ;;  %v8499_v52 = vmov %v8498_v8  ;;  %v7016_v28 = vsel %vm4431_vm5, 0.0, %v2386_v23  ;;  %v2391_v9 = vmul.f32 %v2390_v39, %v7012_v63 }
 0x382   : > { %v2110_v34 = vmul.f32 %v8499_v52, %v6717_v44  ;;  %v2403_v32 = vmul.f32 %v2402_v50, %v7012_v63  ;;  %v2360_v44 = vadd.f32 %v2358_v19, %v2328_v55  ;;  %v2392_v38 = vmul.f32 %v2390_v39, %v7016_v28 }
 0x383   : > { %v2404_v16 = vmul.f32 %v2402_v50, %v7016_v28  ;;  %v2409_v37 = vmul.f32 %v2408_v15, %v7012_v63  ;;  %v2143_v51 = vmul.f32 %v2142_v20, %v6763_v5  ;;  %v2393_v18 = vadd.f32 %v2391_v9, %v2359_v49 }
 0x384   : > { %v7028_v59 = vadd.f32 %v2403_v32, %v2371_v54  ;;  %v2410_v30 = vmul.f32 %v2408_v15, %v7016_v28  ;;  %v2174_v48 = vstv %s6988_s3  ;;  %v2394_v14 = vadd.f32 %v2392_v38, %v2360_v44  ;;  %s7276_s3 = sld [smem:[#allocation15 + $0x31]] }
 0x385   : > { %v7032_v60 = vadd.f32 %v2404_v16, %v2372_v57  ;;  %v7034_v43 = vadd.f32 %v2409_v37, %v2377_v47  ;;  %v2111_v2 = vadd.f32 %v2109_v7, %v2077_v21  ;;  %v7038_v24 = vmax.f32 %v2393_v18, 0.0 }
 0x386   : > { %v7036_v17 = vadd.f32 %v2410_v30, %v2378_v61  ;;  %v2112_v56 = vadd.f32 %v2110_v34, %v2078_v33  ;;  %v2144_v5 = vmul.f32 %v2142_v20, %v6744_v45  ;;  %v2208_v54 = vstv %s6992_s26  ;;  %v8503_v33 = vld [vmem:[#allocation70_spill] sm:$0xff]  ;;  %s7278_s26 = sld [smem:[#allocation15 + $0x38]] }
 0x387   : > { %v7044_v53 = vmax.f32 %v2394_v14, 0.0  ;;  %v2145_v1 = vadd.f32 %v2143_v51, %v2111_v2  ;;  %v2175_v41 = vmul.f32 %v2174_v48, %v6796_v12  ;;  %2425 = vrot.lane.b32.xlu0 %v7038_v24, %s8500_s13  ;;  %v2209_v21 = vmul.f32 %v2208_v54, %v6840_v22 }
 0x388   : > { %v2146_v55 = vadd.f32 %v2144_v5, %v2112_v56  ;;  %v2176_v26 = vmul.f32 %v2174_v48, %v6787_v0  ;;  %v2240_v57 = vstv %s7020_s4  ;;  %v2210_v12 = vmul.f32 %v2208_v54, %v6836_v35  ;;  %s7280_s4 = sld [smem:[#allocation15 + $0x39]] }
 0x389   : > { %2427 = vrot.lane.b32.xlu1 %v7044_v53, %s8500_s13  ;;  %v2177_v45 = vadd.f32 %v2175_v41, %v2145_v1  ;;  %v2241_v47 = vmul.f32 %v2240_v57, %v6867_v13  ;;  %v2242_v22 = vmul.f32 %v2240_v57, %v6871_v42  ;;  %v2264_v61 = vstv %s3571_s20  ;;  %v8505_v13 = vld [vmem:[#allocation71_spill] sm:$0xff]  ;;  %s7288_s20 = sld [smem:[#allocation15 + $0x41]] }
 0x38a   : > { %v2178_v19 = vadd.f32 %v2176_v26, %v2146_v55  ;;  %v2296_v50 = vstv %s3575_s5  ;;  %v2265_v15 = vmul.f32 %v2264_v61, %v8503_v33  ;;  %v2266_v42 = vmul.f32 %v2264_v61, %v8505_v13  ;;  %s7294_s5 = sld [smem:[#allocation15 + $0x2]] }
 0x38b   : > { %2447 = vrot.lane.b32.xlu0 %v7038_v24, %s8501_s27  ;;  %v2211_v20 = vadd.f32 %v2209_v21, %v2177_v45  ;;  %v2330_v6 = vstv %s3579_s15  ;;  %v2297_v8 = vmul.f32 %v2296_v50, %v6913_v36  ;;  %v2298_v52 = vmul.f32 %v2296_v50, %v6917_v25  ;;  %s7307_s15 = sld [smem:[#allocation15 + $0xa]] }
 0x38c   : > { %v2212_v0 = vadd.f32 %v2210_v12, %v2178_v19  ;;  %v2331_v34 = vmul.f32 %v2330_v6, %v6946_v31  ;;  %v2332_v23 = vmul.f32 %v2330_v6, %v6952_v46  ;;  %v2362_v49 = vstv %s3583_s25  ;;  %s7346_s25 = sld [smem:[#allocation15 + $0x22]] }
 0x38d   : > { %2449 = vrot.lane.b32.xlu1 %v7044_v53, %s8501_s27  ;;  %v2243_v35 = vadd.f32 %v2241_v47, %v2211_v20  ;;  %v2396_v44 = vstv %s3587_s24  ;;  %v2363_v36 = vmul.f32 %v2362_v49, %v6973_v62  ;;  %v2364_v31 = vmul.f32 %v2362_v49, %v6980_v58  ;;  %s7353_s24 = sld [smem:[#allocation15 + $0x12]] }
 0x38e   : > { %v2244_v39 = vadd.f32 %v2242_v22, %v2212_v0  ;;  %v2397_v46 = vmul.f32 %v2396_v44, %v7012_v63  ;;  %v2398_v16 = vmul.f32 %v2396_v44, %v7016_v28  ;;  %v7132_v28 = vmax.f32 %v7028_v59, 0.0 }
 0x38f   : > { %2467 = vrot.lane.b32.xlu0 %v7038_v24, %s8502_s21  ;;  %v2267_v40 = vadd.f32 %v2265_v15, %v2243_v35  ;;  %v7135_v30 = vmax.f32 %v7032_v60, 0.0  ;;  %v7170_v59 = vmax.f32 %v7034_v43, 0.0  ;;  %v7173_v48 = vmax.f32 %v7036_v17, 0.0 }
 0x390   : > { %v2268_v7 = vadd.f32 %v2266_v42, %v2244_v39  ;;  %v2436_v43 = vstv %s7189_s0  ;;  %v2442_v54 = vstv %s7193_s2  ;;  %v2422_v26 = vstv %s7197_s17  ;;  %s7402_s0 = sld [smem:[#allocation15 + $0x2a]]  ;;  %s7404_s2 = sld [smem:[#allocation15 + $0x25]] }
 0x391   : > { %2469 = vrot.lane.b32.xlu1 %v7044_v53, %s8502_s21  ;;  %v2299_v9 = vadd.f32 %v2297_v8, %v2267_v40  ;;  %v2456_v20 = vstv %s7205_s29  ;;  %v2424_v22 = vstv %s7203_s12  ;;  %v2462_v61 = vstv %s7207_s19  ;;  %s7414_s17 = sld [smem:[#allocation15 + $0x2b]]  ;;  %s7425_s29 = sld [smem:[#allocation15 + $0x3a]] }
 0x392   : > { %v2300_v32 = vadd.f32 %v2298_v52, %v2268_v7  ;;  %v2478_v39 = vstv %s7209_s1  ;;  %v2484_v33 = vstv %s7211_s30  ;;  %v2498_v13 = vstv %s7213_s8  ;;  %s7418_s12 = sld [smem:[#allocation15 + $0x33]]  ;;  %s7431_s1 = sld [smem:[#allocation15 + $0x42]] }
 0x393   : > { %2489 = vrot.lane.b32.xlu0 %v7038_v24, %s8504_s7  ;;  %v2333_v38 = vadd.f32 %v2331_v34, %v2299_v9  ;;  %v2510_v42 = vstv %s7199_s9  ;;  %s7416_s9 = sld [smem:[#allocation15 + $0x32]]  ;;  %s7427_s19 = sld [smem:[#allocation15 + $0x3b]] }
 0x394   : > { %v2334_v25 = vadd.f32 %v2332_v23, %v2300_v32  ;;  %s7433_s30 = sld [smem:[#allocation15 + $0x43]]  ;;  %s7448_s8 = sld [smem:[#allocation15 + $0x4]] }
 0x395   : > { %2491 = vrot.lane.b32.xlu1 %v7044_v53, %s8504_s7  ;;  %v2365_v37 = vadd.f32 %v2363_v36, %v2333_v38  ;;  %v2504_v36 = vstv %s7231_s11  ;;  %s7475_s11 = sld [smem:[#allocation15 + $0x5]] }
 0x396   : > { %v2366_v51 = vadd.f32 %v2364_v31, %v2334_v25 }
 0x397   : > { %2521 = vrot.lane.b32.xlu0 %v7038_v24, %s8506_s22  ;;  %v2399_v62 = vadd.f32 %v2397_v46, %v2365_v37  ;;  %v2511_v37 = vmul.f32 %v2510_v42, %v7038_v24 }
 0x398   : > { %v2400_v18 = vadd.f32 %v2398_v16, %v2366_v51  ;;  %v2516_v16 = vstv %s7233_s28  ;;  %s7479_s28 = sld [smem:[#allocation15 + $0xc]] }
 0x399   : > { %2523 = vrot.lane.b32.xlu1 %v7044_v53, %s8506_s22  ;;  %v7095_v58 = vmax.f32 %v2399_v62, 0.0 }
 0x39a   : > { %v7097_v63 = vmax.f32 %v2400_v18, 0.0 }
 0x39b   : > { %2541 = vrot.lane.b32.xlu0 %v7038_v24, %s8507_s23 }
 0x39d   : > { %2543 = vrot.lane.b32.xlu1 %v7044_v53, %s8507_s23 }
 0x39f   : > { %2563 = vrot.lane.b32.xlu0 %v7038_v24, %s8508_s16 }
 0x3a1   : > { %2565 = vrot.lane.b32.xlu1 %v7044_v53, %s8508_s16 }
 0x3a3   : > { %2583 = vrot.lane.b32.xlu0 %v7038_v24, %s8509_s14 }
 0x3a5   : > { %2585 = vrot.lane.b32.xlu1 %v7044_v53, %s8509_s14 }
 0x3a7   : > { %2605 = vrot.lane.b32.xlu0 %v7095_v58, %s8500_s13 }
 0x3a9   : > { %2607 = vrot.lane.b32.xlu1 %v7097_v63, %s8500_s13 }
 0x3ab   : > { %2627 = vrot.lane.b32.xlu0 %v7095_v58, %s8501_s27 }
 0x3ad   : > { %2629 = vrot.lane.b32.xlu1 %v7097_v63, %s8501_s27 }
 0x3af   : > { %2647 = vrot.lane.b32.xlu0 %v7095_v58, %s8502_s21 }
 0x3b1   : > { %2649 = vrot.lane.b32.xlu1 %v7097_v63, %s8502_s21 }
 0x3b3   : > { %2669 = vrot.lane.b32.xlu0 %v7095_v58, %s8504_s7 }
 0x3b5   : > { %2671 = vrot.lane.b32.xlu1 %v7097_v63, %s8504_s7 }
 0x3b7   : > { %2701 = vrot.lane.b32.xlu0 %v7095_v58, %s8506_s22 }
 0x3b9   : > { %2703 = vrot.lane.b32.xlu1 %v7097_v63, %s8506_s22 }
 0x3bb   : > { %2721 = vrot.lane.b32.xlu0 %v7095_v58, %s8507_s23 }
 0x3bd   : > { %2723 = vrot.lane.b32.xlu1 %v7097_v63, %s8507_s23 }
 0x3bf   : > { %2743 = vrot.lane.b32.xlu0 %v7095_v58, %s8508_s16 }
 0x3c1   : > { %2745 = vrot.lane.b32.xlu1 %v7097_v63, %s8508_s16 }
 0x3c3   : > { %2763 = vrot.lane.b32.xlu0 %v7095_v58, %s8509_s14 }
 0x3c5   : > { %2765 = vrot.lane.b32.xlu1 %v7097_v63, %s8509_s14 }
 0x3c7   : > { %2785 = vrot.lane.b32.xlu0 %v7132_v28, %s8500_s13 }
 0x3c9   : > { %2787 = vrot.lane.b32.xlu1 %v7135_v30, %s8500_s13 }
 0x3cb   : > { %2807 = vrot.lane.b32.xlu0 %v7132_v28, %s8501_s27 }
 0x3cd   : > { %2809 = vrot.lane.b32.xlu1 %v7135_v30, %s8501_s27 }
 0x3cf   : > { %2827 = vrot.lane.b32.xlu0 %v7132_v28, %s8502_s21 }
 0x3d1   : > { %2829 = vrot.lane.b32.xlu1 %v7135_v30, %s8502_s21 }
 0x3d3   : > { %2849 = vrot.lane.b32.xlu0 %v7132_v28, %s8504_s7 }
 0x3d5   : > { %2851 = vrot.lane.b32.xlu1 %v7135_v30, %s8504_s7 }
 0x3d7   : > { %2881 = vrot.lane.b32.xlu0 %v7132_v28, %s8506_s22 }
 0x3d9   : > { %2883 = vrot.lane.b32.xlu1 %v7135_v30, %s8506_s22 }
 0x3db   : > { %2901 = vrot.lane.b32.xlu0 %v7132_v28, %s8507_s23 }
 0x3dd   : > { %2903 = vrot.lane.b32.xlu1 %v7135_v30, %s8507_s23 }
 0x3df   : > { %2923 = vrot.lane.b32.xlu0 %v7132_v28, %s8508_s16 }
 0x3e1   : > { %2925 = vrot.lane.b32.xlu1 %v7135_v30, %s8508_s16 }
 0x3e3   : > { %2943 = vrot.lane.b32.xlu0 %v7132_v28, %s8509_s14 }
 0x3e5   : > { %2945 = vrot.lane.b32.xlu1 %v7135_v30, %s8509_s14 }
 0x3e7   : > { %2965 = vrot.lane.b32.xlu0 %v7170_v59, %s8500_s13 }
 0x3e9   : > { %2967 = vrot.lane.b32.xlu1 %v7173_v48, %s8500_s13  ;;  %s7286_s13 = sld [smem:[#allocation15 + $0x40]] }
 0x3eb   : > { %2987 = vrot.lane.b32.xlu0 %v7170_v59, %s8501_s27 }
 0x3ed   : > { %2989 = vrot.lane.b32.xlu1 %v7173_v48, %s8501_s27  ;;  %s7300_s27 = sld [smem:[#allocation15 + $0x3]] }
 0x3ef   : > { %3007 = vrot.lane.b32.xlu0 %v7170_v59, %s8502_s21 }
 0x3f1   : > { %3009 = vrot.lane.b32.xlu1 %v7173_v48, %s8502_s21  ;;  %s7323_s21 = sld [smem:[#allocation15 + $0xb]] }
 0x3f3   : > { %3029 = vrot.lane.b32.xlu0 %v7170_v59, %s8504_s7 }
 0x3f5   : > { %3031 = vrot.lane.b32.xlu1 %v7173_v48, %s8504_s7  ;;  %s7355_s7 = sld [smem:[#allocation15 + $0x13]] }
 0x3f7   : > { %3061 = vrot.lane.b32.xlu0 %v7170_v59, %s8506_s22 }
 0x3f9   : > { %3063 = vrot.lane.b32.xlu1 %v7173_v48, %s8506_s22  ;;  %v2426_v14 = vpop.permute.xlu0 %2425  ;;  %s7365_s22 = sld [smem:[#allocation15 + $0x23]] }
 0x3fb   : > { %v2428_v60 = vpop.permute.xlu1 %2427  ;;  %3081 = vrot.lane.b32.xlu0 %v7170_v59, %s8507_s23 }
 0x3fc   : > { %v2429_v2 = vsel %vm474_vm1, %v2426_v14, %v2428_v60  ;;  %v2430_v17 = vsel %vm474_vm1, %v2428_v60, %v2426_v14 }
 0x3fd   : > { %v2431_v56 = vsel %vm458_vm0, 0.0, %v2430_v17  ;;  %v2434_v5 = vsel %vm4394_vm3, 0.0, %v2429_v2  ;;  %3083 = vrot.lane.b32.xlu1 %v7173_v48, %s8507_s23  ;;  %v2448_v41 = vpop.permute.xlu0 %2447  ;;  %s7369_s23 = sld [smem:[#allocation15 + $0x1a]] }
 0x3fe   : > { %v2433_v1 = vsel %vm4390_vm2, 0.0, %v2431_v56  ;;  %v2438_v21 = vmul.f32 %v2436_v43, %v2434_v5  ;;  %v2444_v0 = vmul.f32 %v2442_v54, %v2434_v5 }
 0x3ff   : > { %v2450_v55 = vpop.permute.xlu1 %2449  ;;  %v2437_v57 = vmul.f32 %v2436_v43, %v2433_v1  ;;  %3103 = vrot.lane.b32.xlu0 %v7170_v59, %s8508_s16  ;;  %v2443_v12 = vmul.f32 %v2442_v54, %v2433_v1 }
 0x400   : > { %v2452_v45 = vsel %vm458_vm0, %v2450_v55, %v2448_v41  ;;  %v2451_v47 = vsel %vm458_vm0, %v2448_v41, %v2450_v55  ;;  %v2440_v50 = vadd.f32 %v2438_v21, %v2422_v26  ;;  %v2446_v9 = vadd.f32 %v2444_v0, %v2424_v22 }
 0x401   : > { %v2453_v19 = vsel %vm458_vm0, 0.0, %v2452_v45  ;;  %3105 = vrot.lane.b32.xlu1 %v7173_v48, %s8508_s16  ;;  %v2468_v35 = vpop.permute.xlu0 %2467  ;;  %v2439_v6 = vadd.f32 %v2437_v57, %v2422_v26  ;;  %v2458_v8 = vmul.f32 %v2456_v20, %v2451_v47  ;;  %v2445_v52 = vadd.f32 %v2443_v12, %v2424_v22  ;;  %s7371_s16 = sld [smem:[#allocation15 + $0x1b]] }
 0x402   : > { %v2457_v40 = vmul.f32 %v2456_v20, %v2453_v19  ;;  %v2463_v34 = vmul.f32 %v2462_v61, %v2453_v19  ;;  %v2464_v32 = vmul.f32 %v2462_v61, %v2451_v47  ;;  %v2512_v0 = vmul.f32 %v2510_v42, %v7044_v53 }
 0x403   : > { %v2470_v15 = vpop.permute.xlu1 %2469  ;;  %3123 = vrot.lane.b32.xlu0 %v7170_v59, %s8509_s14  ;;  %v2460_v62 = vadd.f32 %v2458_v8, %v2440_v50  ;;  %v2517_v61 = vmul.f32 %v2516_v16, %v7038_v24  ;;  %v2552_v24 = vstv %s7274_s10  ;;  %s7496_s10 = sld [smem:[#allocation15 + $0x15]] }
 0x404   : > { %v2471_v7 = vsel %vm517_vm4, %v2468_v35, %v2470_v15  ;;  %v2472_v23 = vsel %vm517_vm4, %v2470_v15, %v2468_v35  ;;  %v2459_v51 = vadd.f32 %v2457_v40, %v2439_v6  ;;  %v2465_v60 = vadd.f32 %v2463_v34, %v2445_v52 }
 0x405   : > { %v2476_v49 = vsel %vm4431_vm5, 0.0, %v2471_v7  ;;  %3125 = vrot.lane.b32.xlu1 %v7173_v48, %s8509_s14  ;;  %v2473_v44 = vsel %vm458_vm0, 0.0, %v2472_v23  ;;  %v2490_v38 = vpop.permute.xlu0 %2489  ;;  %v2466_v56 = vadd.f32 %v2464_v32, %v2446_v9  ;;  %v2518_v35 = vmul.f32 %v2516_v16, %v7044_v53  ;;  %s7397_s14 = sld [smem:[#allocation15 + $0x24]] }
 0x406   : > { %v2475_v25 = vsel %vm4435_vm6, 0.0, %v2473_v44  ;;  %v2480_v31 = vmul.f32 %v2478_v39, %v2476_v49  ;;  %v2486_v43 = vmul.f32 %v2484_v33, %v2476_v49  ;;  %v2536_v15 = vstv %s7268_s6  ;;  %s7494_s6 = sld [smem:[#allocation15 + $0x14]] }
 0x407   : > { %v2492_v46 = vpop.permute.xlu1 %2491  ;;  %v2479_v18 = vmul.f32 %v2478_v39, %v2475_v25  ;;  %v2485_v14 = vmul.f32 %v2484_v33, %v2475_v25  ;;  %v2530_v33 = vstv %s7266_s18  ;;  %v2558_v53 = vstv %s7276_s3  ;;  %s7490_s18 = sld [smem:[#allocation15 + $0xd]]  ;;  %s7509_s3 = sld [smem:[#allocation15 + $0x26]] }
 0x408   : > { %v2493_v2 = vsel %vm540_vm7, %v2490_v38, %v2492_v46  ;;  %v2494_v17 = vsel %vm540_vm7, %v2492_v46, %v2490_v38  ;;  %v2482_v21 = vadd.f32 %v2480_v31, %v2460_v62  ;;  %v2488_v22 = vadd.f32 %v2486_v43, %v2466_v56 }
 0x409   : > { %v2481_v5 = vadd.f32 %v2479_v18, %v2459_v51  ;;  %v2495_v54 = vsel %vm4390_vm2, 0.0, %v2494_v17  ;;  %v2496_v1 = vsel %vm4394_vm3, 0.0, %v2493_v2  ;;  %v2522_v41 = vpop.permute.xlu0 %2521  ;;  %v2487_v12 = vadd.f32 %v2485_v14, %v2465_v60 }
 0x40a   : > { %v2499_v55 = vmul.f32 %v2498_v13, %v2495_v54  ;;  %v2500_v26 = vmul.f32 %v2498_v13, %v2496_v1  ;;  %v2506_v57 = vmul.f32 %v2504_v36, %v2496_v1  ;;  %v2505_v20 = vmul.f32 %v2504_v36, %v2495_v54 }
 0x40b   : > { %v2524_v45 = vpop.permute.xlu1 %2523  ;;  %v2572_v52 = vstv %s7278_s26  ;;  %v2578_v34 = vstv %s7280_s4  ;;  %v2594_v9 = vstv %s7286_s13  ;;  %v2600_v32 = vstv %s7288_s20  ;;  %s7512_s26 = sld [smem:[#allocation15 + $0x1c]]  ;;  %s7514_s4 = sld [smem:[#allocation15 + $0x1d]] }
 0x40c   : > { %v2525_v47 = vsel %vm573_vm8, %v2522_v41, %v2524_v45  ;;  %v2526_v19 = vsel %vm573_vm8, %v2524_v45, %v2522_v41  ;;  %v2501_v39 = vadd.f32 %v2499_v55, %v2481_v5  ;;  %v2502_v50 = vadd.f32 %v2500_v26, %v2482_v21  ;;  %s7533_s13 = sld [smem:[#allocation15 + $0x2c]]  ;;  %s7535_s20 = sld [smem:[#allocation15 + $0x2d]] }
 0x40d   : > { %v2542_v13 = vpop.permute.xlu0 %2541  ;;  %v2508_v6 = vadd.f32 %v2506_v57, %v2488_v22  ;;  %v2527_v40 = vsel %vm4435_vm6, 0.0, %v2525_v47  ;;  %v2528_v42 = vsel %vm4431_vm5, 0.0, %v2526_v19  ;;  %v2507_v7 = vadd.f32 %v2505_v20, %v2487_v12 }
 0x40e   : > { %v2513_v44 = vadd.f32 %v2511_v37, %v2501_v39  ;;  %v2514_v38 = vadd.f32 %v2512_v0, %v2502_v50  ;;  %v2531_v36 = vmul.f32 %v2530_v33, %v2527_v40  ;;  %v2532_v25 = vmul.f32 %v2530_v33, %v2528_v42 }
 0x40f   : > { %v2544_v8 = vpop.permute.xlu1 %2543  ;;  %v2520_v46 = vadd.f32 %v2518_v35, %v2508_v6  ;;  %v2538_v16 = vmul.f32 %v2536_v15, %v2528_v42  ;;  %v2616_v18 = vstv %s7294_s5  ;;  %v2519_v14 = vadd.f32 %v2517_v61, %v2507_v7  ;;  %s7542_s5 = sld [smem:[#allocation15 + $0x34]] }
 0x410   : > { %v2545_v23 = vsel %vm594_vm9, %v2542_v13, %v2544_v8  ;;  %v2546_v49 = vsel %vm594_vm9, %v2544_v8, %v2542_v13  ;;  %v2622_v43 = vstv %s7300_s27  ;;  %v2537_v2 = vmul.f32 %v2536_v15, %v2527_v40  ;;  %s7544_s27 = sld [smem:[#allocation15 + $0x35]] }
 0x411   : > { %v2564_v31 = vpop.permute.xlu0 %2563  ;;  %v2548_v51 = vsel %vm461_vm10, 0.0, %v2546_v49  ;;  %v2549_v60 = vsel %vm4390_vm2, 0.0, %v2545_v23  ;;  %v2533_v54 = vadd.f32 %v2531_v36, %v2513_v44  ;;  %v2534_v1 = vadd.f32 %v2532_v25, %v2514_v38 }
 0x412   : > { %v2550_v37 = vsel %vm4394_vm3, 0.0, %v2548_v51  ;;  %v2636_v55 = vstv %s7307_s15  ;;  %v2540_v26 = vadd.f32 %v2538_v16, %v2520_v46  ;;  %v2553_v57 = vmul.f32 %v2552_v24, %v2549_v60  ;;  %s7546_s15 = sld [smem:[#allocation15 + $0x3c]] }
 0x413   : > { %v2566_v62 = vpop.permute.xlu1 %2565  ;;  %v2554_v17 = vmul.f32 %v2552_v24, %v2550_v37  ;;  %v2560_v56 = vmul.f32 %v2558_v53, %v2550_v37  ;;  %v2559_v45 = vmul.f32 %v2558_v53, %v2549_v60  ;;  %v2539_v61 = vadd.f32 %v2537_v2, %v2519_v14 }
 0x414   : > { %v2568_v5 = vsel %vm617_vm11, %v2566_v62, %v2564_v31  ;;  %v2567_v12 = vsel %vm617_vm11, %v2564_v31, %v2566_v62  ;;  %v2642_v40 = vstv %s7323_s21  ;;  %v2555_v42 = vadd.f32 %v2553_v57, %v2533_v54  ;;  %s7548_s21 = sld [smem:[#allocation15 + $0x3d]] }
 0x415   : > { %v2570_v41 = vsel %vm461_vm10, 0.0, %v2568_v5  ;;  %v2584_v21 = vpop.permute.xlu0 %2583  ;;  %v2556_v47 = vadd.f32 %v2554_v17, %v2534_v1  ;;  %v2562_v35 = vadd.f32 %v2560_v56, %v2540_v26  ;;  %v2573_v33 = vmul.f32 %v2572_v52, %v2567_v12 }
 0x416   : > { %v2574_v19 = vmul.f32 %v2572_v52, %v2570_v41  ;;  %v2580_v39 = vmul.f32 %v2578_v34, %v2570_v41  ;;  %v2561_v24 = vadd.f32 %v2559_v45, %v2539_v61  ;;  %v2579_v49 = vmul.f32 %v2578_v34, %v2567_v12 }
 0x417   : > { %v2586_v20 = vpop.permute.xlu1 %2585  ;;  %v2575_v14 = vadd.f32 %v2573_v33, %v2555_v42  ;;  %v2690_v41 = vstv %s7346_s25  ;;  %v2658_v57 = vstv %s7353_s24  ;;  %v2664_v45 = vstv %s7355_s7  ;;  %s7554_s25 = sld [smem:[#allocation15 + $0x44]]  ;;  %s7556_s24 = sld [smem:[#allocation15 + $0x45]] }
 0x418   : > { %v2587_v22 = vsel %vm638_vm12, %v2584_v21, %v2586_v20  ;;  %v2588_v0 = vsel %vm638_vm12, %v2586_v20, %v2584_v21  ;;  %v2576_v23 = vadd.f32 %v2574_v19, %v2556_v47  ;;  %v2582_v38 = vadd.f32 %v2580_v39, %v2562_v35  ;;  %s7562_s7 = sld [smem:[#allocation15 + $0x6]] }
 0x419   : > { %v2590_v50 = vsel %vm461_vm10, 0.0, %v2588_v0  ;;  %v2591_v15 = vsel %vm4435_vm6, 0.0, %v2587_v22  ;;  %v2606_v6 = vpop.permute.xlu0 %2605  ;;  %v2581_v17 = vadd.f32 %v2579_v49, %v2561_v24  ;;  %v2692_v33 = vmul.f32 %v2690_v41, %v7097_v63 }
 0x41a   : > { %v2592_v13 = vsel %vm4431_vm5, 0.0, %v2590_v50  ;;  %v2595_v36 = vmul.f32 %v2594_v9, %v2591_v15  ;;  %v2601_v16 = vmul.f32 %v2600_v32, %v2591_v15  ;;  %v2696_v15 = vstv %s7365_s22  ;;  %s7568_s22 = sld [smem:[#allocation15 + $0x7]] }
 0x41b   : > { %v2596_v8 = vmul.f32 %v2594_v9, %v2592_v13  ;;  %v2602_v7 = vmul.f32 %v2600_v32, %v2592_v13  ;;  %v2608_v53 = vpop.permute.xlu1 %2607  ;;  %v2678_v24 = vstv %s7369_s23  ;;  %s7583_s23 = sld [smem:[#allocation15 + $0xe]] }
 0x41c   : > { %v2609_v52 = vsel %vm474_vm1, %v2606_v6, %v2608_v53  ;;  %v2610_v44 = vsel %vm474_vm1, %v2608_v53, %v2606_v6  ;;  %v2597_v54 = vadd.f32 %v2595_v36, %v2575_v14  ;;  %v2684_v53 = vstv %s7371_s16  ;;  %s7600_s16 = sld [smem:[#allocation15 + $0xf]] }
 0x41d   : > { %v2611_v25 = vsel %vm458_vm0, 0.0, %v2610_v44  ;;  %v2614_v31 = vsel %vm4394_vm3, 0.0, %v2609_v52  ;;  %v2598_v46 = vadd.f32 %v2596_v8, %v2576_v23  ;;  %v2628_v62 = vpop.permute.xlu0 %2627  ;;  %v2604_v9 = vadd.f32 %v2602_v7, %v2582_v38 }
 0x41e   : > { %v2613_v34 = vsel %vm4390_vm2, 0.0, %v2611_v25  ;;  %v2618_v51 = vmul.f32 %v2616_v18, %v2614_v31  ;;  %v2624_v37 = vmul.f32 %v2622_v43, %v2614_v31 }
 0x41f   : > { %v2617_v60 = vmul.f32 %v2616_v18, %v2613_v34  ;;  %v2630_v2 = vpop.permute.xlu1 %2629  ;;  %v2623_v32 = vmul.f32 %v2622_v43, %v2613_v34  ;;  %v2603_v18 = vadd.f32 %v2601_v16, %v2581_v17 }
 0x420   : > { %v2631_v56 = vsel %vm458_vm0, %v2628_v62, %v2630_v2  ;;  %v2632_v5 = vsel %vm458_vm0, %v2630_v2, %v2628_v62  ;;  %v2620_v21 = vadd.f32 %v2618_v51, %v2598_v46  ;;  %v2626_v43 = vadd.f32 %v2624_v37, %v2604_v9 }
 0x421   : > { %v2633_v1 = vsel %vm458_vm0, 0.0, %v2632_v5  ;;  %v2648_v26 = vpop.permute.xlu0 %2647  ;;  %v2619_v12 = vadd.f32 %v2617_v60, %v2597_v54  ;;  %v2638_v20 = vmul.f32 %v2636_v55, %v2631_v56  ;;  %v2644_v47 = vmul.f32 %v2642_v40, %v2631_v56 }
 0x422   : > { %v2625_v22 = vadd.f32 %v2623_v32, %v2603_v18  ;;  %v2637_v0 = vmul.f32 %v2636_v55, %v2633_v1  ;;  %v2643_v61 = vmul.f32 %v2642_v40, %v2633_v1  ;;  %v2698_v32 = vmul.f32 %v2696_v15, %v7097_v63 }
 0x423   : > { %v2650_v19 = vpop.permute.xlu1 %2649  ;;  %v2640_v40 = vadd.f32 %v2638_v20, %v2620_v21  ;;  %v2646_v8 = vadd.f32 %v2644_v47, %v2626_v43  ;;  %v2691_v56 = vmul.f32 %v2690_v41, %v7095_v58  ;;  %v2697_v5 = vmul.f32 %v2696_v15, %v7095_v58 }
 0x424   : > { %v2651_v35 = vsel %vm517_vm4, %v2648_v26, %v2650_v19  ;;  %v2652_v39 = vsel %vm517_vm4, %v2650_v19, %v2648_v26  ;;  %v2639_v49 = vadd.f32 %v2637_v0, %v2619_v12  ;;  %v2645_v52 = vadd.f32 %v2643_v61, %v2625_v22 }
 0x425   : > { %v2656_v50 = vsel %vm4431_vm5, 0.0, %v2651_v35  ;;  %v2653_v13 = vsel %vm458_vm0, 0.0, %v2652_v39  ;;  %v2670_v55 = vpop.permute.xlu0 %2669  ;;  %v2870_v58 = vstv %s7397_s14  ;;  %v2710_v47 = vstv %s7402_s0  ;;  %s7624_s14 = sld [smem:[#allocation15 + $0x27]]  ;;  %s7631_s0 = sld [smem:[#allocation15 + $0x16]] }
 0x426   : > { %v2660_v6 = vmul.f32 %v2658_v57, %v2656_v50  ;;  %v2666_v42 = vmul.f32 %v2664_v45, %v2656_v50  ;;  %v2655_v7 = vsel %vm4435_vm6, 0.0, %v2653_v13  ;;  %v2876_v22 = vstv %s7404_s2  ;;  %s7633_s2 = sld [smem:[#allocation15 + $0x17]] }
 0x427   : > { %v2672_v23 = vpop.permute.xlu1 %2671  ;;  %v2659_v44 = vmul.f32 %v2658_v57, %v2655_v7  ;;  %v2665_v38 = vmul.f32 %v2664_v45, %v2655_v7  ;;  %v2716_v39 = vstv %s7414_s17  ;;  %v2732_v50 = vstv %s7416_s9  ;;  %s7645_s17 = sld [smem:[#allocation15 + $0x1e]]  ;;  %s7647_s9 = sld [smem:[#allocation15 + $0x1f]] }
 0x428   : > { %v2662_v36 = vadd.f32 %v2660_v6, %v2640_v40  ;;  %v2668_v25 = vadd.f32 %v2666_v42, %v2646_v8  ;;  %v2673_v31 = vsel %vm540_vm7, %v2670_v55, %v2672_v23  ;;  %v2674_v46 = vsel %vm540_vm7, %v2672_v23, %v2670_v55 }
 0x429   : > { %v2661_v16 = vadd.f32 %v2659_v44, %v2639_v49  ;;  %v2667_v34 = vadd.f32 %v2665_v38, %v2645_v52  ;;  %v2675_v51 = vsel %vm4390_vm2, 0.0, %v2674_v46  ;;  %v2676_v62 = vsel %vm4394_vm3, 0.0, %v2673_v31  ;;  %v2702_v14 = vpop.permute.xlu0 %2701 }
 0x42a   : > { %v2679_v9 = vmul.f32 %v2678_v24, %v2675_v51  ;;  %v2680_v60 = vmul.f32 %v2678_v24, %v2676_v62  ;;  %v2685_v37 = vmul.f32 %v2684_v53, %v2675_v51  ;;  %v2686_v2 = vmul.f32 %v2684_v53, %v2676_v62 }
 0x42b   : > { %v2704_v17 = vpop.permute.xlu1 %2703  ;;  %v7453_v15 = vmul.f32 %v2870_v58, %v7135_v30  ;;  %v2738_v6 = vstv %s7418_s12  ;;  %v7461_v24 = vmul.f32 %v2876_v22, %v7135_v30  ;;  %v2752_v53 = vstv %s7425_s29  ;;  %s7669_s12 = sld [smem:[#allocation15 + $0x2e]]  ;;  %s7671_s29 = sld [smem:[#allocation15 + $0x2f]] }
 0x42c   : > { %v2706_v54 = vsel %vm573_vm8, %v2704_v17, %v2702_v14  ;;  %v2681_v1 = vadd.f32 %v2679_v9, %v2661_v16  ;;  %v2682_v18 = vadd.f32 %v2680_v60, %v2662_v36  ;;  %v2687_v21 = vadd.f32 %v2685_v37, %v2667_v34 }
 0x42d   : > { %v2688_v26 = vadd.f32 %v2686_v2, %v2668_v25  ;;  %v2705_v63 = vsel %vm573_vm8, %v2702_v14, %v2704_v17  ;;  %v2722_v41 = vpop.permute.xlu0 %2721  ;;  %v2708_v19 = vsel %vm4431_vm5, 0.0, %v2706_v54  ;;  %v2758_v52 = vstv %s7427_s19  ;;  %s7682_s19 = sld [smem:[#allocation15 + $0x36]] }
 0x42e   : > { %v2693_v57 = vadd.f32 %v2691_v56, %v2681_v1  ;;  %v2694_v45 = vadd.f32 %v2692_v33, %v2682_v18  ;;  %v2699_v12 = vadd.f32 %v2697_v5, %v2687_v21  ;;  %v2707_v0 = vsel %vm4435_vm6, 0.0, %v2705_v63 }
 0x42f   : > { %v2700_v43 = vadd.f32 %v2698_v32, %v2688_v26  ;;  %v2724_v20 = vpop.permute.xlu1 %2723  ;;  %v2712_v13 = vmul.f32 %v2710_v47, %v2708_v19  ;;  %v2711_v40 = vmul.f32 %v2710_v47, %v2707_v0  ;;  %v2717_v23 = vmul.f32 %v2716_v39, %v2707_v0 }
 0x430   : > { %v2725_v61 = vsel %vm594_vm9, %v2722_v41, %v2724_v20  ;;  %v2726_v35 = vsel %vm594_vm9, %v2724_v20, %v2722_v41  ;;  %v2718_v38 = vmul.f32 %v2716_v39, %v2708_v19  ;;  %v2774_v25 = vstv %s7431_s1  ;;  %s7684_s1 = sld [smem:[#allocation15 + $0x37]] }
 0x431   : > { %v2744_v33 = vpop.permute.xlu0 %2743  ;;  %v2728_v42 = vsel %vm461_vm10, 0.0, %v2726_v35  ;;  %v2729_v8 = vsel %vm4390_vm2, 0.0, %v2725_v61  ;;  %v2780_v31 = vstv %s7433_s30  ;;  %v2714_v46 = vadd.f32 %v2712_v13, %v2694_v45  ;;  %s7693_s30 = sld [smem:[#allocation15 + $0x3e]] }
 0x432   : > { %v2730_v7 = vsel %vm4394_vm3, 0.0, %v2728_v42  ;;  %v2733_v16 = vmul.f32 %v2732_v50, %v2729_v8  ;;  %v2739_v34 = vmul.f32 %v2738_v6, %v2729_v8  ;;  %v2713_v14 = vadd.f32 %v2711_v40, %v2693_v57 }
 0x433   : > { %v2746_v55 = vpop.permute.xlu1 %2745  ;;  %v2734_v49 = vmul.f32 %v2732_v50, %v2730_v7  ;;  %v2740_v9 = vmul.f32 %v2738_v6, %v2730_v7  ;;  %v2719_v2 = vadd.f32 %v2717_v23, %v2699_v12  ;;  %v2720_v5 = vadd.f32 %v2718_v38, %v2700_v43 }
 0x434   : > { %v2748_v44 = vsel %vm617_vm11, %v2746_v55, %v2744_v33  ;;  %v2747_v51 = vsel %vm617_vm11, %v2744_v33, %v2746_v55  ;;  %v2796_v21 = vstv %s7448_s8  ;;  %v2735_v26 = vadd.f32 %v2733_v16, %v2713_v14  ;;  %s7695_s8 = sld [smem:[#allocation15 + $0x3f]] }
 0x435   : > { %v2750_v36 = vsel %vm461_vm10, 0.0, %v2748_v44  ;;  %v2764_v30 = vpop.permute.xlu0 %2763  ;;  %v2736_v17 = vadd.f32 %v2734_v49, %v2714_v46  ;;  %v2753_v54 = vmul.f32 %v2752_v53, %v2747_v51  ;;  %v2741_v63 = vadd.f32 %v2739_v34, %v2719_v2 }
 0x436   : > { %v2754_v32 = vmul.f32 %v2752_v53, %v2750_v36  ;;  %v2742_v12 = vadd.f32 %v2740_v9, %v2720_v5  ;;  %v2760_v43 = vmul.f32 %v2758_v52, %v2750_v36  ;;  %v2759_v0 = vmul.f32 %v2758_v52, %v2747_v51 }
 0x437   : > { %v2766_v62 = vpop.permute.xlu1 %2765  ;;  %v2802_v33 = vstv %s7475_s11  ;;  %v2816_v8 = vstv %s7479_s28  ;;  %v2755_v53 = vadd.f32 %v2753_v54, %v2735_v26  ;;  %v2822_v16 = vstv %s7490_s18  ;;  %s7701_s11 = sld [smem:[#allocation15 + $0x46]]  ;;  %s7703_s28 = sld [smem:[#allocation15 + $0x47]] }
 0x438   : > { %v2767_v60 = vsel %vm638_vm12, %v2764_v30, %v2766_v62  ;;  %v2768_v37 = vsel %vm638_vm12, %v2766_v62, %v2764_v30  ;;  %v2756_v19 = vadd.f32 %v2754_v32, %v2736_v17  ;;  %v2762_v23 = vadd.f32 %v2760_v43, %v2742_v12  ;;  %s8510_s18 = sld [smem:[#allocation35_spill]] }
 0x439   : > { %v2770_v56 = vsel %vm461_vm10, 0.0, %v2768_v37  ;;  %v2786_v18 = vpop.permute.xlu0 %2785  ;;  %v2771_v41 = vsel %vm4435_vm6, 0.0, %v2767_v60  ;;  %v2761_v44 = vadd.f32 %v2759_v0, %v2741_v63  ;;  %v2838_v14 = vstv %s7494_s6  ;;  %s8511_s6 = sld [smem:[#allocation30_spill]] }
 0x43a   : > { %v2772_v1 = vsel %vm4431_vm5, 0.0, %v2770_v56  ;;  %v2775_v39 = vmul.f32 %v2774_v25, %v2771_v41  ;;  %v2781_v55 = vmul.f32 %v2780_v31, %v2771_v41  ;;  %v2844_v9 = vstv %s7496_s10 }
 0x43b   : > { %v2776_v57 = vmul.f32 %v2774_v25, %v2772_v1  ;;  %v2788_v45 = vpop.permute.xlu1 %2787  ;;  %v2782_v50 = vmul.f32 %v2780_v31, %v2772_v1  ;;  %v3050_v41 = vstv %s7509_s3  ;;  %v2858_v12 = vstv %s7512_s26  ;;  %s8512_s26 = sld [smem:[#allocation33_spill]] }
 0x43c   : > { %v2789_v20 = vsel %vm474_vm1, %v2786_v18, %v2788_v45  ;;  %v2790_v47 = vsel %vm474_vm1, %v2788_v45, %v2786_v18  ;;  %v2777_v25 = vadd.f32 %v2775_v39, %v2755_v53  ;;  %v2783_v51 = vadd.f32 %v2781_v55, %v2761_v44 }
 0x43d   : > { %v2791_v61 = vsel %vm458_vm0, 0.0, %v2790_v47  ;;  %v2794_v35 = vsel %vm4394_vm3, 0.0, %v2789_v20  ;;  %v2808_v6 = vpop.permute.xlu0 %2807  ;;  %v2778_v42 = vadd.f32 %v2776_v57, %v2756_v19  ;;  %v2784_v31 = vadd.f32 %v2782_v50, %v2762_v23 }
 0x43e   : > { %v2793_v13 = vsel %vm4390_vm2, 0.0, %v2791_v61  ;;  %v2798_v40 = vmul.f32 %v2796_v21, %v2794_v35  ;;  %v2804_v46 = vmul.f32 %v2802_v33, %v2794_v35  ;;  %v2864_v43 = vstv %s7514_s4  ;;  %s3351_s10 = sshll.u32 %s8510_s18, 5 }
 0x43f   : > { %v2810_v7 = vpop.permute.xlu1 %2809  ;;  %v2797_v49 = vmul.f32 %v2796_v21, %v2793_v13  ;;  %v2803_v38 = vmul.f32 %v2802_v33, %v2793_v13  ;;  %s3668_s3 = sshll.u32 %s8511_s6, 9  ;;  %s450_s4 = scalar_lea.vmem [#allocation18], %s3351_s10 }
 0x440   : > { %v2812_v52 = vsel %vm458_vm0, %v2810_v7, %v2808_v6  ;;  %v2811_v36 = vsel %vm458_vm0, %v2808_v6, %v2810_v7  ;;  %v2800_v62 = vadd.f32 %v2798_v40, %v2778_v42  ;;  %v2806_v18 = vadd.f32 %v2804_v46, %v2784_v31 }
 0x441   : > { %v2813_v30 = vsel %vm458_vm0, 0.0, %v2812_v52  ;;  %v2828_v34 = vpop.permute.xlu0 %2827  ;;  %v2799_v37 = vadd.f32 %v2797_v49, %v2777_v25  ;;  %v2818_v17 = vmul.f32 %v2816_v8, %v2811_v36  ;;  %v2805_v56 = vadd.f32 %v2803_v38, %v2783_v51  ;;  %p8514_p5 = scmp.ne.s32.totalorder %s8512_s26, 0 }
 0x442   : > { %v2817_v2 = vmul.f32 %v2816_v8, %v2813_v30  ;;  %v2823_v5 = vmul.f32 %v2822_v16, %v2813_v30  ;;  %v2824_v21 = vmul.f32 %v2822_v16, %v2811_v36  ;;  %v2871_v25 = vmul.f32 %v2870_v58, %v7132_v28 }
 0x443   : > { %v2830_v60 = vpop.permute.xlu1 %2829  ;;  %v2820_v19 = vadd.f32 %v2818_v17, %v2800_v62  ;;  %v2877_v31 = vmul.f32 %v2876_v22, %v7132_v28  ;;  %v7579_v46 = vmul.f32 %v3050_v41, %v7173_v48  ;;  %v2890_v51 = vstv %s7533_s13  ;;  %s3178_s13 = sshll.u32 %s450_s4, 4  ;;  %s7756_s13 = int_to_ptr.vmem [resolvable:$true] %s3178_s13 }
 0x444   : > { %v2831_v32 = vsel %vm517_vm4, %v2828_v34, %v2830_v60  ;;  %v2832_v54 = vsel %vm517_vm4, %v2830_v60, %v2828_v34  ;;  %v2819_v47 = vadd.f32 %v2817_v2, %v2799_v37  ;;  %v2825_v35 = vadd.f32 %v2823_v5, %v2805_v56 }
 0x445   : > { %v2836_v1 = vsel %vm4431_vm5, 0.0, %v2831_v32  ;;  %v2833_v26 = vsel %vm458_vm0, 0.0, %v2832_v54  ;;  %v2850_v63 = vpop.permute.xlu0 %2849  ;;  %v2826_v13 = vadd.f32 %v2824_v21, %v2806_v18  ;;  %v2896_v62 = vstv %s7535_s20 }
 0x446   : > { %v2835_v57 = vsel %vm4435_vm6, 0.0, %v2833_v26  ;;  %v2840_v45 = vmul.f32 %v2838_v14, %v2836_v1  ;;  %v2846_v39 = vmul.f32 %v2844_v9, %v2836_v1  ;;  %v2912_v22 = vstv %s7542_s5 }
 0x447   : > { %v2852_v20 = vpop.permute.xlu1 %2851  ;;  %v2839_v0 = vmul.f32 %v2838_v14, %v2835_v57  ;;  %v2845_v61 = vmul.f32 %v2844_v9, %v2835_v57  ;;  %v2918_v2 = vstv %s7544_s27  ;;  %v2932_v17 = vstv %s7546_s15  ;;  %s8513_s27 = sld [smem:[#allocation99_spill]] }
 0x448   : > { %v2853_v50 = vsel %vm540_vm7, %v2850_v63, %v2852_v20  ;;  %v2854_v33 = vsel %vm540_vm7, %v2852_v20, %v2850_v63  ;;  %v2842_v8 = vadd.f32 %v2840_v45, %v2820_v19  ;;  %v2848_v30 = vadd.f32 %v2846_v39, %v2826_v13 }
 0x449   : > { %v2841_v6 = vadd.f32 %v2839_v0, %v2819_v47  ;;  %v2855_v42 = vsel %vm4390_vm2, 0.0, %v2854_v33  ;;  %v2856_v55 = vsel %vm4394_vm3, 0.0, %v2853_v50  ;;  %v2882_v40 = vpop.permute.xlu0 %2881  ;;  %v2847_v52 = vadd.f32 %v2845_v61, %v2825_v35 }
 0x44a   : > { %v2859_v7 = vmul.f32 %v2858_v12, %v2855_v42  ;;  %v2860_v53 = vmul.f32 %v2858_v12, %v2856_v55  ;;  %v2866_v23 = vmul.f32 %v2864_v43, %v2856_v55  ;;  %v2865_v44 = vmul.f32 %v2864_v43, %v2855_v42 }
 0x44b   : > { %v2884_v49 = vpop.permute.xlu1 %2883  ;;  %v2938_v32 = vstv %s7548_s21  ;;  %v2954_v54 = vstv %s7554_s25  ;;  %v2960_v1 = vstv %s7556_s24  ;;  %v2976_v47 = vstv %s7562_s7  ;;  %s3164_s21 = scalar_lea.sflag [#allocation4], %s8510_s18  ;;  %s3962_s25 = scalar_lea.vmem %s7756_s13, 512 }
 0x44c   : > { %v2885_v38 = vsel %vm573_vm8, %v2882_v40, %v2884_v49  ;;  %v2886_v36 = vsel %vm573_vm8, %v2884_v49, %v2882_v40  ;;  %v2861_v16 = vadd.f32 %v2859_v7, %v2841_v6  ;;  %v2862_v34 = vadd.f32 %v2860_v53, %v2842_v8  ;;  %p3963_p4 = scmp.ne.s32.totalorder %s7756_s13, %s3962_s25  ;;  %s4067_s24 = smov [#allocation18]  }
 0x44d   : > { %v2902_v14 = vpop.permute.xlu0 %2901  ;;  %v2868_v9 = vadd.f32 %v2866_v23, %v2848_v30  ;;  %v2887_v58 = vsel %vm4435_vm6, 0.0, %v2885_v38  ;;  %v2888_v28 = vsel %vm4431_vm5, 0.0, %v2886_v36  ;;  %v2867_v37 = vadd.f32 %v2865_v44, %v2847_v52  ;;  %s7754_s15 = scalar_lea.hbm %s8513_s27, %s3668_s3  ;;  %s3966_s7 = sshll.u32 %s4067_s24, 4  ;;  %s3967_s7 = int_to_ptr.vmem [resolvable:$false] %s3966_s7 }
 0x44e   : > { %v2873_v18 = vadd.f32 %v2871_v25, %v2861_v16  ;;  %v2874_v21 = vadd.f32 %v7453_v15, %v2862_v34  ;;  %v2891_v26 = vmul.f32 %v2890_v51, %v2887_v58  ;;  %v2892_v63 = vmul.f32 %v2890_v51, %v2888_v28  ;;  %p3964_p7 = pnand %p3963_p4, %p8514_p5  ;;  %p3969_p12 = scmp.lt.s32.totalorder %s7756_s13, %s3967_s7 }
 0x44f   : > { %v2904_v60 = vpop.permute.xlu1 %2903  ;;  %v2880_v45 = vadd.f32 %v7461_v24, %v2868_v9  ;;  %v2898_v12 = vmul.f32 %v2896_v62, %v2888_v28  ;;  %v2879_v19 = vadd.f32 %v2877_v31, %v2867_v37  ;;  %v2982_v61 = vstv %s7568_s22  ;;  %s3968_s22 = scalar_lea.vmem %s3967_s7, 1024 }
 0x450   : > { %v2905_v56 = vsel %vm594_vm9, %v2902_v14, %v2904_v60  ;;  %v2906_v5 = vsel %vm594_vm9, %v2904_v60, %v2902_v14  ;;  %v2897_v35 = vmul.f32 %v2896_v62, %v2887_v58  ;;  %v2893_v33 = vadd.f32 %v2891_v26, %v2873_v18  ;;  %p3965_p3 = pneg %p3964_p7  ;;  %p3970_p13 = scmp.lt.s32.totalorder %s3968_s22, %s3962_s25 }
 0x451   : > { %v2924_v57 = vpop.permute.xlu0 %2923  ;;  %v2908_v43 = vsel %vm461_vm10, 0.0, %v2906_v5  ;;  %v2909_v0 = vsel %vm4390_vm2, 0.0, %v2905_v56  ;;  %v2894_v13 = vadd.f32 %v2892_v63, %v2874_v21  ;;  %v2996_v55 = vstv %s7583_s23 }
 0x452   : > { %v2910_v15 = vsel %vm4394_vm3, 0.0, %v2908_v43  ;;  %v2900_v40 = vadd.f32 %v2898_v12, %v2880_v45  ;;  %v2913_v8 = vmul.f32 %v2912_v22, %v2909_v0  ;;  %v2919_v7 = vmul.f32 %v2918_v2, %v2909_v0  ;;  %p3971_p0 = por %p3970_p13, %p3969_p12 }
 0x453   : > { %v2926_v20 = vpop.permute.xlu1 %2925  ;;  %v2914_v39 = vmul.f32 %v2912_v22, %v2910_v15  ;;  %v2920_v50 = vmul.f32 %v2918_v2, %v2910_v15  ;;  %v2899_v36 = vadd.f32 %v2897_v35, %v2879_v19  ;;  %v3002_v14 = vstv %s7600_s16 }
 0x454   : > { %v2928_v24 = vsel %vm617_vm11, %v2926_v20, %v2924_v57  ;;  %v2927_v53 = vsel %vm617_vm11, %v2924_v57, %v2926_v20  ;;  %v2915_v9 = vadd.f32 %v2913_v8, %v2893_v33  ;;  %v7659_v33 = vmul.f32 %v3050_v41, %v7170_v59  ;;  %p3972_p8 = pnand %p3971_p0, %p3965_p3 }
 0x455   : > { %v2930_v6 = vsel %vm461_vm10, 0.0, %v2928_v24  ;;  %v2944_v42 = vpop.permute.xlu0 %2943  ;;  %v2916_v49 = vadd.f32 %v2914_v39, %v2894_v13  ;;  %v2922_v30 = vadd.f32 %v2920_v50, %v2900_v40  ;;  %v2933_v16 = vmul.f32 %v2932_v17, %v2927_v53 }
 0x456   : > { %v2934_v52 = vmul.f32 %v2932_v17, %v2930_v6  ;;  %v2940_v25 = vmul.f32 %v2938_v32, %v2930_v6  ;;  %v2921_v58 = vadd.f32 %v2919_v7, %v2899_v36  ;;  %v2939_v2 = vmul.f32 %v2938_v32, %v2927_v53 }
 0x457   : > { %v2946_v23 = vpop.permute.xlu1 %2945  ;;  %v2935_v43 = vadd.f32 %v2933_v16, %v2915_v9  ;;  %v3024_v40 = vstv %s7633_s2 }
 0x458   : > { %v2947_v44 = vsel %vm638_vm12, %v2944_v42, %v2946_v23  ;;  %v2948_v38 = vsel %vm638_vm12, %v2946_v23, %v2944_v42  ;;  %v2936_v37 = vadd.f32 %v2934_v52, %v2916_v49  ;;  %v2942_v5 = vadd.f32 %v2940_v25, %v2922_v30 }
 0x459   : > { %v2950_v31 = vsel %vm461_vm10, 0.0, %v2948_v38  ;;  %v2951_v34 = vsel %vm4435_vm6, 0.0, %v2947_v44  ;;  %v2966_v62 = vpop.permute.xlu0 %2965 }
 0x45a   : > { %v2952_v51 = vsel %vm4431_vm5, 0.0, %v2950_v31  ;;  %v2955_v18 = vmul.f32 %v2954_v54, %v2951_v34  ;;  %v2961_v57 = vmul.f32 %v2960_v1, %v2951_v34 }
 0x45b   : > { %v2956_v28 = vmul.f32 %v2954_v54, %v2952_v51  ;;  %v2962_v22 = vmul.f32 %v2960_v1, %v2952_v51  ;;  %v2968_v60 = vpop.permute.xlu1 %2967  ;;  %v2941_v1 = vadd.f32 %v2939_v2, %v2921_v58 }
 0x45c   : > { %v2969_v17 = vsel %vm474_vm1, %v2966_v62, %v2968_v60  ;;  %v2970_v56 = vsel %vm474_vm1, %v2968_v60, %v2966_v62  ;;  %v2957_v50 = vadd.f32 %v2955_v18, %v2935_v43  ;;  %v3038_v62 = vstv %s7645_s17 }
 0x45d   : > { %v2971_v21 = vsel %vm458_vm0, 0.0, %v2970_v56  ;;  %v2974_v26 = vsel %vm4394_vm3, 0.0, %v2969_v17  ;;  %v2958_v63 = vadd.f32 %v2956_v28, %v2936_v37  ;;  %v2988_v12 = vpop.permute.xlu0 %2987  ;;  %v2964_v20 = vadd.f32 %v2962_v22, %v2942_v5 }
 0x45e   : > { %v2973_v45 = vsel %vm4390_vm2, 0.0, %v2971_v21  ;;  %v2978_v32 = vmul.f32 %v2976_v47, %v2974_v26  ;;  %v2984_v19 = vmul.f32 %v2982_v61, %v2974_v26  ;;  %v2963_v13 = vadd.f32 %v2961_v57, %v2941_v1 }
 0x45f   : > { %v2977_v54 = vmul.f32 %v2976_v47, %v2973_v45  ;;  %v2990_v0 = vpop.permute.xlu1 %2989  ;;  %v2983_v15 = vmul.f32 %v2982_v61, %v2973_v45  ;;  %v3056_v47 = vstv %s7624_s14  ;;  %v3018_v61 = vstv %s7631_s0 }
 0x460   : > { %v2991_v35 = vsel %vm458_vm0, %v2988_v12, %v2990_v0  ;;  %v2992_v39 = vsel %vm458_vm0, %v2990_v0, %v2988_v12  ;;  %v2980_v6 = vadd.f32 %v2978_v32, %v2958_v63  ;;  %v2986_v7 = vadd.f32 %v2984_v19, %v2964_v20 }
 0x461   : > { %v2993_v24 = vsel %vm458_vm0, 0.0, %v2992_v39  ;;  %v3008_v42 = vpop.permute.xlu0 %3007  ;;  %v2979_v8 = vadd.f32 %v2977_v54, %v2957_v50  ;;  %v2998_v53 = vmul.f32 %v2996_v55, %v2991_v35  ;;  %v3004_v23 = vmul.f32 %v3002_v14, %v2991_v35 }
 0x462   : > { %v2985_v52 = vadd.f32 %v2983_v15, %v2963_v13  ;;  %v2997_v44 = vmul.f32 %v2996_v55, %v2993_v24  ;;  %v3003_v38 = vmul.f32 %v3002_v14, %v2993_v24  ;;  %v3058_v25 = vmul.f32 %v3056_v47, %v7173_v48 }
 0x463   : > { %v3010_v49 = vpop.permute.xlu1 %3009  ;;  %v3057_v31 = vmul.f32 %v3056_v47, %v7170_v59  ;;  %v3000_v14 = vadd.f32 %v2998_v53, %v2980_v6  ;;  %v3006_v9 = vadd.f32 %v3004_v23, %v2986_v7  ;;  %v3044_v28 = vstv %s7647_s9 }
 0x464   : > { %v3011_v41 = vsel %vm517_vm4, %v3008_v42, %v3010_v49  ;;  %v3012_v36 = vsel %vm517_vm4, %v3010_v49, %v3008_v42  ;;  %v2999_v22 = vadd.f32 %v2997_v44, %v2979_v8  ;;  %v3005_v59 = vadd.f32 %v3003_v38, %v2985_v52 }
 0x465   : > { %v3016_v30 = vsel %vm4431_vm5, 0.0, %v3011_v41  ;;  %v3013_v55 = vsel %vm458_vm0, 0.0, %v3012_v36  ;;  %v3030_v51 = vpop.permute.xlu0 %3029  ;;  %v3070_v54 = vstv %s7669_s12  ;;  %v3076_v19 = vstv %s7671_s29 }
 0x466   : > { %v3020_v16 = vmul.f32 %v3018_v61, %v3016_v30  ;;  %v3026_v34 = vmul.f32 %v3024_v40, %v3016_v30  ;;  %v3015_v58 = vsel %vm4435_vm6, 0.0, %v3013_v55  ;;  %v3092_v6 = vstv %s7682_s19 }
 0x467   : > { %v3032_v48 = vpop.permute.xlu1 %3031  ;;  %v3019_v60 = vmul.f32 %v3018_v61, %v3015_v58  ;;  %v3025_v37 = vmul.f32 %v3024_v40, %v3015_v58  ;;  %v3098_v42 = vstv %s7684_s1  ;;  %v3112_v36 = vstv %s7693_s30 }
 0x468   : > { %v3022_v2 = vadd.f32 %v3020_v16, %v3000_v14  ;;  %v3028_v17 = vadd.f32 %v3026_v34, %v3006_v9  ;;  %v3033_v56 = vsel %vm540_vm7, %v3030_v51, %v3032_v48  ;;  %v3034_v5 = vsel %vm540_vm7, %v3032_v48, %v3030_v51 }
 0x469   : > { %v3021_v18 = vadd.f32 %v3019_v60, %v2999_v22  ;;  %v3027_v21 = vadd.f32 %v3025_v37, %v3005_v59  ;;  %v3035_v26 = vsel %vm4390_vm2, 0.0, %v3034_v5  ;;  %v3036_v63 = vsel %vm4394_vm3, 0.0, %v3033_v56  ;;  %v3062_v57 = vpop.permute.xlu0 %3061 }
 0x46a   : > { %v3039_v45 = vmul.f32 %v3038_v62, %v3035_v26  ;;  %v3040_v32 = vmul.f32 %v3038_v62, %v3036_v63  ;;  %v3045_v12 = vmul.f32 %v3044_v28, %v3035_v26  ;;  %v3046_v43 = vmul.f32 %v3044_v28, %v3036_v63 }
 0x46b   : > { %v3064_v20 = vpop.permute.xlu1 %3063  ;;  %v3118_v30 = vstv %s7695_s8  ;;  %v3140_v34 = vstv %s7703_s28 }
 0x46c   : > { %v3065_v0 = vsel %vm573_vm8, %v3062_v57, %v3064_v20  ;;  %v3066_v1 = vsel %vm573_vm8, %v3064_v20, %v3062_v57  ;;  %v3041_v15 = vadd.f32 %v3039_v45, %v3021_v18  ;;  %v3042_v35 = vadd.f32 %v3040_v32, %v3022_v2 }
 0x46d   : > { %v3047_v39 = vadd.f32 %v3045_v12, %v3027_v21  ;;  %v3048_v50 = vadd.f32 %v3046_v43, %v3028_v17  ;;  %v3067_v24 = vsel %vm4435_vm6, 0.0, %v3065_v0  ;;  %v3068_v47 = vsel %vm4431_vm5, 0.0, %v3066_v1  ;;  %v3082_v13 = vpop.permute.xlu0 %3081 }
 0x46e   : > { %v3053_v61 = vadd.f32 %v7659_v33, %v3041_v15  ;;  %v3054_v40 = vadd.f32 %v7579_v46, %v3042_v35  ;;  %v3071_v23 = vmul.f32 %v3070_v54, %v3067_v24  ;;  %v3072_v49 = vmul.f32 %v3070_v54, %v3068_v47 }
 0x46f   : > { %v3059_v8 = vadd.f32 %v3057_v31, %v3047_v39  ;;  %v3060_v7 = vadd.f32 %v3058_v25, %v3048_v50  ;;  %v3084_v53 = vpop.permute.xlu1 %3083  ;;  %v3077_v52 = vmul.f32 %v3076_v19, %v3067_v24  ;;  %v3078_v44 = vmul.f32 %v3076_v19, %v3068_v47 }
 0x470   : > { %v3085_v38 = vsel %vm594_vm9, %v3082_v13, %v3084_v53  ;;  %v3086_v41 = vsel %vm594_vm9, %v3084_v53, %v3082_v13  ;;  %v3073_v33 = vadd.f32 %v3071_v23, %v3053_v61  ;;  %v3074_v55 = vadd.f32 %v3072_v49, %v3054_v40 }
 0x471   : > { %v3104_v16 = vpop.permute.xlu0 %3103  ;;  %v3134_v46 = vstv %s7701_s11  ;;  %v3079_v31 = vadd.f32 %v3077_v52, %v3059_v8  ;;  %v3080_v25 = vadd.f32 %v3078_v44, %v3060_v7  ;;  %v3088_v51 = vsel %vm461_vm10, 0.0, %v3086_v41 }
 0x472   : > { %v3089_v62 = vsel %vm4390_vm2, 0.0, %v3085_v38  ;;  %v3090_v9 = vsel %vm4394_vm3, 0.0, %v3088_v51 }
 0x473   : > { %v3106_v14 = vpop.permute.xlu1 %3105  ;;  %v3093_v58 = vmul.f32 %v3092_v6, %v3089_v62  ;;  %v3099_v28 = vmul.f32 %v3098_v42, %v3089_v62  ;;  %v3094_v22 = vmul.f32 %v3092_v6, %v3090_v9  ;;  %v3100_v59 = vmul.f32 %v3098_v42, %v3090_v9 }
 0x474   : > { %v3107_v48 = vsel %vm617_vm11, %v3104_v16, %v3106_v14  ;;  %v3108_v60 = vsel %vm617_vm11, %v3106_v14, %v3104_v16 }
 0x475   : > { %v3113_v37 = vmul.f32 %v3112_v36, %v3107_v48  ;;  %v3095_v2 = vadd.f32 %v3093_v58, %v3073_v33  ;;  %v3101_v17 = vadd.f32 %v3099_v28, %v3079_v31  ;;  %v3110_v10 = vsel %vm461_vm10, 0.0, %v3108_v60  ;;  %v3124_v5 = vpop.permute.xlu0 %3123 }
 0x476   : > { %v3119_v56 = vmul.f32 %v3118_v30, %v3107_v48  ;;  %v3096_v11 = vadd.f32 %v3094_v22, %v3074_v55  ;;  %v3102_v18 = vadd.f32 %v3100_v59, %v3080_v25  ;;  %v3114_v21 = vmul.f32 %v3112_v36, %v3110_v10 }
 0x477   : > { %v3120_v26 = vmul.f32 %v3118_v30, %v3110_v10  ;;  %v3126_v63 = vpop.permute.xlu1 %3125  ;;  %v3115_v32 = vadd.f32 %v3113_v37, %v3095_v2 }
 0x478   : > { %v3127_v57 = vsel %vm638_vm12, %v3124_v5, %v3126_v63  ;;  %v3128_v45 = vsel %vm638_vm12, %v3126_v63, %v3124_v5  ;;  %v3121_v20 = vadd.f32 %v3119_v56, %v3101_v17  ;;  %v3116_v1 = vadd.f32 %v3114_v21, %v3096_v11 }
 0x479   : > { %v3130_v12 = vsel %vm461_vm10, 0.0, %v3128_v45  ;;  %v3131_v43 = vsel %vm4435_vm6, 0.0, %v3127_v57  ;;  %v3122_v15 = vadd.f32 %v3120_v26, %v3102_v18 }
 0x47a   : > { %v3132_v54 = vsel %vm4431_vm5, 0.0, %v3130_v12  ;;  %v3135_v19 = vmul.f32 %v3134_v46, %v3131_v43  ;;  %v3141_v0 = vmul.f32 %v3140_v34, %v3131_v43 }
 0x47b   : > { %v3136_v35 = vmul.f32 %v3134_v46, %v3132_v54  ;;  %v3142_v39 = vmul.f32 %v3140_v34, %v3132_v54 }
 0x47c   : > { %v3137_v50 = vadd.f32 %v3135_v19, %v3115_v32  ;;  %v3143_v3 = vadd.f32 %v3141_v0, %v3121_v20 }
 0x47d   : > { %v3138_v24 = vadd.f32 %v3136_v35, %v3116_v1  ;;  %v3144_v4 = vadd.f32 %v3142_v39, %v3122_v15 }
 0x47e   : > { %v3145_v47 = vsub.f32 %v3143_v3, %v3137_v50 }
 0x47f   : > { %v3146_v13 = vsub.f32 %v3144_v4, %v3138_v24 }
 0x480   : > { %v3147_v29 = vmul.f32 1.442695, %v3145_v47 }
 0x481   : > { %v3149_v6 = vmul.f32 1.442695, %v3146_v13 }
 0x482   : > { %3804 = vpow2.f32 %v3147_v29 }
 0x483   : > { %3806 = vpow2.f32 %v3149_v6 }
 0x48c   : > { %v3805_v27 = vpop.eup %3804 }
 0x48d   : > { %v3807_v42 = vpop.eup %3806  ;;  %v3151_v61 = vadd.f32 1.0, %v3805_v27 }
 0x48e   : > { %v3152_v40 = vadd.f32 1.0, %v3807_v42 }
 0x48f   : > { %3808 = vrcp.f32 %v3151_v61 }
 0x490   : > { %3810 = vrcp.f32 %v3152_v40 }
 0x499   : > { %v3809_v8 = vpop.eup %3808 }
 0x49a   : > { %v3811_v7 = vpop.eup %3810  ;;  %3157 = vst [vmem:[%s450_s4] sm:$0xff] %v3809_v8  ;;  %v3159_v53 = vsub.f32 1.0, %v3809_v8 }
 0x49b   : > { %3158 = vst [vmem:[%s450_s4 + $0x8] sm:$0xff] %v3811_v7  ;;  %v3160_v23 = vsub.f32 1.0, %v3811_v7 }
 0x49c   : > { %3161 = vst [vmem:[%s450_s4 + $0x10] sm:$0xff] %v3159_v53 }
 0x49d   : > { %3162 = vst [vmem:[%s450_s4 + $0x18] sm:$0xff] %v3160_v23 }
 0x49e   : > { %3975 = shalt.err (!%p3972_p8)
}
 0x49f   : > { %s3976_s23 = scalar_lea.hbm %s7754_s15, 512  ;;  %s3980_s0 = scalar_lea.hbm %s8513_s27, 1024 }
 0x4a0   : > { %p3977_p9 = scmp.ne.s32.totalorder %s7754_s15, %s3976_s23  ;;  %p3981_p11 = scmp.lt.u32.totalorder %s7754_s15, %s8513_s27 }
 0x4a1   : > { %p3982_p2 = scmp.lt.u32.totalorder %s3980_s0, %s3976_s23  ;;  %p3984_p4 = scmp.lt.u32.totalorder %s3976_s23, %s7754_s15 }
 0x4a2   : > { %p3978_p10 = pnand %p3977_p9, %p8514_p5 }
 0x4a3   : > { %p3983_p1 = por %p3982_p2, %p3981_p11 }
 0x4a4   : > { %p3979_p6 = pneg %p3978_p10 }
 0x4a5   : > { %p3985_p7 = por %p3984_p4, %p3983_p1 }
 0x4a7   : > { %p3986_p3 = pnand %p3985_p7, %p3979_p6 }
 0x4a9   : > { %3989 = shalt.err (!%p3986_p3)
}
 0x4aa   : > { %3703 = dma.vmem_to_hbm [thread:$0]  (%p8514_p5), %s7756_s13, 512, %s7754_s15, %s3164_s21  }
 0x4ab PF: > { %s8515_s9 = sld [smem:[#allocation26_spill]]  ;;  %s8516_s12 = sld [smem:[#allocation34_spill]] }
 0x4ac   : > { %s8517_s29 = sld [smem:[#allocation29_spill]] }
 0x4b1   : > { %s3190_s19 = sand.u32 1, %s8515_s9   ;;  %p8518_p12 = scmp.ne.s32.totalorder %s8516_s12, 0 }
 0x4b2   : > { %p8519_p13 = scmp.ge.s32.totalorder %s8517_s29, 2  ;;  %s3191_s1 = scalar_lea.sflag [#allocation4], %s3190_s19 }
 0x4b4   : > { %p3735_p0 = pnand %p8519_p13, %p8518_p12 }
 0x4b6   : > { %4031 = dma.done.wait (!%p3735_p0), %s3191_s1, 512  }
 0x4b7   : > { %4033 = vsyncadd (!%p3735_p0), %s3191_s1, 4294966784  ;;  %s8520_s12 = sld [smem:[#allocation31_spill]]  ;;  %s8521_s30 = sld [smem:[#allocation27_spill]] }
 0x4b8   : > { %s8522_s10 = sld [smem:[#allocation28_spill]]  ;;  %s8523_s11 = sld [smem:[#allocation32_spill]] }
 0x4bd   : > { %p27_p8 = scmp.ge.s32.totalorder %s8520_s12, 4  }
 0x4bf   :  { %29 = sbr.rel (!%p27_p8) target bundleno = 21 (0x15), region = 134 }
 0x4c6   :  { %3196 = vsyncpa [#allocation3], 1 }
 0x4c7   :  { %3198 = vsyncpa [#allocation3 + $0x1], 1 }
 0x4c8   :  { %3199 = vsyncpa [#allocation4], 1 }
 0x4c9   :  { %3201 = vsyncpa [#allocation4 + $0x1], 1 }
 0x4ca   :  { %3202 = vsyncpa [#allocation5], 1 }
 0x4cb   :  { %3204 = vsyncpa [#allocation5 + $0x1], 1 }
 0x4cc   :  { %3205 = vsyncpa [#allocation8], 1 }
 0x4cd   :  { %3206 = vsyncpa [#allocation11], 1 }
 0x4ce   :  { %3207 = vsyncpa [#allocation14], 1 }
 0x4cf   :  { %3208 = vsyncpa [#allocation17], 1 }

</bundles_post_ra>
